<compile_context>
chip_gen: v7x
topology: tpu7x:2x2x1
jax: 0.10.0
libtpu: 0.0.40
codegen_flags: <defaults>
</compile_context>

<pallas_src>
import functools
import math

import jax
import jax.numpy as jnp
from jax import lax
from jax.experimental import pallas as pl
from jax.experimental.pallas import tpu as pltpu

_EPS = 1e-5  # nn.GroupNorm default


def _attention_block_kernel(x_ref, mask_ref, segdn_ref, segup_ref, wqkv_ref,
                            params_ref, wproj_ref, out_ref, attn_ref, *,
                            groups, block_b, n, mm_dtype):
    # x_ref:     (C, block_b*n)       activations for block_b batch elements (also residual)
    # mask_ref:  (C, C)               0/1 group-membership mask (symmetric)
    # segdn_ref: (block_b*n, block_b) 0/1 spatial-segment indicator (column s = element s)
    # segup_ref: (block_b, block_b*n) its transpose (broadcast per-element stats back)
    # wqkv_ref:  (3C, C)    params_ref: (3C, 4) = [b_qkv | gamma | beta | b_proj]
    # wproj_ref: (C, C)     out_ref: (C, block_b*n)   attn_ref: VMEM scratch (C, block_b*n)
    C = x_ref.shape[0]
    cg = C // groups

    x = x_ref[...]                                   # (C, bb*n) f32
    params = params_ref[...]                         # (3C, 4)  f32
    b_qkv = params[:, 0:1]                           # (3C, 1)
    gamma = params[0:C, 1:2]                         # (C, 1)
    beta = params[0:C, 2:3]
    b_proj = params[0:C, 3:4]

    # ---------------- GroupNorm(groups, C) ----------------
    # Reduce over spatial axis first (tiny (C, bb) results), then aggregate / broadcast
    # per-group stats with tiny matmuls.  NOTE: single-pass E[x^2]-E[x]^2 variance
    # (fine for unit-scale activations; a two-pass formulation would serialise an
    # extra full-slab reduction on the critical path).
    seg_dn = segdn_ref[...]
    seg_up = segup_ref[...]
    mask = mask_ref[...]
    s1 = jnp.dot(x, seg_dn, preferred_element_type=jnp.float32)       # (C, bb) per-(c,b) sum
    s2 = jnp.dot(x * x, seg_dn, preferred_element_type=jnp.float32)   # (C, bb) per-(c,b) sum sq
    g1 = jnp.dot(mask, s1, preferred_element_type=jnp.float32)        # per-(group,b), per-channel rows
    g2 = jnp.dot(mask, s2, preferred_element_type=jnp.float32)
    inv_cnt = 1.0 / float(cg * n)
    mean = g1 * inv_cnt                                                # (C, bb)
    var = g2 * inv_cnt - mean * mean
    a = lax.rsqrt(var + _EPS) * gamma                                  # (C, bb)
    shift = beta - mean * a                                            # (C, bb)
    a_full = jnp.dot(a, seg_up, preferred_element_type=jnp.float32)    # (C, bb*n)
    shift_full = jnp.dot(shift, seg_up, preferred_element_type=jnp.float32)
    xn = x * a_full + shift_full                                       # (C, bb*n) f32

    # ---------------- qkv 1x1 conv: one (3C,C) x (C, bb*n) matmul ----------------
    qkv = jnp.dot(wqkv_ref[...], xn.astype(mm_dtype),
                  preferred_element_type=jnp.float32) + b_qkv          # (3C, bb*n) f32
    scale = float(C) ** -0.5
    q = qkv[0:C, :] * scale          # fold softmax scale into q: (C, bb*n) mul, not (n, n)
    k = qkv[C:2 * C, :]
    v = qkv[2 * C:3 * C, :]

    # ---------------- spatial self-attention, one element at a time ----------------
    for s in range(block_b):
        lo, hi = s * n, (s + 1) * n
        qs = q[:, lo:hi].astype(mm_dtype)                              # (C, n)
        ks = k[:, lo:hi].astype(mm_dtype)
        vs = v[:, lo:hi].astype(mm_dtype)
        # logits[i, j] = sum_c q[c, i] * k[c, j]  (contract channel axis, no explicit q.T)
        logits = lax.dot_general(qs, ks, (((0,), (0,)), ((), ())),
                                 preferred_element_type=jnp.float32)   # (n, n) f32
        m = jnp.max(logits, axis=-1, keepdims=True)
        e = jnp.exp(logits - m)
        denom = jnp.sum(e, axis=-1, keepdims=True)
        p = e * pl.reciprocal(denom, approx=True)                      # EUP recip + VPU mul
        # out[c, i] = sum_j v[c, j] * p[i, j]     (contract j axis, no explicit p.T)
        o = lax.dot_general(vs, p.astype(mm_dtype), (((1,), (1,)), ((), ())),
                            preferred_element_type=jnp.float32)        # (C, n) f32
        attn_ref[:, lo:hi] = o.astype(attn_ref.dtype)

    # ---------------- proj 1x1 conv + residual: one (C,C) x (C, bb*n) matmul ----------------
    y = jnp.dot(wproj_ref[...], attn_ref[...],
                preferred_element_type=jnp.float32) + b_proj           # (C, bb*n) f32
    out_ref[...] = (y + x).astype(out_ref.dtype)


def attention_block(x, gamma, beta, w_qkv, b_qkv, w_proj, b_proj, *,
                    groups=8, block_b=4, matmul_dtype=jnp.bfloat16):
    """Forward pass of AttentionBlock(channels=C) on x of shape (B, C, H, W)."""
    B, C, H, W = x.shape
    assert C % groups == 0, "GroupNorm requires channels divisible by num_groups"
    N = H * W

    # Batch tile that divides B; fall back to the whole batch if the block's lane width
    # would otherwise violate the 128-lane tiling constraint.
    bb = max(1, min(block_b, B))
    while B % bb:
        bb -= 1
    if (bb * N) % 128 != 0:
        bb = B
    grid = (B // bb,)

    # Lane-dense (C, B*N) slab; the transpose is wrapper-side layout plumbing.
    x_cn = jnp.transpose(x.reshape(B, C, N).astype(jnp.float32),
                         (1, 0, 2)).reshape(C, B * N)

    # GroupNorm group-membership mask and spatial-segment indicator matrices (all 0/1).
    gid = jnp.arange(C, dtype=jnp.int32) // (C // groups)
    group_mask = (gid[:, None] == gid[None, :]).astype(jnp.float32)            # (C, C)
    sid = jnp.arange(bb * N, dtype=jnp.int32) // N
    seg_dn = (sid[:, None] == jnp.arange(bb, dtype=jnp.int32)[None, :]).astype(jnp.float32)
    seg_up = seg_dn.T                                                          # (bb, bb*N)

    # Pack all per-channel vectors into one operand: [b_qkv | gamma | beta | b_proj].
    params = jnp.zeros((3 * C, 4), jnp.float32)
    params = params.at[:, 0].set(b_qkv.astype(jnp.float32))
    params = params.at[:C, 1].set(gamma.astype(jnp.float32))
    params = params.at[:C, 2].set(beta.astype(jnp.float32))
    params = params.at[:C, 3].set(b_proj.astype(jnp.float32))

    kernel = functools.partial(_attention_block_kernel, groups=groups,
                               block_b=bb, n=N, mm_dtype=matmul_dtype)

    # VMEM budgeting: per step we hold the in/out slabs plus the (N, N) attention work.
    # Raise the scoped limit only when needed; cap at v7x's 64 MiB per-core budget.
    # TODO(synk): tiled/online-softmax attention once attn_work nears the VMEM budget.
    slab = C * bb * N * 4
    attn_work = 3 * N * N * 4
    est = 8 * slab + attn_work
    cparams = {"dimension_semantics": ("parallel",)}
    if est > 24 * 1024 * 1024:
        cparams["vmem_limit_bytes"] = min(est + (8 << 20), 64 * 1024 * 1024)

    out_cn = pl.pallas_call(
        kernel,
        out_shape=jax.ShapeDtypeStruct((C, B * N), jnp.float32),
        grid=grid,
        in_specs=[
            pl.BlockSpec((C, bb * N), lambda g: (0, g)),       # activations, bb elements/step
            pl.BlockSpec((C, C), lambda g: (0, 0)),            # group mask (resident)
            pl.BlockSpec((bb * N, bb), lambda g: (0, 0)),      # segment down (resident)
            pl.BlockSpec((bb, bb * N), lambda g: (0, 0)),      # segment up (resident)
            pl.BlockSpec((3 * C, C), lambda g: (0, 0)),        # w_qkv (resident)
            pl.BlockSpec((3 * C, 4), lambda g: (0, 0)),        # packed biases/affine (resident)
            pl.BlockSpec((C, C), lambda g: (0, 0)),            # w_proj (resident)
        ],
        out_specs=pl.BlockSpec((C, bb * N), lambda g: (0, g)),
        scratch_shapes=[pltpu.VMEM((C, bb * N), matmul_dtype)],
        compiler_params=pltpu.CompilerParams(**cparams),
    )(x_cn, group_mask, seg_dn, seg_up, w_qkv.astype(matmul_dtype), params,
      w_proj.astype(matmul_dtype))

    return out_cn.reshape(C, B, N).transpose(1, 0, 2).reshape(B, C, H, W)


def _reference(x, gamma, beta, w_qkv, b_qkv, w_proj, b_proj, groups=8, eps=_EPS):
    """Pure-JAX mirror of the PyTorch AttentionBlock.forward."""
    B, C, H, W = x.shape
    N = H * W
    hp = jax.lax.Precision.HIGHEST

    xg = x.reshape(B, groups, C // groups, N)
    mean = xg.mean(axis=(2, 3), keepdims=True)
    var = ((xg - mean) ** 2).mean(axis=(2, 3), keepdims=True)
    xn = ((xg - mean) / jnp.sqrt(var + eps)).reshape(B, C, H, W)
    xn = xn * gamma.reshape(1, C, 1, 1) + beta.reshape(1, C, 1, 1)

    qkv = jnp.einsum('oc,bchw->bohw', w_qkv, xn, precision=hp) \
        + b_qkv.reshape(1, 3 * C, 1, 1)
    q, k, v = jnp.split(qkv.reshape(B, 3 * C, N), 3, axis=1)

    attn = jnp.einsum('bci,bcj->bij', q, k, precision=hp) * (C ** -0.5)
    attn = jax.nn.softmax(attn, axis=2)
    out = jnp.einsum('bij,bcj->bci', attn, v, precision=hp).reshape(B, C, H, W)
    y = jnp.einsum('oc,bchw->bohw', w_proj, out, precision=hp) \
        + b_proj.reshape(1, C, 1, 1)
    return y + x


if __name__ == "__main__":
    key = jax.random.PRNGKey(0)
    B, C, H, W = 8, 32, 16, 16   # channels divisible by 8 (GroupNorm(8, C)); grid=(2,)
    ks = jax.random.split(key, 7)

    x = jax.random.normal(ks[0], (B, C, H, W), dtype=jnp.float32)
    gamma = 1.0 + 0.1 * jax.random.normal(ks[1], (C,), dtype=jnp.float32)
    beta = 0.1 * jax.random.normal(ks[2], (C,), dtype=jnp.float32)
    w_qkv = jax.random.normal(ks[3], (3 * C, C), dtype=jnp.float32) / math.sqrt(C)
    b_qkv = 0.1 * jax.random.normal(ks[4], (3 * C,), dtype=jnp.float32)
    w_proj = jax.random.normal(ks[5], (C, C), dtype=jnp.float32) / math.sqrt(C)
    b_proj = 0.1 * jax.random.normal(ks[6], (C,), dtype=jnp.float32)

    # Default path: bf16 MXU operands, f32 accumulation / softmax.
    out_bf16 = attention_block(x, gamma, beta, w_qkv, b_qkv, w_proj, b_proj)
    # Full-f32 path for the tight numerical check.
    out_f32 = attention_block(x, gamma, beta, w_qkv, b_qkv, w_proj, b_proj,
                              matmul_dtype=jnp.float32)
    out_bf16, out_f32 = jax.block_until_ready((out_bf16, out_f32))

    ref = _reference(x, gamma, beta, w_qkv, b_qkv, w_proj, b_proj)
    assert out_bf16.shape == (B, C, H, W), out_bf16.shape
    assert out_f32.shape == (B, C, H, W), out_f32.shape

    # f32-MXU path must match the high-precision reference tightly.
    assert jnp.allclose(out_f32, ref, atol=2e-3, rtol=2e-3), \
        float(jnp.max(jnp.abs(out_f32 - ref)))
    # bf16-MXU path: bf16 operand rounding with f32 accumulate -> check relative error.
    rel = float(jnp.linalg.norm((out_bf16 - ref).ravel())
                / jnp.linalg.norm(ref.ravel()))
    assert rel < 2e-2, rel

    print("KERNEL_OK")
</pallas_src>

<mosaic_0001>
module attributes {stable_mosaic.version = 11 : i64} {
  func.func @_attention_block_kernel(%arg0: i32, %arg1: memref<32x1024xf32, #tpu.memory_space<vmem>>, %arg2: memref<32x32xf32, #tpu.memory_space<vmem>>, %arg3: memref<1024x4xf32, #tpu.memory_space<vmem>>, %arg4: memref<4x1024xf32, #tpu.memory_space<vmem>>, %arg5: memref<96x32xbf16, #tpu.memory_space<vmem>>, %arg6: memref<96x4xf32, #tpu.memory_space<vmem>>, %arg7: memref<32x32xbf16, #tpu.memory_space<vmem>>, %arg8: memref<32x1024xf32, #tpu.memory_space<vmem>>, %arg9: memref<32x1024xbf16, #tpu.memory_space<vmem>>) attributes {dimension_semantics = [#tpu.dimension_semantics<parallel>], iteration_bounds = array<i64: 2>, scalar_prefetch = 0 : i64, scratch_operands = 1 : i64, tpu.core_type = #tpu.core_type<tc>, window_params = [{transform_indices = @transform_0, window_bounds = array<i64: 32, 1024>}, {pipeline_mode = #tpu.pipeline_mode<synchronous>, transform_indices = @transform_1, window_bounds = array<i64: 32, 32>}, {pipeline_mode = #tpu.pipeline_mode<synchronous>, transform_indices = @transform_2, window_bounds = array<i64: 1024, 4>}, {pipeline_mode = #tpu.pipeline_mode<synchronous>, transform_indices = @transform_3, window_bounds = array<i64: 4, 1024>}, {pipeline_mode = #tpu.pipeline_mode<synchronous>, transform_indices = @transform_4, window_bounds = array<i64: 96, 32>}, {pipeline_mode = #tpu.pipeline_mode<synchronous>, transform_indices = @transform_5, window_bounds = array<i64: 96, 4>}, {pipeline_mode = #tpu.pipeline_mode<synchronous>, transform_indices = @transform_6, window_bounds = array<i64: 32, 32>}, {transform_indices = @transform_7, window_bounds = array<i64: 32, 1024>}]} {
    %c0 = arith.constant 0 : index
    %c0_0 = arith.constant 0 : index
    %0 = vector.load %arg1[%c0, %c0_0] : memref<32x1024xf32, #tpu.memory_space<vmem>>, vector<32x1024xf32>
    %c0_1 = arith.constant 0 : index
    %c0_2 = arith.constant 0 : index
    %1 = vector.load %arg6[%c0_1, %c0_2] : memref<96x4xf32, #tpu.memory_space<vmem>>, vector<96x4xf32>
    %2 = vector.extract_strided_slice %1 {offsets = [0, 0], sizes = [96, 1], strides = [1, 1]} : vector<96x4xf32> to vector<96x1xf32>
    %3 = vector.extract_strided_slice %1 {offsets = [0, 1], sizes = [32, 1], strides = [1, 1]} : vector<96x4xf32> to vector<32x1xf32>
    %4 = vector.extract_strided_slice %1 {offsets = [0, 2], sizes = [32, 1], strides = [1, 1]} : vector<96x4xf32> to vector<32x1xf32>
    %5 = vector.extract_strided_slice %1 {offsets = [0, 3], sizes = [32, 1], strides = [1, 1]} : vector<96x4xf32> to vector<32x1xf32>
    %c0_3 = arith.constant 0 : index
    %c0_4 = arith.constant 0 : index
    %6 = vector.load %arg3[%c0_3, %c0_4] : memref<1024x4xf32, #tpu.memory_space<vmem>>, vector<1024x4xf32>
    %c0_5 = arith.constant 0 : index
    %c0_6 = arith.constant 0 : index
    %7 = vector.load %arg4[%c0_5, %c0_6] : memref<4x1024xf32, #tpu.memory_space<vmem>>, vector<4x1024xf32>
    %c0_7 = arith.constant 0 : index
    %c0_8 = arith.constant 0 : index
    %8 = vector.load %arg2[%c0_7, %c0_8] : memref<32x32xf32, #tpu.memory_space<vmem>>, vector<32x32xf32>
    %cst = arith.constant dense<0.000000e+00> : vector<32x4xf32>
    %9 = tpu.matmul %0, %6, %cst {dimension_numbers = #tpu.dot_dimension_numbers<[1], [0], [0], [1], [0, 0, 1, 1], [], []>} : vector<32x1024xf32>, vector<1024x4xf32>, vector<32x4xf32> -> vector<32x4xf32>
    %10 = arith.mulf %0, %0 : vector<32x1024xf32>
    %cst_9 = arith.constant dense<0.000000e+00> : vector<32x4xf32>
    %11 = tpu.matmul %10, %6, %cst_9 {dimension_numbers = #tpu.dot_dimension_numbers<[1], [0], [0], [1], [0, 0, 1, 1], [], []>} : vector<32x1024xf32>, vector<1024x4xf32>, vector<32x4xf32> -> vector<32x4xf32>
    %cst_10 = arith.constant dense<0.000000e+00> : vector<32x4xf32>
    %12 = tpu.matmul %8, %9, %cst_10 {dimension_numbers = #tpu.dot_dimension_numbers<[1], [0], [0], [1], [0, 0, 1, 1], [], []>} : vector<32x32xf32>, vector<32x4xf32>, vector<32x4xf32> -> vector<32x4xf32>
    %cst_11 = arith.constant dense<0.000000e+00> : vector<32x4xf32>
    %13 = tpu.matmul %8, %11, %cst_11 {dimension_numbers = #tpu.dot_dimension_numbers<[1], [0], [0], [1], [0, 0, 1, 1], [], []>} : vector<32x32xf32>, vector<32x4xf32>, vector<32x4xf32> -> vector<32x4xf32>
    %cst_12 = arith.constant 9.765625E-4 : f32
    %14 = vector.broadcast %cst_12 : f32 to vector<32x4xf32>
    %15 = arith.mulf %12, %14 : vector<32x4xf32>
    %cst_13 = arith.constant 9.765625E-4 : f32
    %16 = vector.broadcast %cst_13 : f32 to vector<32x4xf32>
    %17 = arith.mulf %13, %16 : vector<32x4xf32>
    %18 = arith.mulf %15, %15 : vector<32x4xf32>
    %19 = arith.subf %17, %18 : vector<32x4xf32>
    %cst_14 = arith.constant 9.99999974E-6 : f32
    %20 = vector.broadcast %cst_14 : f32 to vector<32x4xf32>
    %21 = arith.addf %19, %20 : vector<32x4xf32>
    %22 = math.rsqrt %21 : vector<32x4xf32>
    %23 = vector.broadcast %3 : vector<32x1xf32> to vector<32x4xf32>
    %24 = arith.mulf %22, %23 : vector<32x4xf32>
    %25 = arith.mulf %15, %24 : vector<32x4xf32>
    %26 = vector.broadcast %4 : vector<32x1xf32> to vector<32x4xf32>
    %27 = arith.subf %26, %25 : vector<32x4xf32>
    %cst_15 = arith.constant dense<0.000000e+00> : vector<32x1024xf32>
    %28 = tpu.matmul %24, %7, %cst_15 {dimension_numbers = #tpu.dot_dimension_numbers<[1], [0], [0], [1], [0, 0, 1, 1], [], []>} : vector<32x4xf32>, vector<4x1024xf32>, vector<32x1024xf32> -> vector<32x1024xf32>
    %cst_16 = arith.constant dense<0.000000e+00> : vector<32x1024xf32>
    %29 = tpu.matmul %27, %7, %cst_16 {dimension_numbers = #tpu.dot_dimension_numbers<[1], [0], [0], [1], [0, 0, 1, 1], [], []>} : vector<32x4xf32>, vector<4x1024xf32>, vector<32x1024xf32> -> vector<32x1024xf32>
    %30 = arith.mulf %0, %28 : vector<32x1024xf32>
    %31 = arith.addf %30, %29 : vector<32x1024xf32>
    %c0_17 = arith.constant 0 : index
    %c0_18 = arith.constant 0 : index
    %32 = vector.load %arg5[%c0_17, %c0_18] : memref<96x32xbf16, #tpu.memory_space<vmem>>, vector<96x32xbf16>
    %33 = arith.truncf %31 : vector<32x1024xf32> to vector<32x1024xbf16>
    %cst_19 = arith.constant dense<0.000000e+00> : vector<96x1024xf32>
    %34 = tpu.matmul %32, %33, %cst_19 {dimension_numbers = #tpu.dot_dimension_numbers<[1], [0], [0], [1], [0, 0, 1, 1], [], []>} : vector<96x32xbf16>, vector<32x1024xbf16>, vector<96x1024xf32> -> vector<96x1024xf32>
    %35 = vector.broadcast %2 : vector<96x1xf32> to vector<96x1024xf32>
    %36 = arith.addf %34, %35 : vector<96x1024xf32>
    %37 = vector.extract_strided_slice %36 {offsets = [0, 0], sizes = [32, 1024], strides = [1, 1]} : vector<96x1024xf32> to vector<32x1024xf32>
    %cst_20 = arith.constant 0.176776692 : f32
    %38 = vector.broadcast %cst_20 : f32 to vector<32x1024xf32>
    %39 = arith.mulf %37, %38 : vector<32x1024xf32>
    %40 = vector.extract_strided_slice %36 {offsets = [32, 0], sizes = [32, 1024], strides = [1, 1]} : vector<96x1024xf32> to vector<32x1024xf32>
    %41 = vector.extract_strided_slice %36 {offsets = [64, 0], sizes = [32, 1024], strides = [1, 1]} : vector<96x1024xf32> to vector<32x1024xf32>
    %42 = vector.extract_strided_slice %39 {offsets = [0, 0], sizes = [32, 256], strides = [1, 1]} : vector<32x1024xf32> to vector<32x256xf32>
    %43 = arith.truncf %42 : vector<32x256xf32> to vector<32x256xbf16>
    %44 = vector.extract_strided_slice %40 {offsets = [0, 0], sizes = [32, 256], strides = [1, 1]} : vector<32x1024xf32> to vector<32x256xf32>
    %45 = arith.truncf %44 : vector<32x256xf32> to vector<32x256xbf16>
    %46 = vector.extract_strided_slice %41 {offsets = [0, 0], sizes = [32, 256], strides = [1, 1]} : vector<32x1024xf32> to vector<32x256xf32>
    %47 = arith.truncf %46 : vector<32x256xf32> to vector<32x256xbf16>
    %cst_21 = arith.constant dense<0.000000e+00> : vector<256x256xf32>
    %48 = tpu.matmul %43, %45, %cst_21 {dimension_numbers = #tpu.dot_dimension_numbers<[0], [0], [1], [1], [0, 1, 1, 1], [], []>} : vector<32x256xbf16>, vector<32x256xbf16>, vector<256x256xf32> -> vector<256x256xf32>
    %cst_22 = arith.constant dense<0xFF800000> : vector<256xf32>
    %49 = vector.multi_reduction <maximumf>, %48, %cst_22 [1] : vector<256x256xf32> to vector<256xf32>
    %50 = vector.shape_cast %49 : vector<256xf32> to vector<256x1xf32>
    %51 = vector.broadcast %50 : vector<256x1xf32> to vector<256x256xf32>
    %52 = arith.subf %48, %51 : vector<256x256xf32>
    %53 = math.exp %52 : vector<256x256xf32>
    %cst_23 = arith.constant dense<0.000000e+00> : vector<256xf32>
    %54 = vector.multi_reduction <add>, %53, %cst_23 [1] : vector<256x256xf32> to vector<256xf32>
    %55 = vector.shape_cast %54 : vector<256xf32> to vector<256x1xf32>
    %56 = tpu.reciprocal %55 {approx = true} : vector<256x1xf32> -> vector<256x1xf32>
    %57 = vector.broadcast %56 : vector<256x1xf32> to vector<256x256xf32>
    %58 = arith.mulf %53, %57 : vector<256x256xf32>
    %59 = arith.truncf %58 : vector<256x256xf32> to vector<256x256xbf16>
    %cst_24 = arith.constant dense<0.000000e+00> : vector<32x256xf32>
    %60 = tpu.matmul %47, %59, %cst_24 {dimension_numbers = #tpu.dot_dimension_numbers<[1], [1], [0], [0], [0, 0, 1, 0], [], []>} : vector<32x256xbf16>, vector<256x256xbf16>, vector<32x256xf32> -> vector<32x256xf32>
    %61 = arith.truncf %60 : vector<32x256xf32> to vector<32x256xbf16>
    %c0_25 = arith.constant 0 : index
    %c0_26 = arith.constant 0 : index
    %62 = vector.load %arg9[%c0_25, %c0_26] : memref<32x1024xbf16, #tpu.memory_space<vmem>>, vector<32x256xbf16>
    tpu.vector_store %arg9[%c0_25, %c0_26], %61 {strides = array<i32>} : memref<32x1024xbf16, #tpu.memory_space<vmem>>, vector<32x256xbf16>,
    %63 = vector.extract_strided_slice %39 {offsets = [0, 256], sizes = [32, 256], strides = [1, 1]} : vector<32x1024xf32> to vector<32x256xf32>
    %64 = arith.truncf %63 : vector<32x256xf32> to vector<32x256xbf16>
    %65 = vector.extract_strided_slice %40 {offsets = [0, 256], sizes = [32, 256], strides = [1, 1]} : vector<32x1024xf32> to vector<32x256xf32>
    %66 = arith.truncf %65 : vector<32x256xf32> to vector<32x256xbf16>
    %67 = vector.extract_strided_slice %41 {offsets = [0, 256], sizes = [32, 256], strides = [1, 1]} : vector<32x1024xf32> to vector<32x256xf32>
    %68 = arith.truncf %67 : vector<32x256xf32> to vector<32x256xbf16>
    %cst_27 = arith.constant dense<0.000000e+00> : vector<256x256xf32>
    %69 = tpu.matmul %64, %66, %cst_27 {dimension_numbers = #tpu.dot_dimension_numbers<[0], [0], [1], [1], [0, 1, 1, 1], [], []>} : vector<32x256xbf16>, vector<32x256xbf16>, vector<256x256xf32> -> vector<256x256xf32>
    %cst_28 = arith.constant dense<0xFF800000> : vector<256xf32>
    %70 = vector.multi_reduction <maximumf>, %69, %cst_28 [1] : vector<256x256xf32> to vector<256xf32>
    %71 = vector.shape_cast %70 : vector<256xf32> to vector<256x1xf32>
    %72 = vector.broadcast %71 : vector<256x1xf32> to vector<256x256xf32>
    %73 = arith.subf %69, %72 : vector<256x256xf32>
    %74 = math.exp %73 : vector<256x256xf32>
    %cst_29 = arith.constant dense<0.000000e+00> : vector<256xf32>
    %75 = vector.multi_reduction <add>, %74, %cst_29 [1] : vector<256x256xf32> to vector<256xf32>
    %76 = vector.shape_cast %75 : vector<256xf32> to vector<256x1xf32>
    %77 = tpu.reciprocal %76 {approx = true} : vector<256x1xf32> -> vector<256x1xf32>
    %78 = vector.broadcast %77 : vector<256x1xf32> to vector<256x256xf32>
    %79 = arith.mulf %74, %78 : vector<256x256xf32>
    %80 = arith.truncf %79 : vector<256x256xf32> to vector<256x256xbf16>
    %cst_30 = arith.constant dense<0.000000e+00> : vector<32x256xf32>
    %81 = tpu.matmul %68, %80, %cst_30 {dimension_numbers = #tpu.dot_dimension_numbers<[1], [1], [0], [0], [0, 0, 1, 0], [], []>} : vector<32x256xbf16>, vector<256x256xbf16>, vector<32x256xf32> -> vector<32x256xf32>
    %82 = arith.truncf %81 : vector<32x256xf32> to vector<32x256xbf16>
    %c0_31 = arith.constant 0 : index
    %c256 = arith.constant 256 : index
    %83 = vector.load %arg9[%c0_31, %c256] : memref<32x1024xbf16, #tpu.memory_space<vmem>>, vector<32x256xbf16>
    tpu.vector_store %arg9[%c0_31, %c256], %82 {strides = array<i32>} : memref<32x1024xbf16, #tpu.memory_space<vmem>>, vector<32x256xbf16>,
    %84 = vector.extract_strided_slice %39 {offsets = [0, 512], sizes = [32, 256], strides = [1, 1]} : vector<32x1024xf32> to vector<32x256xf32>
    %85 = arith.truncf %84 : vector<32x256xf32> to vector<32x256xbf16>
    %86 = vector.extract_strided_slice %40 {offsets = [0, 512], sizes = [32, 256], strides = [1, 1]} : vector<32x1024xf32> to vector<32x256xf32>
    %87 = arith.truncf %86 : vector<32x256xf32> to vector<32x256xbf16>
    %88 = vector.extract_strided_slice %41 {offsets = [0, 512], sizes = [32, 256], strides = [1, 1]} : vector<32x1024xf32> to vector<32x256xf32>
    %89 = arith.truncf %88 : vector<32x256xf32> to vector<32x256xbf16>
    %cst_32 = arith.constant dense<0.000000e+00> : vector<256x256xf32>
    %90 = tpu.matmul %85, %87, %cst_32 {dimension_numbers = #tpu.dot_dimension_numbers<[0], [0], [1], [1], [0, 1, 1, 1], [], []>} : vector<32x256xbf16>, vector<32x256xbf16>, vector<256x256xf32> -> vector<256x256xf32>
    %cst_33 = arith.constant dense<0xFF800000> : vector<256xf32>
    %91 = vector.multi_reduction <maximumf>, %90, %cst_33 [1] : vector<256x256xf32> to vector<256xf32>
    %92 = vector.shape_cast %91 : vector<256xf32> to vector<256x1xf32>
    %93 = vector.broadcast %92 : vector<256x1xf32> to vector<256x256xf32>
    %94 = arith.subf %90, %93 : vector<256x256xf32>
    %95 = math.exp %94 : vector<256x256xf32>
    %cst_34 = arith.constant dense<0.000000e+00> : vector<256xf32>
    %96 = vector.multi_reduction <add>, %95, %cst_34 [1] : vector<256x256xf32> to vector<256xf32>
    %97 = vector.shape_cast %96 : vector<256xf32> to vector<256x1xf32>
    %98 = tpu.reciprocal %97 {approx = true} : vector<256x1xf32> -> vector<256x1xf32>
    %99 = vector.broadcast %98 : vector<256x1xf32> to vector<256x256xf32>
    %100 = arith.mulf %95, %99 : vector<256x256xf32>
    %101 = arith.truncf %100 : vector<256x256xf32> to vector<256x256xbf16>
    %cst_35 = arith.constant dense<0.000000e+00> : vector<32x256xf32>
    %102 = tpu.matmul %89, %101, %cst_35 {dimension_numbers = #tpu.dot_dimension_numbers<[1], [1], [0], [0], [0, 0, 1, 0], [], []>} : vector<32x256xbf16>, vector<256x256xbf16>, vector<32x256xf32> -> vector<32x256xf32>
    %103 = arith.truncf %102 : vector<32x256xf32> to vector<32x256xbf16>
    %c0_36 = arith.constant 0 : index
    %c512 = arith.constant 512 : index
    %104 = vector.load %arg9[%c0_36, %c512] : memref<32x1024xbf16, #tpu.memory_space<vmem>>, vector<32x256xbf16>
    tpu.vector_store %arg9[%c0_36, %c512], %103 {strides = array<i32>} : memref<32x1024xbf16, #tpu.memory_space<vmem>>, vector<32x256xbf16>,
    %105 = vector.extract_strided_slice %39 {offsets = [0, 768], sizes = [32, 256], strides = [1, 1]} : vector<32x1024xf32> to vector<32x256xf32>
    %106 = arith.truncf %105 : vector<32x256xf32> to vector<32x256xbf16>
    %107 = vector.extract_strided_slice %40 {offsets = [0, 768], sizes = [32, 256], strides = [1, 1]} : vector<32x1024xf32> to vector<32x256xf32>
    %108 = arith.truncf %107 : vector<32x256xf32> to vector<32x256xbf16>
    %109 = vector.extract_strided_slice %41 {offsets = [0, 768], sizes = [32, 256], strides = [1, 1]} : vector<32x1024xf32> to vector<32x256xf32>
    %110 = arith.truncf %109 : vector<32x256xf32> to vector<32x256xbf16>
    %cst_37 = arith.constant dense<0.000000e+00> : vector<256x256xf32>
    %111 = tpu.matmul %106, %108, %cst_37 {dimension_numbers = #tpu.dot_dimension_numbers<[0], [0], [1], [1], [0, 1, 1, 1], [], []>} : vector<32x256xbf16>, vector<32x256xbf16>, vector<256x256xf32> -> vector<256x256xf32>
    %cst_38 = arith.constant dense<0xFF800000> : vector<256xf32>
    %112 = vector.multi_reduction <maximumf>, %111, %cst_38 [1] : vector<256x256xf32> to vector<256xf32>
    %113 = vector.shape_cast %112 : vector<256xf32> to vector<256x1xf32>
    %114 = vector.broadcast %113 : vector<256x1xf32> to vector<256x256xf32>
    %115 = arith.subf %111, %114 : vector<256x256xf32>
    %116 = math.exp %115 : vector<256x256xf32>
    %cst_39 = arith.constant dense<0.000000e+00> : vector<256xf32>
    %117 = vector.multi_reduction <add>, %116, %cst_39 [1] : vector<256x256xf32> to vector<256xf32>
    %118 = vector.shape_cast %117 : vector<256xf32> to vector<256x1xf32>
    %119 = tpu.reciprocal %118 {approx = true} : vector<256x1xf32> -> vector<256x1xf32>
    %120 = vector.broadcast %119 : vector<256x1xf32> to vector<256x256xf32>
    %121 = arith.mulf %116, %120 : vector<256x256xf32>
    %122 = arith.truncf %121 : vector<256x256xf32> to vector<256x256xbf16>
    %cst_40 = arith.constant dense<0.000000e+00> : vector<32x256xf32>
    %123 = tpu.matmul %110, %122, %cst_40 {dimension_numbers = #tpu.dot_dimension_numbers<[1], [1], [0], [0], [0, 0, 1, 0], [], []>} : vector<32x256xbf16>, vector<256x256xbf16>, vector<32x256xf32> -> vector<32x256xf32>
    %124 = arith.truncf %123 : vector<32x256xf32> to vector<32x256xbf16>
    %c0_41 = arith.constant 0 : index
    %c768 = arith.constant 768 : index
    %125 = vector.load %arg9[%c0_41, %c768] : memref<32x1024xbf16, #tpu.memory_space<vmem>>, vector<32x256xbf16>
    tpu.vector_store %arg9[%c0_41, %c768], %124 {strides = array<i32>} : memref<32x1024xbf16, #tpu.memory_space<vmem>>, vector<32x256xbf16>,
    %c0_42 = arith.constant 0 : index
    %c0_43 = arith.constant 0 : index
    %126 = vector.load %arg7[%c0_42, %c0_43] : memref<32x32xbf16, #tpu.memory_space<vmem>>, vector<32x32xbf16>
    %c0_44 = arith.constant 0 : index
    %c0_45 = arith.constant 0 : index
    %127 = vector.load %arg9[%c0_44, %c0_45] : memref<32x1024xbf16, #tpu.memory_space<vmem>>, vector<32x1024xbf16>
    %cst_46 = arith.constant dense<0.000000e+00> : vector<32x1024xf32>
    %128 = tpu.matmul %126, %127, %cst_46 {dimension_numbers = #tpu.dot_dimension_numbers<[1], [0], [0], [1], [0, 0, 1, 1], [], []>} : vector<32x32xbf16>, vector<32x1024xbf16>, vector<32x1024xf32> -> vector<32x1024xf32>
    %129 = vector.broadcast %5 : vector<32x1xf32> to vector<32x1024xf32>
    %130 = arith.addf %128, %129 : vector<32x1024xf32>
    %131 = arith.addf %130, %0 : vector<32x1024xf32>
    %c0_47 = arith.constant 0 : index
    %c0_48 = arith.constant 0 : index
    %132 = vector.load %arg8[%c0_47, %c0_48] : memref<32x1024xf32, #tpu.memory_space<vmem>>, vector<32x1024xf32>
    tpu.vector_store %arg8[%c0_47, %c0_48], %131 {strides = array<i32>} : memref<32x1024xf32, #tpu.memory_space<vmem>>, vector<32x1024xf32>,
    return
  }
  func.func @transform_0(%arg0: i32) -> (i32, i32) {
    %c0_i32 = arith.constant 0 : i32
    %c0_i32_0 = arith.constant 0 : i32
    return %c0_i32, %arg0 : i32, i32
  }
  func.func @transform_1(%arg0: i32) -> (i32, i32) {
    %c0_i32 = arith.constant 0 : i32
    %c0_i32_0 = arith.constant 0 : i32
    %c0_i32_1 = arith.constant 0 : i32
    return %c0_i32, %c0_i32_0 : i32, i32
  }
  func.func @transform_2(%arg0: i32) -> (i32, i32) {
    %c0_i32 = arith.constant 0 : i32
    %c0_i32_0 = arith.constant 0 : i32
    %c0_i32_1 = arith.constant 0 : i32
    return %c0_i32, %c0_i32_0 : i32, i32
  }
  func.func @transform_3(%arg0: i32) -> (i32, i32) {
    %c0_i32 = arith.constant 0 : i32
    %c0_i32_0 = arith.constant 0 : i32
    %c0_i32_1 = arith.constant 0 : i32
    return %c0_i32, %c0_i32_0 : i32, i32
  }
  func.func @transform_4(%arg0: i32) -> (i32, i32) {
    %c0_i32 = arith.constant 0 : i32
    %c0_i32_0 = arith.constant 0 : i32
    %c0_i32_1 = arith.constant 0 : i32
    return %c0_i32, %c0_i32_0 : i32, i32
  }
  func.func @transform_5(%arg0: i32) -> (i32, i32) {
    %c0_i32 = arith.constant 0 : i32
    %c0_i32_0 = arith.constant 0 : i32
    %c0_i32_1 = arith.constant 0 : i32
    return %c0_i32, %c0_i32_0 : i32, i32
  }
  func.func @transform_6(%arg0: i32) -> (i32, i32) {
    %c0_i32 = arith.constant 0 : i32
    %c0_i32_0 = arith.constant 0 : i32
    %c0_i32_1 = arith.constant 0 : i32
    return %c0_i32, %c0_i32_0 : i32, i32
  }
  func.func @transform_7(%arg0: i32) -> (i32, i32) {
    %c0_i32 = arith.constant 0 : i32
    %c0_i32_0 = arith.constant 0 : i32
    return %c0_i32, %arg0 : i32, i32
  }
}

</mosaic_0001>

<bundles_post_ra>
// kernel: tpu_custom_call.1
= control target key start
LH: loop header
LB: loop body
LE: loop exit
PB: predicated region body
PF: predicated region fallthrough
CT: control target
= control target key end

     0   :  { %12 = vsyncpa [#allocation5], 0  ;;  %s13012_s0 = inlined_call_operand.vmem [shape: f32[32,2048], index: 0, kind: input, shape index: {}]   ;;  %s13013_s1 = inlined_call_operand.vmem [shape: f32[32,32], index: 1, kind: input, shape index: {}]   ;;  %s13014_s2 = inlined_call_operand.vmem [shape: f32[1024,4], index: 2, kind: input, shape index: {}]   ;;  %s13015_s3 = inlined_call_operand.vmem [shape: f32[4,1024], index: 3, kind: input, shape index: {}]   ;;  %s13016_s4 = inlined_call_operand.vmem [shape: bf16[96,32], index: 4, kind: input, shape index: {}]   ;;  %s13017_s5 = inlined_call_operand.vmem [shape: f32[96,4], index: 5, kind: input, shape index: {}]   ;;  %s13018_s6 = inlined_call_operand.vmem [shape: bf16[32,32], index: 6, kind: input, shape index: {}]   ;;  %s13019_s7 = inlined_call_operand.hbm [shape: f32[32,2048], index: 7, kind: output, shape index: {}]  }
   0x1   :  { %14 = vsyncpa [#allocation5 + $0x1], 0  ;;  %s8581_s24 = smov 0   ;;  %s8583_s25 = smov 0  }
   0x2   :  { %s8585_s26 = smov 0   ;;  %s8587_s27 = smov 0  }
   0x3 LB: > { %s6712_s28 = sadd.s32 4294967295, %s8530_s27   ;;  %s6713_s29 = sadd.s32 4294967294, %s8530_s27   ;;  %s8530_s27 = sphi %s8587_s27, %s13842_s27   ;;  %s8526_s26 = sphi %s8585_s26, %s13841_s26   ;;  %s8522_s25 = sphi %s8583_s25, %s13840_s25   ;;  %s8518_s24 = sphi %s8581_s24, %s13839_s24  }
   0x4   : > { %s8604_s30 = sadd.s32 1, %s8530_s27   ;;  %s27_s8 = sadd.s32 1, %s8526_s26 }
   0x5   : > { %s24_s9 = ssub.s32 %s8530_s27, %s8604_s30  ;;  %p34_p0 = scmp.ne.s32.totalorder %s8526_s26, %s8522_s25 }
   0x6   : > { %p25_p1 = scmp.eq.s32.totalorder %s24_s9, 0  ;;  %p35_p2 = scmp.eq.s32.totalorder %s8530_s27, 0 }
   0x7   : > { %p190_p3 = scmp.eq.s32.totalorder %s6712_s28, 1  ;;  %p195_p4 = scmp.ne.s32.totalorder %s8522_s25, %s8518_s24 }
   0x8   : > { %s8617_s10 = scalar_select %p25_p1, %s8526_s26, %s27_s8  }
   0x9   : > { %p36_p5 = por %p35_p2, %p34_p0  ;;  %p8619_p6 = por %p190_p3, %p34_p0 }
   0xa   : > { %p196_p7 = scmp.eq.s32.totalorder %s6713_s29, 1  ;;  %p6715_p9 = scmp.ge.s32.totalorder %s8530_s27, 2 }
   0xc   : > { %p8623_p8 = por %p196_p7, %p195_p4  ;;  %230 = sbr.rel (%p6715_p9) target bundleno = 39 (0x27), region = 40 }
  0x13   : > { %233 = sbr.rel (!%p36_p5) target bundleno = 39 (0x27), region = 44  ;;  %s235_s13 = sand.u32 (%p36_p5), 1, %s8526_s26  }
  0x14   : > { %s6887_s14 = sshll.u32 (%p36_p5), %s8530_s27, 6  ;;  %s6716_s15 = sshll.u32 (%p36_p5), %s235_s13, 8 }
  0x15   : > { %s8635_s18 = scalar_lea.vmem (%p36_p5), %s13012_s0, %s6887_s14  ;;  %s8640_s19 = scalar_lea.vmem (%p36_p5), [#allocation3], %s6716_s15 }
  0x16   : > { %v253_v0 = vld [vmem:[%s8635_s18] sm:$0xff] (%p36_p5)  ;;  %v255_v1 = vld [vmem:[%s8635_s18 + $0x8] sm:$0xff] (%p36_p5)  ;;  %v257_v2 = vld [vmem:[%s8635_s18 + $0x10] sm:$0xff] (%p36_p5) }
  0x17   : > { %254 = vst [vmem:[%s8640_s19] sm:$0xff] (%p36_p5), %v253_v0  ;;  %256 = vst [vmem:[%s8640_s19 + $0x8] sm:$0xff] (%p36_p5), %v255_v1  ;;  %v259_v3 = vld [vmem:[%s8635_s18 + $0x18] sm:$0xff] (%p36_p5)  ;;  %v261_v4 = vld [vmem:[%s8635_s18 + $0x20] sm:$0xff] (%p36_p5) }
  0x18   : > { %258 = vst [vmem:[%s8640_s19 + $0x10] sm:$0xff] (%p36_p5), %v257_v2  ;;  %v263_v5 = vld [vmem:[%s8635_s18 + $0x28] sm:$0xff] (%p36_p5)  ;;  %260 = vst [vmem:[%s8640_s19 + $0x18] sm:$0xff] (%p36_p5), %v259_v3  ;;  %v265_v6 = vld [vmem:[%s8635_s18 + $0x30] sm:$0xff] (%p36_p5) }
  0x19   : > { %262 = vst [vmem:[%s8640_s19 + $0x20] sm:$0xff] (%p36_p5), %v261_v4  ;;  %264 = vst [vmem:[%s8640_s19 + $0x28] sm:$0xff] (%p36_p5), %v263_v5  ;;  %v267_v7 = vld [vmem:[%s8635_s18 + $0x38] sm:$0xff] (%p36_p5)  ;;  %v269_v8 = vld [vmem:[%s8635_s18 + $0x80] sm:$0xff] (%p36_p5) }
  0x1a   : > { %266 = vst [vmem:[%s8640_s19 + $0x30] sm:$0xff] %v265_v6  ;;  %268 = vst [vmem:[%s8640_s19 + $0x38] sm:$0xff] %v267_v7  ;;  %v271_v9 = vld [vmem:[%s8635_s18 + $0x88] sm:$0xff]  ;;  %v273_v10 = vld [vmem:[%s8635_s18 + $0x90] sm:$0xff] }
  0x1b   : > { %270 = vst [vmem:[%s8640_s19 + $0x40] sm:$0xff] %v269_v8  ;;  %v275_v11 = vld [vmem:[%s8635_s18 + $0x98] sm:$0xff]  ;;  %272 = vst [vmem:[%s8640_s19 + $0x48] sm:$0xff] %v271_v9  ;;  %v277_v12 = vld [vmem:[%s8635_s18 + $0xa0] sm:$0xff] }
  0x1c   : > { %274 = vst [vmem:[%s8640_s19 + $0x50] sm:$0xff] %v273_v10  ;;  %276 = vst [vmem:[%s8640_s19 + $0x58] sm:$0xff] %v275_v11  ;;  %v279_v13 = vld [vmem:[%s8635_s18 + $0xa8] sm:$0xff]  ;;  %v281_v14 = vld [vmem:[%s8635_s18 + $0xb0] sm:$0xff] }
  0x1d   : > { %278 = vst [vmem:[%s8640_s19 + $0x60] sm:$0xff] %v277_v12  ;;  %280 = vst [vmem:[%s8640_s19 + $0x68] sm:$0xff] %v279_v13  ;;  %v283_v15 = vld [vmem:[%s8635_s18 + $0xb8] sm:$0xff]  ;;  %v285_v16 = vld [vmem:[%s8635_s18 + $0x100] sm:$0xff] }
  0x1e   : > { %282 = vst [vmem:[%s8640_s19 + $0x70] sm:$0xff] %v281_v14  ;;  %v287_v17 = vld [vmem:[%s8635_s18 + $0x108] sm:$0xff]  ;;  %284 = vst [vmem:[%s8640_s19 + $0x78] sm:$0xff] %v283_v15  ;;  %v289_v18 = vld [vmem:[%s8635_s18 + $0x110] sm:$0xff] }
  0x1f   : > { %286 = vst [vmem:[%s8640_s19 + $0x80] sm:$0xff] %v285_v16  ;;  %288 = vst [vmem:[%s8640_s19 + $0x88] sm:$0xff] %v287_v17  ;;  %v291_v19 = vld [vmem:[%s8635_s18 + $0x118] sm:$0xff]  ;;  %v293_v20 = vld [vmem:[%s8635_s18 + $0x120] sm:$0xff] }
  0x20   : > { %290 = vst [vmem:[%s8640_s19 + $0x90] sm:$0xff] %v289_v18  ;;  %292 = vst [vmem:[%s8640_s19 + $0x98] sm:$0xff] %v291_v19  ;;  %v295_v21 = vld [vmem:[%s8635_s18 + $0x128] sm:$0xff]  ;;  %v297_v22 = vld [vmem:[%s8635_s18 + $0x130] sm:$0xff] }
  0x21   : > { %294 = vst [vmem:[%s8640_s19 + $0xa0] sm:$0xff] %v293_v20  ;;  %v299_v23 = vld [vmem:[%s8635_s18 + $0x138] sm:$0xff]  ;;  %296 = vst [vmem:[%s8640_s19 + $0xa8] sm:$0xff] %v295_v21  ;;  %v301_v24 = vld [vmem:[%s8635_s18 + $0x180] sm:$0xff] }
  0x22   : > { %298 = vst [vmem:[%s8640_s19 + $0xb0] sm:$0xff] %v297_v22  ;;  %300 = vst [vmem:[%s8640_s19 + $0xb8] sm:$0xff] %v299_v23  ;;  %v303_v25 = vld [vmem:[%s8635_s18 + $0x188] sm:$0xff]  ;;  %v305_v26 = vld [vmem:[%s8635_s18 + $0x190] sm:$0xff] }
  0x23   : > { %302 = vst [vmem:[%s8640_s19 + $0xc0] sm:$0xff] %v301_v24  ;;  %304 = vst [vmem:[%s8640_s19 + $0xc8] sm:$0xff] %v303_v25  ;;  %v307_v27 = vld [vmem:[%s8635_s18 + $0x198] sm:$0xff]  ;;  %v309_v28 = vld [vmem:[%s8635_s18 + $0x1a0] sm:$0xff] }
  0x24   : > { %306 = vst [vmem:[%s8640_s19 + $0xd0] sm:$0xff] %v305_v26  ;;  %v311_v29 = vld [vmem:[%s8635_s18 + $0x1a8] sm:$0xff]  ;;  %308 = vst [vmem:[%s8640_s19 + $0xd8] sm:$0xff] %v307_v27  ;;  %v313_v30 = vld [vmem:[%s8635_s18 + $0x1b0] sm:$0xff] }
  0x25   : > { %310 = vst [vmem:[%s8640_s19 + $0xe0] sm:$0xff] %v309_v28  ;;  %312 = vst [vmem:[%s8640_s19 + $0xe8] sm:$0xff] %v311_v29  ;;  %v315_v31 = vld [vmem:[%s8635_s18 + $0x1b8] sm:$0xff] }
  0x26   : > { %314 = vst [vmem:[%s8640_s19 + $0xf0] sm:$0xff] %v313_v30  ;;  %316 = vst [vmem:[%s8640_s19 + $0xf8] sm:$0xff] %v315_v31 }
  0x27 PF: > { %p6719_p10 = scmp.ge.s32.totalorder %s8530_s27, 1  ;;  %p321_p11 = scmp.lt.s32.totalorder %s8530_s27, 3 }
  0x29   : > { %p322_p12 = pnand %p6719_p10, %p321_p11 }
  0x2b   : > { %325 = sbr.rel (%p322_p12) target bundleno = 4723 (0x1273), region = 67 }
  0x32   : > { %v422_v32 = vld [vmem:[%s13014_s2 + $0x80] sm:$0xff]  ;;  %v423_v33 = vld [vmem:[%s13014_s2 + $0x88] sm:$0xff]  ;;  %v424_v43 = vld [vmem:[%s13014_s2 + $0x90] sm:$0xff]  ;;  %s328_s22 = sand.u32 1, %s8522_s25   ;;  %vm1254_vm0 = vcmask 261120   ;;  %vm1530_vm1 = vcmask 1043456  }
  0x33   : > { %v454_v34 = vld [vmem:[%s13014_s2 + $0x180] sm:$0xff]  ;;  %v8714_v35 = vpack.c.bf16 %v423_v33, %v422_v32  ;;  %v455_v36 = vld [vmem:[%s13014_s2 + $0x188] sm:$0xff]  ;;  %v425_v45 = vld [vmem:[%s13014_s2 + $0x98] sm:$0xff]  ;;  %s8890_s9 = sshll.u32 %s328_s22, 8  ;;  %vm1517_vm2 = vcmask 31744   ;;  %s12970_s17 = scalar_lea.sflag [#allocation5], %s328_s22 }
  0x34   : > { %v406_v37 = vld [vmem:[%s13014_s2] sm:$0xff]  ;;  %v407_v38 = vld [vmem:[%s13014_s2 + $0x8] sm:$0xff]  ;;  %v8725_v39 = vpack.c.bf16 %v455_v36, %v454_v34  ;;  %v456_v46 = vld [vmem:[%s13014_s2 + $0x190] sm:$0xff]  ;;  %v8752_v48 = vpack.c.bf16 %v425_v45, %v424_v43  ;;  %s8947_s29 = scalar_lea.vmem [#allocation3], %s8890_s9  ;;  %s12866_s13 = scalar_lea.vmem [#allocation4], %s8890_s9 }
  0x35   : > { %v8727_v40 = vpack.c.bf16 %v407_v38, %v406_v37  ;;  %v438_v41 = vld [vmem:[%s13014_s2 + $0x100] sm:$0xff]  ;;  %v439_v42 = vld [vmem:[%s13014_s2 + $0x108] sm:$0xff]  ;;  %7286 = vmatprep.subr.bf16.mxu0 %v8714_v35  ;;  %v457_v47 = vld [vmem:[%s13014_s2 + $0x198] sm:$0xff]  ;;  %s6888_s9 = sshll.u32 %s6712_s28, 10  ;;  %s6645_s14 = sshll.u32 %s12866_s13, 4  ;;  %s12962_s14 = int_to_ptr.vmem [resolvable:$true] %s6645_s14 }
  0x36   : > { %v8739_v44 = vpack.c.bf16 %v439_v42, %v438_v41  ;;  %7318 = vmatprep.subr.bf16.mxu1 %v8725_v39  ;;  %v8754_v49 = vpack.c.bf16 %v457_v47, %v456_v46  ;;  %v408_v50 = vld [vmem:[%s13014_s2 + $0x10] sm:$0xff]  ;;  %v409_v51 = vld [vmem:[%s13014_s2 + $0x18] sm:$0xff]  ;;  %v426_v55 = vld [vmem:[%s13014_s2 + $0xa0] sm:$0xff]  ;;  %s12958_s16 = scalar_lea.hbm %s13019_s7, %s6888_s9  ;;  %s8468_s18 = scalar_lea.vmem %s12962_s14, 4096 }
  0x37   : > { %7288 = vmatpush3.bf16.msra.mxu0 %v8727_v40  ;;  %v440_v52 = vld [vmem:[%s13014_s2 + $0x110] sm:$0xff]  ;;  %v8766_v53 = vpack.c.bf16 %v409_v51, %v408_v50  ;;  %v441_v54 = vld [vmem:[%s13014_s2 + $0x118] sm:$0xff]  ;;  %v427_v56 = vld [vmem:[%s13014_s2 + $0xa8] sm:$0xff]  ;;  %p8469_p13 = scmp.ne.s32.totalorder %s12962_s14, %s8468_s18  ;;  %s8537_s19 = smov [#allocation4]  }
  0x38   : > { %7320 = vmatpush3.bf16.msra.mxu1 %v8739_v44  ;;  %7290 = vmatprep.subr.bf16.mxu0 %v8752_v48  ;;  %v8779_v57 = vpack.c.bf16 %v441_v54, %v440_v52  ;;  %v8781_v58 = vpack.c.bf16 %v427_v56, %v426_v55  ;;  %v458_v59 = vld [vmem:[%s13014_s2 + $0x1a0] sm:$0xff]  ;;  %v459_v60 = vld [vmem:[%s13014_s2 + $0x1a8] sm:$0xff]  ;;  %v428_v3 = vld [vmem:[%s13014_s2 + $0xb0] sm:$0xff]  ;;  %s8472_s20 = sshll.u32 %s8537_s19, 4  ;;  %s8473_s20 = int_to_ptr.vmem [resolvable:$false] %s8472_s20 }
  0x39   : > { %7322 = vmatprep.subr.bf16.mxu1 %v8754_v49  ;;  %v410_v61 = vld [vmem:[%s13014_s2 + $0x20] sm:$0xff]  ;;  %v8792_v62 = vpack.c.bf16 %v459_v60, %v458_v59  ;;  %v411_v63 = vld [vmem:[%s13014_s2 + $0x28] sm:$0xff]  ;;  %v429_v4 = vld [vmem:[%s13014_s2 + $0xb8] sm:$0xff]  ;;  %p8470_p0 = pnand %p8469_p13, %p8619_p6  ;;  %s8474_s21 = scalar_lea.vmem %s8473_s20, 8192 }
  0x3a   : > { %v442_v0 = vld [vmem:[%s13014_s2 + $0x120] sm:$0xff]  ;;  %v443_v1 = vld [vmem:[%s13014_s2 + $0x128] sm:$0xff]  ;;  %v8804_v2 = vpack.c.bf16 %v411_v63, %v410_v61  ;;  %v460_v5 = vld [vmem:[%s13014_s2 + $0x1b0] sm:$0xff]  ;;  %v8819_v7 = vpack.c.bf16 %v429_v4, %v428_v3  ;;  %p8475_p2 = scmp.lt.s32.totalorder %s12962_s14, %s8473_s20  ;;  %p8476_p3 = scmp.lt.s32.totalorder %s8474_s21, %s8468_s18 }
  0x3b   : > { %7292 = vmatpush3.bf16.msra.mxu0 %v8766_v53  ;;  %v8817_v6 = vpack.c.bf16 %v443_v1, %v442_v0  ;;  %v461_v8 = vld [vmem:[%s13014_s2 + $0x1b8] sm:$0xff]  ;;  %v412_v9 = vld [vmem:[%s13014_s2 + $0x30] sm:$0xff]  ;;  %v430_v14 = vld [vmem:[%s13014_s2 + $0xc0] sm:$0xff]  ;;  %p8471_p1 = pneg %p8470_p0 }
  0x3c   : > { %7324 = vmatpush3.bf16.msra.mxu1 %v8779_v57  ;;  %7294 = vmatprep.subr.bf16.mxu0 %v8781_v58  ;;  %v413_v10 = vld [vmem:[%s13014_s2 + $0x38] sm:$0xff]  ;;  %v8831_v11 = vpack.c.bf16 %v461_v8, %v460_v5  ;;  %v444_v12 = vld [vmem:[%s13014_s2 + $0x130] sm:$0xff]  ;;  %v431_v15 = vld [vmem:[%s13014_s2 + $0xc8] sm:$0xff]  ;;  %p8477_p4 = por %p8476_p3, %p8475_p2 }
  0x3d   : > { %7326 = vmatprep.subr.bf16.mxu1 %v8792_v62  ;;  %v445_v13 = vld [vmem:[%s13014_s2 + $0x138] sm:$0xff]  ;;  %v462_v16 = vld [vmem:[%s13014_s2 + $0x1c0] sm:$0xff]  ;;  %v463_v17 = vld [vmem:[%s13014_s2 + $0x1c8] sm:$0xff]  ;;  %v8852_v18 = vpack.c.bf16 %v413_v10, %v412_v9  ;;  %v8859_v20 = vpack.c.bf16 %v431_v15, %v430_v14 }
  0x3e   : > { %v8857_v19 = vpack.c.bf16 %v445_v13, %v444_v12  ;;  %v414_v21 = vld [vmem:[%s13014_s2 + $0x40] sm:$0xff]  ;;  %v415_v22 = vld [vmem:[%s13014_s2 + $0x48] sm:$0xff]  ;;  %v8871_v24 = vpack.c.bf16 %v463_v17, %v462_v16  ;;  %v432_v26 = vld [vmem:[%s13014_s2 + $0xd0] sm:$0xff]  ;;  %p8478_p5 = pnand %p8477_p4, %p8471_p1 }
  0x3f   : > { %7296 = vmatpush3.bf16.msra.mxu0 %v8804_v2  ;;  %v446_v23 = vld [vmem:[%s13014_s2 + $0x140] sm:$0xff]  ;;  %v447_v25 = vld [vmem:[%s13014_s2 + $0x148] sm:$0xff]  ;;  %v433_v27 = vld [vmem:[%s13014_s2 + $0xd8] sm:$0xff]  ;;  %v8893_v30 = vpack.c.bf16 %v415_v22, %v414_v21 }
  0x40   : > { %7328 = vmatpush3.bf16.msra.mxu1 %v8817_v6  ;;  %7298 = vmatprep.subr.bf16.mxu0 %v8819_v7  ;;  %v464_v28 = vld [vmem:[%s13014_s2 + $0x1d0] sm:$0xff]  ;;  %v465_v29 = vld [vmem:[%s13014_s2 + $0x1d8] sm:$0xff]  ;;  %v8897_v31 = vpack.c.bf16 %v447_v25, %v446_v23  ;;  %v8899_v32 = vpack.c.bf16 %v433_v27, %v432_v26  ;;  %v434_v41 = vld [vmem:[%s13014_s2 + $0xe0] sm:$0xff] }
  0x41   : > { %7330 = vmatprep.subr.bf16.mxu1 %v8831_v11  ;;  %v416_v33 = vld [vmem:[%s13014_s2 + $0x50] sm:$0xff]  ;;  %v417_v34 = vld [vmem:[%s13014_s2 + $0x58] sm:$0xff]  ;;  %v8911_v37 = vpack.c.bf16 %v465_v29, %v464_v28  ;;  %v435_v42 = vld [vmem:[%s13014_s2 + $0xe8] sm:$0xff] }
  0x42   : > { %v448_v36 = vld [vmem:[%s13014_s2 + $0x150] sm:$0xff]  ;;  %v449_v38 = vld [vmem:[%s13014_s2 + $0x158] sm:$0xff]  ;;  %v466_v43 = vld [vmem:[%s13014_s2 + $0x1e0] sm:$0xff]  ;;  %v8929_v46 = vpack.c.bf16 %v417_v34, %v416_v33  ;;  %v8941_v52 = vpack.c.bf16 %v435_v42, %v434_v41 }
  0x43   : > { %7300 = vmatpush3.bf16.msra.mxu0 %v8852_v18  ;;  %v467_v45 = vld [vmem:[%s13014_s2 + $0x1e8] sm:$0xff]  ;;  %v418_v47 = vld [vmem:[%s13014_s2 + $0x60] sm:$0xff]  ;;  %v8939_v51 = vpack.c.bf16 %v449_v38, %v448_v36  ;;  %v8953_v56 = vld [vmem:[%s8947_s29 + $0x18] sm:$0xff] }
  0x44   : > { %7332 = vmatpush3.bf16.msra.mxu1 %v8857_v19  ;;  %7302 = vmatprep.subr.bf16.mxu0 %v8859_v20  ;;  %v419_v50 = vld [vmem:[%s13014_s2 + $0x68] sm:$0xff]  ;;  %v450_v54 = vld [vmem:[%s13014_s2 + $0x160] sm:$0xff]  ;;  %v8956_v59 = vpack.c.bf16 %v467_v45, %v466_v43  ;;  %v436_v61 = vld [vmem:[%s13014_s2 + $0xf0] sm:$0xff] }
  0x45   : > { %7334 = vmatprep.subr.bf16.mxu1 %v8871_v24  ;;  %v8950_v55 = vld [vmem:[%s8947_s29 + $0x8] sm:$0xff]  ;;  %v437_v63 = vld [vmem:[%s13014_s2 + $0xf8] sm:$0xff]  ;;  %v468_v0 = vld [vmem:[%s13014_s2 + $0x1f0] sm:$0xff]  ;;  %691 = vmatprep.mubr.f32.mxu1 %v8953_v56  ;;  %v8976_v3 = vpack.c.bf16 %v419_v50, %v418_v47 }
  0x46   : > { %v451_v60 = vld [vmem:[%s13014_s2 + $0x168] sm:$0xff]  ;;  %606 = vmatprep.mubr.f32.mxu0 %v8950_v55  ;;  %v469_v1 = vld [vmem:[%s13014_s2 + $0x1f8] sm:$0xff]  ;;  %v8982_v5 = vpack.c.bf16 %v437_v63, %v436_v61  ;;  %v420_v8 = vld [vmem:[%s13014_s2 + $0x70] sm:$0xff] }
  0x47   : > { %7304 = vmatpush3.bf16.msra.mxu0 %v8893_v30  ;;  %v8980_v4 = vpack.c.bf16 %v451_v60, %v450_v54  ;;  %v421_v9 = vld [vmem:[%s13014_s2 + $0x78] sm:$0xff]  ;;  %v452_v10 = vld [vmem:[%s13014_s2 + $0x170] sm:$0xff]  ;;  %v8994_v12 = vpack.c.bf16 %v469_v1, %v468_v0  ;;  %v486_v14 = vld [vmem:[%s13014_s2 + $0x280] sm:$0xff] }
  0x48   : > { %7336 = vmatpush3.bf16.msra.mxu1 %v8897_v31  ;;  %7306 = vmatprep.subr.bf16.mxu0 %v8899_v32  ;;  %v453_v13 = vld [vmem:[%s13014_s2 + $0x178] sm:$0xff]  ;;  %v487_v15 = vld [vmem:[%s13014_s2 + $0x288] sm:$0xff]  ;;  %v518_v16 = vld [vmem:[%s13014_s2 + $0x380] sm:$0xff]  ;;  %v9012_v21 = vpack.c.bf16 %v421_v9, %v420_v8 }
  0x49   : > { %7338 = vmatprep.subr.bf16.mxu1 %v8911_v37  ;;  %v519_v17 = vld [vmem:[%s13014_s2 + $0x388] sm:$0xff]  ;;  %v9016_v22 = vpack.c.bf16 %v453_v13, %v452_v10  ;;  %v9018_v23 = vpack.c.bf16 %v487_v15, %v486_v14  ;;  %v470_v25 = vld [vmem:[%s13014_s2 + $0x200] sm:$0xff]  ;;  %v488_v33 = vld [vmem:[%s13014_s2 + $0x290] sm:$0xff] }
  0x4a   : > { %v471_v26 = vld [vmem:[%s13014_s2 + $0x208] sm:$0xff]  ;;  %v502_v27 = vld [vmem:[%s13014_s2 + $0x300] sm:$0xff]  ;;  %v9030_v28 = vpack.c.bf16 %v519_v17, %v518_v16  ;;  %v489_v34 = vld [vmem:[%s13014_s2 + $0x298] sm:$0xff] }
  0x4b   : > { %7308 = vmatpush3.bf16.msra.mxu0 %v8929_v46  ;;  %v503_v29 = vld [vmem:[%s13014_s2 + $0x308] sm:$0xff]  ;;  %v520_v36 = vld [vmem:[%s13014_s2 + $0x390] sm:$0xff]  ;;  %v521_v38 = vld [vmem:[%s13014_s2 + $0x398] sm:$0xff]  ;;  %v9054_v43 = vpack.c.bf16 %v471_v26, %v470_v25  ;;  %v9060_v47 = vpack.c.bf16 %v489_v34, %v488_v33 }
  0x4c   : > { %7340 = vmatpush3.bf16.msra.mxu1 %v8939_v51  ;;  %7310 = vmatprep.subr.bf16.mxu0 %v8941_v52  ;;  %v9049_v41 = vld [vmem:[%s8947_s29] sm:$0xff]  ;;  %v9052_v42 = vld [vmem:[%s8947_s29 + $0x10] sm:$0xff]  ;;  %v9058_v45 = vpack.c.bf16 %v503_v29, %v502_v27  ;;  %v473_v54 = vld [vmem:[%s13014_s2 + $0x218] sm:$0xff]  ;;  %v9072_v61 = vpack.c.bf16 %v521_v38, %v520_v36 }
  0x4d   : > { %7342 = vmatprep.subr.bf16.mxu1 %v8956_v59  ;;  %13256 = vst [vmem:[#allocation8_spill] sm:$0xff] %v9060_v47  ;;  %v472_v50 = vld [vmem:[%s13014_s2 + $0x210] sm:$0xff]  ;;  %v505_v63 = vld [vmem:[%s13014_s2 + $0x318] sm:$0xff]  ;;  %v490_v0 = vld [vmem:[%s13014_s2 + $0x2a0] sm:$0xff] }
  0x4e   : > { %13255 = vst [vmem:[#allocation7_spill] sm:$0xff] %v9058_v45  ;;  %v504_v60 = vld [vmem:[%s13014_s2 + $0x310] sm:$0xff]  ;;  %13257 = vst [vmem:[#allocation9_spill] sm:$0xff] %v9072_v61  ;;  %v491_v1 = vld [vmem:[%s13014_s2 + $0x2a8] sm:$0xff]  ;;  %v9095_v13 = vpack.c.bf16 %v473_v54, %v472_v50 }
  0x4f   : > { %7312 = vmatpush3.bf16.msra.mxu0 %v8976_v3  ;;  %v522_v8 = vld [vmem:[%s13014_s2 + $0x3a0] sm:$0xff]  ;;  %v523_v9 = vld [vmem:[%s13014_s2 + $0x3a8] sm:$0xff]  ;;  %v9101_v15 = vld [vmem:[%s8947_s29 + $0x58] sm:$0xff]  ;;  %v9108_v17 = vpack.c.bf16 %v505_v63, %v504_v60  ;;  %v9110_v25 = vpack.c.bf16 %v491_v1, %v490_v0 }
  0x50   : > { %7344 = vmatpush3.bf16.msra.mxu1 %v8980_v4  ;;  %7314 = vmatprep.subr.bf16.mxu0 %v8982_v5  ;;  %v474_v10 = vld [vmem:[%s13014_s2 + $0x220] sm:$0xff]  ;;  %13258 = vst [vmem:[#allocation10_spill] sm:$0xff] %v9095_v13  ;;  %v9098_v14 = vld [vmem:[%s8947_s29 + $0x48] sm:$0xff]  ;;  %v9119_v29 = vld [vmem:[%s8947_s29 + $0x50] sm:$0xff]  ;;  %v9122_v33 = vpack.c.bf16 %v523_v9, %v522_v8 }
  0x51   : > { %7346 = vmatprep.subr.bf16.mxu1 %v8994_v12  ;;  %v9104_v16 = vld [vmem:[%s8947_s29 + $0x40] sm:$0xff]  ;;  %13259 = vst [vmem:[#allocation11_spill] sm:$0xff] %v9108_v17  ;;  %13260 = vst [vmem:[#allocation12_spill] sm:$0xff] %v9110_v25  ;;  %v475_v26 = vld [vmem:[%s13014_s2 + $0x228] sm:$0xff] }
  0x52   : > { %v506_v27 = vld [vmem:[%s13014_s2 + $0x320] sm:$0xff]  ;;  %13261 = vst [vmem:[#allocation13_spill] sm:$0xff] %v9122_v33  ;;  %v507_v34 = vld [vmem:[%s13014_s2 + $0x328] sm:$0xff]  ;;  %v492_v36 = vld [vmem:[%s13014_s2 + $0x2b0] sm:$0xff]  ;;  %v9146_v63 = vpack.c.bf16 %v475_v26, %v474_v10 }
  0x53   : > { %7316 = vmatpush3.bf16.msra.mxu0 %v9012_v21  ;;  %v493_v38 = vld [vmem:[%s13014_s2 + $0x2b8] sm:$0xff]  ;;  %v524_v50 = vld [vmem:[%s13014_s2 + $0x3b0] sm:$0xff]  ;;  %v9150_v0 = vld [vmem:[%s8947_s29 + $0x88] sm:$0xff]  ;;  %v9160_v9 = vpack.c.bf16 %v507_v34, %v506_v27 }
  0x54   : > { %7348 = vmatpush3.bf16.msra.mxu1 %v9016_v22  ;;  %7350 = vmatprep.subr.bf16.mxu0 %v9018_v23  ;;  %v525_v54 = vld [vmem:[%s13014_s2 + $0x3b8] sm:$0xff]  ;;  %v476_v60 = vld [vmem:[%s13014_s2 + $0x230] sm:$0xff]  ;;  %13262 = vst [vmem:[#allocation14_spill] sm:$0xff] %v9146_v63  ;;  %13263 = vst [vmem:[#allocation15_spill] sm:$0xff] %v9150_v0 }
  0x55   : > { %7382 = vmatprep.subr.bf16.mxu1 %v9030_v28  ;;  %v9153_v1 = vld [vmem:[%s8947_s29 + $0x98] sm:$0xff]  ;;  %v9156_v8 = vld [vmem:[%s8947_s29 + $0x80] sm:$0xff]  ;;  %13266 = vst [vmem:[#allocation18_spill] sm:$0xff] %v9160_v9  ;;  %v508_v26 = vld [vmem:[%s13014_s2 + $0x330] sm:$0xff] }
  0x56   : > { %607 = vmatmul.mubr.f32.vlgmr.msra.gmra.mrb[0].mxu0 %v9049_v41  ;;  %13264 = vst [vmem:[#allocation16_spill] sm:$0xff] %v9153_v1  ;;  %13265 = vst [vmem:[#allocation17_spill] sm:$0xff] %v9156_v8  ;;  %v477_v10 = vld [vmem:[%s13014_s2 + $0x238] sm:$0xff]  ;;  %v494_v34 = vld [vmem:[%s13014_s2 + $0x2c0] sm:$0xff] }
  0x57   : > { %692 = vmatmul.mubr.f32.vlgmr.msra.gmra.mrb[0].mxu1 %v9052_v42  ;;  %7352 = vmatpush3.bf16.msra.mxu0 %v9054_v43  ;;  %v509_v27 = vld [vmem:[%s13014_s2 + $0x338] sm:$0xff] }
  0x58   : > { %7384 = vmatpush3.bf16.msra.mxu1 %v9058_v45  ;;  %7354 = vmatprep.subr.bf16.mxu0 %v9060_v47  ;;  %v9208_v47 = vld [vmem:[%s8947_s29 + $0xc0] sm:$0xff]  ;;  %v9212_v45 = vpack.c.bf16 %v509_v27, %v508_v26  ;;  %v511_v26 = vld [vmem:[%s13014_s2 + $0x348] sm:$0xff]  ;;  %v496_v27 = vld [vmem:[%s13014_s2 + $0x2d0] sm:$0xff] }
  0x59   : > { %7386 = vmatprep.subr.bf16.mxu1 %v9072_v61  ;;  %611 = vmatprep.mubr.f32.mxu0 %v9098_v14  ;;  %v9162_v61 = vpack.c.bf16 %v493_v38, %v492_v36  ;;  %v495_v36 = vld [vmem:[%s13014_s2 + $0x2c8] sm:$0xff]  ;;  %v526_v38 = vld [vmem:[%s13014_s2 + $0x3c0] sm:$0xff]  ;;  %13273 = vst [vmem:[#allocation25_spill] sm:$0xff] %v9208_v47 }
  0x5a   : > { %696 = vmatprep.mubr.f32.mxu1 %v9101_v15  ;;  %612 = vmatmul.mubr.f32.gmra.mrb[2].mxu0 %v9104_v16  ;;  %13274 = vst [vmem:[#allocation26_spill] sm:$0xff] %v9212_v45 }
  0x5b   : > { %7356 = vmatpush3.bf16.msra.mxu0 %v9095_v13  ;;  %697 = vmatmul.mubr.f32.gmra.mrb[2].mxu1 %v9119_v29  ;;  %13267 = vst [vmem:[#allocation19_spill] sm:$0xff] %v9162_v61  ;;  %v9171_v13 = vld [vmem:[%s8947_s29 + $0x90] sm:$0xff] }
  0x5c   : > { %7388 = vmatpush3.bf16.msra.mxu1 %v9108_v17  ;;  %7358 = vmatprep.subr.bf16.mxu0 %v9110_v25  ;;  %13268 = vst [vmem:[#allocation20_spill] sm:$0xff] %v9171_v13  ;;  %v9174_v25 = vpack.c.bf16 %v525_v54, %v524_v50  ;;  %v527_v50 = vld [vmem:[%s13014_s2 + $0x3c8] sm:$0xff]  ;;  %v478_v54 = vld [vmem:[%s13014_s2 + $0x240] sm:$0xff] }
  0x5d   : > { %7390 = vmatprep.subr.bf16.mxu1 %v9122_v33  ;;  %616 = vmatprep.mubr.f32.mxu0 %v9150_v0  ;;  %v9198_v33 = vpack.c.bf16 %v477_v10, %v476_v60  ;;  %v9202_v17 = vld [vmem:[%s8947_s29 + $0xc8] sm:$0xff]  ;;  %v9205_v0 = vld [vmem:[%s8947_s29 + $0xd8] sm:$0xff]  ;;  %v510_v10 = vld [vmem:[%s13014_s2 + $0x340] sm:$0xff] }
  0x5e   : > { %13269 = vst [vmem:[#allocation21_spill] sm:$0xff] %v9174_v25  ;;  %701 = vmatprep.mubr.f32.mxu1 %v9153_v1  ;;  %617 = vmatmul.mubr.f32.gmra.mrb[4].mxu0 %v9156_v8  ;;  %13271 = vst [vmem:[#allocation23_spill] sm:$0xff] %v9202_v17  ;;  %v9214_v1 = vpack.c.bf16 %v495_v36, %v494_v34  ;;  %v479_v60 = vld [vmem:[%s13014_s2 + $0x248] sm:$0xff]  ;;  %v497_v34 = vld [vmem:[%s13014_s2 + $0x2d8] sm:$0xff] }
  0x5f   : > { %7360 = vmatpush3.bf16.msra.mxu0 %v9146_v63  ;;  %13270 = vst [vmem:[#allocation22_spill] sm:$0xff] %v9198_v33  ;;  %702 = vmatmul.mubr.f32.gmra.mrb[4].mxu1 %v9171_v13  ;;  %13272 = vst [vmem:[#allocation24_spill] sm:$0xff] %v9205_v0  ;;  %v9223_v63 = vld [vmem:[%s8947_s29 + $0xd0] sm:$0xff]  ;;  %v533_v13 = vld [vmem:[%s13014_s2 + $0x3f8] sm:$0xff] }
  0x60   : > { %7392 = vmatpush3.bf16.msra.mxu1 %v9160_v9  ;;  %7362 = vmatprep.subr.bf16.mxu0 %v9162_v61  ;;  %13275 = vst [vmem:[#allocation27_spill] sm:$0xff] %v9214_v1  ;;  %13276 = vst [vmem:[#allocation28_spill] sm:$0xff] %v9223_v63  ;;  %v9226_v9 = vpack.c.bf16 %v527_v50, %v526_v38  ;;  %v528_v36 = vld [vmem:[%s13014_s2 + $0x3d0] sm:$0xff]  ;;  %v529_v38 = vld [vmem:[%s13014_s2 + $0x3d8] sm:$0xff]  ;;  %v9247_v50 = vpack.c.bf16 %v479_v60, %v478_v54 }
  0x61   : > { %7394 = vmatprep.subr.bf16.mxu1 %v9174_v25  ;;  %621 = vmatprep.mubr.f32.mxu0 %v9202_v17  ;;  %v480_v25 = vld [vmem:[%s13014_s2 + $0x250] sm:$0xff]  ;;  %v9254_v61 = vld [vmem:[%s8947_s29 + $0x28] sm:$0xff]  ;;  %v9257_v17 = vld [vmem:[%s8947_s29 + $0x38] sm:$0xff] }
  0x62   : > { %13277 = vst [vmem:[#allocation29_spill] sm:$0xff] %v9226_v9  ;;  %706 = vmatprep.mubr.f32.mxu1 %v9205_v0  ;;  %622 = vmatmul.mubr.f32.gmra.mrb[6].mxu0 %v9208_v47  ;;  %13278 = vst [vmem:[#allocation30_spill] sm:$0xff] %v9247_v50  ;;  %v9261_v0 = vpack.c.bf16 %v511_v26, %v510_v10  ;;  %v9263_v47 = vpack.c.bf16 %v497_v34, %v496_v27  ;;  %v481_v54 = vld [vmem:[%s13014_s2 + $0x258] sm:$0xff]  ;;  %v512_v60 = vld [vmem:[%s13014_s2 + $0x350] sm:$0xff] }
  0x63   : > { %7364 = vmatpush3.bf16.msra.mxu0 %v9198_v33  ;;  %707 = vmatmul.mubr.f32.gmra.mrb[6].mxu1 %v9223_v63  ;;  %13279 = vst [vmem:[#allocation31_spill] sm:$0xff] %v9254_v61  ;;  %13280 = vst [vmem:[#allocation32_spill] sm:$0xff] %v9257_v17  ;;  %v513_v33 = vld [vmem:[%s13014_s2 + $0x358] sm:$0xff]  ;;  %v498_v10 = vld [vmem:[%s13014_s2 + $0x2e0] sm:$0xff] }
  0x64   : > { %7396 = vmatpush3.bf16.msra.mxu1 %v9212_v45  ;;  %7366 = vmatprep.subr.bf16.mxu0 %v9214_v1  ;;  %13281 = vst [vmem:[#allocation33_spill] sm:$0xff] %v9263_v47  ;;  %v9275_v45 = vpack.c.bf16 %v529_v38, %v528_v36  ;;  %v499_v26 = vld [vmem:[%s13014_s2 + $0x2e8] sm:$0xff]  ;;  %v530_v27 = vld [vmem:[%s13014_s2 + $0x3e0] sm:$0xff]  ;;  %v500_v63 = vld [vmem:[%s13014_s2 + $0x2f0] sm:$0xff] }
  0x65   : > { %7398 = vmatprep.subr.bf16.mxu1 %v9226_v9  ;;  %776 = vmatprep.mubr.f32.mxu0 %v9254_v61  ;;  %v531_v34 = vld [vmem:[%s13014_s2 + $0x3e8] sm:$0xff]  ;;  %v482_v36 = vld [vmem:[%s13014_s2 + $0x260] sm:$0xff]  ;;  %v9298_v9 = vpack.c.bf16 %v481_v54, %v480_v25  ;;  %v9314_v25 = vpack.c.bf16 %v513_v33, %v512_v60  ;;  %v9316_v54 = vpack.c.bf16 %v499_v26, %v498_v10  ;;  %v485_v33 = vld [vmem:[%s13014_s2 + $0x278] sm:$0xff] }
  0x66   : > { %v483_v38 = vld [vmem:[%s13014_s2 + $0x268] sm:$0xff]  ;;  %861 = vmatprep.mubr.f32.mxu1 %v9257_v17  ;;  %v514_v1 = vld [vmem:[%s13014_s2 + $0x360] sm:$0xff]  ;;  %v501_v17 = vld [vmem:[%s13014_s2 + $0x2f8] sm:$0xff]  ;;  %v9325_v8 = vpack.c.bf16 %v531_v34, %v530_v27 }
  0x67   : > { %7368 = vmatpush3.bf16.msra.mxu0 %v9247_v50  ;;  %v515_v61 = vld [vmem:[%s13014_s2 + $0x368] sm:$0xff]  ;;  %v532_v50 = vld [vmem:[%s13014_s2 + $0x3f0] sm:$0xff]  ;;  %v9334_v60 = vpack.c.bf16 %v483_v38, %v482_v36  ;;  %v9343_v27 = vpack.c.bf16 %v501_v17, %v500_v63  ;;  %v517_v36 = vld [vmem:[%s13014_s2 + $0x378] sm:$0xff] }
  0x68   : > { %7400 = vmatpush3.bf16.msra.mxu1 %v9261_v0  ;;  %7370 = vmatprep.subr.bf16.mxu0 %v9263_v47  ;;  %v484_v47 = vld [vmem:[%s13014_s2 + $0x270] sm:$0xff]  ;;  %v9341_v26 = vpack.c.bf16 %v515_v61, %v514_v1  ;;  %v9346_v34 = vpack.c.bf16 %v533_v13, %v532_v50  ;;  %v9361_v13 = vld [vmem:[%s8947_s29 + $0x20] sm:$0xff]  ;;  %v9370_v17 = vld [vmem:[%s8947_s29 + $0x68] sm:$0xff] }
  0x69   : > { %7402 = vmatprep.subr.bf16.mxu1 %v9275_v45  ;;  %v516_v10 = vld [vmem:[%s13014_s2 + $0x370] sm:$0xff]  ;;  %v9352_v38 = vpack.c.bf16 %v485_v33, %v484_v47  ;;  %v9376_v63 = vld [vmem:[%s8947_s29 + $0x60] sm:$0xff]  ;;  %v9379_v1 = vld [vmem:[%s8947_s29 + $0x78] sm:$0xff] }
  0x6a   : > { %v9356_v61 = vpack.c.bf16 %v517_v36, %v516_v10  ;;  %v9366_v47 = vld [vmem:[%s8947_s29 + $0x30] sm:$0xff]  ;;  %v13301_v33 = vld [vmem:[#allocation31_spill] sm:$0xff]  ;;  %v13302_v36 = vld [vmem:[#allocation32_spill] sm:$0xff] }
  0x6b   : > { %7372 = vmatpush3.bf16.msra.mxu0 %v9298_v9  ;;  %v13300_v50 = vld [vmem:[#allocation21_spill] sm:$0xff]  ;;  %v887_v10 = vmul.f32 %v13301_v33, %v13301_v33 }
  0x6c   : > { %7404 = vmatpush3.bf16.msra.mxu1 %v9314_v25  ;;  %7374 = vmatprep.subr.bf16.mxu0 %v9316_v54 }
  0x6d   : > { %7406 = vmatprep.subr.bf16.mxu1 %v9325_v8 }
  0x6f   : > { %7376 = vmatpush3.bf16.msra.mxu0 %v9334_v60 }
  0x70   : > { %7408 = vmatpush3.bf16.msra.mxu1 %v9341_v26  ;;  %7378 = vmatprep.subr.bf16.mxu0 %v9343_v27 }
  0x71   : > { %7410 = vmatprep.subr.bf16.mxu1 %v9346_v34 }
  0x73   : > { %7380 = vmatpush3.bf16.msra.mxu0 %v9352_v38 }
  0x74   : > { %7412 = vmatpush3.bf16.msra.mxu1 %v9356_v61  ;;  %7414 = vmatprep.subr.bf16.mxu0 %v8714_v35  ;;  %v9384_v35 = vld [vmem:[%s8947_s29 + $0x70] sm:$0xff] }
  0x75   : > { %7446 = vmatprep.subr.bf16.mxu1 %v8725_v39  ;;  %v9389_v39 = vld [vmem:[%s8947_s29 + $0xa8] sm:$0xff] }
  0x76   : > { %777 = vmatmul.mubr.f32.vlgmr.msra.gmra.mrb[8].mxu0 %v9361_v13 }
  0x77   : > { %862 = vmatmul.mubr.f32.vlgmr.msra.gmra.mrb[8].mxu1 %v9366_v47  ;;  %7416 = vmatpush3.bf16.msra.mxu0 %v8727_v40  ;;  %v9396_v40 = vld [vmem:[%s8947_s29 + $0xa0] sm:$0xff] }
  0x78   : > { %7448 = vmatpush3.bf16.msra.mxu1 %v8739_v44  ;;  %781 = vmatprep.mubr.f32.mxu0 %v9370_v17  ;;  %v9399_v44 = vld [vmem:[%s8947_s29 + $0xb8] sm:$0xff] }
  0x79   : > { %7418 = vmatprep.subr.bf16.mxu0 %v8752_v48  ;;  %7450 = vmatprep.subr.bf16.mxu1 %v8754_v49  ;;  %v9404_v48 = vld [vmem:[%s8947_s29 + $0xb0] sm:$0xff]  ;;  %v9409_v49 = vld [vmem:[%s8947_s29 + $0xe8] sm:$0xff] }
  0x7a   : > { %782 = vmatmul.mubr.f32.gmra.mrb[10].mxu0 %v9376_v63  ;;  %866 = vmatprep.mubr.f32.mxu1 %v9379_v1 }
  0x7b   : > { %7420 = vmatpush3.bf16.msra.mxu0 %v8766_v53  ;;  %867 = vmatmul.mubr.f32.gmra.mrb[10].mxu1 %v9384_v35  ;;  %v9416_v53 = vld [vmem:[%s8947_s29 + $0xe0] sm:$0xff] }
  0x7c   : > { %7452 = vmatpush3.bf16.msra.mxu1 %v8779_v57  ;;  %786 = vmatprep.mubr.f32.mxu0 %v9389_v39  ;;  %v9419_v57 = vld [vmem:[%s8947_s29 + $0xf8] sm:$0xff] }
  0x7d   : > { %7422 = vmatprep.subr.bf16.mxu0 %v8781_v58  ;;  %7454 = vmatprep.subr.bf16.mxu1 %v8792_v62  ;;  %v9424_v58 = vld [vmem:[%s8947_s29 + $0xf0] sm:$0xff]  ;;  %v883_v62 = vmul.f32 %v8950_v55, %v8950_v55 }
  0x7e   : > { %787 = vmatmul.mubr.f32.gmra.mrb[12].mxu0 %v9396_v40  ;;  %871 = vmatprep.mubr.f32.mxu1 %v9399_v44 }
  0x7f   : > { %7424 = vmatpush3.bf16.msra.mxu0 %v8804_v2  ;;  %872 = vmatmul.mubr.f32.gmra.mrb[12].mxu1 %v9404_v48  ;;  %v885_v2 = vmul.f32 %v8953_v56, %v8953_v56  ;;  %v13288_v56 = vld [vmem:[#allocation10_spill] sm:$0xff] }
  0x80   : > { %7456 = vmatpush3.bf16.msra.mxu1 %v8817_v6  ;;  %791 = vmatprep.mubr.f32.mxu0 %v9409_v49  ;;  %v882_v6 = vmul.f32 %v9049_v41, %v9049_v41  ;;  %v13295_v41 = vld [vmem:[#allocation25_spill] sm:$0xff] }
  0x81   : > { %7426 = vmatprep.subr.bf16.mxu0 %v8819_v7  ;;  %7458 = vmatprep.subr.bf16.mxu1 %v8831_v11  ;;  %v884_v7 = vmul.f32 %v9052_v42, %v9052_v42  ;;  %v891_v11 = vmul.f32 %v9098_v14, %v9098_v14  ;;  %v906_v42 = vmul.f32 %v13295_v41, %v13295_v41  ;;  %v13297_v14 = vld [vmem:[#allocation28_spill] sm:$0xff] }
  0x82   : > { %792 = vmatmul.mubr.f32.gmra.mrb[14].mxu0 %v9416_v53  ;;  %876 = vmatprep.mubr.f32.mxu1 %v9419_v57 }
  0x83   : > { %7428 = vmatpush3.bf16.msra.mxu0 %v8852_v18  ;;  %877 = vmatmul.mubr.f32.gmra.mrb[14].mxu1 %v9424_v58  ;;  %v893_v18 = vmul.f32 %v9101_v15, %v9101_v15  ;;  %v908_v15 = vmul.f32 %v13297_v14, %v13297_v14 }
  0x84   : > { %7460 = vmatpush3.bf16.msra.mxu1 %v8857_v19  ;;  %7430 = vmatprep.subr.bf16.mxu0 %v8859_v20  ;;  %v890_v19 = vmul.f32 %v9104_v16, %v9104_v16  ;;  %v892_v20 = vmul.f32 %v9119_v29, %v9119_v29  ;;  %v13298_v16 = vld [vmem:[#allocation18_spill] sm:$0xff]  ;;  %v13299_v29 = vld [vmem:[#allocation19_spill] sm:$0xff] }
  0x85   : > { %7462 = vmatprep.subr.bf16.mxu1 %v8871_v24  ;;  %978 = vmatprep.mubr.f32.mxu0 %v883_v62  ;;  %v13282_v24 = vld [vmem:[#allocation7_spill] sm:$0xff]  ;;  %v889_v62 = vmul.f32 %v13302_v36, %v13302_v36 }
  0x86   : > { %1063 = vmatprep.mubr.f32.mxu1 %v885_v2  ;;  %v13303_v2 = vld [vmem:[#allocation22_spill] sm:$0xff] }
  0x87   : > { %7432 = vmatpush3.bf16.msra.mxu0 %v8893_v30  ;;  %v13283_v30 = vld [vmem:[#allocation8_spill] sm:$0xff] }
  0x88   : > { %7464 = vmatpush3.bf16.msra.mxu1 %v8897_v31  ;;  %7434 = vmatprep.subr.bf16.mxu0 %v8899_v32  ;;  %v13284_v31 = vld [vmem:[#allocation9_spill] sm:$0xff]  ;;  %v13285_v32 = vld [vmem:[#allocation15_spill] sm:$0xff] }
  0x89   : > { %7466 = vmatprep.subr.bf16.mxu1 %v8911_v37  ;;  %v899_v37 = vmul.f32 %v13285_v32, %v13285_v32 }
  0x8b   : > { %7436 = vmatpush3.bf16.msra.mxu0 %v8929_v46  ;;  %v13286_v46 = vld [vmem:[#allocation16_spill] sm:$0xff] }
  0x8c   : > { %7468 = vmatpush3.bf16.msra.mxu1 %v8939_v51  ;;  %7438 = vmatprep.subr.bf16.mxu0 %v8941_v52  ;;  %v901_v51 = vmul.f32 %v13286_v46, %v13286_v46  ;;  %v13287_v52 = vld [vmem:[#allocation17_spill] sm:$0xff] }
  0x8d   : > { %7470 = vmatprep.subr.bf16.mxu1 %v8956_v59  ;;  %v898_v55 = vmul.f32 %v13287_v52, %v13287_v52  ;;  %v13289_v59 = vld [vmem:[#allocation20_spill] sm:$0xff]  ;;  %v8533_v52 = vmov 2  }
  0x8f   : > { %7440 = vmatpush3.bf16.msra.mxu0 %v8976_v3  ;;  %v900_v3 = vmul.f32 %v13289_v59, %v13289_v59 }
  0x90   : > { %7472 = vmatpush3.bf16.msra.mxu1 %v8980_v4  ;;  %7442 = vmatprep.subr.bf16.mxu0 %v8982_v5  ;;  %v13290_v4 = vld [vmem:[#allocation11_spill] sm:$0xff]  ;;  %v13291_v5 = vld [vmem:[#allocation12_spill] sm:$0xff] }
  0x91   : > { %7474 = vmatprep.subr.bf16.mxu1 %v8994_v12  ;;  %v13292_v12 = vld [vmem:[#allocation13_spill] sm:$0xff] }
  0x93   : > { %7444 = vmatpush3.bf16.msra.mxu0 %v9012_v21  ;;  %v13293_v21 = vld [vmem:[#allocation23_spill] sm:$0xff] }
  0x94   : > { %7476 = vmatpush3.bf16.msra.mxu1 %v9016_v22  ;;  %7478 = vmatprep.subr.bf16.mxu0 %v9018_v23  ;;  %v907_v22 = vmul.f32 %v13293_v21, %v13293_v21  ;;  %v13294_v23 = vld [vmem:[#allocation24_spill] sm:$0xff] }
  0x95   : > { %7510 = vmatprep.subr.bf16.mxu1 %v9030_v28  ;;  %v909_v28 = vmul.f32 %v13294_v23, %v13294_v23 }
  0x96   : > { %979 = vmatmul.mubr.f32.vlgmr.msra.gmra.mrb[16].mxu0 %v882_v6  ;;  %v13304_v6 = vld [vmem:[#allocation26_spill] sm:$0xff] }
  0x97   : > { %1064 = vmatmul.mubr.f32.vlgmr.msra.gmra.mrb[16].mxu1 %v884_v7  ;;  %7480 = vmatpush3.bf16.msra.mxu0 %v9054_v43  ;;  %v13296_v43 = vld [vmem:[#allocation14_spill] sm:$0xff]  ;;  %v13305_v7 = vld [vmem:[#allocation27_spill] sm:$0xff] }
  0x98   : > { %7512 = vmatpush3.bf16.msra.mxu1 %v13282_v24  ;;  %7482 = vmatprep.subr.bf16.mxu0 %v13283_v30 }
  0x99   : > { %7514 = vmatprep.subr.bf16.mxu1 %v13284_v31  ;;  %983 = vmatprep.mubr.f32.mxu0 %v891_v11  ;;  %v13306_v11 = vld [vmem:[#allocation29_spill] sm:$0xff] }
  0x9a   : > { %1068 = vmatprep.mubr.f32.mxu1 %v893_v18  ;;  %984 = vmatmul.mubr.f32.gmra.mrb[18].mxu0 %v890_v19  ;;  %v13307_v18 = vld [vmem:[#allocation30_spill] sm:$0xff]  ;;  %v13308_v19 = vld [vmem:[#allocation33_spill] sm:$0xff] }
  0x9b   : > { %7484 = vmatpush3.bf16.msra.mxu0 %v13288_v56  ;;  %1069 = vmatmul.mubr.f32.gmra.mrb[18].mxu1 %v892_v20 }
  0x9c   : > { %7516 = vmatpush3.bf16.msra.mxu1 %v13290_v4  ;;  %7486 = vmatprep.subr.bf16.mxu0 %v13291_v5 }
  0x9d   : > { %7518 = vmatprep.subr.bf16.mxu1 %v13292_v12  ;;  %988 = vmatprep.mubr.f32.mxu0 %v899_v37 }
  0x9e   : > { %1073 = vmatprep.mubr.f32.mxu1 %v901_v51  ;;  %989 = vmatmul.mubr.f32.gmra.mrb[20].mxu0 %v898_v55 }
  0x9f   : > { %7488 = vmatpush3.bf16.msra.mxu0 %v13296_v43  ;;  %1074 = vmatmul.mubr.f32.gmra.mrb[20].mxu1 %v900_v3 }
  0xa0   : > { %7520 = vmatpush3.bf16.msra.mxu1 %v13298_v16  ;;  %7490 = vmatprep.subr.bf16.mxu0 %v13299_v29 }
  0xa1   : > { %7522 = vmatprep.subr.bf16.mxu1 %v13300_v50  ;;  %993 = vmatprep.mubr.f32.mxu0 %v907_v22 }
  0xa2   : > { %1078 = vmatprep.mubr.f32.mxu1 %v909_v28  ;;  %994 = vmatmul.mubr.f32.gmra.mrb[22].mxu0 %v906_v42 }
  0xa3   : > { %7492 = vmatpush3.bf16.msra.mxu0 %v13303_v2  ;;  %1079 = vmatmul.mubr.f32.gmra.mrb[22].mxu1 %v908_v15 }
  0xa4   : > { %7524 = vmatpush3.bf16.msra.mxu1 %v13304_v6  ;;  %7494 = vmatprep.subr.bf16.mxu0 %v13305_v7 }
  0xa5   : > { %7526 = vmatprep.subr.bf16.mxu1 %v13306_v11  ;;  %1148 = vmatprep.mubr.f32.mxu0 %v887_v10 }
  0xa6   : > { %1233 = vmatprep.mubr.f32.mxu1 %v889_v62 }
  0xa7   : > { %7496 = vmatpush3.bf16.msra.mxu0 %v13307_v18 }
  0xa8   : > { %7528 = vmatpush3.bf16.msra.mxu1 %v9261_v0  ;;  %7498 = vmatprep.subr.bf16.mxu0 %v13308_v19  ;;  %v886_v0 = vmul.f32 %v9361_v13, %v9361_v13  ;;  %v910_v13 = vmul.f32 %v9416_v53, %v9416_v53 }
  0xa9   : > { %7530 = vmatprep.subr.bf16.mxu1 %v9275_v45  ;;  %v888_v45 = vmul.f32 %v9366_v47, %v9366_v47  ;;  %v912_v47 = vmul.f32 %v9424_v58, %v9424_v58 }
  0xab   : > { %7500 = vmatpush3.bf16.msra.mxu0 %v9298_v9  ;;  %v895_v9 = vmul.f32 %v9370_v17, %v9370_v17  ;;  %v9548_v17 = vld [vmem:[%s13013_s1] sm:$0xff] }
  0xac   : > { %7532 = vmatpush3.bf16.msra.mxu1 %v9314_v25  ;;  %7502 = vmatprep.subr.bf16.mxu0 %v9316_v54  ;;  %v894_v25 = vmul.f32 %v9376_v63, %v9376_v63  ;;  %v896_v54 = vmul.f32 %v9384_v35, %v9384_v35  ;;  %v9555_v63 = vld [vmem:[%s13017_s5 + $0x10] sm:$0xff]  ;;  %v8532_v35 = vmov 1  }
  0xad   : > { %7534 = vmatprep.subr.bf16.mxu1 %v9325_v8  ;;  %v897_v8 = vmul.f32 %v9379_v1, %v9379_v1  ;;  %v9560_v1 = vld [vmem:[%s13017_s5] sm:$0xff]  ;;  %7605 = vset.pattern.permute.xlu1 %v8532_v35 }
  0xae   : > { %7604 = vset.pattern.permute.xlu0 %v8532_v35  ;;  %1473 = vperm.xlu1 %7605, %v9555_v63  }
  0xaf   : > { %7504 = vmatpush3.bf16.msra.mxu0 %v9334_v60  ;;  %v903_v60 = vmul.f32 %v9389_v39, %v9389_v39  ;;  %1463 = vperm.xlu0 %7604, %v9560_v1  }
  0xb0   : > { %7536 = vmatpush3.bf16.msra.mxu1 %v9341_v26  ;;  %7506 = vmatprep.subr.bf16.mxu0 %v9343_v27  ;;  %v905_v26 = vmul.f32 %v9399_v44, %v9399_v44  ;;  %v902_v27 = vmul.f32 %v9396_v40, %v9396_v40 }
  0xb1   : > { %7538 = vmatprep.subr.bf16.mxu1 %v9346_v34  ;;  %v904_v34 = vmul.f32 %v9404_v48, %v9404_v48  ;;  %v9567_v48 = vld [vmem:[%s13017_s5 + $0x18] sm:$0xff] }
  0xb2   : > { %1478 = vperm.xlu1 %7605, %v9567_v48  }
  0xb3   : > { %7508 = vmatpush3.bf16.msra.mxu0 %v9352_v38  ;;  %v911_v38 = vmul.f32 %v9409_v49, %v9409_v49  ;;  %v9572_v49 = vld [vmem:[%s13017_s5 + $0x8] sm:$0xff] }
  0xb4   : > { %7540 = vmatpush3.bf16.msra.mxu1 %v9356_v61  ;;  %v913_v61 = vmul.f32 %v9419_v57, %v9419_v57  ;;  %1468 = vperm.xlu0 %7604, %v9572_v49  }
  0xb6   : > { %1149 = vmatmul.mubr.f32.vlgmr.msra.gmra.mrb[24].mxu0 %v886_v0  ;;  %7607 = vset.pattern.permute.xlu1 %v8533_v52 }
  0xb7   : > { %1234 = vmatmul.mubr.f32.vlgmr.msra.gmra.mrb[24].mxu1 %v888_v45  ;;  %1153 = vmatprep.mubr.f32.mxu0 %v895_v9 }
  0xb8   : > { %1238 = vmatprep.mubr.f32.mxu1 %v897_v8  ;;  %7606 = vset.pattern.permute.xlu0 %v8533_v52 }
  0xb9   : > { %1494 = vperm.xlu1 %7607, %v9572_v49   ;;  %1490 = vperm.xlu0 %7606, %v9560_v1  }
  0xba   : > { %1154 = vmatmul.mubr.f32.gmra.mrb[26].mxu0 %v894_v25 }
  0xbb   : > { %1239 = vmatmul.mubr.f32.gmra.mrb[26].mxu1 %v896_v54  ;;  %1158 = vmatprep.mubr.f32.mxu0 %v903_v60 }
  0xbc   : > { %1243 = vmatprep.mubr.f32.mxu1 %v905_v26 }
  0xbd   : > { %1502 = vperm.xlu0 %7606, %v9567_v48   ;;  %1498 = vperm.xlu1 %7607, %v9555_v63  }
  0xbe   : > { %1159 = vmatmul.mubr.f32.gmra.mrb[28].mxu0 %v902_v27 }
  0xbf   : > { %1244 = vmatmul.mubr.f32.gmra.mrb[28].mxu1 %v904_v34  ;;  %1163 = vmatprep.mubr.f32.mxu0 %v911_v38 }
  0xc0   : > { %1248 = vmatprep.mubr.f32.mxu1 %v913_v61 }
  0xc2   : > { %1164 = vmatmul.mubr.f32.gmra.mrb[30].mxu0 %v910_v13 }
  0xc3   : > { %1249 = vmatmul.mubr.f32.gmra.mrb[30].mxu1 %v912_v47  ;;  %7265 = vmatprep.mubr.msk.f32.mxu0 %vm1254_vm0, %v9548_v17 }
 0x129   : > { %v6921_v39 = vpop.f32.mrb[0].mxu0 }
 0x12a   : > { %v6965_v40 = vpop.f32.mrb[0].mxu1  ;;  %v6922_v44 = vpop.f32.mrb[1].mxu0 }
 0x12b   : > { %v6923_v53 = vadd.f32 %v6922_v44, %v6921_v39  ;;  %v6966_v57 = vpop.f32.mrb[1].mxu1 }
 0x12c   : > { %v6967_v58 = vadd.f32 %v6966_v57, %v6965_v40  ;;  %v9583_v57 = vld [vmem:[%s13013_s1 + $0x8] sm:$0xff] }
 0x12d   : > { %v6924_v20 = vpop.f32.mrb[2].mxu0 }
 0x12e   : > { %v694_v24 = vadd.f32 %v6967_v58, %v6923_v53  ;;  %v6968_v30 = vpop.f32.mrb[2].mxu1  ;;  %v6925_v31 = vpop.f32.mrb[3].mxu0  ;;  %v9588_v58 = vld [vmem:[%s13013_s1 + $0x10] sm:$0xff] }
 0x12f   : > { %v6926_v32 = vadd.f32 %v6925_v31, %v6924_v20  ;;  %v6969_v37 = vpop.f32.mrb[3].mxu1  ;;  %v9597_v20 = vld [vmem:[%s13013_s1 + $0x18] sm:$0xff] }
 0x130   : > { %v6970_v46 = vadd.f32 %v6969_v37, %v6968_v30 }
 0x131   : > { %v6927_v51 = vpop.f32.mrb[4].mxu0 }
 0x132   : > { %v699_v55 = vadd.f32 %v6970_v46, %v6926_v32  ;;  %v6971_v56 = vpop.f32.mrb[4].mxu1  ;;  %v6928_v59 = vpop.f32.mrb[5].mxu0 }
 0x133   : > { %v6929_v3 = vadd.f32 %v6928_v59, %v6927_v51  ;;  %v6972_v4 = vpop.f32.mrb[5].mxu1 }
 0x134   : > { %v6973_v5 = vadd.f32 %v6972_v4, %v6971_v56 }
 0x135   : > { %v6930_v12 = vpop.f32.mrb[6].mxu0 }
 0x136   : > { %v704_v21 = vadd.f32 %v6973_v5, %v6929_v3  ;;  %v6974_v22 = vpop.f32.mrb[6].mxu1  ;;  %v6931_v23 = vpop.f32.mrb[7].mxu0 }
 0x137   : > { %v6932_v28 = vadd.f32 %v6931_v23, %v6930_v12  ;;  %v6975_v41 = vpop.f32.mrb[7].mxu1 }
 0x138   : > { %v6976_v42 = vadd.f32 %v6975_v41, %v6974_v22 }
 0x13a   : > { %v709_v43 = vadd.f32 %v6976_v42, %v6932_v28 }
 0x149   : > { %v7009_v14 = vpop.f32.mrb[8].mxu0 }
 0x14a   : > { %v7010_v15 = vpop.f32.mrb[9].mxu0  ;;  %v7053_v16 = vpop.f32.mrb[8].mxu1 }
 0x14b   : > { %v7011_v29 = vadd.f32 %v7010_v15, %v7009_v14  ;;  %v7054_v50 = vpop.f32.mrb[9].mxu1 }
 0x14c   : > { %v7055_v33 = vadd.f32 %v7054_v50, %v7053_v16 }
 0x14d   : > { %v779_v10 = vadd.f32 %v7011_v29, %v694_v24  ;;  %v7012_v36 = vpop.f32.mrb[10].mxu0 }
 0x14e   : > { %v7013_v62 = vpop.f32.mrb[11].mxu0  ;;  %v7056_v2 = vpop.f32.mrb[10].mxu1 }
 0x14f   : > { %v864_v6 = vadd.f32 %v7055_v33, %v779_v10  ;;  %v7014_v7 = vadd.f32 %v7013_v62, %v7012_v36  ;;  %v7057_v11 = vpop.f32.mrb[11].mxu1 }
 0x150   : > { %v7058_v18 = vadd.f32 %v7057_v11, %v7056_v2 }
 0x151   : > { %v784_v19 = vadd.f32 %v7014_v7, %v699_v55  ;;  %v7015_v0 = vpop.f32.mrb[12].mxu0 }
 0x152   : > { %v7016_v45 = vpop.f32.mrb[13].mxu0  ;;  %v7059_v9 = vpop.f32.mrb[12].mxu1 }
 0x153   : > { %v869_v8 = vadd.f32 %v7058_v18, %v784_v19  ;;  %v7017_v25 = vadd.f32 %v7016_v45, %v7015_v0  ;;  %v7060_v54 = vpop.f32.mrb[13].mxu1 }
 0x154   : > { %v7061_v60 = vadd.f32 %v7060_v54, %v7059_v9 }
 0x155   : > { %v789_v26 = vadd.f32 %v7017_v25, %v704_v21  ;;  %v7018_v27 = vpop.f32.mrb[14].mxu0  ;;  %v7541_v34 = vpack.c.bf16 %v869_v8, %v864_v6 }
 0x156   : > { %v7019_v38 = vpop.f32.mrb[15].mxu0  ;;  %v7062_v61 = vpop.f32.mrb[14].mxu1 }
 0x157   : > { %v874_v13 = vadd.f32 %v7061_v60, %v789_v26  ;;  %v7020_v47 = vadd.f32 %v7019_v38, %v7018_v27  ;;  %7542 = vmatprep.subr.bf16.mxu0 %v7541_v34  ;;  %v7063_v35 = vpop.f32.mrb[15].mxu1 }
 0x158   : > { %v7064_v39 = vadd.f32 %v7063_v35, %v7062_v61  ;;  %7544 = vmatpush3.bf16.msra.mxu0 %v7541_v34 }
 0x159   : > { %v794_v40 = vadd.f32 %v7020_v47, %v709_v43 }
 0x15b   : > { %v879_v44 = vadd.f32 %v7064_v39, %v794_v40 }
 0x15d   : > { %v7545_v53 = vpack.c.bf16 %v879_v44, %v874_v13 }
 0x15f   : > { %7546 = vmatprep.subr.bf16.mxu0 %v7545_v53 }
 0x160   : > { %7548 = vmatpush3.bf16.msra.mxu0 %v7545_v53 }
 0x163   : > { %7266 = vmatmul.mubr.msk.f32.vlgmr.msra.gmra.mrb[32].mxu0 %vm1254_vm0, %v9583_v57 }
 0x164   : > { %7268 = vmatprep.mubr.msk.f32.mxu0 %vm1254_vm0, %v9588_v58 }
 0x167   : > { %7269 = vmatmul.mubr.msk.f32.gmra.mrb[34].mxu0 %vm1254_vm0, %v9597_v20 }
 0x168   : > { %7279 = vmatprep.mubr.msk.f32.mxu0 %vm1254_vm0, %v9548_v17 }
 0x169   : > { %v7097_v24 = vpop.f32.mrb[16].mxu0 }
 0x16a   : > { %v7141_v30 = vpop.f32.mrb[16].mxu1  ;;  %v7098_v31 = vpop.f32.mrb[17].mxu0 }
 0x16b   : > { %v7099_v32 = vadd.f32 %v7098_v31, %v7097_v24  ;;  %v7142_v37 = vpop.f32.mrb[17].mxu1 }
 0x16c   : > { %v7143_v46 = vadd.f32 %v7142_v37, %v7141_v30 }
 0x16d   : > { %v7100_v51 = vpop.f32.mrb[18].mxu0 }
 0x16e   : > { %v1066_v52 = vadd.f32 %v7143_v46, %v7099_v32  ;;  %v7144_v55 = vpop.f32.mrb[18].mxu1  ;;  %v7101_v56 = vpop.f32.mrb[19].mxu0  ;;  %v9612_v46 = vld [vmem:[%s13015_s3] sm:$0xff] }
 0x16f   : > { %v7102_v59 = vadd.f32 %v7101_v56, %v7100_v51  ;;  %v7145_v3 = vpop.f32.mrb[19].mxu1  ;;  %v9617_v51 = vld [vmem:[%s13015_s3 + $0x8] sm:$0xff]  ;;  %v9651_v56 = vld [vmem:[%s13015_s3 + $0x18] sm:$0xff] }
 0x170   : > { %v7146_v4 = vadd.f32 %v7145_v3, %v7144_v55 }
 0x171   : > { %v7103_v5 = vpop.f32.mrb[20].mxu0 }
 0x172   : > { %v1071_v12 = vadd.f32 %v7146_v4, %v7102_v59  ;;  %v7147_v21 = vpop.f32.mrb[20].mxu1  ;;  %v7104_v22 = vpop.f32.mrb[21].mxu0  ;;  %v9655_v59 = vcombine.high %v9651_v56, %v9651_v56 }
 0x173   : > { %v7105_v23 = vadd.f32 %v7104_v22, %v7103_v5  ;;  %v7148_v28 = vpop.f32.mrb[21].mxu1 }
 0x174   : > { %v7149_v17 = vadd.f32 %v7148_v28, %v7147_v21 }
 0x175   : > { %v7106_v41 = vpop.f32.mrb[22].mxu0 }
 0x176   : > { %v1076_v42 = vadd.f32 %v7149_v17, %v7105_v23  ;;  %v7150_v43 = vpop.f32.mrb[22].mxu1  ;;  %v7107_v14 = vpop.f32.mrb[23].mxu0 }
 0x177   : > { %v7108_v15 = vadd.f32 %v7107_v14, %v7106_v41  ;;  %v7151_v16 = vpop.f32.mrb[23].mxu1 }
 0x178   : > { %v7152_v29 = vadd.f32 %v7151_v16, %v7150_v43 }
 0x17a   : > { %v1081_v50 = vadd.f32 %v7152_v29, %v7108_v15 }
 0x189   : > { %v7185_v33 = vpop.f32.mrb[24].mxu0 }
 0x18a   : > { %v7186_v10 = vpop.f32.mrb[25].mxu0  ;;  %v7229_v36 = vpop.f32.mrb[24].mxu1 }
 0x18b   : > { %v7187_v62 = vadd.f32 %v7186_v10, %v7185_v33  ;;  %v7230_v2 = vpop.f32.mrb[25].mxu1 }
 0x18c   : > { %v7231_v6 = vadd.f32 %v7230_v2, %v7229_v36 }
 0x18d   : > { %v1151_v7 = vadd.f32 %v7187_v62, %v1066_v52  ;;  %v7188_v11 = vpop.f32.mrb[26].mxu0  ;;  %v9621_v52 = vcombine.high %v9612_v46, %v9612_v46 }
 0x18e   : > { %v7189_v18 = vpop.f32.mrb[27].mxu0  ;;  %v7232_v19 = vpop.f32.mrb[26].mxu1 }
 0x18f   : > { %v1236_v0 = vadd.f32 %v7231_v6, %v1151_v7  ;;  %v7190_v45 = vadd.f32 %v7189_v18, %v7188_v11  ;;  %v7233_v9 = vpop.f32.mrb[27].mxu1 }
 0x190   : > { %v7234_v8 = vadd.f32 %v7233_v9, %v7232_v19  ;;  %v1474_v9 = vpop.permute.xlu1 %1473 }
 0x191   : > { %v1156_v25 = vadd.f32 %v7190_v45, %v1071_v12  ;;  %v7191_v54 = vpop.f32.mrb[28].mxu0 }
 0x192   : > { %v7192_v60 = vpop.f32.mrb[29].mxu0  ;;  %v7235_v26 = vpop.f32.mrb[28].mxu1 }
 0x193   : > { %v1241_v27 = vadd.f32 %v7234_v8, %v1156_v25  ;;  %v7193_v34 = vadd.f32 %v7192_v60, %v7191_v54  ;;  %v7236_v38 = vpop.f32.mrb[29].mxu1 }
 0x194   : > { %v7237_v61 = vadd.f32 %v7236_v38, %v7235_v26  ;;  %v1479_v38 = vpop.permute.xlu1 %1478 }
 0x195   : > { %v1161_v13 = vadd.f32 %v7193_v34, %v1076_v42  ;;  %v7194_v47 = vpop.f32.mrb[30].mxu0  ;;  %v7549_v35 = vpack.c.bf16 %v1241_v27, %v1236_v0  ;;  %v1464_v0 = vpop.permute.xlu0 %1463 }
 0x196   : > { %v7195_v39 = vpop.f32.mrb[31].mxu0  ;;  %v7238_v40 = vpop.f32.mrb[30].mxu1 }
 0x197   : > { %v1246_v44 = vadd.f32 %v7237_v61, %v1161_v13  ;;  %v7196_v53 = vadd.f32 %v7195_v39, %v7194_v47  ;;  %v7239_v24 = vpop.f32.mrb[31].mxu1  ;;  %7550 = vmatprep.subr.bf16.mxu0 %v7549_v35 }
 0x198   : > { %v7240_v30 = vadd.f32 %v7239_v24, %v7238_v40  ;;  %7552 = vmatpush3.bf16.msra.mxu0 %v7549_v35 }
 0x199   : > { %v1166_v31 = vadd.f32 %v7196_v53, %v1081_v50  ;;  %v1469_v8 = vpop.permute.xlu0 %1468  ;;  %v1495_v53 = vpop.permute.xlu1 %1494 }
 0x19b   : > { %v1251_v32 = vadd.f32 %v7240_v30, %v1166_v31 }
 0x19d   : > { %v7553_v37 = vpack.c.bf16 %v1251_v32, %v1246_v44  ;;  %v1491_v44 = vpop.permute.xlu0 %1490  ;;  %v1499_v31 = vpop.permute.xlu1 %1498 }
 0x19f   : > { %7554 = vmatprep.subr.bf16.mxu0 %v7553_v37 }
 0x1a0   : > { %7556 = vmatpush3.bf16.msra.mxu0 %v7553_v37 }
 0x1a1   : > { %6730 = vmatprep.subr.msk.mxu0 %vm1530_vm1, %v9621_v52  ;;  %v1503_v37 = vpop.permute.xlu0 %1502 }
 0x1a3   : > { %7280 = vmatmul.mubr.msk.f32.vlgmr.msra.gmra.mrb[36].mxu0 %vm1254_vm0, %v9583_v57  ;;  %v9625_v57 = vcombine.high %v9617_v51, %v9617_v51 }
 0x1a4   : > { %7282 = vmatprep.mubr.msk.f32.mxu0 %vm1254_vm0, %v9588_v58  ;;  %6731 = vmatpush1.msk.msra.mxu0 %vm1530_vm1, %v9612_v46  ;;  %v8534_v58 = vmov 0.0  }
 0x1a5   : > { %6736 = vmatprep.subr.msk.mxu1 %vm1530_vm1, %v9625_v57  ;;  %1700 = vmatprep.mubr.f32.mxu1 %v8534_v58 }
 0x1a6   : > { %6737 = vmatpush1.msk.msra.mxu1 %vm1530_vm1, %v9617_v51 }
 0x1a7   : > { %7283 = vmatmul.mubr.msk.f32.gmra.mrb[38].mxu0 %vm1254_vm0, %v9597_v20  ;;  %v9640_v20 = vld [vmem:[%s13015_s3 + $0x10] sm:$0xff]  ;;  %6748 = vmatprep.subr.msk.mxu1 %vm1530_vm1, %v9655_v59 }
 0x1a8   : > { %1611 = vmatprep.mubr.f32.mxu0 %v8534_v58  ;;  %v9644_v55 = vcombine.high %v9640_v20, %v9640_v20 }
 0x1aa   : > { %6742 = vmatprep.subr.msk.mxu0 %vm1530_vm1, %v9644_v55 }
 0x236   : > { %v7267_v3 = vpop.f32.mrb[32].mxu0 }
 0x237   : > { %v1333_v4 = vpop.f32.mrb[33].mxu0  ;;  %v1438_v21 = vmul.f32 0.0009765625, %v7267_v3 }
 0x238   : > { %v1437_v22 = vmul.f32 0.0009765625, %v1333_v4 }
 0x239   : > { %v1446_v28 = vmul.f32 %v1438_v21, %v1438_v21 }
 0x23a   : > { %v7270_v5 = vpop.f32.mrb[34].mxu0  ;;  %v1445_v43 = vmul.f32 %v1437_v22, %v1437_v22 }
 0x23b   : > { %v1343_v12 = vpop.f32.mrb[35].mxu0  ;;  %v1440_v17 = vmul.f32 0.0009765625, %v7270_v5 }
 0x23c   : > { %v1439_v14 = vmul.f32 0.0009765625, %v1343_v12 }
 0x23d   : > { %v1448_v33 = vmul.f32 %v1440_v17, %v1440_v17 }
 0x23e   : > { %v1447_v2 = vmul.f32 %v1439_v14, %v1439_v14 }
 0x276   : > { %v7281_v23 = vpop.f32.mrb[36].mxu0 }
 0x277   : > { %v1442_v41 = vmul.f32 0.0009765625, %v7281_v23  ;;  %v1418_v42 = vpop.f32.mrb[37].mxu0 }
 0x278   : > { %v1441_v15 = vmul.f32 0.0009765625, %v1418_v42 }
 0x279   : > { %v1450_v16 = vsub.f32 %v1442_v41, %v1446_v28 }
 0x27a   : > { %v1449_v29 = vsub.f32 %v1441_v15, %v1445_v43  ;;  %v7284_v50 = vpop.f32.mrb[38].mxu0 }
 0x27b   : > { %v1454_v10 = vadd.f32 1e-05, %v1450_v16  ;;  %v1444_v36 = vmul.f32 0.0009765625, %v7284_v50  ;;  %v1428_v62 = vpop.f32.mrb[39].mxu0 }
 0x27c   : > { %v1453_v6 = vadd.f32 1e-05, %v1449_v29  ;;  %v1443_v7 = vmul.f32 0.0009765625, %v1428_v62 }
 0x27d   : > { %7624 = vrsqrt.f32 %v1454_v10  ;;  %v1452_v11 = vsub.f32 %v1444_v36, %v1448_v33 }
 0x27e   : > { %7626 = vrsqrt.f32 %v1453_v6  ;;  %v1451_v18 = vsub.f32 %v1443_v7, %v1447_v2 }
 0x27f   : > { %v1456_v19 = vadd.f32 1e-05, %v1452_v11 }
 0x280   : > { %v1455_v45 = vadd.f32 1e-05, %v1451_v18  ;;  %v8400_v18 = vld [vmem:[%s8947_s29] sm:$0xff] }
 0x281   : > { %7628 = vrsqrt.f32 %v1456_v19 }
 0x282   : > { %7630 = vrsqrt.f32 %v1455_v45 }
 0x287   : > { %v7625_v25 = vpop.eup %7624 }
 0x288   : > { %v7627_v54 = vpop.eup %7626  ;;  %v1482_v60 = vmul.f32 %v7625_v25, %v1469_v8  ;;  %v8403_v25 = vld [vmem:[%s8947_s29 + $0x18] sm:$0xff] }
 0x289   : > { %v1481_v26 = vmul.f32 %v7627_v54, %v1464_v0  ;;  %v8401_v0 = vld [vmem:[%s8947_s29 + $0x10] sm:$0xff] }
 0x28a   : > { %v1486_v27 = vmul.f32 %v1482_v60, %v1438_v21 }
 0x28b   : > { %v7629_v34 = vpop.eup %7628  ;;  %v1485_v61 = vmul.f32 %v1481_v26, %v1437_v22  ;;  %6732 = vmatmul.mubr.msk.f32.vlgmr.msra.gmra.mrb[40].mxu0 %vm1517_vm2, %v1481_v26  ;;  %6738 = vmatmul.mubr.msk.f32.vlgmr.msra.gmra.mrb[32].mxu1 %vm1517_vm2, %v1481_v26 }
 0x28c   : > { %v7631_v13 = vpop.eup %7630  ;;  %v1484_v47 = vmul.f32 %v7629_v34, %v1479_v38  ;;  %1617 = vmatprep.mubr.f32.mxu0 %v8534_v58  ;;  %1706 = vmatprep.mubr.f32.mxu1 %v8534_v58  ;;  %v1506_v30 = vsub.f32 %v1495_v53, %v1486_v27  ;;  %v8406_v53 = vld [vmem:[%s8947_s29 + $0x48] sm:$0xff] }
 0x28d   : > { %v1483_v35 = vmul.f32 %v7631_v13, %v1474_v9  ;;  %6743 = vmatpush1.msk.msra.mxu0 %vm1530_vm1, %v9640_v20  ;;  %6749 = vmatpush1.msk.msra.mxu1 %vm1530_vm1, %v9651_v56  ;;  %v1505_v24 = vsub.f32 %v1491_v44, %v1485_v61  ;;  %v8402_v9 = vld [vmem:[%s8947_s29 + $0x8] sm:$0xff] }
 0x28e   : > { %v1488_v39 = vmul.f32 %v1484_v47, %v1440_v17  ;;  %6754 = vmatprep.subr.msk.mxu0 %vm1530_vm1, %v9621_v52  ;;  %6760 = vmatprep.subr.msk.mxu1 %vm1530_vm1, %v9625_v57  ;;  %v399_v52 = vld [vmem:[%s13017_s5 + $0x28] sm:$0xff]  ;;  %v398_v57 = vld [vmem:[%s13017_s5 + $0x20] sm:$0xff] }
 0x28f   : > { %6733 = vmatmul.mubr.msk.f32.gmra.mrb[42].mxu0 %vm1517_vm2, %v1482_v60  ;;  %6739 = vmatmul.mubr.msk.f32.gmra.mrb[34].mxu1 %vm1517_vm2, %v1482_v60  ;;  %v1487_v40 = vmul.f32 %v1483_v35, %v1439_v14 }
 0x290   : > { %1623 = vmatprep.mubr.f32.mxu0 %v8534_v58  ;;  %1712 = vmatprep.mubr.f32.mxu1 %v8534_v58 }
 0x291   : > { %v1507_v32 = vsub.f32 %v1499_v31, %v1487_v40  ;;  %v8405_v40 = vld [vmem:[%s8947_s29 + $0x50] sm:$0xff] }
 0x293   : > { %6734 = vmatmul.mubr.msk.f32.gmra.mrb[44].mxu0 %vm1517_vm2, %v1483_v35  ;;  %6740 = vmatmul.mubr.msk.f32.gmra.mrb[36].mxu1 %vm1517_vm2, %v1483_v35 }
 0x294   : > { %1629 = vmatprep.mubr.f32.mxu0 %v8534_v58  ;;  %1718 = vmatprep.mubr.f32.mxu1 %v8534_v58 }
 0x297   : > { %6735 = vmatmul.mubr.msk.f32.gmra.mrb[46].mxu0 %vm1517_vm2, %v1484_v47  ;;  %6741 = vmatmul.mubr.msk.f32.gmra.mrb[38].mxu1 %vm1517_vm2, %v1484_v47 }
 0x298   : > { %1789 = vmatprep.mubr.f32.mxu0 %v8534_v58  ;;  %1878 = vmatprep.mubr.f32.mxu1 %v8534_v58 }
 0x29b   : > { %6744 = vmatmul.mubr.msk.f32.vlgmr.msra.gmra.mrb[48].mxu0 %vm1517_vm2, %v1481_v26  ;;  %6750 = vmatmul.mubr.msk.f32.vlgmr.msra.gmra.mrb[40].mxu1 %vm1517_vm2, %v1481_v26 }
 0x29c   : > { %1795 = vmatprep.mubr.f32.mxu0 %v8534_v58  ;;  %1884 = vmatprep.mubr.f32.mxu1 %v8534_v58 }
 0x29d   : > { %6755 = vmatpush1.msk.msra.mxu0 %vm1530_vm1, %v9612_v46  ;;  %6761 = vmatpush1.msk.msra.mxu1 %vm1530_vm1, %v9617_v51  ;;  %v1508_v46 = vsub.f32 %v1503_v37, %v1488_v39  ;;  %v13047_v51 = vmov 0  }
 0x29e   : > { %6766 = vmatprep.subr.msk.mxu0 %vm1530_vm1, %v9644_v55  ;;  %6772 = vmatprep.subr.msk.mxu1 %vm1530_vm1, %v9655_v59 }
 0x29f   : > { %6745 = vmatmul.mubr.msk.f32.gmra.mrb[50].mxu0 %vm1517_vm2, %v1482_v60  ;;  %6751 = vmatmul.mubr.msk.f32.gmra.mrb[42].mxu1 %vm1517_vm2, %v1482_v60 }
 0x2a0   : > { %1801 = vmatprep.mubr.f32.mxu0 %v8534_v58  ;;  %1890 = vmatprep.mubr.f32.mxu1 %v8534_v58 }
 0x2a1   : > { %7608 = vset.pattern.permute.xlu1 %v13047_v51  ;;  %7609 = vset.pattern.permute.xlu0 %v13047_v51 }
 0x2a2   : > { %2364 = vperm.xlu1 %7608, %v9560_v1   ;;  %2368 = vperm.xlu0 %7609, %v9572_v49   ;;  %v401_v1 = vld [vmem:[%s13017_s5 + $0x38] sm:$0xff] }
 0x2a3   : > { %6746 = vmatmul.mubr.msk.f32.gmra.mrb[52].mxu0 %vm1517_vm2, %v1483_v35  ;;  %6752 = vmatmul.mubr.msk.f32.gmra.mrb[44].mxu1 %vm1517_vm2, %v1483_v35  ;;  %v8404_v35 = vld [vmem:[%s8947_s29 + $0x40] sm:$0xff] }
 0x2a4   : > { %1807 = vmatprep.mubr.f32.mxu0 %v8534_v58  ;;  %1896 = vmatprep.mubr.f32.mxu1 %v8534_v58 }
 0x2a6   : > { %2372 = vperm.xlu1 %7608, %v9555_v63   ;;  %2381 = vperm.xlu0 %7609, %v398_v57   ;;  %v400_v63 = vld [vmem:[%s13017_s5 + $0x30] sm:$0xff] }
 0x2a7   : > { %6747 = vmatmul.mubr.msk.f32.gmra.mrb[54].mxu0 %vm1517_vm2, %v1484_v47  ;;  %6753 = vmatmul.mubr.msk.f32.gmra.mrb[46].mxu1 %vm1517_vm2, %v1484_v47 }
 0x2a8   : > { %1979 = vmatprep.mubr.f32.mxu0 %v8534_v58  ;;  %2068 = vmatprep.mubr.f32.mxu1 %v8534_v58 }
 0x2aa   : > { %2376 = vperm.xlu1 %7608, %v9567_v48   ;;  %2391 = vperm.xlu0 %7609, %v400_v63   ;;  %v8408_v63 = vld [vmem:[%s8947_s29 + $0x80] sm:$0xff] }
 0x2ab   : > { %6756 = vmatmul.mubr.msk.f32.vlgmr.msra.gmra.mrb[56].mxu0 %vm1517_vm2, %v1505_v24  ;;  %6762 = vmatmul.mubr.msk.f32.vlgmr.msra.gmra.mrb[48].mxu1 %vm1517_vm2, %v1505_v24 }
 0x2ac   : > { %1985 = vmatprep.mubr.f32.mxu0 %v8534_v58  ;;  %2074 = vmatprep.mubr.f32.mxu1 %v8534_v58 }
 0x2ad   : > { %6767 = vmatpush1.msk.msra.mxu0 %vm1530_vm1, %v9640_v20  ;;  %6773 = vmatpush1.msk.msra.mxu1 %vm1530_vm1, %v9651_v56 }
 0x2ae   : > { %2386 = vperm.xlu1 %7608, %v399_v52  }
 0x2af   : > { %6757 = vmatmul.mubr.msk.f32.gmra.mrb[58].mxu0 %vm1517_vm2, %v1506_v30  ;;  %6763 = vmatmul.mubr.msk.f32.gmra.mrb[50].mxu1 %vm1517_vm2, %v1506_v30 }
 0x2b0   : > { %1991 = vmatprep.mubr.f32.mxu0 %v8534_v58  ;;  %2080 = vmatprep.mubr.f32.mxu1 %v8534_v58 }
 0x2b2   : > { %2396 = vperm.xlu1 %7608, %v401_v1  }
 0x2b3   : > { %6758 = vmatmul.mubr.msk.f32.gmra.mrb[60].mxu0 %vm1517_vm2, %v1507_v32  ;;  %6764 = vmatmul.mubr.msk.f32.gmra.mrb[52].mxu1 %vm1517_vm2, %v1507_v32 }
 0x2b4   : > { %1997 = vmatprep.mubr.f32.mxu0 %v8534_v58  ;;  %2086 = vmatprep.mubr.f32.mxu1 %v8534_v58 }
 0x2b7   : > { %6759 = vmatmul.mubr.msk.f32.gmra.mrb[62].mxu0 %vm1517_vm2, %v1508_v46  ;;  %6765 = vmatmul.mubr.msk.f32.gmra.mrb[54].mxu1 %vm1517_vm2, %v1508_v46 }
 0x2b8   : > { %2157 = vmatprep.mubr.f32.mxu0 %v8534_v58  ;;  %2246 = vmatprep.mubr.f32.mxu1 %v8534_v58 }
 0x2bb   : > { %6768 = vmatmul.mubr.msk.f32.vlgmr.msra.gmra.mrb[64].mxu0 %vm1517_vm2, %v1505_v24  ;;  %6774 = vmatmul.mubr.msk.f32.vlgmr.msra.gmra.mrb[56].mxu1 %vm1517_vm2, %v1505_v24 }
 0x2bc   : > { %2163 = vmatprep.mubr.f32.mxu0 %v8534_v58  ;;  %2252 = vmatprep.mubr.f32.mxu1 %v8534_v58 }
 0x2bf   : > { %6769 = vmatmul.mubr.msk.f32.gmra.mrb[66].mxu0 %vm1517_vm2, %v1506_v30  ;;  %6775 = vmatmul.mubr.msk.f32.gmra.mrb[58].mxu1 %vm1517_vm2, %v1506_v30  ;;  %v8407_v30 = vld [vmem:[%s8947_s29 + $0x58] sm:$0xff] }
 0x2c0   : > { %2169 = vmatprep.mubr.f32.mxu0 %v8534_v58  ;;  %2258 = vmatprep.mubr.f32.mxu1 %v8534_v58 }
 0x2c3   : > { %6770 = vmatmul.mubr.msk.f32.gmra.mrb[68].mxu0 %vm1517_vm2, %v1507_v32  ;;  %6776 = vmatmul.mubr.msk.f32.gmra.mrb[60].mxu1 %vm1517_vm2, %v1507_v32 }
 0x2c4   : > { %2175 = vmatprep.mubr.f32.mxu0 %v8534_v58  ;;  %2264 = vmatprep.mubr.f32.mxu1 %v8534_v58 }
 0x2c7   : > { %6771 = vmatmul.mubr.msk.f32.gmra.mrb[70].mxu0 %vm1517_vm2, %v1508_v46  ;;  %6777 = vmatmul.mubr.msk.f32.gmra.mrb[62].mxu1 %vm1517_vm2, %v1508_v46 }
 0x2c8   : > { %2499 = vmatprep.mubr.bf16.mxu0 %v13047_v51  ;;  %2592 = vmatprep.mubr.bf16.mxu1 %v13047_v51 }
 0x35e   : > { %v1613_v58 = vpop.f32.mrb[40].mxu0  ;;  %v1702_v20 = vpop.f32.mrb[32].mxu1 }
 0x35f   : > { %v1615_v48 = vpop.f32.mrb[41].mxu0  ;;  %v1704_v49 = vpop.f32.mrb[33].mxu1  ;;  %v2271_v19 = vmul.f32 %v8400_v18, %v1613_v58  ;;  %v2273_v45 = vmul.f32 %v8401_v0, %v1702_v20  ;;  %v8411_v0 = vld [vmem:[%s8947_s29 + $0x98] sm:$0xff] }
 0x360   : > { %v2272_v8 = vmul.f32 %v8402_v9, %v1615_v48  ;;  %v2274_v54 = vmul.f32 %v8403_v25, %v1704_v49  ;;  %v8409_v49 = vld [vmem:[%s8947_s29 + $0x90] sm:$0xff] }
 0x362   : > { %v1619_v55 = vpop.f32.mrb[42].mxu0  ;;  %v1708_v56 = vpop.f32.mrb[34].mxu1 }
 0x363   : > { %v1621_v59 = vpop.f32.mrb[43].mxu0  ;;  %v1710_v3 = vpop.f32.mrb[35].mxu1  ;;  %v2279_v39 = vmul.f32 %v8404_v35, %v1619_v55  ;;  %v2281_v44 = vmul.f32 %v8405_v40, %v1708_v56 }
 0x364   : > { %v2280_v24 = vmul.f32 %v8406_v53, %v1621_v59  ;;  %v2282_v31 = vmul.f32 %v8407_v30, %v1710_v3 }
 0x366   : > { %v1625_v4 = vpop.f32.mrb[44].mxu0  ;;  %v1714_v5 = vpop.f32.mrb[36].mxu1 }
 0x367   : > { %v1627_v12 = vpop.f32.mrb[45].mxu0  ;;  %v1716_v21 = vpop.f32.mrb[37].mxu1  ;;  %v2287_v48 = vmul.f32 %v8408_v63, %v1625_v4  ;;  %v2289_v55 = vmul.f32 %v8409_v49, %v1714_v5 }
 0x368   : > { %v2290_v3 = vmul.f32 %v8411_v0, %v1716_v21  ;;  %v8421_v0 = vld [vmem:[%s8947_s29 + $0x70] sm:$0xff] }
 0x36a   : > { %v9761_v22 = vpop.f32.mrb[46].mxu0  ;;  %v9763_v23 = vpop.f32.mrb[38].mxu1 }
 0x36b   : > { %v9765_v28 = vpop.f32.mrb[47].mxu0  ;;  %v9767_v17 = vpop.f32.mrb[39].mxu1 }
 0x36e   : > { %v9769_v41 = vpop.f32.mrb[48].mxu0  ;;  %v9771_v42 = vpop.f32.mrb[40].mxu1 }
 0x36f   : > { %v9773_v43 = vpop.f32.mrb[49].mxu0  ;;  %v9775_v14 = vpop.f32.mrb[41].mxu1 }
 0x372   : > { %v9777_v15 = vpop.f32.mrb[50].mxu0  ;;  %v9779_v16 = vpop.f32.mrb[42].mxu1 }
 0x373   : > { %v9781_v29 = vpop.f32.mrb[51].mxu0  ;;  %v9783_v50 = vpop.f32.mrb[43].mxu1 }
 0x376   : > { %v9785_v33 = vpop.f32.mrb[52].mxu0  ;;  %v9787_v10 = vpop.f32.mrb[44].mxu1 }
 0x377   : > { %v9789_v36 = vpop.f32.mrb[53].mxu0  ;;  %v9791_v62 = vpop.f32.mrb[45].mxu1 }
 0x37a   : > { %v9793_v2 = vpop.f32.mrb[54].mxu0  ;;  %v9795_v6 = vpop.f32.mrb[46].mxu1 }
 0x37b   : > { %v9797_v7 = vpop.f32.mrb[55].mxu0  ;;  %v9799_v11 = vpop.f32.mrb[47].mxu1 }
 0x37e   : > { %v1981_v60 = vpop.f32.mrb[56].mxu0  ;;  %v2070_v26 = vpop.f32.mrb[48].mxu1 }
 0x37f   : > { %v2303_v27 = vadd.f32 %v2271_v19, %v1981_v60  ;;  %v2305_v34 = vadd.f32 %v2273_v45, %v2070_v26  ;;  %v1983_v38 = vpop.f32.mrb[57].mxu0  ;;  %v2072_v61 = vpop.f32.mrb[49].mxu1  ;;  %v8410_v19 = vld [vmem:[%s8947_s29 + $0x88] sm:$0xff] }
 0x380   : > { %v2304_v13 = vadd.f32 %v2272_v8, %v1983_v38  ;;  %v2306_v47 = vadd.f32 %v2274_v54, %v2072_v61  ;;  %v2288_v59 = vmul.f32 %v8410_v19, %v1627_v12  ;;  %v8414_v61 = vld [vmem:[%s8947_s29 + $0xc8] sm:$0xff] }
 0x382   : > { %v1987_v32 = vpop.f32.mrb[58].mxu0  ;;  %v2076_v37 = vpop.f32.mrb[50].mxu1 }
 0x383   : > { %v2311_v46 = vadd.f32 %v2279_v39, %v1987_v32  ;;  %v2313_v52 = vadd.f32 %v2281_v44, %v2076_v37  ;;  %v1989_v57 = vpop.f32.mrb[59].mxu0  ;;  %v2078_v58 = vpop.f32.mrb[51].mxu1  ;;  %v8417_v37 = vld [vmem:[%s8947_s29 + $0x30] sm:$0xff] }
 0x384   : > { %v2312_v20 = vadd.f32 %v2280_v24, %v1989_v57  ;;  %v2314_v1 = vadd.f32 %v2282_v31, %v2078_v58  ;;  %v8418_v57 = vld [vmem:[%s8947_s29 + $0x28] sm:$0xff]  ;;  %v8419_v58 = vld [vmem:[%s8947_s29 + $0x38] sm:$0xff] }
 0x385   : > { %v2347_v18 = vpack.c.bf16 %v2311_v46, %v2303_v27  ;;  %v2349_v56 = vpack.c.bf16 %v2313_v52, %v2305_v34  ;;  %v8412_v27 = vld [vmem:[%s8947_s29 + $0xc0] sm:$0xff]  ;;  %v8413_v34 = vld [vmem:[%s8947_s29 + $0xd0] sm:$0xff]  ;;  %v2277_v46 = vmul.f32 %v8417_v37, %v9771_v42 }
 0x386   : > { %v2348_v45 = vpack.c.bf16 %v2312_v20, %v2304_v13  ;;  %v2350_v9 = vpack.c.bf16 %v2314_v1, %v2306_v47  ;;  %v1993_v8 = vpop.f32.mrb[60].mxu0  ;;  %v2082_v25 = vpop.f32.mrb[52].mxu1  ;;  %v2295_v12 = vmul.f32 %v8412_v27, %v9761_v22  ;;  %v2297_v21 = vmul.f32 %v8413_v34, %v9763_v23  ;;  %v8415_v47 = vld [vmem:[%s8947_s29 + $0xd8] sm:$0xff]  ;;  %v8416_v23 = vld [vmem:[%s8947_s29 + $0x20] sm:$0xff] }
 0x387   : > { %v2319_v54 = vadd.f32 %v2287_v48, %v1993_v8  ;;  %v2321_v60 = vadd.f32 %v2289_v55, %v2082_v25  ;;  %v1995_v26 = vpop.f32.mrb[61].mxu0  ;;  %v2084_v4 = vpop.f32.mrb[53].mxu1  ;;  %v2296_v13 = vmul.f32 %v8414_v61, %v9765_v28  ;;  %v2298_v35 = vmul.f32 %v8415_v47, %v9767_v17  ;;  %v8423_v8 = vld [vmem:[%s8947_s29 + $0x78] sm:$0xff]  ;;  %v8426_v61 = vld [vmem:[%s8947_s29 + $0xa8] sm:$0xff] }
 0x388   : > { %v2320_v38 = vadd.f32 %v2288_v59, %v1995_v26  ;;  %v2322_v5 = vadd.f32 %v2290_v3, %v2084_v4  ;;  %2467 = vmatprep.subr.bf16.mxu0 %v2348_v45  ;;  %2560 = vmatprep.subr.bf16.mxu1 %v2350_v9  ;;  %v2275_v32 = vmul.f32 %v8416_v23, %v9769_v41  ;;  %v8422_v45 = vld [vmem:[%s8947_s29 + $0x68] sm:$0xff] }
 0x389   : > { %2468 = vmatpush1.bf16.msra.mxu0 %v2347_v18  ;;  %2561 = vmatpush1.bf16.msra.mxu1 %v2349_v56  ;;  %v2276_v17 = vmul.f32 %v8418_v57, %v9773_v43  ;;  %v2278_v20 = vmul.f32 %v8419_v58, %v9775_v14  ;;  %v9832_v43 = vld [vmem:[%s13016_s4] sm:$0xff]   ;;  %v2285_v3 = vmul.f32 %v8421_v0, %v9779_v16 }
 0x38a   : > { %v1999_v39 = vpop.f32.mrb[62].mxu0  ;;  %v2088_v40 = vpop.f32.mrb[54].mxu1  ;;  %v8420_v14 = vld [vmem:[%s8947_s29 + $0x60] sm:$0xff]  ;;  %v2284_v9 = vmul.f32 %v8422_v45, %v9781_v29  ;;  %v2286_v25 = vmul.f32 %v8423_v8, %v9783_v50  ;;  %v8425_v29 = vld [vmem:[%s8947_s29 + $0xb0] sm:$0xff] }
 0x38b   : > { %v2327_v44 = vadd.f32 %v2295_v12, %v1999_v39  ;;  %v2329_v53 = vadd.f32 %v2297_v21, %v2088_v40  ;;  %v2001_v22 = vpop.f32.mrb[63].mxu0  ;;  %v2090_v24 = vpop.f32.mrb[55].mxu1  ;;  %v2283_v59 = vmul.f32 %v8420_v14, %v9777_v15  ;;  %v2293_v50 = vmul.f32 %v8425_v29, %v9787_v10 }
 0x38c   : > { %v2328_v30 = vadd.f32 %v2296_v13, %v2001_v22  ;;  %v2330_v31 = vadd.f32 %v2298_v35, %v2090_v24  ;;  %v8427_v13 = vld [vmem:[%s8947_s29 + $0xb8] sm:$0xff]  ;;  %v9928_v14 = vpop.permute.xlu0 %2368 }
 0x38d   : > { %v2355_v28 = vpack.c.bf16 %v2327_v44, %v2319_v54  ;;  %v2357_v52 = vpack.c.bf16 %v2329_v53, %v2321_v60  ;;  %v2294_v47 = vmul.f32 %v8427_v13, %v9791_v62  ;;  %v8428_v62 = vld [vmem:[%s8947_s29 + $0xe0] sm:$0xff] }
 0x38e   : > { %v2356_v1 = vpack.c.bf16 %v2328_v30, %v2320_v38  ;;  %v2358_v63 = vpack.c.bf16 %v2330_v31, %v2322_v5  ;;  %v2159_v48 = vpop.f32.mrb[64].mxu0  ;;  %v2248_v49 = vpop.f32.mrb[56].mxu1  ;;  %v8424_v5 = vld [vmem:[%s8947_s29 + $0xa0] sm:$0xff]  ;;  %v2299_v23 = vmul.f32 %v8428_v62, %v9793_v2 }
 0x38f   : > { %v2307_v55 = vadd.f32 %v2275_v32, %v2159_v48  ;;  %v2309_v41 = vadd.f32 %v2277_v46, %v2248_v49  ;;  %v2161_v18 = vpop.f32.mrb[65].mxu0  ;;  %v2250_v42 = vpop.f32.mrb[57].mxu1  ;;  %v2291_v16 = vmul.f32 %v8424_v5, %v9785_v33  ;;  %v2292_v33 = vmul.f32 %v8426_v61, %v9789_v36  ;;  %v7617_v36 = vld [vmem:[%s13016_s4 + $0x8] sm:$0xff]   ;;  %v8429_v32 = vld [vmem:[%s8947_s29 + $0xf0] sm:$0xff] }
 0x390   : > { %v2308_v56 = vadd.f32 %v2276_v17, %v2161_v18  ;;  %v2310_v19 = vadd.f32 %v2278_v20, %v2250_v42  ;;  %2469 = vmatprep.subr.bf16.mxu0 %v2356_v1  ;;  %2562 = vmatprep.subr.bf16.mxu1 %v2358_v63  ;;  %v2301_v37 = vmul.f32 %v8429_v32, %v9795_v6  ;;  %v8430_v46 = vld [vmem:[%s8947_s29 + $0xe8] sm:$0xff]  ;;  %v7619_v18 = vld [vmem:[%s13016_s4 + $0x18] sm:$0xff]   ;;  %v7620_v42 = vld [vmem:[%s13016_s4 + $0x20] sm:$0xff]  }
 0x391   : > { %2470 = vmatpush1.bf16.msra.mxu0 %v2355_v28  ;;  %2563 = vmatpush1.bf16.msra.mxu1 %v2357_v52  ;;  %v2300_v28 = vmul.f32 %v8430_v46, %v9797_v7  ;;  %v8431_v52 = vld [vmem:[%s8947_s29 + $0xf8] sm:$0xff] }
 0x392   : > { %v2165_v54 = vpop.f32.mrb[66].mxu0  ;;  %v2254_v60 = vpop.f32.mrb[58].mxu1  ;;  %v2302_v57 = vmul.f32 %v8431_v52, %v9799_v11 }
 0x393   : > { %v2315_v26 = vadd.f32 %v2283_v59, %v2165_v54  ;;  %v2317_v4 = vadd.f32 %v2285_v3, %v2254_v60  ;;  %v2167_v38 = vpop.f32.mrb[67].mxu0  ;;  %v2256_v15 = vpop.f32.mrb[59].mxu1 }
 0x394   : > { %v2316_v27 = vadd.f32 %v2284_v9, %v2167_v38  ;;  %v2318_v12 = vadd.f32 %v2286_v25, %v2256_v15  ;;  %6784 = vmatmul.mubr.msk.bf16.vlgmr.msra.gmra.mrb[72].mxu0 %vm1254_vm0, %v9832_v43  ;;  %6790 = vmatmul.mubr.msk.bf16.vlgmr.msra.gmra.mrb[64].mxu1 %vm1254_vm0, %v9832_v43 }
 0x395   : > { %v2351_v34 = vpack.c.bf16 %v2315_v26, %v2307_v55  ;;  %v2353_v21 = vpack.c.bf16 %v2317_v4, %v2309_v41  ;;  %2509 = vmatprep.mubr.bf16.mxu0 %v13047_v51  ;;  %2602 = vmatprep.mubr.bf16.mxu1 %v13047_v51  ;;  %v7618_v41 = vld [vmem:[%s13016_s4 + $0x10] sm:$0xff]  }
 0x396   : > { %v2352_v35 = vpack.c.bf16 %v2316_v27, %v2308_v56  ;;  %v2354_v39 = vpack.c.bf16 %v2318_v12, %v2310_v19  ;;  %v2171_v40 = vpop.f32.mrb[68].mxu0  ;;  %v2260_v44 = vpop.f32.mrb[60].mxu1  ;;  %v7621_v56 = vld [vmem:[%s13016_s4 + $0x28] sm:$0xff]  }
 0x397   : > { %v2323_v10 = vadd.f32 %v2291_v16, %v2171_v40  ;;  %v2325_v53 = vadd.f32 %v2293_v50, %v2260_v44  ;;  %v2173_v22 = vpop.f32.mrb[69].mxu0  ;;  %v2262_v24 = vpop.f32.mrb[61].mxu1 }
 0x398   : > { %v2324_v30 = vadd.f32 %v2292_v33, %v2173_v22  ;;  %v2326_v31 = vadd.f32 %v2294_v47, %v2262_v24  ;;  %2653 = vmatprep.subr.bf16.mxu0 %v2352_v35  ;;  %2746 = vmatprep.subr.bf16.mxu1 %v2354_v39  ;;  %v9924_v19 = vpop.permute.xlu1 %2364 }
 0x399   : > { %2654 = vmatpush1.bf16.msra.mxu0 %v2351_v34  ;;  %2747 = vmatpush1.bf16.msra.mxu1 %v2353_v21 }
 0x39a   : > { %v2177_v17 = vpop.f32.mrb[70].mxu0  ;;  %v2266_v58 = vpop.f32.mrb[62].mxu1 }
 0x39b   : > { %v2331_v20 = vadd.f32 %v2299_v23, %v2177_v17  ;;  %v2333_v1 = vadd.f32 %v2301_v37, %v2266_v58  ;;  %v2179_v63 = vpop.f32.mrb[71].mxu0  ;;  %v2268_v48 = vpop.f32.mrb[63].mxu1 }
 0x39c   : > { %v2332_v49 = vadd.f32 %v2300_v28, %v2179_v63  ;;  %v2334_v55 = vadd.f32 %v2302_v57, %v2268_v48  ;;  %6785 = vmatmul.mubr.msk.bf16.gmra.mrb[76].mxu0 %vm1254_vm0, %v7617_v36  ;;  %6791 = vmatmul.mubr.msk.bf16.gmra.mrb[68].mxu1 %vm1254_vm0, %v7617_v36 }
 0x39d   : > { %v2359_v2 = vpack.c.bf16 %v2331_v20, %v2323_v10  ;;  %v2361_v6 = vpack.c.bf16 %v2333_v1, %v2325_v53  ;;  %2519 = vmatprep.mubr.bf16.mxu0 %v13047_v51  ;;  %2612 = vmatprep.mubr.bf16.mxu1 %v13047_v51 }
 0x39e   : > { %v2360_v7 = vpack.c.bf16 %v2332_v49, %v2324_v30  ;;  %v2362_v11 = vpack.c.bf16 %v2334_v55, %v2326_v31 }
 0x3a0   : > { %2655 = vmatprep.subr.bf16.mxu0 %v2360_v7  ;;  %2748 = vmatprep.subr.bf16.mxu1 %v2362_v11  ;;  %v9970_v7 = vpop.permute.xlu0 %2381 }
 0x3a1   : > { %2656 = vmatpush1.bf16.msra.mxu0 %v2359_v2  ;;  %2749 = vmatpush1.bf16.msra.mxu1 %v2361_v6 }
 0x3a4   : > { %6786 = vmatmul.mubr.msk.bf16.gmra.mrb[80].mxu0 %vm1254_vm0, %v7618_v41  ;;  %6792 = vmatmul.mubr.msk.bf16.gmra.mrb[72].mxu1 %vm1254_vm0, %v7618_v41 }
 0x3a5   : > { %2529 = vmatprep.mubr.bf16.mxu0 %v13047_v51  ;;  %2622 = vmatprep.mubr.bf16.mxu1 %v13047_v51 }
 0x3ac   : > { %6787 = vmatmul.mubr.msk.bf16.gmra.mrb[84].mxu0 %vm1254_vm0, %v7619_v18  ;;  %6793 = vmatmul.mubr.msk.bf16.gmra.mrb[76].mxu1 %vm1254_vm0, %v7619_v18 }
 0x3ad   : > { %2539 = vmatprep.mubr.bf16.mxu0 %v13047_v51  ;;  %2632 = vmatprep.mubr.bf16.mxu1 %v13047_v51 }
 0x3b4   : > { %6788 = vmatmul.mubr.msk.bf16.gmra.mrb[88].mxu0 %vm1254_vm0, %v7620_v42  ;;  %6794 = vmatmul.mubr.msk.bf16.gmra.mrb[80].mxu1 %vm1254_vm0, %v7620_v42 }
 0x3b5   : > { %2549 = vmatprep.mubr.bf16.mxu0 %v13047_v51  ;;  %2642 = vmatprep.mubr.bf16.mxu1 %v13047_v51 }
 0x3bc   : > { %6789 = vmatmul.mubr.msk.bf16.gmra.mrb[92].mxu0 %vm1254_vm0, %v7621_v56  ;;  %6795 = vmatmul.mubr.msk.bf16.gmra.mrb[84].mxu1 %vm1254_vm0, %v7621_v56 }
 0x3bd   : > { %2685 = vmatprep.mubr.bf16.mxu0 %v13047_v51  ;;  %2778 = vmatprep.mubr.bf16.mxu1 %v13047_v51 }
 0x3c4   : > { %6796 = vmatmul.mubr.msk.bf16.vlgmr.msra.gmra.mrb[96].mxu0 %vm1254_vm0, %v9832_v43  ;;  %6802 = vmatmul.mubr.msk.bf16.vlgmr.msra.gmra.mrb[88].mxu1 %vm1254_vm0, %v9832_v43  ;;  %v9926_v43 = vpop.permute.xlu1 %2372 }
 0x3c5   : > { %2695 = vmatprep.mubr.bf16.mxu0 %v13047_v51  ;;  %2788 = vmatprep.mubr.bf16.mxu1 %v13047_v51 }
 0x3c8   : > { %v9946_v47 = vpop.permute.xlu1 %2376 }
 0x3cc   : > { %6797 = vmatmul.mubr.msk.bf16.gmra.mrb[100].mxu0 %vm1254_vm0, %v7617_v36  ;;  %6803 = vmatmul.mubr.msk.bf16.gmra.mrb[92].mxu1 %vm1254_vm0, %v7617_v36  ;;  %v9968_v6 = vpop.permute.xlu1 %2386 }
 0x3cd   : > { %2705 = vmatprep.mubr.bf16.mxu0 %v13047_v51  ;;  %2798 = vmatprep.mubr.bf16.mxu1 %v13047_v51 }
 0x3d4   : > { %6798 = vmatmul.mubr.msk.bf16.gmra.mrb[104].mxu0 %vm1254_vm0, %v7618_v41  ;;  %6804 = vmatmul.mubr.msk.bf16.gmra.mrb[96].mxu1 %vm1254_vm0, %v7618_v41 }
 0x3d5   : > { %2715 = vmatprep.mubr.bf16.mxu0 %v13047_v51  ;;  %2808 = vmatprep.mubr.bf16.mxu1 %v13047_v51 }
 0x3dc   : > { %6799 = vmatmul.mubr.msk.bf16.gmra.mrb[108].mxu0 %vm1254_vm0, %v7619_v18  ;;  %6805 = vmatmul.mubr.msk.bf16.gmra.mrb[100].mxu1 %vm1254_vm0, %v7619_v18 }
 0x3dd   : > { %2725 = vmatprep.mubr.bf16.mxu0 %v13047_v51  ;;  %2818 = vmatprep.mubr.bf16.mxu1 %v13047_v51 }
 0x3e4   : > { %6800 = vmatmul.mubr.msk.bf16.gmra.mrb[112].mxu0 %vm1254_vm0, %v7620_v42  ;;  %6806 = vmatmul.mubr.msk.bf16.gmra.mrb[104].mxu1 %vm1254_vm0, %v7620_v42 }
 0x3e5   : > { %2735 = vmatprep.mubr.bf16.mxu0 %v13047_v51  ;;  %2828 = vmatprep.mubr.bf16.mxu1 %v13047_v51 }
 0x3ec   : > { %6801 = vmatmul.mubr.msk.bf16.gmra.mrb[116].mxu0 %vm1254_vm0, %v7621_v56  ;;  %6807 = vmatmul.mubr.msk.bf16.gmra.mrb[108].mxu1 %vm1254_vm0, %v7621_v56 }
 0x3ed   : > { %2995 = vmatprep.mubr.bf16.mxu0 %v13047_v51 }
 0x467   : > { %v2501_v59 = vpop.f32.mrb[72].mxu0  ;;  %v2594_v0 = vpop.f32.mrb[64].mxu1 }
 0x468   : > { %v2502_v3 = vadd.f32 %v2501_v59, %v9924_v19  ;;  %v2595_v45 = vadd.f32 %v2594_v0, %v9924_v19  ;;  %v2503_v9 = vpop.f32.mrb[73].mxu0  ;;  %v2596_v8 = vpop.f32.mrb[65].mxu1 }
 0x469   : > { %v2504_v25 = vadd.f32 %v2503_v9, %v9924_v19  ;;  %v2597_v54 = vadd.f32 %v2596_v8, %v9924_v19  ;;  %v2505_v60 = vpop.f32.mrb[74].mxu0  ;;  %v2598_v26 = vpop.f32.mrb[66].mxu1 }
 0x46a   : > { %v9934_v4 = vmul.f32 0.17677669, %v2595_v45  ;;  %v2506_v38 = vadd.f32 %v2505_v60, %v9928_v14  ;;  %v2599_v15 = vadd.f32 %v2598_v26, %v9928_v14  ;;  %v2507_v5 = vpop.f32.mrb[75].mxu0  ;;  %v2600_v16 = vpop.f32.mrb[67].mxu1  ;;  %v2839_v50 = vmul.f32 0.17677669, %v2502_v3 }
 0x46b   : > { %v9938_v27 = vmul.f32 0.17677669, %v2597_v54  ;;  %v2508_v12 = vadd.f32 %v2507_v5, %v9928_v14  ;;  %v2601_v29 = vadd.f32 %v2600_v16, %v9928_v14  ;;  %v2840_v61 = vmul.f32 0.17677669, %v2504_v25 }
 0x46c   : > { %13309 = vst [vmem:[#allocation7_spill] sm:$0xff] %v9934_v4  ;;  %v2847_v34 = vmul.f32 0.17677669, %v2506_v38  ;;  %v9942_v21 = vmul.f32 0.17677669, %v2599_v15 }
 0x46d   : > { %13310 = vst [vmem:[#allocation8_spill] sm:$0xff] %v9938_v27  ;;  %v2848_v33 = vmul.f32 0.17677669, %v2508_v12  ;;  %v9944_v13 = vmul.f32 0.17677669, %v2601_v29 }
 0x46e   : > { %13311 = vst [vmem:[#allocation9_spill] sm:$0xff] %v9942_v21  ;;  %v2871_v35 = vpack.c.bf16 %v2847_v34, %v2839_v50 }
 0x46f   : > { %13312 = vst [vmem:[#allocation15_spill] sm:$0xff] %v9944_v13  ;;  %v2872_v40 = vpack.c.bf16 %v2848_v33, %v2840_v61  ;;  %v2511_v10 = vpop.f32.mrb[76].mxu0  ;;  %v2604_v53 = vpop.f32.mrb[68].mxu1 }
 0x470   : > { %v2512_v22 = vadd.f32 %v2511_v10, %v9926_v43  ;;  %v2605_v24 = vadd.f32 %v2604_v53, %v9926_v43  ;;  %v2513_v30 = vpop.f32.mrb[77].mxu0  ;;  %v2606_v31 = vpop.f32.mrb[69].mxu1  ;;  %2883 = vxpose.xlu0.c.b16.start [1/2] (short) %v2871_v35, 128 }
 0x471   : > { %v2514_v36 = vadd.f32 %v2513_v30, %v9926_v43  ;;  %v2607_v62 = vadd.f32 %v2606_v31, %v9926_v43  ;;  %v2515_v23 = vpop.f32.mrb[78].mxu0  ;;  %v2608_v32 = vpop.f32.mrb[70].mxu1  ;;  %2899 = vxpose.xlu1.c.b16.start [1/2] (short) %v2872_v40, 128 }
 0x472   : > { %v2516_v37 = vadd.f32 %v2515_v23, %v9946_v47  ;;  %v2609_v46 = vadd.f32 %v2608_v32, %v9946_v47  ;;  %v2517_v28 = vpop.f32.mrb[79].mxu0  ;;  %v2610_v52 = vpop.f32.mrb[71].mxu1  ;;  %v2855_v57 = vmul.f32 0.17677669, %v2512_v22  ;;  %v9958_v17 = vmul.f32 0.17677669, %v2605_v24 }
 0x473   : > { %v2518_v58 = vadd.f32 %v2517_v28, %v9946_v47  ;;  %v2611_v20 = vadd.f32 %v2610_v52, %v9946_v47  ;;  %v2856_v1 = vmul.f32 0.17677669, %v2514_v36  ;;  %v9964_v49 = vmul.f32 0.17677669, %v2607_v62  ;;  %v9996_v33 = vpop.permute.xlu1 %2396  ;;  %v9998_v35 = vpop.permute.xlu0 %2391 }
 0x474   : > { %13313 = vst [vmem:[#allocation16_spill] sm:$0xff] %v9958_v17  ;;  %v2863_v63 = vmul.f32 0.17677669, %v2516_v37  ;;  %v9962_v48 = vmul.f32 0.17677669, %v2609_v46 }
 0x475   : > { %13315 = vst [vmem:[#allocation10_spill] sm:$0xff] %v9964_v49  ;;  %v2864_v55 = vmul.f32 0.17677669, %v2518_v58  ;;  %v9966_v2 = vmul.f32 0.17677669, %v2611_v20 }
 0x476   : > { %13314 = vst [vmem:[#allocation17_spill] sm:$0xff] %v9962_v48  ;;  %v2873_v11 = vpack.c.bf16 %v2863_v63, %v2855_v57 }
 0x477   : > { %13316 = vst [vmem:[#allocation20_spill] sm:$0xff] %v9966_v2  ;;  %v2874_v18 = vpack.c.bf16 %v2864_v55, %v2856_v1  ;;  %v2521_v56 = vpop.f32.mrb[80].mxu0  ;;  %v2614_v59 = vpop.f32.mrb[72].mxu1 }
 0x478   : > { %v2523_v0 = vpop.f32.mrb[81].mxu0  ;;  %v2616_v3 = vpop.f32.mrb[73].mxu1  ;;  %2884 = vxpose.xlu0.c.b16.end [2/2] (short) %v2873_v11, 128  ;;  %v2522_v8 = vadd.f32 %v2521_v56, %v9970_v7  ;;  %v9978_v25 = vadd.f32 %v2614_v59, %v9970_v7 }
 0x479   : > { %v2525_v45 = vpop.f32.mrb[82].mxu0  ;;  %v2618_v9 = vpop.f32.mrb[74].mxu1  ;;  %2900 = vxpose.xlu1.c.b16.end [2/2] (short) %v2874_v18, 128  ;;  %v2524_v15 = vadd.f32 %v2523_v0, %v9970_v7  ;;  %v9986_v5 = vadd.f32 %v2616_v3, %v9970_v7 }
 0x47a   : > { %13317 = vst [vmem:[#allocation11_spill] sm:$0xff] %v9978_v25  ;;  %v2526_v54 = vadd.f32 %v2525_v45, %v9968_v6  ;;  %v9982_v60 = vadd.f32 %v2618_v9, %v9968_v6  ;;  %v2527_v26 = vpop.f32.mrb[83].mxu0  ;;  %v2620_v38 = vpop.f32.mrb[75].mxu1 }
 0x47b   : > { %13319 = vst [vmem:[#allocation13_spill] sm:$0xff] %v9986_v5  ;;  %v2528_v16 = vadd.f32 %v2527_v26, %v9968_v6  ;;  %v9990_v12 = vadd.f32 %v2620_v38, %v9968_v6 }
 0x47c   : > { %13318 = vst [vmem:[#allocation12_spill] sm:$0xff] %v9982_v60  ;;  %v2875_v29 = vpack.c.bf16 %v2526_v54, %v2522_v8 }
 0x47d   : > { %13320 = vst [vmem:[#allocation23_spill] sm:$0xff] %v9990_v12  ;;  %v2876_v34 = vpack.c.bf16 %v2528_v16, %v2524_v15 }
 0x47f   : > { %v2531_v40 = vpop.f32.mrb[84].mxu0  ;;  %v2624_v10 = vpop.f32.mrb[76].mxu1  ;;  %2963 = vmatprep.subr.bf16.mxu0 %v2876_v34 }
 0x480   : > { %v2533_v53 = vpop.f32.mrb[85].mxu0  ;;  %v2626_v22 = vpop.f32.mrb[77].mxu1  ;;  %2964 = vmatpush1.bf16.msra.mxu0 %v2875_v29  ;;  %v2532_v31 = vadd.f32 %v2531_v40, %v9998_v35  ;;  %v10002_v36 = vadd.f32 %v2624_v10, %v9998_v35 }
 0x481   : > { %v2535_v24 = vpop.f32.mrb[86].mxu0  ;;  %v2628_v30 = vpop.f32.mrb[78].mxu1  ;;  %v2534_v46 = vadd.f32 %v2533_v53, %v9998_v35  ;;  %v10010_v28 = vadd.f32 %v2626_v22, %v9998_v35 }
 0x482   : > { %13321 = vst [vmem:[#allocation24_spill] sm:$0xff] %v10002_v36  ;;  %v2536_v62 = vadd.f32 %v2535_v24, %v9996_v33  ;;  %v10006_v23 = vadd.f32 %v2628_v30, %v9996_v33  ;;  %v2537_v32 = vpop.f32.mrb[87].mxu0  ;;  %v2630_v37 = vpop.f32.mrb[79].mxu1 }
 0x483   : > { %13323 = vst [vmem:[#allocation14_spill] sm:$0xff] %v10010_v28  ;;  %v2538_v52 = vadd.f32 %v2537_v32, %v9996_v33  ;;  %v10014_v57 = vadd.f32 %v2630_v37, %v9996_v33 }
 0x484   : > { %13322 = vst [vmem:[#allocation25_spill] sm:$0xff] %v10006_v23  ;;  %v2877_v58 = vpack.c.bf16 %v2536_v62, %v2532_v31 }
 0x485   : > { %13324 = vst [vmem:[#allocation28_spill] sm:$0xff] %v10014_v57  ;;  %v2878_v1 = vpack.c.bf16 %v2538_v52, %v2534_v46 }
 0x487   : > { %2965 = vmatprep.subr.bf16.mxu0 %v2878_v1  ;;  %v10020_v55 = vpop.f32.mrb[88].mxu0  ;;  %v10022_v11 = vpop.f32.mrb[80].mxu1 }
 0x488   : > { %13325 = vst [vmem:[#allocation18_spill] sm:$0xff] %v10020_v55  ;;  %13326 = vst [vmem:[#allocation19_spill] sm:$0xff] %v10022_v11  ;;  %2966 = vmatpush1.bf16.msra.mxu0 %v2877_v58  ;;  %v10024_v18 = vpop.f32.mrb[89].mxu0  ;;  %v10026_v56 = vpop.f32.mrb[81].mxu1 }
 0x489   : > { %13327 = vst [vmem:[#allocation21_spill] sm:$0xff] %v10024_v18  ;;  %13328 = vst [vmem:[#allocation31_spill] sm:$0xff] %v10026_v56  ;;  %v10028_v59 = vpop.f32.mrb[90].mxu0  ;;  %v10030_v0 = vpop.f32.mrb[82].mxu1 }
 0x48a   : > { %13329 = vst [vmem:[#allocation32_spill] sm:$0xff] %v10028_v59  ;;  %13330 = vst [vmem:[#allocation22_spill] sm:$0xff] %v10030_v0  ;;  %v10032_v3 = vpop.f32.mrb[91].mxu0  ;;  %v10034_v45 = vpop.f32.mrb[83].mxu1 }
 0x48b   : > { %13331 = vst [vmem:[#allocation26_spill] sm:$0xff] %v10032_v3  ;;  %13332 = vst [vmem:[#allocation27_spill] sm:$0xff] %v10034_v45 }
 0x48f   : > { %v10036_v9 = vpop.f32.mrb[92].mxu0  ;;  %v10038_v8 = vpop.f32.mrb[84].mxu1 }
 0x490   : > { %13333 = vst [vmem:[#allocation29_spill] sm:$0xff] %v10036_v9  ;;  %13334 = vst [vmem:[#allocation30_spill] sm:$0xff] %v10038_v8  ;;  %v10040_v54 = vpop.f32.mrb[93].mxu0  ;;  %v10042_v26 = vpop.f32.mrb[85].mxu1 }
 0x491   : > { %13335 = vst [vmem:[#allocation33_spill] sm:$0xff] %v10040_v54  ;;  %13336 = vst [vmem:[#allocation34_spill] sm:$0xff] %v10042_v26  ;;  %v10044_v38 = vpop.f32.mrb[94].mxu0  ;;  %v10046_v15 = vpop.f32.mrb[86].mxu1 }
 0x492   : > { %13337 = vst [vmem:[#allocation35_spill] sm:$0xff] %v10044_v38  ;;  %13338 = vst [vmem:[#allocation36_spill] sm:$0xff] %v10046_v15  ;;  %v10048_v16 = vpop.f32.mrb[95].mxu0  ;;  %v10050_v29 = vpop.f32.mrb[87].mxu1 }
 0x493   : > { %13339 = vst [vmem:[#allocation37_spill] sm:$0xff] %v10048_v16  ;;  %13340 = vst [vmem:[#allocation38_spill] sm:$0xff] %v10050_v29 }
 0x497   : > { %v2687_v34 = vpop.f32.mrb[96].mxu0  ;;  %v2780_v40 = vpop.f32.mrb[88].mxu1 }
 0x498   : > { %v2688_v10 = vadd.f32 %v2687_v34, %v9924_v19  ;;  %v2781_v53 = vadd.f32 %v2780_v40, %v9924_v19  ;;  %v2689_v22 = vpop.f32.mrb[97].mxu0  ;;  %v2782_v24 = vpop.f32.mrb[89].mxu1 }
 0x499   : > { %v2690_v30 = vadd.f32 %v2689_v22, %v9924_v19  ;;  %v2783_v31 = vadd.f32 %v2782_v24, %v9924_v19  ;;  %v2691_v62 = vpop.f32.mrb[98].mxu0  ;;  %v2784_v32 = vpop.f32.mrb[90].mxu1 }
 0x49a   : > { %v2692_v37 = vadd.f32 %v2691_v62, %v9928_v14  ;;  %v2785_v46 = vadd.f32 %v2784_v32, %v9928_v14  ;;  %v2693_v52 = vpop.f32.mrb[99].mxu0  ;;  %v2786_v58 = vpop.f32.mrb[91].mxu1  ;;  %v10058_v1 = vmul.f32 0.17677669, %v2688_v10  ;;  %v10060_v20 = vmul.f32 0.17677669, %v2781_v53 }
 0x49b   : > { %v2694_v34 = vadd.f32 %v2693_v52, %v9928_v14  ;;  %v2787_v40 = vadd.f32 %v2786_v58, %v9928_v14  ;;  %v10064_v63 = vmul.f32 0.17677669, %v2690_v30  ;;  %v10070_v24 = vmul.f32 0.17677669, %v2783_v31 }
 0x49c   : > { %13341 = vst [vmem:[#allocation39_spill] sm:$0xff] %v10058_v1  ;;  %13342 = vst [vmem:[#allocation40_spill] sm:$0xff] %v10060_v20  ;;  %v10066_v22 = vmul.f32 0.17677669, %v2692_v37  ;;  %v10068_v19 = vmul.f32 0.17677669, %v2785_v46 }
 0x49d   : > { %13343 = vst [vmem:[#allocation41_spill] sm:$0xff] %v10064_v63  ;;  %13346 = vst [vmem:[#allocation44_spill] sm:$0xff] %v10070_v24  ;;  %v10072_v62 = vmul.f32 0.17677669, %v2694_v34  ;;  %v10074_v32 = vmul.f32 0.17677669, %v2787_v40 }
 0x49e   : > { %13344 = vst [vmem:[#allocation42_spill] sm:$0xff] %v10066_v22  ;;  %13345 = vst [vmem:[#allocation43_spill] sm:$0xff] %v10068_v19 }
 0x49f   : > { %13347 = vst [vmem:[#allocation45_spill] sm:$0xff] %v10072_v62  ;;  %13348 = vst [vmem:[#allocation46_spill] sm:$0xff] %v10074_v32  ;;  %v2697_v37 = vpop.f32.mrb[100].mxu0  ;;  %v2790_v46 = vpop.f32.mrb[92].mxu1 }
 0x4a0   : > { %v2698_v31 = vadd.f32 %v2697_v37, %v9926_v43  ;;  %v2791_v52 = vadd.f32 %v2790_v46, %v9926_v43  ;;  %v2699_v58 = vpop.f32.mrb[101].mxu0  ;;  %v2792_v34 = vpop.f32.mrb[93].mxu1 }
 0x4a1   : > { %v2700_v40 = vadd.f32 %v2699_v58, %v9926_v43  ;;  %v2793_v10 = vadd.f32 %v2792_v34, %v9926_v43  ;;  %v2701_v50 = vpop.f32.mrb[102].mxu0  ;;  %v2794_v53 = vpop.f32.mrb[94].mxu1 }
 0x4a2   : > { %v2702_v61 = vadd.f32 %v2701_v50, %v9946_v47  ;;  %v2795_v14 = vadd.f32 %v2794_v53, %v9946_v47  ;;  %v2703_v42 = vpop.f32.mrb[103].mxu0  ;;  %v2796_v30 = vpop.f32.mrb[95].mxu1  ;;  %v10090_v44 = vmul.f32 0.17677669, %v2698_v31  ;;  %v10092_v41 = vmul.f32 0.17677669, %v2791_v52 }
 0x4a3   : > { %v2704_v37 = vadd.f32 %v2703_v42, %v9946_v47  ;;  %v2797_v46 = vadd.f32 %v2796_v30, %v9946_v47  ;;  %v10096_v39 = vmul.f32 0.17677669, %v2700_v40  ;;  %v10102_v34 = vmul.f32 0.17677669, %v2793_v10 }
 0x4a4   : > { %13349 = vst [vmem:[#allocation47_spill] sm:$0xff] %v10090_v44  ;;  %13350 = vst [vmem:[#allocation48_spill] sm:$0xff] %v10092_v41  ;;  %v10098_v58 = vmul.f32 0.17677669, %v2702_v61  ;;  %v10100_v43 = vmul.f32 0.17677669, %v2795_v14 }
 0x4a5   : > { %13351 = vst [vmem:[#allocation49_spill] sm:$0xff] %v10096_v39  ;;  %13354 = vst [vmem:[#allocation52_spill] sm:$0xff] %v10102_v34  ;;  %v10104_v50 = vmul.f32 0.17677669, %v2704_v37  ;;  %v10106_v53 = vmul.f32 0.17677669, %v2797_v46 }
 0x4a6   : > { %13352 = vst [vmem:[#allocation50_spill] sm:$0xff] %v10098_v58  ;;  %13353 = vst [vmem:[#allocation51_spill] sm:$0xff] %v10100_v43 }
 0x4a7   : > { %13355 = vst [vmem:[#allocation53_spill] sm:$0xff] %v10104_v50  ;;  %13356 = vst [vmem:[#allocation54_spill] sm:$0xff] %v10106_v53  ;;  %v2707_v14 = vpop.f32.mrb[104].mxu0  ;;  %v2800_v30 = vpop.f32.mrb[96].mxu1 }
 0x4a8   : > { %v2709_v10 = vpop.f32.mrb[105].mxu0  ;;  %v2802_v52 = vpop.f32.mrb[97].mxu1  ;;  %v10117_v46 = vadd.f32 %v2707_v14, %v9970_v7  ;;  %v10120_v31 = vadd.f32 %v2800_v30, %v9970_v7 }
 0x4a9   : > { %v2711_v40 = vpop.f32.mrb[106].mxu0  ;;  %v2804_v37 = vpop.f32.mrb[98].mxu1  ;;  %v10129_v34 = vadd.f32 %v2709_v10, %v9970_v7  ;;  %v10132_v53 = vadd.f32 %v2802_v52, %v9970_v7 }
 0x4aa   : > { %13357 = vst [vmem:[#allocation55_spill] sm:$0xff] %v10117_v46  ;;  %13358 = vst [vmem:[#allocation56_spill] sm:$0xff] %v10120_v31  ;;  %v10123_v42 = vadd.f32 %v2711_v40, %v9968_v6  ;;  %v10126_v47 = vadd.f32 %v2804_v37, %v9968_v6  ;;  %v2713_v51 = vpop.f32.mrb[107].mxu0  ;;  %v2806_v61 = vpop.f32.mrb[99].mxu1 }
 0x4ab   : > { %13361 = vst [vmem:[#allocation59_spill] sm:$0xff] %v10129_v34  ;;  %13362 = vst [vmem:[#allocation60_spill] sm:$0xff] %v10132_v53  ;;  %v10135_v14 = vadd.f32 %v2713_v51, %v9968_v6  ;;  %v10138_v30 = vadd.f32 %v2806_v61, %v9968_v6 }
 0x4ac   : > { %13359 = vst [vmem:[#allocation57_spill] sm:$0xff] %v10123_v42  ;;  %13360 = vst [vmem:[#allocation58_spill] sm:$0xff] %v10126_v47 }
 0x4ad   : > { %13363 = vst [vmem:[#allocation61_spill] sm:$0xff] %v10135_v14  ;;  %13364 = vst [vmem:[#allocation62_spill] sm:$0xff] %v10138_v30 }
 0x4af   : > { %v2717_v7 = vpop.f32.mrb[108].mxu0  ;;  %v2810_v52 = vpop.f32.mrb[100].mxu1 }
 0x4b0   : > { %v2719_v43 = vpop.f32.mrb[109].mxu0  ;;  %v2812_v51 = vpop.f32.mrb[101].mxu1  ;;  %v10149_v6 = vadd.f32 %v2717_v7, %v9998_v35  ;;  %v10152_v61 = vadd.f32 %v2810_v52, %v9998_v35 }
 0x4b1   : > { %v2721_v24 = vpop.f32.mrb[110].mxu0  ;;  %v2814_v32 = vpop.f32.mrb[102].mxu1  ;;  %v10161_v31 = vadd.f32 %v2719_v43, %v9998_v35  ;;  %v10164_v47 = vadd.f32 %v2812_v51, %v9998_v35  ;;  %v13381_v43 = vmov 0  }
 0x4b2   : > { %13365 = vst [vmem:[#allocation63_spill] sm:$0xff] %v10149_v6  ;;  %13366 = vst [vmem:[#allocation64_spill] sm:$0xff] %v10152_v61  ;;  %v10155_v37 = vadd.f32 %v2721_v24, %v9996_v33  ;;  %v10158_v40 = vadd.f32 %v2814_v32, %v9996_v33  ;;  %v2723_v41 = vpop.f32.mrb[111].mxu0  ;;  %v2816_v10 = vpop.f32.mrb[103].mxu1 }
 0x4b3   : > { %13369 = vst [vmem:[#allocation67_spill] sm:$0xff] %v10161_v31  ;;  %13370 = vst [vmem:[#allocation68_spill] sm:$0xff] %v10164_v47  ;;  %v10167_v7 = vadd.f32 %v2723_v41, %v9996_v33  ;;  %v10170_v52 = vadd.f32 %v2816_v10, %v9996_v33 }
 0x4b4   : > { %13367 = vst [vmem:[#allocation65_spill] sm:$0xff] %v10155_v37  ;;  %13368 = vst [vmem:[#allocation66_spill] sm:$0xff] %v10158_v40 }
 0x4b5   : > { %13371 = vst [vmem:[#allocation69_spill] sm:$0xff] %v10167_v7  ;;  %13372 = vst [vmem:[#allocation70_spill] sm:$0xff] %v10170_v52 }
 0x4b7   : > { %v10180_v35 = vpop.f32.mrb[112].mxu0 }
 0x4b8   : > { %13373 = vst [vmem:[#allocation71_spill] sm:$0xff] %v10180_v35  ;;  %v10182_v51 = vpop.f32.mrb[113].mxu0 }
 0x4b9   : > { %13374 = vst [vmem:[#allocation72_spill] sm:$0xff] %v10182_v51  ;;  %v10184_v41 = vpop.f32.mrb[114].mxu0 }
 0x4ba   : > { %13375 = vst [vmem:[#allocation73_spill] sm:$0xff] %v10184_v41  ;;  %v10186_v33 = vpop.f32.mrb[115].mxu0 }
 0x4bb   : > { %13376 = vst [vmem:[#allocation74_spill] sm:$0xff] %v10186_v33 }
 0x4bf   : > { %v10188_v10 = vpop.f32.mrb[116].mxu0 }
 0x4c0   : > { %13377 = vst [vmem:[#allocation75_spill] sm:$0xff] %v10188_v10  ;;  %v10190_v24 = vpop.f32.mrb[117].mxu0 }
 0x4c1   : > { %13378 = vst [vmem:[#allocation76_spill] sm:$0xff] %v10190_v24  ;;  %v10192_v30 = vpop.f32.mrb[118].mxu0 }
 0x4c2   : > { %13379 = vst [vmem:[#allocation77_spill] sm:$0xff] %v10192_v30  ;;  %v10194_v61 = vpop.f32.mrb[119].mxu0 }
 0x4c3   : > { %13380 = vst [vmem:[#allocation78_spill] sm:$0xff] %v10194_v61 }
 0x4da   : > { %v2891_v32 = vpop.trf.xlu0 }
 0x4db   : > { %6808 = vmatmul.mubr.msk.bf16.vlgmr.msra.gmra.mrb[120].mxu0 %vm1254_vm0, %v2891_v32 }
 0x4dc   : > { %3005 = vmatprep.mubr.bf16.mxu0 %v13381_v43 }
 0x4de   : > { %v2892_v53 = vpop.trf.xlu0 }
 0x4e2   : > { %v2893_v40 = vpop.trf.xlu0 }
 0x4e3   : > { %6809 = vmatmul.mubr.msk.bf16.gmra.mrb[124].mxu0 %vm1254_vm0, %v2892_v53 }
 0x4e4   : > { %3015 = vmatprep.mubr.bf16.mxu0 %v13381_v43 }
 0x4e6   : > { %v2894_v47 = vpop.trf.xlu0 }
 0x4ea   : > { %v2895_v52 = vpop.trf.xlu0 }
 0x4eb   : > { %6810 = vmatmul.mubr.msk.bf16.gmra.mrb[128].mxu0 %vm1254_vm0, %v2893_v40 }
 0x4ec   : > { %3025 = vmatprep.mubr.bf16.mxu0 %v13381_v43 }
 0x4ee   : > { %v2896_v32 = vpop.trf.xlu0 }
 0x4f2   : > { %v2897_v53 = vpop.trf.xlu0 }
 0x4f3   : > { %6811 = vmatmul.mubr.msk.bf16.gmra.mrb[132].mxu0 %vm1254_vm0, %v2894_v47  ;;  %v2907_v47 = vpop.trf.xlu1 }
 0x4f4   : > { %3035 = vmatprep.mubr.bf16.mxu0 %v13381_v43 }
 0x4f6   : > { %v2898_v40 = vpop.trf.xlu0 }
 0x4fb   : > { %6812 = vmatmul.mubr.msk.bf16.gmra.mrb[136].mxu0 %vm1254_vm0, %v2895_v52  ;;  %v2908_v52 = vpop.trf.xlu1 }
 0x4fc   : > { %3045 = vmatprep.mubr.bf16.mxu0 %v13381_v43 }
 0x503   : > { %6813 = vmatmul.mubr.msk.bf16.gmra.mrb[140].mxu0 %vm1254_vm0, %v2896_v32  ;;  %v2909_v32 = vpop.trf.xlu1 }
 0x504   : > { %3055 = vmatprep.mubr.bf16.mxu0 %v13381_v43 }
 0x50b   : > { %6814 = vmatmul.mubr.msk.bf16.gmra.mrb[144].mxu0 %vm1254_vm0, %v2897_v53  ;;  %v2910_v53 = vpop.trf.xlu1 }
 0x50c   : > { %3065 = vmatprep.mubr.bf16.mxu0 %v13381_v43 }
 0x513   : > { %6815 = vmatmul.mubr.msk.bf16.gmra.mrb[148].mxu0 %vm1254_vm0, %v2898_v40  ;;  %v2911_v40 = vpop.trf.xlu1 }
 0x514   : > { %3075 = vmatprep.mubr.bf16.mxu0 %v13381_v43 }
 0x51b   : > { %6816 = vmatmul.mubr.msk.bf16.gmra.mrb[152].mxu0 %vm1254_vm0, %v2907_v47  ;;  %v2912_v47 = vpop.trf.xlu1 }
 0x51c   : > { %3085 = vmatprep.mubr.bf16.mxu0 %v13381_v43 }
 0x523   : > { %6817 = vmatmul.mubr.msk.bf16.gmra.mrb[156].mxu0 %vm1254_vm0, %v2908_v52  ;;  %v2913_v52 = vpop.trf.xlu1 }
 0x524   : > { %3095 = vmatprep.mubr.bf16.mxu0 %v13381_v43 }
 0x52b   : > { %6818 = vmatmul.mubr.msk.bf16.gmra.mrb[160].mxu0 %vm1254_vm0, %v2909_v32  ;;  %v2914_v32 = vpop.trf.xlu1 }
 0x52c   : > { %3105 = vmatprep.mubr.bf16.mxu0 %v13381_v43 }
 0x533   : > { %6819 = vmatmul.mubr.msk.bf16.gmra.mrb[164].mxu0 %vm1254_vm0, %v2910_v53 }
 0x534   : > { %3115 = vmatprep.mubr.bf16.mxu0 %v13381_v43 }
 0x53b   : > { %6820 = vmatmul.mubr.msk.bf16.gmra.mrb[168].mxu0 %vm1254_vm0, %v2911_v40 }
 0x53c   : > { %3125 = vmatprep.mubr.bf16.mxu0 %v13381_v43 }
 0x543   : > { %6821 = vmatmul.mubr.msk.bf16.gmra.mrb[172].mxu0 %vm1254_vm0, %v2912_v47 }
 0x544   : > { %3135 = vmatprep.mubr.bf16.mxu0 %v13381_v43 }
 0x54b   : > { %6822 = vmatmul.mubr.msk.bf16.gmra.mrb[176].mxu0 %vm1254_vm0, %v2913_v52 }
 0x54c   : > { %3145 = vmatprep.mubr.bf16.mxu0 %v13381_v43 }
 0x553   : > { %6823 = vmatmul.mubr.msk.bf16.gmra.mrb[180].mxu0 %vm1254_vm0, %v2914_v32 }
 0x5ae   : > { %v10227_v53 = vpop.f32.mrb[120].mxu0 }
 0x5af   : > { %v10229_v20 = vpop.f32.mrb[121].mxu0 }
 0x5b0   : > { %v10231_v40 = vpop.f32.mrb[122].mxu0  ;;  %v3156_v19 = vmax.f32 %v10227_v53, %v10229_v20 }
 0x5b1   : > { %v10235_v47 = vpop.f32.mrb[123].mxu0 }
 0x5b2   : > { %3157 = vmax.xlane.f32.xlu0 %v3156_v19  ;;  %v3159_v52 = vmax.f32 %v10231_v40, %v10235_v47 }
 0x5b4   : > { %3160 = vmax.xlane.f32.xlu1 %v3159_v52 }
 0x5b6   : > { %v10239_v6 = vpop.f32.mrb[124].mxu0 }
 0x5b7   : > { %v10241_v37 = vpop.f32.mrb[125].mxu0 }
 0x5b8   : > { %v3162_v32 = vmax.f32 %v10239_v6, %v10241_v37  ;;  %v10245_v31 = vpop.f32.mrb[126].mxu0 }
 0x5b9   : > { %v10247_v7 = vpop.f32.mrb[127].mxu0 }
 0x5ba   : > { %3163 = vmax.xlane.f32.xlu0 %v3162_v32  ;;  %v3165_v46 = vmax.f32 %v10245_v31, %v10247_v7 }
 0x5be   : > { %3166 = vmax.xlane.f32.xlu0 %v3165_v46  ;;  %v10251_v19 = vpop.f32.mrb[128].mxu0 }
 0x5bf   : > { %v10253_v42 = vpop.f32.mrb[129].mxu0 }
 0x5c0   : > { %v10255_v52 = vpop.f32.mrb[130].mxu0  ;;  %v3168_v34 = vmax.f32 %v10251_v19, %v10253_v42 }
 0x5c1   : > { %v10259_v14 = vpop.f32.mrb[131].mxu0 }
 0x5c2   : > { %3169 = vmax.xlane.f32.xlu1 %v3168_v34  ;;  %v3171_v39 = vmax.f32 %v10255_v52, %v10259_v14 }
 0x5c4   : > { %3172 = vmax.xlane.f32.xlu0 %v3171_v39 }
 0x5c6   : > { %v10263_v32 = vpop.f32.mrb[132].mxu0 }
 0x5c7   : > { %v10265_v50 = vpop.f32.mrb[133].mxu0 }
 0x5c8   : > { %v10267_v46 = vpop.f32.mrb[134].mxu0  ;;  %v3174_v44 = vmax.f32 %v10263_v32, %v10265_v50 }
 0x5c9   : > { %v10271_v58 = vpop.f32.mrb[135].mxu0 }
 0x5ca   : > { %3175 = vmax.xlane.f32.xlu1 %v3174_v44  ;;  %v3177_v63 = vmax.f32 %v10267_v46, %v10271_v58 }
 0x5cc   : > { %3178 = vmax.xlane.f32.xlu0 %v3177_v63 }
 0x5ce   : > { %v10275_v34 = vpop.f32.mrb[136].mxu0 }
 0x5cf   : > { %v10277_v62 = vpop.f32.mrb[137].mxu0 }
 0x5d0   : > { %v10279_v39 = vpop.f32.mrb[138].mxu0  ;;  %v3180_v1 = vmax.f32 %v10275_v34, %v10277_v62 }
 0x5d1   : > { %v10283_v22 = vpop.f32.mrb[139].mxu0 }
 0x5d2   : > { %3181 = vmax.xlane.f32.xlu1 %v3180_v1  ;;  %v3183_v43 = vmax.f32 %v10279_v39, %v10283_v22 }
 0x5d4   : > { %3184 = vmax.xlane.f32.xlu0 %v3183_v43 }
 0x5d6   : > { %v10287_v44 = vpop.f32.mrb[140].mxu0 }
 0x5d7   : > { %v10289_v36 = vpop.f32.mrb[141].mxu0 }
 0x5d8   : > { %v10291_v63 = vpop.f32.mrb[142].mxu0  ;;  %v3186_v23 = vmax.f32 %v10287_v44, %v10289_v36 }
 0x5d9   : > { %v10295_v28 = vpop.f32.mrb[143].mxu0 }
 0x5da   : > { %3187 = vmax.xlane.f32.xlu1 %v3186_v23  ;;  %v3189_v57 = vmax.f32 %v10291_v63, %v10295_v28 }
 0x5dc   : > { %3190 = vmax.xlane.f32.xlu0 %v3189_v57 }
 0x5de   : > { %v10299_v1 = vpop.f32.mrb[144].mxu0 }
 0x5df   : > { %v10301_v25 = vpop.f32.mrb[145].mxu0 }
 0x5e0   : > { %v10303_v43 = vpop.f32.mrb[146].mxu0  ;;  %v3192_v60 = vmax.f32 %v10299_v1, %v10301_v25 }
 0x5e1   : > { %v10307_v5 = vpop.f32.mrb[147].mxu0 }
 0x5e2   : > { %3193 = vmax.xlane.f32.xlu1 %v3192_v60  ;;  %v3195_v12 = vmax.f32 %v10303_v43, %v10307_v5 }
 0x5e4   : > { %3196 = vmax.xlane.f32.xlu0 %v3195_v12 }
 0x5e6   : > { %v10311_v23 = vpop.f32.mrb[148].mxu0 }
 0x5e7   : > { %v10313_v30 = vpop.f32.mrb[149].mxu0 }
 0x5e8   : > { %v10315_v57 = vpop.f32.mrb[150].mxu0  ;;  %v3198_v61 = vmax.f32 %v10311_v23, %v10313_v30 }
 0x5e9   : > { %v10319_v15 = vpop.f32.mrb[151].mxu0 }
 0x5ea   : > { %3199 = vmax.xlane.f32.xlu1 %v3198_v61  ;;  %v3201_v29 = vmax.f32 %v10315_v57, %v10319_v15 }
 0x5ec   : > { %3202 = vmax.xlane.f32.xlu0 %v3201_v29 }
 0x5ee   : > { %v10323_v60 = vpop.f32.mrb[152].mxu0 }
 0x5ef   : > { %v10325_v38 = vpop.f32.mrb[153].mxu0 }
 0x5f0   : > { %v10327_v12 = vpop.f32.mrb[154].mxu0  ;;  %v3204_v16 = vmax.f32 %v10323_v60, %v10325_v38 }
 0x5f1   : > { %v10331_v10 = vpop.f32.mrb[155].mxu0 }
 0x5f2   : > { %3205 = vmax.xlane.f32.xlu1 %v3204_v16  ;;  %v3207_v24 = vmax.f32 %v10327_v12, %v10331_v10 }
 0x5f4   : > { %3208 = vmax.xlane.f32.xlu0 %v3207_v24 }
 0x5f6   : > { %v10335_v61 = vpop.f32.mrb[156].mxu0 }
 0x5f7   : > { %v10337_v8 = vpop.f32.mrb[157].mxu0 }
 0x5f8   : > { %13382 = vst [vmem:[#allocation79_spill] sm:$0xff] %v10337_v8  ;;  %v10339_v29 = vpop.f32.mrb[158].mxu0  ;;  %v3210_v26 = vmax.f32 %v10335_v61, %v10337_v8 }
 0x5f9   : > { %13383 = vst [vmem:[#allocation80_spill] sm:$0xff] %v10339_v29  ;;  %v10343_v9 = vpop.f32.mrb[159].mxu0 }
 0x5fa   : > { %13384 = vst [vmem:[#allocation81_spill] sm:$0xff] %v10343_v9  ;;  %3211 = vmax.xlane.f32.xlu1 %v3210_v26  ;;  %v3213_v54 = vmax.f32 %v10339_v29, %v10343_v9 }
 0x5fc   : > { %3214 = vmax.xlane.f32.xlu0 %v3213_v54 }
 0x5fe   : > { %v10347_v16 = vpop.f32.mrb[160].mxu0 }
 0x5ff   : > { %13385 = vst [vmem:[#allocation82_spill] sm:$0xff] %v10347_v16  ;;  %v10349_v41 = vpop.f32.mrb[161].mxu0 }
 0x600   : > { %13386 = vst [vmem:[#allocation83_spill] sm:$0xff] %v10349_v41  ;;  %v10351_v24 = vpop.f32.mrb[162].mxu0  ;;  %v3216_v0 = vmax.f32 %v10347_v16, %v10349_v41 }
 0x601   : > { %13387 = vst [vmem:[#allocation84_spill] sm:$0xff] %v10351_v24  ;;  %v10355_v33 = vpop.f32.mrb[163].mxu0 }
 0x602   : > { %13388 = vst [vmem:[#allocation85_spill] sm:$0xff] %v10355_v33  ;;  %3217 = vmax.xlane.f32.xlu1 %v3216_v0  ;;  %v3219_v59 = vmax.f32 %v10351_v24, %v10355_v33 }
 0x604   : > { %3220 = vmax.xlane.f32.xlu0 %v3219_v59 }
 0x606   : > { %v10359_v26 = vpop.f32.mrb[164].mxu0 }
 0x607   : > { %13389 = vst [vmem:[#allocation86_spill] sm:$0xff] %v10359_v26  ;;  %v10361_v45 = vpop.f32.mrb[165].mxu0 }
 0x608   : > { %13390 = vst [vmem:[#allocation87_spill] sm:$0xff] %v10361_v45  ;;  %v10363_v54 = vpop.f32.mrb[166].mxu0  ;;  %v3222_v3 = vmax.f32 %v10359_v26, %v10361_v45 }
 0x609   : > { %13391 = vst [vmem:[#allocation88_spill] sm:$0xff] %v10363_v54  ;;  %v10367_v55 = vpop.f32.mrb[167].mxu0 }
 0x60a   : > { %13392 = vst [vmem:[#allocation89_spill] sm:$0xff] %v10367_v55  ;;  %3223 = vmax.xlane.f32.xlu1 %v3222_v3  ;;  %v3225_v56 = vmax.f32 %v10363_v54, %v10367_v55 }
 0x60c   : > { %3226 = vmax.xlane.f32.xlu0 %v3225_v56 }
 0x60e   : > { %v10371_v0 = vpop.f32.mrb[168].mxu0 }
 0x60f   : > { %13393 = vst [vmem:[#allocation90_spill] sm:$0xff] %v10371_v0  ;;  %v10373_v18 = vpop.f32.mrb[169].mxu0 }
 0x610   : > { %13394 = vst [vmem:[#allocation91_spill] sm:$0xff] %v10373_v18  ;;  %v3228_v59 = vmax.f32 %v10371_v0, %v10373_v18  ;;  %v10377_v35 = vpop.f32.mrb[170].mxu0 }
 0x611   : > { %v10379_v11 = vpop.f32.mrb[171].mxu0 }
 0x612   : > { %3229 = vmax.xlane.f32.xlu1 %v3228_v59 }
 0x616   : > { %v10383_v3 = vpop.f32.mrb[172].mxu0 }
 0x617   : > { %v10385_v49 = vpop.f32.mrb[173].mxu0 }
 0x618   : > { %v10387_v56 = vpop.f32.mrb[174].mxu0 }
 0x619   : > { %v10391_v27 = vpop.f32.mrb[175].mxu0 }
 0x61e   : > { %v10395_v17 = vpop.f32.mrb[176].mxu0 }
 0x61f   : > { %v10397_v59 = vpop.f32.mrb[177].mxu0 }
 0x620   : > { %v10401_v48 = vpop.f32.mrb[178].mxu0 }
 0x621   : > { %v10403_v4 = vpop.f32.mrb[179].mxu0 }
 0x626   : > { %v10407_v2 = vpop.f32.mrb[180].mxu0 }
 0x627   : > { %v10409_v18 = vpop.f32.mrb[181].mxu0 }
 0x628   : > { %v10413_v0 = vpop.f32.mrb[182].mxu0 }
 0x629   : > { %v10415_v55 = vpop.f32.mrb[183].mxu0 }
 0x63f   : > { %v3158_v54 = vpop.xlane.xlu0 %3157 }
 0x640   : > { %v3252_v45 = vsub.f32 %v10227_v53, %v3158_v54  ;;  %v3253_v26 = vsub.f32 %v10229_v20, %v3158_v54 }
 0x641   : > { %v3161_v21 = vpop.xlane.xlu1 %3160 }
 0x642   : > { %v3316_v33 = vmul.f32 1.442695, %v3252_v45  ;;  %v3318_v24 = vmul.f32 1.442695, %v3253_v26  ;;  %v3254_v41 = vsub.f32 %v10231_v40, %v3161_v21  ;;  %v3255_v16 = vsub.f32 %v10235_v47, %v3161_v21 }
 0x644   : > { %7632 = vpow2.f32 %v3316_v33  ;;  %v3320_v13 = vmul.f32 1.442695, %v3254_v41  ;;  %v3322_v9 = vmul.f32 1.442695, %v3255_v16 }
 0x645   : > { %7634 = vpow2.f32 %v3318_v24 }
 0x646   : > { %7636 = vpow2.f32 %v3320_v13 }
 0x647   : > { %7638 = vpow2.f32 %v3322_v9  ;;  %v3164_v29 = vpop.xlane.xlu0 %3163 }
 0x648   : > { %v3256_v51 = vsub.f32 %v10239_v6, %v3164_v29  ;;  %v3257_v53 = vsub.f32 %v10241_v37, %v3164_v29 }
 0x64a   : > { %v3324_v8 = vmul.f32 1.442695, %v3256_v51  ;;  %v3326_v20 = vmul.f32 1.442695, %v3257_v53 }
 0x64b   : > { %v3167_v54 = vpop.xlane.xlu0 %3166 }
 0x64c   : > { %7640 = vpow2.f32 %v3324_v8  ;;  %v3258_v45 = vsub.f32 %v10245_v31, %v3167_v54  ;;  %v3259_v40 = vsub.f32 %v10247_v7, %v3167_v54 }
 0x64d   : > { %7642 = vpow2.f32 %v3326_v20  ;;  %v13395_v20 = vmax.f32 %v10383_v3, %v10385_v49 }
 0x64e   : > { %v10427_v21 = vpop.eup %7632  ;;  %v3328_v41 = vmul.f32 1.442695, %v3258_v45  ;;  %v3330_v33 = vmul.f32 1.442695, %v3259_v40 }
 0x64f   : > { %v10429_v13 = vpop.eup %7634  ;;  %v3170_v9 = vpop.xlane.xlu1 %3169 }
 0x650   : > { %v10431_v47 = vpop.eup %7636  ;;  %7644 = vpow2.f32 %v3328_v41  ;;  %v3260_v37 = vsub.f32 %v10251_v19, %v3170_v9  ;;  %v3261_v6 = vsub.f32 %v10253_v42, %v3170_v9  ;;  %v3444_v8 = vadd.f32 %v10429_v13, %v10427_v21 }
 0x651   : > { %v10437_v31 = vpop.eup %7638  ;;  %7646 = vpow2.f32 %v3330_v33  ;;  %v3173_v7 = vpop.xlane.xlu0 %3172  ;;  %v13396_v41 = vmax.f32 %v10377_v35, %v10379_v11 }
 0x652   : > { %v3332_v51 = vmul.f32 1.442695, %v3260_v37  ;;  %v3334_v29 = vmul.f32 1.442695, %v3261_v6  ;;  %v3262_v16 = vsub.f32 %v10255_v52, %v3173_v7  ;;  %v3263_v24 = vsub.f32 %v10259_v14, %v3173_v7  ;;  %3445 = vadd.xlane.f32.xlu1 %v3444_v8 }
 0x653   : > { %v3447_v26 = vadd.f32 %v10437_v31, %v10431_v47 }
 0x654   : > { %7648 = vpow2.f32 %v3332_v51  ;;  %v3336_v19 = vmul.f32 1.442695, %v3262_v16  ;;  %v3338_v42 = vmul.f32 1.442695, %v3263_v24  ;;  %v13397_v24 = vmax.f32 %v10395_v17, %v10397_v59 }
 0x655   : > { %7650 = vpow2.f32 %v3334_v29  ;;  %3448 = vadd.xlane.f32.xlu0 %v3447_v26 }
 0x656   : > { %v10443_v53 = vpop.eup %7640  ;;  %7652 = vpow2.f32 %v3336_v19  ;;  %3235 = vmax.xlane.f32.xlu1 %v13395_v20 }
 0x657   : > { %v10448_v54 = vpop.eup %7642  ;;  %7654 = vpow2.f32 %v3338_v42  ;;  %v3176_v14 = vpop.xlane.xlu1 %3175 }
 0x658   : > { %v3264_v52 = vsub.f32 %v10263_v32, %v3176_v14  ;;  %v3265_v45 = vsub.f32 %v10265_v50, %v3176_v14  ;;  %v3450_v40 = vadd.f32 %v10448_v54, %v10443_v53 }
 0x659   : > { %3232 = vmax.xlane.f32.xlu0 %v13396_v41  ;;  %v3179_v33 = vpop.xlane.xlu0 %3178 }
 0x65a   : > { %v10457_v9 = vpop.eup %7644  ;;  %v3340_v37 = vmul.f32 1.442695, %v3264_v52  ;;  %v3342_v6 = vmul.f32 1.442695, %v3265_v45  ;;  %v3266_v8 = vsub.f32 %v10267_v46, %v3179_v33  ;;  %v3267_v7 = vsub.f32 %v10271_v58, %v3179_v33  ;;  %3451 = vadd.xlane.f32.xlu1 %v3450_v40 }
 0x65b   : > { %v10461_v32 = vpop.eup %7646 }
 0x65c   : > { %7656 = vpow2.f32 %v3340_v37  ;;  %v3344_v50 = vmul.f32 1.442695, %v3266_v8  ;;  %v3346_v51 = vmul.f32 1.442695, %v3267_v7  ;;  %v3453_v29 = vadd.f32 %v10461_v32, %v10457_v9 }
 0x65d   : > { %7658 = vpow2.f32 %v3342_v6  ;;  %v13398_v37 = vmax.f32 %v10387_v56, %v10391_v27 }
 0x65e   : > { %v10465_v16 = vpop.eup %7648  ;;  %7660 = vpow2.f32 %v3344_v50  ;;  %3454 = vadd.xlane.f32.xlu0 %v3453_v29  ;;  %3241 = vmax.xlane.f32.xlu1 %v13397_v24 }
 0x65f   : > { %v10470_v46 = vpop.eup %7650  ;;  %7662 = vpow2.f32 %v3346_v51  ;;  %v3182_v58 = vpop.xlane.xlu1 %3181 }
 0x660   : > { %v10472_v26 = vpop.eup %7652  ;;  %v3268_v19 = vsub.f32 %v10275_v34, %v3182_v58  ;;  %v3269_v42 = vsub.f32 %v10277_v62, %v3182_v58  ;;  %v3456_v20 = vadd.f32 %v10470_v46, %v10465_v16 }
 0x661   : > { %v10478_v14 = vpop.eup %7654  ;;  %v3185_v52 = vpop.xlane.xlu0 %3184 }
 0x662   : > { %v3348_v45 = vmul.f32 1.442695, %v3268_v19  ;;  %v3350_v40 = vmul.f32 1.442695, %v3269_v42  ;;  %v3270_v41 = vsub.f32 %v10279_v39, %v3185_v52  ;;  %v3271_v33 = vsub.f32 %v10283_v22, %v3185_v52  ;;  %3238 = vmax.xlane.f32.xlu0 %v13398_v37  ;;  %3457 = vadd.xlane.f32.xlu1 %v3456_v20 }
 0x663   : > { %v3459_v6 = vadd.f32 %v10478_v14, %v10472_v26  ;;  %v13399_v39 = vmax.f32 %v10407_v2, %v10409_v18 }
 0x664   : > { %7664 = vpow2.f32 %v3348_v45  ;;  %v3352_v34 = vmul.f32 1.442695, %v3270_v41  ;;  %v3354_v62 = vmul.f32 1.442695, %v3271_v33 }
 0x665   : > { %7666 = vpow2.f32 %v3350_v40  ;;  %v13400_v40 = vmax.f32 %v10401_v48, %v10403_v4 }
 0x666   : > { %v10487_v8 = vpop.eup %7656  ;;  %7668 = vpow2.f32 %v3352_v34  ;;  %3460 = vadd.xlane.f32.xlu0 %v3459_v6  ;;  %3247 = vmax.xlane.f32.xlu1 %v13399_v39 }
 0x667   : > { %v10492_v22 = vpop.eup %7658  ;;  %7670 = vpow2.f32 %v3354_v62  ;;  %v3188_v7 = vpop.xlane.xlu1 %3187 }
 0x668   : > { %v10494_v50 = vpop.eup %7660  ;;  %v3272_v51 = vsub.f32 %v10287_v44, %v3188_v7  ;;  %v3273_v29 = vsub.f32 %v10289_v36, %v3188_v7  ;;  %v3462_v24 = vadd.f32 %v10492_v22, %v10487_v8 }
 0x669   : > { %v10500_v58 = vpop.eup %7662  ;;  %v3191_v19 = vpop.xlane.xlu0 %3190 }
 0x66a   : > { %v3356_v42 = vmul.f32 1.442695, %v3272_v51  ;;  %v3358_v20 = vmul.f32 1.442695, %v3273_v29  ;;  %v3274_v52 = vsub.f32 %v10291_v63, %v3191_v19  ;;  %v3275_v45 = vsub.f32 %v10295_v28, %v3191_v19  ;;  %3244 = vmax.xlane.f32.xlu0 %v13400_v40  ;;  %3463 = vadd.xlane.f32.xlu1 %v3462_v24 }
 0x66b   : > { %v3465_v41 = vadd.f32 %v10500_v58, %v10494_v50 }
 0x66c   : > { %7672 = vpow2.f32 %v3356_v42  ;;  %v3360_v44 = vmul.f32 1.442695, %v3274_v52  ;;  %v3362_v36 = vmul.f32 1.442695, %v3275_v45  ;;  %v13401_v42 = vmax.f32 %v10413_v0, %v10415_v55 }
 0x66d   : > { %7674 = vpow2.f32 %v3358_v20 }
 0x66e   : > { %v10509_v33 = vpop.eup %7664  ;;  %7676 = vpow2.f32 %v3360_v44  ;;  %3466 = vadd.xlane.f32.xlu0 %v3465_v41 }
 0x66f   : > { %v10511_v37 = vpop.eup %7666  ;;  %7678 = vpow2.f32 %v3362_v36  ;;  %v3194_v28 = vpop.xlane.xlu1 %3193 }
 0x670   : > { %v10513_v63 = vpop.eup %7668  ;;  %v3276_v34 = vsub.f32 %v10299_v1, %v3194_v28  ;;  %v3277_v62 = vsub.f32 %v10301_v25, %v3194_v28  ;;  %v3468_v6 = vadd.f32 %v10511_v37, %v10509_v33 }
 0x671   : > { %v10519_v39 = vpop.eup %7670  ;;  %v3197_v7 = vpop.xlane.xlu0 %3196 }
 0x672   : > { %v3364_v51 = vmul.f32 1.442695, %v3276_v34  ;;  %v3366_v29 = vmul.f32 1.442695, %v3277_v62  ;;  %v3278_v24 = vsub.f32 %v10303_v43, %v3197_v7  ;;  %v3279_v19 = vsub.f32 %v10307_v5, %v3197_v7  ;;  %3469 = vadd.xlane.f32.xlu1 %v3468_v6  ;;  %3250 = vmax.xlane.f32.xlu0 %v13401_v42 }
 0x673   : > { %v3471_v20 = vadd.f32 %v10519_v39, %v10513_v63 }
 0x674   : > { %7680 = vpow2.f32 %v3364_v51  ;;  %v3368_v1 = vmul.f32 1.442695, %v3278_v24  ;;  %v3370_v25 = vmul.f32 1.442695, %v3279_v19 }
 0x675   : > { %7682 = vpow2.f32 %v3366_v29 }
 0x676   : > { %v10528_v52 = vpop.eup %7672  ;;  %7684 = vpow2.f32 %v3368_v1  ;;  %3472 = vadd.xlane.f32.xlu0 %v3471_v20 }
 0x677   : > { %v10530_v45 = vpop.eup %7674  ;;  %7686 = vpow2.f32 %v3370_v25  ;;  %v3200_v5 = vpop.xlane.xlu1 %3199 }
 0x678   : > { %v10532_v43 = vpop.eup %7676  ;;  %v3280_v40 = vsub.f32 %v10311_v23, %v3200_v5  ;;  %v3281_v44 = vsub.f32 %v10313_v30, %v3200_v5  ;;  %v3474_v36 = vadd.f32 %v10530_v45, %v10528_v52 }
 0x679   : > { %v10538_v41 = vpop.eup %7678  ;;  %v3203_v28 = vpop.xlane.xlu0 %3202 }
 0x67a   : > { %v3372_v34 = vmul.f32 1.442695, %v3280_v40  ;;  %v3374_v62 = vmul.f32 1.442695, %v3281_v44  ;;  %v3282_v6 = vsub.f32 %v10315_v57, %v3203_v28  ;;  %v3283_v7 = vsub.f32 %v10319_v15, %v3203_v28  ;;  %3475 = vadd.xlane.f32.xlu1 %v3474_v36 }
 0x67b   : > { %v3477_v51 = vadd.f32 %v10538_v41, %v10532_v43 }
 0x67c   : > { %7688 = vpow2.f32 %v3372_v34  ;;  %v3376_v23 = vmul.f32 1.442695, %v3282_v6  ;;  %v3378_v29 = vmul.f32 1.442695, %v3283_v7 }
 0x67d   : > { %7690 = vpow2.f32 %v3374_v62  ;;  %3478 = vadd.xlane.f32.xlu0 %v3477_v51 }
 0x67e   : > { %v10544_v30 = vpop.eup %7680  ;;  %7692 = vpow2.f32 %v3376_v23 }
 0x67f   : > { %v10546_v24 = vpop.eup %7682  ;;  %7694 = vpow2.f32 %v3378_v29  ;;  %v3206_v19 = vpop.xlane.xlu1 %3205 }
 0x680   : > { %v10548_v42 = vpop.eup %7684  ;;  %v3284_v15 = vsub.f32 %v10323_v60, %v3206_v19  ;;  %v3285_v57 = vsub.f32 %v10325_v38, %v3206_v19  ;;  %v3480_v1 = vadd.f32 %v10546_v24, %v10544_v30 }
 0x681   : > { %v10554_v25 = vpop.eup %7686  ;;  %v3209_v20 = vpop.xlane.xlu0 %3208 }
 0x682   : > { %v3380_v5 = vmul.f32 1.442695, %v3284_v15  ;;  %v3382_v40 = vmul.f32 1.442695, %v3285_v57  ;;  %v3286_v44 = vsub.f32 %v10327_v12, %v3209_v20  ;;  %v3287_v36 = vsub.f32 %v10331_v10, %v3209_v20  ;;  %3481 = vadd.xlane.f32.xlu1 %v3480_v1  ;;  %v13403_v12 = vld [vmem:[#allocation79_spill] sm:$0xff]  ;;  %v13404_v1 = vld [vmem:[#allocation80_spill] sm:$0xff] }
 0x683   : > { %v3483_v28 = vadd.f32 %v10554_v25, %v10548_v42 }
 0x684   : > { %7696 = vpow2.f32 %v3380_v5  ;;  %v3384_v60 = vmul.f32 1.442695, %v3286_v44  ;;  %v3386_v34 = vmul.f32 1.442695, %v3287_v36  ;;  %v13405_v5 = vld [vmem:[#allocation81_spill] sm:$0xff] }
 0x685   : > { %7698 = vpow2.f32 %v3382_v40  ;;  %3484 = vadd.xlane.f32.xlu0 %v3483_v28 }
 0x686   : > { %v10560_v38 = vpop.eup %7688  ;;  %7700 = vpow2.f32 %v3384_v60 }
 0x687   : > { %13402 = vst [vmem:[#allocation92_spill] sm:$0xff] %v10560_v38  ;;  %v10562_v62 = vpop.eup %7690  ;;  %7702 = vpow2.f32 %v3386_v34  ;;  %v3212_v6 = vpop.xlane.xlu1 %3211 }
 0x688   : > { %v10564_v7 = vpop.eup %7692  ;;  %v3288_v10 = vsub.f32 %v10335_v61, %v3212_v6  ;;  %v3289_v51 = vsub.f32 %v13403_v12, %v3212_v6  ;;  %v3486_v23 = vadd.f32 %v10562_v62, %v10560_v38 }
 0x689   : > { %v10570_v29 = vpop.eup %7694  ;;  %v3215_v19 = vpop.xlane.xlu0 %3214 }
 0x68a   : > { %v3388_v15 = vmul.f32 1.442695, %v3288_v10  ;;  %v3390_v57 = vmul.f32 1.442695, %v3289_v51  ;;  %v3290_v20 = vsub.f32 %v13404_v1, %v3215_v19  ;;  %v3291_v40 = vsub.f32 %v13405_v5, %v3215_v19  ;;  %3487 = vadd.xlane.f32.xlu1 %v3486_v23  ;;  %v13409_v10 = vld [vmem:[#allocation82_spill] sm:$0xff]  ;;  %v13410_v51 = vld [vmem:[#allocation83_spill] sm:$0xff] }
 0x68b   : > { %v3489_v44 = vadd.f32 %v10570_v29, %v10564_v7  ;;  %v13412_v5 = vld [vmem:[#allocation84_spill] sm:$0xff] }
 0x68c   : > { %7704 = vpow2.f32 %v3388_v15  ;;  %v3392_v61 = vmul.f32 1.442695, %v3290_v20  ;;  %v3394_v36 = vmul.f32 1.442695, %v3291_v40 }
 0x68d   : > { %7706 = vpow2.f32 %v3390_v57  ;;  %3490 = vadd.xlane.f32.xlu0 %v3489_v44  ;;  %v13413_v44 = vld [vmem:[#allocation85_spill] sm:$0xff] }
 0x68e   : > { %v10576_v28 = vpop.eup %7696  ;;  %7708 = vpow2.f32 %v3392_v61 }
 0x68f   : > { %13406 = vst [vmem:[#allocation79_spill] sm:$0xff] %v10576_v28  ;;  %v10578_v60 = vpop.eup %7698  ;;  %7710 = vpow2.f32 %v3394_v36  ;;  %v3218_v34 = vpop.xlane.xlu1 %3217 }
 0x690   : > { %13407 = vst [vmem:[#allocation80_spill] sm:$0xff] %v10578_v60  ;;  %v10580_v6 = vpop.eup %7700  ;;  %v3292_v12 = vsub.f32 %v13409_v10, %v3218_v34  ;;  %v3293_v23 = vsub.f32 %v13410_v51, %v3218_v34  ;;  %v3492_v19 = vadd.f32 %v10578_v60, %v10576_v28  ;;  %v13416_v28 = vld [vmem:[#allocation88_spill] sm:$0xff] }
 0x691   : > { %13408 = vst [vmem:[#allocation81_spill] sm:$0xff] %v10580_v6  ;;  %v10586_v15 = vpop.eup %7702  ;;  %v3221_v57 = vpop.xlane.xlu0 %3220 }
 0x692   : > { %13411 = vst [vmem:[#allocation82_spill] sm:$0xff] %v10586_v15  ;;  %v3396_v1 = vmul.f32 1.442695, %v3292_v12  ;;  %v3398_v20 = vmul.f32 1.442695, %v3293_v23  ;;  %v3294_v40 = vsub.f32 %v13412_v5, %v3221_v57  ;;  %v3295_v61 = vsub.f32 %v13413_v44, %v3221_v57  ;;  %3493 = vadd.xlane.f32.xlu1 %v3492_v19  ;;  %v13414_v5 = vld [vmem:[#allocation86_spill] sm:$0xff] }
 0x693   : > { %v3495_v36 = vadd.f32 %v10586_v15, %v10580_v6  ;;  %v13415_v19 = vld [vmem:[#allocation87_spill] sm:$0xff]  ;;  %v13417_v6 = vld [vmem:[#allocation89_spill] sm:$0xff] }
 0x694   : > { %7712 = vpow2.f32 %v3396_v1  ;;  %v3400_v10 = vmul.f32 1.442695, %v3294_v40  ;;  %v3402_v38 = vmul.f32 1.442695, %v3295_v61 }
 0x695   : > { %7714 = vpow2.f32 %v3398_v20  ;;  %3496 = vadd.xlane.f32.xlu0 %v3495_v36 }
 0x696   : > { %v10592_v34 = vpop.eup %7704  ;;  %7716 = vpow2.f32 %v3400_v10 }
 0x697   : > { %v10594_v51 = vpop.eup %7706  ;;  %7718 = vpow2.f32 %v3402_v38  ;;  %v3224_v12 = vpop.xlane.xlu1 %3223 }
 0x698   : > { %v10596_v23 = vpop.eup %7708  ;;  %v3296_v57 = vsub.f32 %v13414_v5, %v3224_v12  ;;  %v3297_v44 = vsub.f32 %v13415_v19, %v3224_v12  ;;  %v3498_v1 = vadd.f32 %v10594_v51, %v10592_v34 }
 0x699   : > { %v10602_v40 = vpop.eup %7710  ;;  %v3227_v20 = vpop.xlane.xlu0 %3226 }
 0x69a   : > { %v3404_v61 = vmul.f32 1.442695, %v3296_v57  ;;  %v3406_v36 = vmul.f32 1.442695, %v3297_v44  ;;  %v3298_v10 = vsub.f32 %v13416_v28, %v3227_v20  ;;  %v3299_v15 = vsub.f32 %v13417_v6, %v3227_v20  ;;  %3499 = vadd.xlane.f32.xlu1 %v3498_v1  ;;  %v13420_v28 = vld [vmem:[#allocation90_spill] sm:$0xff]  ;;  %v13421_v1 = vld [vmem:[#allocation91_spill] sm:$0xff] }
 0x69b   : > { %v3501_v38 = vadd.f32 %v10602_v40, %v10596_v23 }
 0x69c   : > { %7720 = vpow2.f32 %v3404_v61  ;;  %v3408_v5 = vmul.f32 1.442695, %v3298_v10  ;;  %v3410_v60 = vmul.f32 1.442695, %v3299_v15 }
 0x69d   : > { %7722 = vpow2.f32 %v3406_v36  ;;  %3502 = vadd.xlane.f32.xlu0 %v3501_v38 }
 0x69e   : > { %v10608_v12 = vpop.eup %7712  ;;  %7724 = vpow2.f32 %v3408_v5 }
 0x69f   : > { %13418 = vst [vmem:[#allocation83_spill] sm:$0xff] %v10608_v12  ;;  %v10610_v19 = vpop.eup %7714  ;;  %7726 = vpow2.f32 %v3410_v60  ;;  %v3230_v57 = vpop.xlane.xlu1 %3229 }
 0x6a0   : > { %v10612_v44 = vpop.eup %7716  ;;  %v3300_v6 = vsub.f32 %v13420_v28, %v3230_v57  ;;  %v3301_v20 = vsub.f32 %v13421_v1, %v3230_v57  ;;  %v3504_v61 = vadd.f32 %v10610_v19, %v10608_v12 }
 0x6a1   : > { %13419 = vst [vmem:[#allocation84_spill] sm:$0xff] %v10612_v44  ;;  %v10618_v10 = vpop.eup %7718 }
 0x6a2   : > { %13422 = vst [vmem:[#allocation85_spill] sm:$0xff] %v10618_v10  ;;  %v3412_v15 = vmul.f32 1.442695, %v3300_v6  ;;  %v3414_v36 = vmul.f32 1.442695, %v3301_v20  ;;  %3505 = vadd.xlane.f32.xlu1 %v3504_v61  ;;  %v3507_v38 = vadd.f32 %v10618_v10, %v10612_v44 }
 0x6a4   : > { %7728 = vpow2.f32 %v3412_v15  ;;  %3508 = vadd.xlane.f32.xlu0 %v3507_v38 }
 0x6a5   : > { %7730 = vpow2.f32 %v3414_v36 }
 0x6a6   : > { %v10622_v60 = vpop.eup %7720 }
 0x6a7   : > { %13423 = vst [vmem:[#allocation86_spill] sm:$0xff] %v10622_v60  ;;  %v10624_v5 = vpop.eup %7722 }
 0x6a8   : > { %13424 = vst [vmem:[#allocation87_spill] sm:$0xff] %v10624_v5  ;;  %v10626_v28 = vpop.eup %7724  ;;  %v3510_v57 = vadd.f32 %v10624_v5, %v10622_v60 }
 0x6a9   : > { %13425 = vst [vmem:[#allocation88_spill] sm:$0xff] %v10626_v28  ;;  %v10630_v1 = vpop.eup %7726 }
 0x6aa   : > { %13426 = vst [vmem:[#allocation89_spill] sm:$0xff] %v10630_v1  ;;  %3511 = vadd.xlane.f32.xlu1 %v3510_v57  ;;  %v3513_v6 = vadd.f32 %v10630_v1, %v10626_v28 }
 0x6ac   : > { %3514 = vadd.xlane.f32.xlu0 %v3513_v6 }
 0x6ae   : > { %v10634_v20 = vpop.eup %7728 }
 0x6af   : > { %13427 = vst [vmem:[#allocation90_spill] sm:$0xff] %v10634_v20  ;;  %v10636_v61 = vpop.eup %7730 }
 0x6b0   : > { %13428 = vst [vmem:[#allocation91_spill] sm:$0xff] %v10636_v61  ;;  %v3516_v15 = vadd.f32 %v10636_v61, %v10634_v20 }
 0x6b2   : > { %3517 = vadd.xlane.f32.xlu1 %v3516_v15 }
 0x6df   : > { %v3446_v36 = vpop.xlane.xlu1 %3445 }
 0x6e0   : > { %7732 = vrcp.f32 %v3446_v36 }
 0x6e2   : > { %v3449_v38 = vpop.xlane.xlu0 %3448 }
 0x6e3   : > { %7734 = vrcp.f32 %v3449_v38  ;;  %v3236_v60 = vpop.xlane.xlu1 %3235 }
 0x6e4   : > { %v3304_v5 = vsub.f32 %v10383_v3, %v3236_v60  ;;  %v3305_v57 = vsub.f32 %v10385_v49, %v3236_v60 }
 0x6e6   : > { %v3420_v12 = vmul.f32 1.442695, %v3304_v5  ;;  %v3422_v28 = vmul.f32 1.442695, %v3305_v57  ;;  %v3233_v6 = vpop.xlane.xlu0 %3232 }
 0x6e7   : > { %v3302_v1 = vsub.f32 %v10377_v35, %v3233_v6  ;;  %v3303_v44 = vsub.f32 %v10379_v11, %v3233_v6  ;;  %v3452_v10 = vpop.xlane.xlu1 %3451 }
 0x6e8   : > { %7736 = vpow2.f32 %v3420_v12 }
 0x6e9   : > { %7738 = vpow2.f32 %v3422_v28  ;;  %v3416_v15 = vmul.f32 1.442695, %v3302_v1  ;;  %v3418_v20 = vmul.f32 1.442695, %v3303_v44 }
 0x6ea   : > { %7740 = vrcp.f32 %v3452_v10  ;;  %v7733_v36 = vpop.eup %7732 }
 0x6eb   : > { %7742 = vpow2.f32 %v3416_v15  ;;  %v3455_v38 = vpop.xlane.xlu0 %3454  ;;  %v10644_v61 = vpop.xlane.xlu1 %3241  ;;  %v3573_v3 = vmul.f32 %v7733_v36, %v10429_v13  ;;  %v3572_v5 = vmul.f32 %v7733_v36, %v10427_v21 }
 0x6ec   : > { %7744 = vpow2.f32 %v3418_v20 }
 0x6ed   : > { %v7735_v49 = vpop.eup %7734  ;;  %7746 = vrcp.f32 %v3455_v38 }
 0x6ee   : > { %v3575_v35 = vmul.f32 %v7735_v49, %v10437_v31  ;;  %v3574_v11 = vmul.f32 %v7735_v49, %v10431_v47 }
 0x6ef   : > { %v3239_v60 = vpop.xlane.xlu0 %3238  ;;  %v3458_v12 = vpop.xlane.xlu1 %3457 }
 0x6f0   : > { %v3306_v44 = vsub.f32 %v10387_v56, %v3239_v60  ;;  %v3307_v10 = vsub.f32 %v10391_v27, %v3239_v60  ;;  %v3637_v28 = vpack.c.bf16 %v3575_v35, %v3573_v3  ;;  %v3636_v1 = vpack.c.bf16 %v3574_v11, %v3572_v5 }
 0x6f1   : > { %7748 = vrcp.f32 %v3458_v12 }
 0x6f2   : > { %v10652_v57 = vpop.eup %7736  ;;  %v3424_v20 = vmul.f32 1.442695, %v3306_v44  ;;  %v3426_v6 = vmul.f32 1.442695, %v3307_v10  ;;  %3668 = vmatprep.subr.bf16.mxu1 %v3637_v28 }
 0x6f3   : > { %v10654_v13 = vpop.eup %7738  ;;  %3669 = vmatpush1.bf16.xpose.msra.mxu1 %v3636_v1  ;;  %v3461_v47 = vpop.xlane.xlu0 %3460 }
 0x6f4   : > { %v10656_v31 = vpop.xlane.xlu1 %3247  ;;  %v7741_v15 = vpop.eup %7740  ;;  %7750 = vpow2.f32 %v3424_v20  ;;  %v3522_v56 = vadd.f32 %v10654_v13, %v10652_v57 }
 0x6f5   : > { %v10660_v27 = vpop.eup %7742  ;;  %7752 = vpow2.f32 %v3426_v6  ;;  %v3577_v60 = vmul.f32 %v7741_v15, %v10448_v54  ;;  %v3576_v5 = vmul.f32 %v7741_v15, %v10443_v53 }
 0x6f6   : > { %v10662_v21 = vpop.eup %7744  ;;  %7754 = vrcp.f32 %v3461_v47  ;;  %3523 = vadd.xlane.f32.xlu1 %v3522_v56 }
 0x6f7   : > { %v7747_v36 = vpop.eup %7746  ;;  %v3245_v38 = vpop.xlane.xlu0 %3244  ;;  %v3519_v49 = vadd.f32 %v10662_v21, %v10660_v27 }
 0x6f8   : > { %v3310_v3 = vsub.f32 %v10401_v48, %v3245_v38  ;;  %v3311_v35 = vsub.f32 %v10403_v4, %v3245_v38  ;;  %v3464_v11 = vpop.xlane.xlu1 %3463  ;;  %v3579_v12 = vmul.f32 %v7747_v36, %v10461_v32  ;;  %v3578_v44 = vmul.f32 %v7747_v36, %v10457_v9 }
 0x6f9   : > { %3520 = vadd.xlane.f32.xlu0 %v3519_v49  ;;  %7756 = vrcp.f32 %v3464_v11 }
 0x6fa   : > { %v3432_v10 = vmul.f32 1.442695, %v3310_v3  ;;  %v3434_v28 = vmul.f32 1.442695, %v3311_v35  ;;  %v3639_v1 = vpack.c.bf16 %v3579_v12, %v3577_v60  ;;  %v3638_v6 = vpack.c.bf16 %v3578_v44, %v3576_v5 }
 0x6fb   : > { %v3467_v20 = vpop.xlane.xlu0 %3466  ;;  %v7749_v48 = vpop.eup %7748 }
 0x6fc   : > { %7758 = vpow2.f32 %v3432_v10  ;;  %3670 = vmatprep.subr.bf16.mxu1 %v3639_v1  ;;  %v3581_v36 = vmul.f32 %v7749_v48, %v10470_v46  ;;  %v3580_v49 = vmul.f32 %v7749_v48, %v10465_v16 }
 0x6fd   : > { %7760 = vpow2.f32 %v3434_v28  ;;  %3671 = vmatpush1.bf16.xpose.msra.mxu1 %v3638_v6 }
 0x6fe   : > { %v10672_v4 = vpop.eup %7750  ;;  %7762 = vrcp.f32 %v3467_v20 }
 0x6ff   : > { %v10674_v54 = vpop.eup %7752  ;;  %v3251_v32 = vpop.xlane.xlu0 %3250 }
 0x700   : > { %v7755_v53 = vpop.eup %7754  ;;  %v3470_v47 = vpop.xlane.xlu1 %3469  ;;  %v3314_v9 = vsub.f32 %v10413_v0, %v3251_v32  ;;  %v3315_v15 = vsub.f32 %v10415_v55, %v3251_v32  ;;  %v3525_v56 = vadd.f32 %v10674_v54, %v10672_v4  ;;  %v402_v55 = vld [vmem:[%s13017_s5 + $0x40] sm:$0xff] }
 0x701   : > { %v3583_v38 = vmul.f32 %v7755_v53, %v10478_v14  ;;  %v3582_v3 = vmul.f32 %v7755_v53, %v10472_v26  ;;  %7764 = vrcp.f32 %v3470_v47  ;;  %v10691_v14 = vpop.f32.mrb[104].mxu1 }
 0x702   : > { %v3440_v35 = vmul.f32 1.442695, %v3314_v9  ;;  %v3442_v11 = vmul.f32 1.442695, %v3315_v15  ;;  %3526 = vadd.xlane.f32.xlu0 %v3525_v56  ;;  %v10696_v1 = vpop.f32.mrb[105].mxu1 }
 0x703   : > { %v3641_v60 = vpack.c.bf16 %v3583_v38, %v3581_v36  ;;  %v3473_v12 = vpop.xlane.xlu0 %3472  ;;  %v3640_v0 = vpack.c.bf16 %v3582_v3, %v3580_v49  ;;  %v7757_v5 = vpop.eup %7756  ;;  %v3308_v3 = vsub.f32 %v10395_v17, %v10644_v61  ;;  %v3312_v17 = vsub.f32 %v10407_v2, %v10656_v31 }
 0x704   : > { %7766 = vpow2.f32 %v3440_v35  ;;  %v3585_v28 = vmul.f32 %v7757_v5, %v10492_v22  ;;  %v3584_v6 = vmul.f32 %v7757_v5, %v10487_v8 }
 0x705   : > { %7768 = vpow2.f32 %v3442_v11  ;;  %3672 = vmatprep.subr.bf16.mxu1 %v3641_v60 }
 0x706   : > { %v10687_v46 = vpop.eup %7758  ;;  %7770 = vrcp.f32 %v3473_v12  ;;  %3673 = vmatpush1.bf16.xpose.msra.mxu1 %v3640_v0  ;;  %v3309_v0 = vsub.f32 %v10397_v59, %v10644_v61 }
 0x707   : > { %v10689_v16 = vpop.eup %7760  ;;  %2401 = vperm.xlu1 %7608, %v402_v55   ;;  %v3476_v26 = vpop.xlane.xlu1 %3475  ;;  %v3428_v55 = vmul.f32 1.442695, %v3308_v3 }
 0x708   : > { %v7763_v44 = vpop.eup %7762  ;;  %v3531_v10 = vadd.f32 %v10689_v16, %v10687_v46  ;;  %7772 = vrcp.f32 %v3476_v26  ;;  %v3430_v5 = vmul.f32 1.442695, %v3309_v0  ;;  %v3313_v26 = vsub.f32 %v10409_v18, %v10656_v31 }
 0x709   : > { %v3587_v20 = vmul.f32 %v7763_v44, %v10500_v58  ;;  %v3586_v48 = vmul.f32 %v7763_v44, %v10494_v50 }
 0x70a   : > { %3532 = vadd.xlane.f32.xlu0 %v3531_v10  ;;  %v3479_v32 = vpop.xlane.xlu0 %3478 }
 0x70b   : > { %7774 = vrcp.f32 %v3479_v32  ;;  %v3643_v53 = vpack.c.bf16 %v3587_v20, %v3585_v28  ;;  %v3642_v47 = vpack.c.bf16 %v3586_v48, %v3584_v6  ;;  %v7765_v9 = vpop.eup %7764  ;;  %v3436_v28 = vmul.f32 1.442695, %v3312_v17  ;;  %v10726_v32 = vpop.f32.mrb[106].mxu1 }
 0x70c   : > { %v3589_v8 = vmul.f32 %v7765_v9, %v10511_v37  ;;  %v3588_v38 = vmul.f32 %v7765_v9, %v10509_v33 }
 0x70d   : > { %3674 = vmatprep.subr.bf16.mxu1 %v3643_v53 }
 0x70e   : > { %v10701_v15 = vpop.eup %7766  ;;  %3675 = vmatpush1.bf16.xpose.msra.mxu1 %v3642_v47 }
 0x70f   : > { %v10703_v22 = vpop.eup %7768  ;;  %v3482_v56 = vpop.xlane.xlu1 %3481 }
 0x710   : > { %v7771_v36 = vpop.eup %7770  ;;  %v3537_v58 = vadd.f32 %v10703_v22, %v10701_v15  ;;  %7776 = vrcp.f32 %v3482_v56 }
 0x711   : > { %v3591_v50 = vmul.f32 %v7771_v36, %v10519_v39  ;;  %v3590_v49 = vmul.f32 %v7771_v36, %v10513_v63  ;;  %v403_v36 = vld [vmem:[%s13017_s5 + $0x48] sm:$0xff] }
 0x712   : > { %3538 = vadd.xlane.f32.xlu0 %v3537_v58  ;;  %v3485_v35 = vpop.xlane.xlu0 %3484  ;;  %v7773_v11 = vpop.eup %7772 }
 0x713   : > { %7778 = vrcp.f32 %v3485_v35  ;;  %v3645_v60 = vpack.c.bf16 %v3591_v50, %v3589_v8  ;;  %v3644_v12 = vpack.c.bf16 %v3590_v49, %v3588_v38  ;;  %v3593_v33 = vmul.f32 %v7773_v11, %v10530_v45 }
 0x714   : > { %v3592_v61 = vmul.f32 %v7773_v11, %v10528_v52  ;;  %v10728_v52 = vpop.f32.mrb[107].mxu1 }
 0x715   : > { %v7775_v37 = vpop.eup %7774  ;;  %3676 = vmatprep.subr.bf16.mxu1 %v3645_v60  ;;  %v13429_v60 = vld [vmem:[#allocation92_spill] sm:$0xff] }
 0x716   : > { %3677 = vmatpush1.bf16.xpose.msra.mxu1 %v3644_v12  ;;  %v3595_v63 = vmul.f32 %v7775_v37, %v10538_v41  ;;  %v3594_v10 = vmul.f32 %v7775_v37, %v10532_v43  ;;  %v3438_v41 = vmul.f32 1.442695, %v3313_v26  ;;  %v13430_v37 = vld [vmem:[#allocation80_spill] sm:$0xff] }
 0x717   : > { %v3488_v39 = vpop.xlane.xlu1 %3487 }
 0x718   : > { %v3647_v44 = vpack.c.bf16 %v3595_v63, %v3593_v33  ;;  %7780 = vrcp.f32 %v3488_v39  ;;  %v3646_v2 = vpack.c.bf16 %v3594_v10, %v3592_v61  ;;  %v13431_v33 = vld [vmem:[#allocation82_spill] sm:$0xff]  ;;  %v13433_v10 = vld [vmem:[#allocation79_spill] sm:$0xff] }
 0x719   : > { %7782 = vpow2.f32 %v3428_v55 }
 0x71a   : > { %3678 = vmatprep.subr.bf16.mxu1 %v3647_v44  ;;  %v3491_v59 = vpop.xlane.xlu0 %3490  ;;  %v7777_v45 = vpop.eup %7776 }
 0x71b   : > { %7784 = vrcp.f32 %v3491_v59  ;;  %v3597_v6 = vmul.f32 %v7777_v45, %v10546_v24  ;;  %v3596_v47 = vmul.f32 %v7777_v45, %v10544_v30 }
 0x71c   : > { %7786 = vpow2.f32 %v3430_v5  ;;  %v13432_v5 = vld [vmem:[#allocation81_spill] sm:$0xff] }
 0x71d   : > { %v7779_v20 = vpop.eup %7778  ;;  %7788 = vpow2.f32 %v3436_v28 }
 0x71e   : > { %3679 = vmatpush1.bf16.xpose.msra.mxu1 %v3646_v2  ;;  %v3599_v18 = vmul.f32 %v7779_v20, %v10554_v25  ;;  %7790 = vpow2.f32 %v3438_v41  ;;  %v3598_v48 = vmul.f32 %v7779_v20, %v10548_v42 }
 0x71f   : > { %v3494_v43 = vpop.xlane.xlu1 %3493 }
 0x720   : > { %v3649_v31 = vpack.c.bf16 %v3599_v18, %v3597_v6  ;;  %7792 = vrcp.f32 %v3494_v43  ;;  %v3648_v25 = vpack.c.bf16 %v3598_v48, %v3596_v47 }
 0x722   : > { %3680 = vmatprep.subr.bf16.mxu1 %v3649_v31  ;;  %v3497_v53 = vpop.xlane.xlu0 %3496  ;;  %v7781_v9 = vpop.eup %7780 }
 0x723   : > { %7794 = vrcp.f32 %v3497_v53  ;;  %v10731_v24 = vpop.eup %7782  ;;  %v3601_v58 = vmul.f32 %v7781_v9, %v10562_v62  ;;  %v3600_v12 = vmul.f32 %v7781_v9, %v13429_v60  ;;  %v404_v9 = vld [vmem:[%s13017_s5 + $0x50] sm:$0xff] }
 0x725   : > { %v7785_v56 = vpop.eup %7784 }
 0x726   : > { %v10736_v42 = vpop.eup %7786  ;;  %3681 = vmatpush1.bf16.xpose.msra.mxu1 %v3648_v25  ;;  %v3603_v8 = vmul.f32 %v7785_v56, %v10570_v29  ;;  %v3602_v38 = vmul.f32 %v7785_v56, %v10564_v7  ;;  %v10763_v56 = vpop.f32.mrb[108].mxu1 }
 0x727   : > { %v3500_v50 = vpop.xlane.xlu1 %3499  ;;  %v10741_v49 = vpop.eup %7788  ;;  %v3528_v3 = vadd.f32 %v10736_v42, %v10731_v24 }
 0x728   : > { %2406 = vperm.xlu0 %7609, %v403_v36   ;;  %v3651_v30 = vpack.c.bf16 %v3603_v8, %v3601_v58  ;;  %7796 = vrcp.f32 %v3500_v50  ;;  %v10745_v35 = vpop.eup %7790  ;;  %v3650_v29 = vpack.c.bf16 %v3602_v38, %v3600_v12  ;;  %v13435_v58 = vld [vmem:[#allocation84_spill] sm:$0xff]  ;;  %v13437_v12 = vld [vmem:[#allocation87_spill] sm:$0xff] }
 0x729   : > { %v3534_v7 = vadd.f32 %v10745_v35, %v10741_v49 }
 0x72a   : > { %3682 = vmatprep.subr.bf16.mxu1 %v3651_v30  ;;  %v3503_v11 = vpop.xlane.xlu0 %3502  ;;  %v7793_v62 = vpop.eup %7792 }
 0x72b   : > { %7798 = vrcp.f32 %v3503_v11  ;;  %3529 = vadd.xlane.f32.xlu1 %v3528_v3  ;;  %v3605_v55 = vmul.f32 %v7793_v62, %v13430_v37  ;;  %v3604_v59 = vmul.f32 %v7793_v62, %v13433_v10  ;;  %v13440_v37 = vld [vmem:[#allocation7_spill] sm:$0xff] }
 0x72d   : > { %v7795_v0 = vpop.eup %7794 }
 0x72e   : > { %3683 = vmatpush1.bf16.xpose.msra.mxu1 %v3650_v29  ;;  %v3607_v63 = vmul.f32 %v7795_v0, %v13431_v33  ;;  %v3606_v26 = vmul.f32 %v7795_v0, %v13432_v5  ;;  %v13438_v29 = vld [vmem:[#allocation89_spill] sm:$0xff]  ;;  %v13444_v5 = vld [vmem:[#allocation16_spill] sm:$0xff] }
 0x72f   : > { %3535 = vadd.xlane.f32.xlu1 %v3534_v7  ;;  %v3506_v17 = vpop.xlane.xlu1 %3505  ;;  %v13439_v7 = vld [vmem:[#allocation9_spill] sm:$0xff] }
 0x730   : > { %7800 = vrcp.f32 %v3506_v17  ;;  %v3653_v39 = vpack.c.bf16 %v3607_v63, %v3605_v55  ;;  %v3652_v45 = vpack.c.bf16 %v3606_v26, %v3604_v59  ;;  %v13441_v55 = vpack.c.bf16 %v13439_v7, %v13440_v37  ;;  %v13442_v63 = vld [vmem:[#allocation88_spill] sm:$0xff] }
 0x731   : > { %v3509_v44 = vpop.xlane.xlu0 %3508 }
 0x732   : > { %3684 = vmatprep.subr.bf16.mxu1 %v3653_v39  ;;  %7802 = vrcp.f32 %v3509_v44  ;;  %v7797_v61 = vpop.eup %7796  ;;  %v13443_v39 = vld [vmem:[#allocation17_spill] sm:$0xff]  ;;  %v13446_v44 = vld [vmem:[#allocation86_spill] sm:$0xff] }
 0x733   : > { %v3609_v41 = vmul.f32 %v7797_v61, %v10594_v51  ;;  %v3608_v48 = vmul.f32 %v7797_v61, %v10592_v34  ;;  %v405_v34 = vld [vmem:[%s13017_s5 + $0x58] sm:$0xff]  ;;  %v13445_v26 = vpack.c.bf16 %v13443_v39, %v13444_v5  ;;  %v13447_v61 = vld [vmem:[#allocation15_spill] sm:$0xff]  ;;  %v13462_v39 = vld [vmem:[#allocation21_spill] sm:$0xff] }
 0x735   : > { %v7799_v28 = vpop.eup %7798 }
 0x736   : > { %3685 = vmatpush1.bf16.xpose.msra.mxu1 %v3652_v45  ;;  %v3611_v2 = vmul.f32 %v7799_v28, %v10602_v40  ;;  %v3610_v18 = vmul.f32 %v7799_v28, %v10596_v23  ;;  %v13434_v40 = vld [vmem:[#allocation85_spill] sm:$0xff]  ;;  %v10765_v23 = vpop.f32.mrb[109].mxu1  ;;  %v13448_v45 = vld [vmem:[#allocation8_spill] sm:$0xff] }
 0x737   : > { %v3512_v20 = vpop.xlane.xlu1 %3511  ;;  %v10771_v50 = vpop.f32.mrb[110].mxu1  ;;  %v13449_v28 = vpack.c.bf16 %v13447_v61, %v13448_v45  ;;  %v13468_v45 = vld [vmem:[#allocation32_spill] sm:$0xff] }
 0x738   : > { %7804 = vrcp.f32 %v3512_v20  ;;  %v3655_v6 = vpack.c.bf16 %v3611_v2, %v3609_v41  ;;  %v3654_v47 = vpack.c.bf16 %v3610_v18, %v3608_v48  ;;  %v10774_v3 = vpop.f32.mrb[111].mxu1  ;;  %v13450_v41 = vld [vmem:[#allocation20_spill] sm:$0xff]  ;;  %v13451_v2 = vld [vmem:[#allocation10_spill] sm:$0xff] }
 0x739   : > { %v3515_v43 = vpop.xlane.xlu0 %3514  ;;  %v13452_v20 = vpack.c.bf16 %v13450_v41, %v13451_v2  ;;  %v13469_v41 = vld [vmem:[#allocation74_spill] sm:$0xff] }
 0x73a   : > { %v7801_v31 = vpop.eup %7800  ;;  %3686 = vmatprep.subr.bf16.mxu1 %v3655_v6  ;;  %7806 = vrcp.f32 %v3515_v43 }
 0x73b   : > { %v3613_v51 = vmul.f32 %v7801_v31, %v10610_v19  ;;  %v13436_v19 = vld [vmem:[#allocation83_spill] sm:$0xff] }
 0x73c   : > { %v7803_v53 = vpop.eup %7802  ;;  %v3612_v38 = vmul.f32 %v7801_v31, %v13436_v19 }
 0x73d   : > { %v3615_v25 = vmul.f32 %v7803_v53, %v13434_v40  ;;  %v3614_v8 = vmul.f32 %v7803_v53, %v13435_v58  ;;  %v13454_v53 = vld [vmem:[#allocation72_spill] sm:$0xff] }
 0x73e   : > { %3687 = vmatpush1.bf16.xpose.msra.mxu1 %v3654_v47 }
 0x73f   : > { %v3657_v36 = vpack.c.bf16 %v3615_v25, %v3613_v51  ;;  %v3656_v60 = vpack.c.bf16 %v3614_v8, %v3612_v38  ;;  %v3518_v6 = vpop.xlane.xlu1 %3517  ;;  %v13458_v25 = vld [vmem:[#allocation71_spill] sm:$0xff]  ;;  %v13461_v38 = vld [vmem:[#allocation90_spill] sm:$0xff] }
 0x740   : > { %2411 = vperm.xlu1 %7608, %v404_v9   ;;  %7808 = vrcp.f32 %v3518_v6  ;;  %v13455_v9 = vld [vmem:[#allocation19_spill] sm:$0xff] }
 0x741   : > { %3688 = vmatprep.subr.bf16.mxu1 %v3657_v36 }
 0x742   : > { %v7805_v30 = vpop.eup %7804 }
 0x743   : > { %v3617_v62 = vmul.f32 %v7805_v30, %v13437_v12  ;;  %v3616_v10 = vmul.f32 %v7805_v30, %v13446_v44  ;;  %v13460_v30 = vld [vmem:[#allocation91_spill] sm:$0xff] }
 0x744   : > { %v7807_v11 = vpop.eup %7806  ;;  %2416 = vperm.xlu1 %7608, %v405_v34  }
 0x745   : > { %v3619_v0 = vmul.f32 %v7807_v11, %v13438_v29  ;;  %v3618_v17 = vmul.f32 %v7807_v11, %v13442_v63 }
 0x746   : > { %3689 = vmatpush1.bf16.xpose.msra.mxu1 %v3656_v60  ;;  %3741 = vxpose.xlu0.c.b16.start [1/2] (short) %v13441_v55, 128 }
 0x747   : > { %v3659_v33 = vpack.c.bf16 %v3619_v0, %v3617_v62  ;;  %v3658_v59 = vpack.c.bf16 %v3618_v17, %v3616_v10  ;;  %v13464_v10 = vld [vmem:[#allocation18_spill] sm:$0xff] }
 0x749   : > { %3690 = vmatprep.subr.bf16.mxu1 %v3659_v33 }
 0x74a   : > { %3742 = vxpose.xlu0.c.b16.end [2/2] (short) %v13445_v26, 128  ;;  %v7809_v58 = vpop.eup %7808  ;;  %v13463_v26 = vld [vmem:[#allocation31_spill] sm:$0xff] }
 0x74b   : > { %v3620_v11 = vmul.f32 %v7809_v58, %v13461_v38 }
 0x74e   : > { %3691 = vmatpush1.bf16.xpose.msra.mxu1 %v3658_v59 }
 0x767   : > { %3757 = vxpose.xlu1.c.b16.start [1/2] (short) %v13449_v28, 128 }
 0x76b   : > { %3758 = vxpose.xlu1.c.b16.end [2/2] (short) %v13452_v20, 128  ;;  %v13470_v20 = vld [vmem:[#allocation22_spill] sm:$0xff] }
 0x783   : > { %v3524_v18 = vpop.xlane.xlu1 %3523 }
 0x786   : > { %v3521_v43 = vpop.xlane.xlu0 %3520 }
 0x787   : > { %7810 = vrcp.f32 %v3521_v43  ;;  %v2402_v31 = vpop.permute.xlu1 %2401  ;;  %v13473_v43 = vld [vmem:[#allocation73_spill] sm:$0xff] }
 0x788   : > { %v10793_v48 = vadd.f32 %v10691_v14, %v2402_v31  ;;  %v10796_v47 = vadd.f32 %v13454_v53, %v2402_v31  ;;  %v10799_v51 = vadd.f32 %v13455_v9, %v2402_v31  ;;  %v10802_v40 = vadd.f32 %v10696_v1, %v2402_v31 }
 0x789   : > { %v10805_v36 = vadd.f32 %v13458_v25, %v2402_v31  ;;  %7812 = vrcp.f32 %v3524_v18  ;;  %v3621_v14 = vmul.f32 %v7809_v58, %v13460_v30  ;;  %v2544_v5 = vadd.f32 %v13462_v39, %v2402_v31 }
 0x78a   : > { %13453 = vst [vmem:[#allocation92_spill] sm:$0xff] %v10793_v48  ;;  %13456 = vst [vmem:[#allocation80_spill] sm:$0xff] %v10799_v51  ;;  %v2637_v44 = vadd.f32 %v13463_v26, %v2402_v31  ;;  %v10818_v59 = vadd.f32 %v13464_v10, %v2402_v31 }
 0x78b   : > { %13457 = vst [vmem:[#allocation82_spill] sm:$0xff] %v10802_v40  ;;  %13459 = vst [vmem:[#allocation81_spill] sm:$0xff] %v10805_v36 }
 0x78f   : > { %v3527_v8 = vpop.xlane.xlu0 %3526 }
 0x790   : > { %7814 = vrcp.f32 %v3527_v8 }
 0x791   : > { %v7811_v34 = vpop.eup %7810 }
 0x792   : > { %v3623_v19 = vmul.f32 %v7811_v34, %v10662_v21  ;;  %v3622_v60 = vmul.f32 %v7811_v34, %v10660_v27 }
 0x793   : > { %v7813_v1 = vpop.eup %7812 }
 0x794   : > { %v3661_v12 = vpack.c.bf16 %v3623_v19, %v3621_v14  ;;  %v3660_v62 = vpack.c.bf16 %v3622_v60, %v3620_v11  ;;  %v3625_v0 = vmul.f32 %v7813_v1, %v10654_v13  ;;  %v3624_v37 = vmul.f32 %v7813_v1, %v10652_v57  ;;  %v13466_v57 = vld [vmem:[#allocation26_spill] sm:$0xff]  ;;  %v13476_v1 = vld [vmem:[#allocation33_spill] sm:$0xff] }
 0x796   : > { %3692 = vmatprep.subr.bf16.mxu1 %v3661_v12 }
 0x797   : > { %3693 = vmatpush1.bf16.xpose.msra.mxu1 %v3660_v62  ;;  %v3533_v63 = vpop.xlane.xlu0 %3532 }
 0x798   : > { %7816 = vrcp.f32 %v3533_v63 }
 0x79a   : > { %v7815_v29 = vpop.eup %7814 }
 0x79b   : > { %v3627_v7 = vmul.f32 %v7815_v29, %v10674_v54  ;;  %v3626_v55 = vmul.f32 %v7815_v29, %v10672_v4  ;;  %v13467_v4 = vld [vmem:[#allocation27_spill] sm:$0xff] }
 0x79d   : > { %v3663_v33 = vpack.c.bf16 %v3627_v7, %v3625_v0  ;;  %v3662_v21 = vpack.c.bf16 %v3626_v55, %v3624_v37  ;;  %v13477_v0 = vld [vmem:[#allocation29_spill] sm:$0xff]  ;;  %v13478_v37 = vld [vmem:[#allocation34_spill] sm:$0xff] }
 0x79f   : > { %3694 = vmatprep.subr.bf16.mxu1 %v3663_v33  ;;  %v3539_v27 = vpop.xlane.xlu0 %3538  ;;  %v13480_v33 = vld [vmem:[#allocation30_spill] sm:$0xff] }
 0x7a0   : > { %3695 = vmatpush1.bf16.xpose.msra.mxu1 %v3662_v21 }
 0x7a2   : > { %v7817_v19 = vpop.eup %7816 }
 0x7a3   : > { %v3631_v60 = vmul.f32 %v7817_v19, %v10689_v16  ;;  %v3630_v12 = vmul.f32 %v7817_v19, %v10687_v46  ;;  %v13484_v46 = vld [vmem:[#allocation75_spill] sm:$0xff] }
 0x7a7   : > { %v2407_v17 = vpop.permute.xlu0 %2406 }
 0x7a8   : > { %v10821_v13 = vadd.f32 %v10726_v32, %v2407_v17  ;;  %v2548_v54 = vadd.f32 %v13466_v57, %v2407_v17  ;;  %v2641_v61 = vadd.f32 %v13467_v4, %v2407_v17  ;;  %v10826_v28 = vadd.f32 %v13468_v45, %v2407_v17 }
 0x7a9   : > { %v10829_v2 = vadd.f32 %v13469_v41, %v2407_v17  ;;  %v10832_v6 = vadd.f32 %v13470_v20, %v2407_v17  ;;  %v10835_v18 = vadd.f32 %v10728_v52, %v2407_v17  ;;  %v10838_v31 = vadd.f32 %v13473_v43, %v2407_v17  ;;  %v13482_v17 = vld [vmem:[#allocation76_spill] sm:$0xff] }
 0x7aa   : > { %13465 = vst [vmem:[#allocation79_spill] sm:$0xff] %v10821_v13  ;;  %v2880_v53 = vpack.c.bf16 %v2548_v54, %v2544_v5  ;;  %v3738_v9 = vpack.c.bf16 %v2641_v61, %v2637_v44  ;;  %v2879_v25 = vpack.c.bf16 %v10826_v28, %v10818_v59  ;;  %v13487_v44 = vld [vmem:[#allocation37_spill] sm:$0xff]  ;;  %v13488_v59 = vld [vmem:[#allocation35_spill] sm:$0xff]  ;;  %v13489_v54 = vld [vmem:[#allocation38_spill] sm:$0xff] }
 0x7ab   : > { %13471 = vst [vmem:[#allocation85_spill] sm:$0xff] %v10832_v6  ;;  %13472 = vst [vmem:[#allocation84_spill] sm:$0xff] %v10835_v18  ;;  %v4596_v58 = vpack.c.bf16 %v10829_v2, %v10796_v47  ;;  %v13493_v28 = vld [vmem:[#allocation78_spill] sm:$0xff] }
 0x7ac   : > { %13474 = vst [vmem:[#allocation83_spill] sm:$0xff] %v10838_v31  ;;  %3700 = vmatprep.mubr.bf16.mxu1 %v2880_v53  ;;  %4558 = vmatprep.mubr.bf16.mxu0 %v3738_v9  ;;  %v13495_v9 = vld [vmem:[#allocation77_spill] sm:$0xff] }
 0x7b8   : > { %v3530_v30 = vpop.xlane.xlu1 %3529 }
 0x7b9   : > { %7818 = vrcp.f32 %v3530_v30 }
 0x7ba   : > { %7820 = vrcp.f32 %v3539_v27 }
 0x7bc   : > { %v3536_v14 = vpop.xlane.xlu1 %3535 }
 0x7bd   : > { %7822 = vrcp.f32 %v3536_v14 }
 0x7c0   : > { %v2412_v38 = vpop.permute.xlu1 %2411 }
 0x7c1   : > { %v10853_v11 = vadd.f32 %v10763_v56, %v2412_v38  ;;  %v2554_v29 = vadd.f32 %v13476_v1, %v2412_v38  ;;  %v2552_v7 = vadd.f32 %v13477_v0, %v2412_v38  ;;  %v10860_v55 = vadd.f32 %v13478_v37, %v2412_v38 }
 0x7c2   : > { %v10863_v21 = vadd.f32 %v13480_v33, %v2412_v38  ;;  %v10868_v16 = vadd.f32 %v13482_v17, %v2412_v38  ;;  %v10871_v39 = vadd.f32 %v13484_v46, %v2412_v38  ;;  %v10901_v1 = vadd.f32 %v10765_v23, %v2412_v38  ;;  %v13500_v23 = vld [vmem:[#allocation13_spill] sm:$0xff]  ;;  %v13505_v17 = vld [vmem:[#allocation28_spill] sm:$0xff] }
 0x7c3   : > { %13475 = vst [vmem:[#allocation87_spill] sm:$0xff] %v10853_v11  ;;  %v7819_v62 = vpop.eup %7818  ;;  %13479 = vst [vmem:[#allocation89_spill] sm:$0xff] %v10860_v55 }
 0x7c4   : > { %13481 = vst [vmem:[#allocation9_spill] sm:$0xff] %v10863_v21  ;;  %v2417_v63 = vpop.permute.xlu1 %2416  ;;  %v3629_v27 = vmul.f32 %v7819_v62, %v10736_v42  ;;  %v3628_v56 = vmul.f32 %v7819_v62, %v10731_v24  ;;  %13483 = vst [vmem:[#allocation7_spill] sm:$0xff] %v10868_v16  ;;  %v7821_v5 = vpop.eup %7820  ;;  %v13491_v24 = vld [vmem:[#allocation36_spill] sm:$0xff] }
 0x7c5   : > { %13485 = vst [vmem:[#allocation88_spill] sm:$0xff] %v10871_v39  ;;  %v10874_v26 = vadd.f32 %v10771_v50, %v2417_v63  ;;  %v2558_v10 = vadd.f32 %v13487_v44, %v2417_v63  ;;  %v2556_v57 = vadd.f32 %v13488_v59, %v2417_v63  ;;  %v10879_v4 = vadd.f32 %v13489_v54, %v2417_v63  ;;  %v13508_v44 = vld [vmem:[#allocation25_spill] sm:$0xff] }
 0x7c6   : > { %v3665_v42 = vpack.c.bf16 %v3631_v60, %v3629_v27  ;;  %v3664_v61 = vpack.c.bf16 %v3630_v12, %v3628_v56  ;;  %v10882_v45 = vadd.f32 %v13491_v24, %v2417_v63  ;;  %v10885_v41 = vadd.f32 %v13493_v28, %v2417_v63  ;;  %13497 = vst [vmem:[#allocation20_spill] sm:$0xff] %v10901_v1  ;;  %v13499_v27 = vld [vmem:[#allocation23_spill] sm:$0xff] }
 0x7c7   : > { %13486 = vst [vmem:[#allocation17_spill] sm:$0xff] %v10874_v26  ;;  %13490 = vst [vmem:[#allocation16_spill] sm:$0xff] %v10879_v4  ;;  %v7823_v20 = vpop.eup %7822  ;;  %v2882_v43 = vpack.c.bf16 %v2558_v10, %v2554_v29  ;;  %v2881_v53 = vpack.c.bf16 %v2556_v57, %v2552_v7  ;;  %v10890_v30 = vadd.f32 %v13495_v9, %v2417_v63  ;;  %v13509_v10 = vld [vmem:[#allocation24_spill] sm:$0xff] }
 0x7c8   : > { %13492 = vst [vmem:[#allocation86_spill] sm:$0xff] %v10882_v45  ;;  %13494 = vst [vmem:[#allocation15_spill] sm:$0xff] %v10885_v41  ;;  %3696 = vmatprep.subr.bf16.mxu1 %v3665_v42  ;;  %v3633_v14 = vmul.f32 %v7823_v20, %v10745_v35  ;;  %v3635_v19 = vmul.f32 %v7821_v5, %v10703_v22  ;;  %v10904_v29 = vadd.f32 %v10774_v3, %v2417_v63  ;;  %v13502_v3 = vld [vmem:[#allocation12_spill] sm:$0xff]  ;;  %v13503_v63 = vld [vmem:[#allocation11_spill] sm:$0xff] }
 0x7c9   : > { %13496 = vst [vmem:[#allocation8_spill] sm:$0xff] %v10890_v30  ;;  %3697 = vmatpush1.bf16.xpose.msra.mxu1 %v3664_v61  ;;  %v3632_v0 = vmul.f32 %v7823_v20, %v10741_v49  ;;  %v3634_v37 = vmul.f32 %v7821_v5, %v10701_v15  ;;  %v13501_v38 = vpack.c.bf16 %v13499_v27, %v13500_v23  ;;  %v13506_v49 = vld [vmem:[#allocation14_spill] sm:$0xff]  ;;  %v13511_v15 = vmov 0   ;;  %v3749_v5 = vpop.trf.xlu0 }
 0x7ca   : > { %13498 = vst [vmem:[#allocation10_spill] sm:$0xff] %v10904_v29  ;;  %v3667_v22 = vpack.c.bf16 %v3635_v19, %v3633_v14  ;;  %v13504_v56 = vpack.c.bf16 %v13502_v3, %v13503_v63  ;;  %v13507_v46 = vpack.c.bf16 %v13505_v17, %v13506_v49  ;;  %v13510_v59 = vpack.c.bf16 %v13508_v44, %v13509_v10 }
 0x7cb   : > { %v3666_v33 = vpack.c.bf16 %v3634_v37, %v3632_v0 }
 0x7cc   : > { %3698 = vmatprep.subr.bf16.mxu1 %v3667_v22 }
 0x7cd   : > { %v3765_v20 = vpop.trf.xlu1 }
 0x7d1   : > { %3699 = vmatpush1.bf16.xpose.msra.mxu1 %v3666_v33 }
 0x7d2   : > { %3821 = vmatprep.subr.bf16.mxu1 %v13501_v38 }
 0x7d8   : > { %3701 = vmatmul.mubr.bf16.vlgmr.msra.gmra.mrb[112].mxu1 %v2879_v25  ;;  %v3750_v25 = vpop.trf.xlu0 }
 0x7d9   : > { %3710 = vmatprep.mubr.bf16.mxu1 %v2882_v43  ;;  %3822 = vmatpush1.bf16.msra.mxu1 %v13504_v56  ;;  %v3766_v43 = vpop.trf.xlu1 }
 0x7da   : > { %3823 = vmatprep.subr.bf16.mxu1 %v13507_v46 }
 0x7dc   : > { %v3751_v57 = vpop.trf.xlu0 }
 0x7dd   : > { %3824 = vmatpush1.bf16.msra.mxu1 %v13510_v59 }
 0x7e0   : > { %3711 = vmatmul.mubr.bf16.gmra.mrb[116].mxu1 %v2881_v53  ;;  %v3752_v54 = vpop.trf.xlu0  ;;  %v3767_v53 = vpop.trf.xlu1 }
 0x7e1   : > { %3853 = vmatprep.mubr.bf16.mxu1 %v13511_v15 }
 0x7e4   : > { %v3753_v42 = vpop.trf.xlu0  ;;  %v3768_v9 = vpop.trf.xlu1 }
 0x7e8   : > { %6824 = vmatmul.mubr.msk.bf16.vlgmr.msra.gmra.mrb[120].mxu1 %vm1254_vm0, %v3749_v5  ;;  %v3754_v61 = vpop.trf.xlu0  ;;  %v3769_v14 = vpop.trf.xlu1 }
 0x7e9   : > { %3863 = vmatprep.mubr.bf16.mxu1 %v13511_v15 }
 0x7ec   : > { %v3755_v24 = vpop.trf.xlu0  ;;  %v3770_v19 = vpop.trf.xlu1 }
 0x7f0   : > { %6825 = vmatmul.mubr.msk.bf16.gmra.mrb[124].mxu1 %vm1254_vm0, %v3750_v25  ;;  %v3756_v28 = vpop.trf.xlu0  ;;  %v3771_v22 = vpop.trf.xlu1 }
 0x7f1   : > { %3873 = vmatprep.mubr.bf16.mxu1 %v13511_v15 }
 0x7f4   : > { %v3772_v0 = vpop.trf.xlu1 }
 0x7f8   : > { %6826 = vmatmul.mubr.msk.bf16.gmra.mrb[128].mxu1 %vm1254_vm0, %v3751_v57 }
 0x7f9   : > { %3883 = vmatprep.mubr.bf16.mxu1 %v13511_v15 }
 0x800   : > { %6827 = vmatmul.mubr.msk.bf16.gmra.mrb[132].mxu1 %vm1254_vm0, %v3752_v54 }
 0x801   : > { %3893 = vmatprep.mubr.bf16.mxu1 %v13511_v15 }
 0x808   : > { %6828 = vmatmul.mubr.msk.bf16.gmra.mrb[136].mxu1 %vm1254_vm0, %v3753_v42 }
 0x809   : > { %3903 = vmatprep.mubr.bf16.mxu1 %v13511_v15 }
 0x810   : > { %6829 = vmatmul.mubr.msk.bf16.gmra.mrb[140].mxu1 %vm1254_vm0, %v3754_v61 }
 0x811   : > { %3913 = vmatprep.mubr.bf16.mxu1 %v13511_v15 }
 0x818   : > { %6830 = vmatmul.mubr.msk.bf16.gmra.mrb[144].mxu1 %vm1254_vm0, %v3755_v24 }
 0x819   : > { %3923 = vmatprep.mubr.bf16.mxu1 %v13511_v15 }
 0x820   : > { %6831 = vmatmul.mubr.msk.bf16.gmra.mrb[148].mxu1 %vm1254_vm0, %v3756_v28 }
 0x821   : > { %3933 = vmatprep.mubr.bf16.mxu1 %v13511_v15 }
 0x828   : > { %6832 = vmatmul.mubr.msk.bf16.gmra.mrb[152].mxu1 %vm1254_vm0, %v3765_v20 }
 0x829   : > { %3943 = vmatprep.mubr.bf16.mxu1 %v13511_v15 }
 0x830   : > { %6833 = vmatmul.mubr.msk.bf16.gmra.mrb[156].mxu1 %vm1254_vm0, %v3766_v43 }
 0x831   : > { %3953 = vmatprep.mubr.bf16.mxu1 %v13511_v15 }
 0x838   : > { %6834 = vmatmul.mubr.msk.bf16.gmra.mrb[160].mxu1 %vm1254_vm0, %v3767_v53 }
 0x839   : > { %3963 = vmatprep.mubr.bf16.mxu1 %v13511_v15 }
 0x840   : > { %6835 = vmatmul.mubr.msk.bf16.gmra.mrb[164].mxu1 %vm1254_vm0, %v3768_v9 }
 0x841   : > { %3973 = vmatprep.mubr.bf16.mxu1 %v13511_v15 }
 0x848   : > { %6836 = vmatmul.mubr.msk.bf16.gmra.mrb[168].mxu1 %vm1254_vm0, %v3769_v14 }
 0x849   : > { %3983 = vmatprep.mubr.bf16.mxu1 %v13511_v15 }
 0x850   : > { %6837 = vmatmul.mubr.msk.bf16.gmra.mrb[172].mxu1 %vm1254_vm0, %v3770_v19 }
 0x851   : > { %3993 = vmatprep.mubr.bf16.mxu1 %v13511_v15 }
 0x858   : > { %6838 = vmatmul.mubr.msk.bf16.gmra.mrb[176].mxu1 %vm1254_vm0, %v3771_v22 }
 0x859   : > { %4003 = vmatprep.mubr.bf16.mxu1 %v13511_v15 }
 0x860   : > { %6839 = vmatmul.mubr.msk.bf16.gmra.mrb[180].mxu1 %vm1254_vm0, %v3772_v0 }
 0x861   : > { %5416 = vmatprep.mubr.bf16.mxu1 %v4596_v58 }
 0x8ab   : > { %v10959_v37 = vpop.f32.mrb[112].mxu1 }
 0x8ac   : > { %13512 = vst [vmem:[#allocation72_spill] sm:$0xff] %v10959_v37  ;;  %v10961_v33 = vpop.f32.mrb[113].mxu1 }
 0x8ad   : > { %13513 = vst [vmem:[#allocation19_spill] sm:$0xff] %v10961_v33  ;;  %v10963_v27 = vpop.f32.mrb[114].mxu1 }
 0x8ae   : > { %13514 = vst [vmem:[#allocation71_spill] sm:$0xff] %v10963_v27  ;;  %v10967_v38 = vpop.f32.mrb[115].mxu1 }
 0x8af   : > { %13515 = vst [vmem:[#allocation91_spill] sm:$0xff] %v10967_v38 }
 0x8b3   : > { %v10971_v63 = vpop.f32.mrb[116].mxu1 }
 0x8b4   : > { %13516 = vst [vmem:[#allocation90_spill] sm:$0xff] %v10971_v63  ;;  %v10973_v56 = vpop.f32.mrb[117].mxu1 }
 0x8b5   : > { %13517 = vst [vmem:[#allocation21_spill] sm:$0xff] %v10973_v56  ;;  %v10975_v47 = vpop.f32.mrb[118].mxu1 }
 0x8b6   : > { %13518 = vst [vmem:[#allocation31_spill] sm:$0xff] %v10975_v47  ;;  %v10979_v58 = vpop.f32.mrb[119].mxu1 }
 0x8b7   : > { %13519 = vst [vmem:[#allocation18_spill] sm:$0xff] %v10979_v58 }
 0x8bb   : > { %v10983_v49 = vpop.f32.mrb[120].mxu1 }
 0x8bc   : > { %v10985_v46 = vpop.f32.mrb[121].mxu1 }
 0x8bd   : > { %v4014_v44 = vmax.f32 %v10983_v49, %v10985_v46  ;;  %v10989_v10 = vpop.f32.mrb[122].mxu1 }
 0x8be   : > { %v10991_v59 = vpop.f32.mrb[123].mxu1 }
 0x8bf   : > { %v4017_v5 = vmax.f32 %v10989_v10, %v10991_v59  ;;  %4015 = vmax.xlane.f32.xlu0 %v4014_v44 }
 0x8c1   : > { %4018 = vmax.xlane.f32.xlu1 %v4017_v5 }
 0x8c3   : > { %v10995_v25 = vpop.f32.mrb[124].mxu1 }
 0x8c4   : > { %v10997_v57 = vpop.f32.mrb[125].mxu1 }
 0x8c5   : > { %v4020_v54 = vmax.f32 %v10995_v25, %v10997_v57  ;;  %v11001_v42 = vpop.f32.mrb[126].mxu1 }
 0x8c6   : > { %v11003_v61 = vpop.f32.mrb[127].mxu1 }
 0x8c7   : > { %v4023_v24 = vmax.f32 %v11001_v42, %v11003_v61  ;;  %4021 = vmax.xlane.f32.xlu0 %v4020_v54 }
 0x8cb   : > { %4024 = vmax.xlane.f32.xlu0 %v4023_v24  ;;  %v11007_v28 = vpop.f32.mrb[128].mxu1 }
 0x8cc   : > { %v11009_v20 = vpop.f32.mrb[129].mxu1 }
 0x8cd   : > { %v4026_v43 = vmax.f32 %v11007_v28, %v11009_v20  ;;  %v11013_v53 = vpop.f32.mrb[130].mxu1 }
 0x8ce   : > { %v11015_v9 = vpop.f32.mrb[131].mxu1 }
 0x8cf   : > { %v4029_v14 = vmax.f32 %v11013_v53, %v11015_v9  ;;  %4027 = vmax.xlane.f32.xlu1 %v4026_v43 }
 0x8d1   : > { %4030 = vmax.xlane.f32.xlu0 %v4029_v14 }
 0x8d3   : > { %v11019_v19 = vpop.f32.mrb[132].mxu1 }
 0x8d4   : > { %v11021_v22 = vpop.f32.mrb[133].mxu1 }
 0x8d5   : > { %v4032_v0 = vmax.f32 %v11019_v19, %v11021_v22  ;;  %v11025_v44 = vpop.f32.mrb[134].mxu1 }
 0x8d6   : > { %v11027_v5 = vpop.f32.mrb[135].mxu1 }
 0x8d7   : > { %v4035_v54 = vmax.f32 %v11025_v44, %v11027_v5  ;;  %4033 = vmax.xlane.f32.xlu1 %v4032_v0 }
 0x8d9   : > { %4036 = vmax.xlane.f32.xlu0 %v4035_v54 }
 0x8db   : > { %v11031_v24 = vpop.f32.mrb[136].mxu1 }
 0x8dc   : > { %v11033_v43 = vpop.f32.mrb[137].mxu1 }
 0x8dd   : > { %v4038_v14 = vmax.f32 %v11031_v24, %v11033_v43  ;;  %v11037_v35 = vpop.f32.mrb[138].mxu1 }
 0x8de   : > { %v11039_v2 = vpop.f32.mrb[139].mxu1 }
 0x8df   : > { %v4041_v17 = vmax.f32 %v11037_v35, %v11039_v2  ;;  %4039 = vmax.xlane.f32.xlu1 %v4038_v14 }
 0x8e1   : > { %4042 = vmax.xlane.f32.xlu0 %v4041_v17 }
 0x8e3   : > { %v11043_v23 = vpop.f32.mrb[140].mxu1 }
 0x8e4   : > { %v11045_v0 = vpop.f32.mrb[141].mxu1 }
 0x8e5   : > { %v4044_v54 = vmax.f32 %v11043_v23, %v11045_v0  ;;  %v11049_v7 = vpop.f32.mrb[142].mxu1 }
 0x8e6   : > { %v11051_v32 = vpop.f32.mrb[143].mxu1 }
 0x8e7   : > { %v4047_v3 = vmax.f32 %v11049_v7, %v11051_v32  ;;  %4045 = vmax.xlane.f32.xlu1 %v4044_v54 }
 0x8e9   : > { %4048 = vmax.xlane.f32.xlu0 %v4047_v3 }
 0x8eb   : > { %v11055_v62 = vpop.f32.mrb[144].mxu1 }
 0x8ec   : > { %v11057_v14 = vpop.f32.mrb[145].mxu1 }
 0x8ed   : > { %v4050_v17 = vmax.f32 %v11055_v62, %v11057_v14  ;;  %v11061_v12 = vpop.f32.mrb[146].mxu1 }
 0x8ee   : > { %v11063_v34 = vpop.f32.mrb[147].mxu1 }
 0x8ef   : > { %v4053_v52 = vmax.f32 %v11061_v12, %v11063_v34  ;;  %4051 = vmax.xlane.f32.xlu1 %v4050_v17 }
 0x8f1   : > { %4054 = vmax.xlane.f32.xlu0 %v4053_v52 }
 0x8f3   : > { %v11067_v60 = vpop.f32.mrb[148].mxu1 }
 0x8f4   : > { %v11069_v54 = vpop.f32.mrb[149].mxu1 }
 0x8f5   : > { %v4056_v3 = vmax.f32 %v11067_v60, %v11069_v54  ;;  %v11073_v50 = vpop.f32.mrb[150].mxu1 }
 0x8f6   : > { %v11075_v8 = vpop.f32.mrb[151].mxu1 }
 0x8f7   : > { %v4059_v11 = vmax.f32 %v11073_v50, %v11075_v8  ;;  %4057 = vmax.xlane.f32.xlu1 %v4056_v3 }
 0x8f9   : > { %4060 = vmax.xlane.f32.xlu0 %v4059_v11 }
 0x8fb   : > { %v11079_v26 = vpop.f32.mrb[152].mxu1 }
 0x8fc   : > { %v11081_v17 = vpop.f32.mrb[153].mxu1 }
 0x8fd   : > { %v4062_v52 = vmax.f32 %v11079_v26, %v11081_v17  ;;  %v11085_v63 = vpop.f32.mrb[154].mxu1 }
 0x8fe   : > { %v11087_v47 = vpop.f32.mrb[155].mxu1 }
 0x8ff   : > { %13520 = vst [vmem:[#allocation26_spill] sm:$0xff] %v11087_v47  ;;  %v4065_v56 = vmax.f32 %v11085_v63, %v11087_v47  ;;  %4063 = vmax.xlane.f32.xlu1 %v4062_v52 }
 0x901   : > { %4066 = vmax.xlane.f32.xlu0 %v4065_v56 }
 0x903   : > { %v11091_v58 = vpop.f32.mrb[156].mxu1 }
 0x904   : > { %13521 = vst [vmem:[#allocation27_spill] sm:$0xff] %v11091_v58  ;;  %v11093_v3 = vpop.f32.mrb[157].mxu1 }
 0x905   : > { %13522 = vst [vmem:[#allocation32_spill] sm:$0xff] %v11093_v3  ;;  %v4068_v11 = vmax.f32 %v11091_v58, %v11093_v3  ;;  %v11097_v37 = vpop.f32.mrb[158].mxu1 }
 0x906   : > { %13523 = vst [vmem:[#allocation74_spill] sm:$0xff] %v11097_v37  ;;  %v11099_v27 = vpop.f32.mrb[159].mxu1 }
 0x907   : > { %13524 = vst [vmem:[#allocation22_spill] sm:$0xff] %v11099_v27  ;;  %v4071_v1 = vmax.f32 %v11097_v37, %v11099_v27  ;;  %4069 = vmax.xlane.f32.xlu1 %v4068_v11 }
 0x909   : > { %4072 = vmax.xlane.f32.xlu0 %v4071_v1 }
 0x90b   : > { %v11103_v29 = vpop.f32.mrb[160].mxu1 }
 0x90c   : > { %13525 = vst [vmem:[#allocation73_spill] sm:$0xff] %v11103_v29  ;;  %v11105_v52 = vpop.f32.mrb[161].mxu1 }
 0x90d   : > { %13526 = vst [vmem:[#allocation33_spill] sm:$0xff] %v11105_v52  ;;  %v4074_v56 = vmax.f32 %v11103_v29, %v11105_v52  ;;  %v11109_v48 = vpop.f32.mrb[162].mxu1 }
 0x90e   : > { %13527 = vst [vmem:[#allocation29_spill] sm:$0xff] %v11109_v48  ;;  %v11111_v13 = vpop.f32.mrb[163].mxu1 }
 0x90f   : > { %13528 = vst [vmem:[#allocation34_spill] sm:$0xff] %v11111_v13  ;;  %v4077_v33 = vmax.f32 %v11109_v48, %v11111_v13  ;;  %4075 = vmax.xlane.f32.xlu1 %v4074_v56 }
 0x911   : > { %4078 = vmax.xlane.f32.xlu0 %v4077_v33 }
 0x913   : > { %v11115_v38 = vpop.f32.mrb[164].mxu1 }
 0x914   : > { %13529 = vst [vmem:[#allocation30_spill] sm:$0xff] %v11115_v38  ;;  %v11117_v11 = vpop.f32.mrb[165].mxu1 }
 0x915   : > { %13530 = vst [vmem:[#allocation76_spill] sm:$0xff] %v11117_v11  ;;  %v4080_v1 = vmax.f32 %v11115_v38, %v11117_v11  ;;  %v11121_v39 = vpop.f32.mrb[166].mxu1 }
 0x916   : > { %13531 = vst [vmem:[#allocation75_spill] sm:$0xff] %v11121_v39  ;;  %v11123_v30 = vpop.f32.mrb[167].mxu1 }
 0x917   : > { %13532 = vst [vmem:[#allocation37_spill] sm:$0xff] %v11123_v30  ;;  %v4083_v16 = vmax.f32 %v11121_v39, %v11123_v30  ;;  %4081 = vmax.xlane.f32.xlu1 %v4080_v1 }
 0x919   : > { %4084 = vmax.xlane.f32.xlu0 %v4083_v16 }
 0x91b   : > { %v11127_v41 = vpop.f32.mrb[168].mxu1 }
 0x91c   : > { %v11129_v56 = vpop.f32.mrb[169].mxu1 }
 0x91d   : > { %v11133_v36 = vpop.f32.mrb[170].mxu1 }
 0x91e   : > { %v11135_v31 = vpop.f32.mrb[171].mxu1 }
 0x923   : > { %v11139_v18 = vpop.f32.mrb[172].mxu1 }
 0x924   : > { %v11141_v15 = vpop.f32.mrb[173].mxu1 }
 0x925   : > { %v11145_v1 = vpop.f32.mrb[174].mxu1 }
 0x926   : > { %v11147_v21 = vpop.f32.mrb[175].mxu1 }
 0x92b   : > { %v11151_v45 = vpop.f32.mrb[176].mxu1 }
 0x92c   : > { %v11153_v55 = vpop.f32.mrb[177].mxu1 }
 0x92d   : > { %v11157_v4 = vpop.f32.mrb[178].mxu1 }
 0x92e   : > { %v11159_v51 = vpop.f32.mrb[179].mxu1 }
 0x933   : > { %v11163_v6 = vpop.f32.mrb[180].mxu1 }
 0x934   : > { %v11165_v30 = vpop.f32.mrb[181].mxu1 }
 0x935   : > { %v11169_v39 = vpop.f32.mrb[182].mxu1 }
 0x936   : > { %v11171_v11 = vpop.f32.mrb[183].mxu1 }
 0x94c   : > { %v4016_v38 = vpop.xlane.xlu0 %4015 }
 0x94d   : > { %v4110_v13 = vsub.f32 %v10983_v49, %v4016_v38  ;;  %v4111_v48 = vsub.f32 %v10985_v46, %v4016_v38 }
 0x94e   : > { %v4019_v16 = vpop.xlane.xlu1 %4018 }
 0x94f   : > { %v4174_v52 = vmul.f32 1.442695, %v4110_v13  ;;  %v4176_v29 = vmul.f32 1.442695, %v4111_v48  ;;  %v4112_v27 = vsub.f32 %v10989_v10, %v4019_v16  ;;  %v4113_v37 = vsub.f32 %v10991_v59, %v4019_v16 }
 0x951   : > { %7824 = vpow2.f32 %v4174_v52  ;;  %v4178_v33 = vmul.f32 1.442695, %v4112_v27  ;;  %v4180_v3 = vmul.f32 1.442695, %v4113_v37 }
 0x952   : > { %7826 = vpow2.f32 %v4176_v29 }
 0x953   : > { %7828 = vpow2.f32 %v4178_v33 }
 0x954   : > { %7830 = vpow2.f32 %v4180_v3  ;;  %v4022_v58 = vpop.xlane.xlu0 %4021 }
 0x955   : > { %v4114_v40 = vsub.f32 %v10995_v25, %v4022_v58  ;;  %v4115_v49 = vsub.f32 %v10997_v57, %v4022_v58 }
 0x957   : > { %v4182_v47 = vmul.f32 1.442695, %v4114_v40  ;;  %v4184_v38 = vmul.f32 1.442695, %v4115_v49 }
 0x958   : > { %v4025_v46 = vpop.xlane.xlu0 %4024 }
 0x959   : > { %7832 = vpow2.f32 %v4182_v47  ;;  %v4116_v48 = vsub.f32 %v11001_v42, %v4025_v46  ;;  %v4117_v13 = vsub.f32 %v11003_v61, %v4025_v46 }
 0x95a   : > { %7834 = vpow2.f32 %v4184_v38  ;;  %v13533_v38 = vmax.f32 %v11127_v41, %v11129_v56 }
 0x95b   : > { %v11183_v10 = vpop.eup %7824  ;;  %v4186_v37 = vmul.f32 1.442695, %v4116_v48  ;;  %v4188_v29 = vmul.f32 1.442695, %v4117_v13 }
 0x95c   : > { %v11185_v27 = vpop.eup %7826  ;;  %v4028_v59 = vpop.xlane.xlu1 %4027 }
 0x95d   : > { %v11187_v3 = vpop.eup %7828  ;;  %7836 = vpow2.f32 %v4186_v37  ;;  %v4118_v40 = vsub.f32 %v11007_v28, %v4028_v59  ;;  %v4119_v58 = vsub.f32 %v11009_v20, %v4028_v59  ;;  %v4302_v47 = vadd.f32 %v11185_v27, %v11183_v10 }
 0x95e   : > { %v11193_v25 = vpop.eup %7830  ;;  %7838 = vpow2.f32 %v4188_v29  ;;  %v4031_v57 = vpop.xlane.xlu0 %4030  ;;  %v13534_v37 = vmax.f32 %v11133_v36, %v11135_v31 }
 0x95f   : > { %v4190_v42 = vmul.f32 1.442695, %v4118_v40  ;;  %v4192_v61 = vmul.f32 1.442695, %v4119_v58  ;;  %4303 = vadd.xlane.f32.xlu1 %v4302_v47  ;;  %v4120_v52 = vsub.f32 %v11013_v53, %v4031_v57  ;;  %v4121_v33 = vsub.f32 %v11015_v9, %v4031_v57 }
 0x960   : > { %v4305_v16 = vadd.f32 %v11193_v25, %v11187_v3 }
 0x961   : > { %7840 = vpow2.f32 %v4190_v42  ;;  %v4194_v28 = vmul.f32 1.442695, %v4120_v52  ;;  %v4196_v20 = vmul.f32 1.442695, %v4121_v33  ;;  %v13535_v33 = vmax.f32 %v11139_v18, %v11141_v15 }
 0x962   : > { %7842 = vpow2.f32 %v4192_v61  ;;  %4306 = vadd.xlane.f32.xlu0 %v4305_v16 }
 0x963   : > { %v11199_v49 = vpop.eup %7832  ;;  %7844 = vpow2.f32 %v4194_v28  ;;  %4087 = vmax.xlane.f32.xlu1 %v13533_v38 }
 0x964   : > { %v11204_v46 = vpop.eup %7834  ;;  %7846 = vpow2.f32 %v4196_v20  ;;  %v4034_v53 = vpop.xlane.xlu1 %4033 }
 0x965   : > { %v4122_v9 = vsub.f32 %v11019_v19, %v4034_v53  ;;  %v4123_v48 = vsub.f32 %v11021_v22, %v4034_v53  ;;  %v4308_v13 = vadd.f32 %v11204_v46, %v11199_v49 }
 0x966   : > { %4090 = vmax.xlane.f32.xlu0 %v13534_v37  ;;  %v4037_v29 = vpop.xlane.xlu0 %4036  ;;  %v13536_v37 = vmax.f32 %v11145_v1, %v11147_v21 }
 0x967   : > { %v11213_v59 = vpop.eup %7836  ;;  %v4198_v40 = vmul.f32 1.442695, %v4122_v9  ;;  %v4200_v58 = vmul.f32 1.442695, %v4123_v48  ;;  %4309 = vadd.xlane.f32.xlu1 %v4308_v13  ;;  %v4124_v47 = vsub.f32 %v11025_v44, %v4037_v29  ;;  %v4125_v57 = vsub.f32 %v11027_v5, %v4037_v29 }
 0x968   : > { %v11217_v19 = vpop.eup %7838 }
 0x969   : > { %7848 = vpow2.f32 %v4198_v40  ;;  %v4202_v22 = vmul.f32 1.442695, %v4124_v47  ;;  %v4204_v42 = vmul.f32 1.442695, %v4125_v57  ;;  %v4311_v61 = vadd.f32 %v11217_v19, %v11213_v59 }
 0x96a   : > { %7850 = vpow2.f32 %v4200_v58  ;;  %v13537_v57 = vmax.f32 %v11151_v45, %v11153_v55 }
 0x96b   : > { %v11221_v52 = vpop.eup %7840  ;;  %7852 = vpow2.f32 %v4202_v22  ;;  %4093 = vmax.xlane.f32.xlu1 %v13535_v33  ;;  %4312 = vadd.xlane.f32.xlu0 %v4311_v61 }
 0x96c   : > { %v11226_v44 = vpop.eup %7842  ;;  %7854 = vpow2.f32 %v4204_v42  ;;  %v4040_v5 = vpop.xlane.xlu1 %4039 }
 0x96d   : > { %v11228_v16 = vpop.eup %7844  ;;  %v4126_v28 = vsub.f32 %v11031_v24, %v4040_v5  ;;  %v4127_v20 = vsub.f32 %v11033_v43, %v4040_v5  ;;  %v4314_v38 = vadd.f32 %v11226_v44, %v11221_v52 }
 0x96e   : > { %v11234_v53 = vpop.eup %7846  ;;  %v4043_v9 = vpop.xlane.xlu0 %4042 }
 0x96f   : > { %v4206_v48 = vmul.f32 1.442695, %v4126_v28  ;;  %v4208_v13 = vmul.f32 1.442695, %v4127_v20  ;;  %4315 = vadd.xlane.f32.xlu1 %v4314_v38  ;;  %4096 = vmax.xlane.f32.xlu0 %v13536_v37  ;;  %v4128_v29 = vsub.f32 %v11037_v35, %v4043_v9  ;;  %v4129_v40 = vsub.f32 %v11039_v2, %v4043_v9 }
 0x970   : > { %v4317_v58 = vadd.f32 %v11234_v53, %v11228_v16  ;;  %v13538_v9 = vmax.f32 %v11157_v4, %v11159_v51 }
 0x971   : > { %7856 = vpow2.f32 %v4206_v48  ;;  %v4210_v24 = vmul.f32 1.442695, %v4128_v29  ;;  %v4212_v43 = vmul.f32 1.442695, %v4129_v40  ;;  %v13539_v40 = vmax.f32 %v11163_v6, %v11165_v30 }
 0x972   : > { %7858 = vpow2.f32 %v4208_v13 }
 0x973   : > { %v11243_v47 = vpop.eup %7848  ;;  %7860 = vpow2.f32 %v4210_v24  ;;  %4099 = vmax.xlane.f32.xlu1 %v13537_v57  ;;  %4318 = vadd.xlane.f32.xlu0 %v4317_v58 }
 0x974   : > { %v11248_v22 = vpop.eup %7850  ;;  %7862 = vpow2.f32 %v4212_v43  ;;  %v4046_v35 = vpop.xlane.xlu1 %4045 }
 0x975   : > { %v11250_v2 = vpop.eup %7852  ;;  %v4130_v42 = vsub.f32 %v11043_v23, %v4046_v35  ;;  %v4131_v61 = vsub.f32 %v11045_v0, %v4046_v35  ;;  %v4320_v33 = vadd.f32 %v11248_v22, %v11243_v47 }
 0x976   : > { %v11256_v5 = vpop.eup %7854  ;;  %v4049_v28 = vpop.xlane.xlu0 %4048 }
 0x977   : > { %v4214_v20 = vmul.f32 1.442695, %v4130_v42  ;;  %v4216_v38 = vmul.f32 1.442695, %v4131_v61  ;;  %4321 = vadd.xlane.f32.xlu1 %v4320_v33  ;;  %4102 = vmax.xlane.f32.xlu0 %v13538_v9  ;;  %v4132_v48 = vsub.f32 %v11049_v7, %v4049_v28  ;;  %v4133_v13 = vsub.f32 %v11051_v32, %v4049_v28 }
 0x978   : > { %v4323_v37 = vadd.f32 %v11256_v5, %v11250_v2  ;;  %v13540_v28 = vmax.f32 %v11169_v39, %v11171_v11 }
 0x979   : > { %7864 = vpow2.f32 %v4214_v20  ;;  %v4218_v23 = vmul.f32 1.442695, %v4132_v48  ;;  %v4220_v0 = vmul.f32 1.442695, %v4133_v13 }
 0x97a   : > { %7866 = vpow2.f32 %v4216_v38 }
 0x97b   : > { %v11265_v29 = vpop.eup %7856  ;;  %7868 = vpow2.f32 %v4218_v23  ;;  %4105 = vmax.xlane.f32.xlu1 %v13539_v40  ;;  %4324 = vadd.xlane.f32.xlu0 %v4323_v37 }
 0x97c   : > { %v11270_v24 = vpop.eup %7858  ;;  %7870 = vpow2.f32 %v4220_v0  ;;  %v4052_v7 = vpop.xlane.xlu1 %4051 }
 0x97d   : > { %v11272_v32 = vpop.eup %7860  ;;  %v4134_v43 = vsub.f32 %v11055_v62, %v4052_v7  ;;  %v4135_v58 = vsub.f32 %v11057_v14, %v4052_v7  ;;  %v4326_v57 = vadd.f32 %v11270_v24, %v11265_v29 }
 0x97e   : > { %v11278_v35 = vpop.eup %7862  ;;  %v4055_v42 = vpop.xlane.xlu0 %4054 }
 0x97f   : > { %v4222_v61 = vmul.f32 1.442695, %v4134_v43  ;;  %v4224_v33 = vmul.f32 1.442695, %v4135_v58  ;;  %4327 = vadd.xlane.f32.xlu1 %v4326_v57  ;;  %4108 = vmax.xlane.f32.xlu0 %v13540_v28  ;;  %v4136_v20 = vsub.f32 %v11061_v12, %v4055_v42  ;;  %v4137_v38 = vsub.f32 %v11063_v34, %v4055_v42 }
 0x980   : > { %v4329_v9 = vadd.f32 %v11278_v35, %v11272_v32 }
 0x981   : > { %7872 = vpow2.f32 %v4222_v61  ;;  %v4226_v62 = vmul.f32 1.442695, %v4136_v20  ;;  %v4228_v14 = vmul.f32 1.442695, %v4137_v38 }
 0x982   : > { %7874 = vpow2.f32 %v4224_v33 }
 0x983   : > { %v11287_v48 = vpop.eup %7864  ;;  %7876 = vpow2.f32 %v4226_v62  ;;  %4330 = vadd.xlane.f32.xlu0 %v4329_v9 }
 0x984   : > { %v11289_v13 = vpop.eup %7866  ;;  %7878 = vpow2.f32 %v4228_v14  ;;  %v4058_v23 = vpop.xlane.xlu1 %4057 }
 0x985   : > { %v11291_v0 = vpop.eup %7868  ;;  %v4138_v12 = vsub.f32 %v11067_v60, %v4058_v23  ;;  %v4139_v34 = vsub.f32 %v11069_v54, %v4058_v23  ;;  %v4332_v37 = vadd.f32 %v11289_v13, %v11287_v48 }
 0x986   : > { %v11297_v40 = vpop.eup %7870  ;;  %v4061_v7 = vpop.xlane.xlu0 %4060 }
 0x987   : > { %v4230_v43 = vmul.f32 1.442695, %v4138_v12  ;;  %v4232_v58 = vmul.f32 1.442695, %v4139_v34  ;;  %4333 = vadd.xlane.f32.xlu1 %v4332_v37  ;;  %v4140_v57 = vsub.f32 %v11073_v50, %v4061_v7  ;;  %v4141_v42 = vsub.f32 %v11075_v8, %v4061_v7  ;;  %v13541_v37 = vld [vmem:[#allocation26_spill] sm:$0xff] }
 0x988   : > { %v4335_v61 = vadd.f32 %v11297_v40, %v11291_v0 }
 0x989   : > { %7880 = vpow2.f32 %v4230_v43  ;;  %v4234_v60 = vmul.f32 1.442695, %v4140_v57  ;;  %v4236_v33 = vmul.f32 1.442695, %v4141_v42 }
 0x98a   : > { %7882 = vpow2.f32 %v4232_v58  ;;  %4336 = vadd.xlane.f32.xlu0 %v4335_v61 }
 0x98b   : > { %v11303_v54 = vpop.eup %7872  ;;  %7884 = vpow2.f32 %v4234_v60 }
 0x98c   : > { %v11305_v28 = vpop.eup %7874  ;;  %7886 = vpow2.f32 %v4236_v33  ;;  %v4064_v20 = vpop.xlane.xlu1 %4063  ;;  %v13545_v33 = vld [vmem:[#allocation32_spill] sm:$0xff] }
 0x98d   : > { %v11307_v38 = vpop.eup %7876  ;;  %v4142_v50 = vsub.f32 %v11079_v26, %v4064_v20  ;;  %v4143_v8 = vsub.f32 %v11081_v17, %v4064_v20  ;;  %v4338_v62 = vadd.f32 %v11305_v28, %v11303_v54 }
 0x98e   : > { %v11313_v14 = vpop.eup %7878  ;;  %v4067_v9 = vpop.xlane.xlu0 %4066 }
 0x98f   : > { %v4238_v23 = vmul.f32 1.442695, %v4142_v50  ;;  %v4240_v12 = vmul.f32 1.442695, %v4143_v8  ;;  %4339 = vadd.xlane.f32.xlu1 %v4338_v62  ;;  %v4144_v34 = vsub.f32 %v11085_v63, %v4067_v9  ;;  %v4145_v7 = vsub.f32 %v13541_v37, %v4067_v9  ;;  %v13544_v63 = vld [vmem:[#allocation27_spill] sm:$0xff]  ;;  %v13548_v37 = vld [vmem:[#allocation22_spill] sm:$0xff] }
 0x990   : > { %v4341_v43 = vadd.f32 %v11313_v14, %v11307_v38 }
 0x991   : > { %7888 = vpow2.f32 %v4238_v23  ;;  %v4242_v26 = vmul.f32 1.442695, %v4144_v34  ;;  %v4244_v58 = vmul.f32 1.442695, %v4145_v7 }
 0x992   : > { %7890 = vpow2.f32 %v4240_v12  ;;  %4342 = vadd.xlane.f32.xlu0 %v4341_v43  ;;  %v13547_v12 = vld [vmem:[#allocation74_spill] sm:$0xff] }
 0x993   : > { %v11319_v17 = vpop.eup %7880  ;;  %7892 = vpow2.f32 %v4242_v26 }
 0x994   : > { %13542 = vst [vmem:[#allocation35_spill] sm:$0xff] %v11319_v17  ;;  %v11321_v57 = vpop.eup %7882  ;;  %7894 = vpow2.f32 %v4244_v58  ;;  %v4070_v42 = vpop.xlane.xlu1 %4069 }
 0x995   : > { %v11323_v61 = vpop.eup %7884  ;;  %v4146_v60 = vsub.f32 %v13544_v63, %v4070_v42  ;;  %v4147_v20 = vsub.f32 %v13545_v33, %v4070_v42  ;;  %v4344_v50 = vadd.f32 %v11321_v57, %v11319_v17  ;;  %v13556_v17 = vld [vmem:[#allocation34_spill] sm:$0xff] }
 0x996   : > { %13543 = vst [vmem:[#allocation38_spill] sm:$0xff] %v11323_v61  ;;  %v11329_v8 = vpop.eup %7886  ;;  %v4073_v62 = vpop.xlane.xlu0 %4072 }
 0x997   : > { %13546 = vst [vmem:[#allocation36_spill] sm:$0xff] %v11329_v8  ;;  %v4246_v9 = vmul.f32 1.442695, %v4146_v60  ;;  %v4248_v23 = vmul.f32 1.442695, %v4147_v20  ;;  %4345 = vadd.xlane.f32.xlu1 %v4344_v50  ;;  %v4148_v34 = vsub.f32 %v13547_v12, %v4073_v62  ;;  %v4149_v7 = vsub.f32 %v13548_v37, %v4073_v62  ;;  %v13552_v20 = vld [vmem:[#allocation73_spill] sm:$0xff] }
 0x998   : > { %v4347_v43 = vadd.f32 %v11329_v8, %v11323_v61  ;;  %v13553_v62 = vld [vmem:[#allocation33_spill] sm:$0xff] }
 0x999   : > { %7896 = vpow2.f32 %v4246_v9  ;;  %v4250_v26 = vmul.f32 1.442695, %v4148_v34  ;;  %v4252_v58 = vmul.f32 1.442695, %v4149_v7 }
 0x99a   : > { %7898 = vpow2.f32 %v4248_v23  ;;  %4348 = vadd.xlane.f32.xlu0 %v4347_v43  ;;  %v13555_v43 = vld [vmem:[#allocation29_spill] sm:$0xff] }
 0x99b   : > { %v11335_v42 = vpop.eup %7888  ;;  %7900 = vpow2.f32 %v4250_v26 }
 0x99c   : > { %13549 = vst [vmem:[#allocation78_spill] sm:$0xff] %v11335_v42  ;;  %v11337_v63 = vpop.eup %7890  ;;  %7902 = vpow2.f32 %v4252_v58  ;;  %v4076_v60 = vpop.xlane.xlu1 %4075 }
 0x99d   : > { %13550 = vst [vmem:[#allocation77_spill] sm:$0xff] %v11337_v63  ;;  %v11339_v33 = vpop.eup %7892  ;;  %v4150_v50 = vsub.f32 %v13552_v20, %v4076_v60  ;;  %v4151_v12 = vsub.f32 %v13553_v62, %v4076_v60  ;;  %v4350_v9 = vadd.f32 %v11337_v63, %v11335_v42 }
 0x99e   : > { %13551 = vst [vmem:[#allocation23_spill] sm:$0xff] %v11339_v33  ;;  %v11345_v34 = vpop.eup %7894  ;;  %v4079_v23 = vpop.xlane.xlu0 %4078 }
 0x99f   : > { %13554 = vst [vmem:[#allocation13_spill] sm:$0xff] %v11345_v34  ;;  %v4254_v37 = vmul.f32 1.442695, %v4150_v50  ;;  %v4256_v7 = vmul.f32 1.442695, %v4151_v12  ;;  %4351 = vadd.xlane.f32.xlu1 %v4350_v9  ;;  %v4152_v26 = vsub.f32 %v13555_v43, %v4079_v23  ;;  %v4153_v58 = vsub.f32 %v13556_v17, %v4079_v23  ;;  %v13557_v9 = vld [vmem:[#allocation30_spill] sm:$0xff] }
 0x9a0   : > { %v4353_v61 = vadd.f32 %v11345_v34, %v11339_v33  ;;  %v13558_v17 = vld [vmem:[#allocation76_spill] sm:$0xff]  ;;  %v13560_v33 = vld [vmem:[#allocation37_spill] sm:$0xff] }
 0x9a1   : > { %7904 = vpow2.f32 %v4254_v37  ;;  %v4258_v20 = vmul.f32 1.442695, %v4152_v26  ;;  %v4260_v8 = vmul.f32 1.442695, %v4153_v58 }
 0x9a2   : > { %7906 = vpow2.f32 %v4256_v7  ;;  %4354 = vadd.xlane.f32.xlu0 %v4353_v61 }
 0x9a3   : > { %v11351_v60 = vpop.eup %7896  ;;  %7908 = vpow2.f32 %v4258_v20  ;;  %v13559_v20 = vld [vmem:[#allocation75_spill] sm:$0xff] }
 0x9a4   : > { %v11353_v62 = vpop.eup %7898  ;;  %7910 = vpow2.f32 %v4260_v8  ;;  %v4082_v50 = vpop.xlane.xlu1 %4081 }
 0x9a5   : > { %v11355_v12 = vpop.eup %7900  ;;  %v4154_v43 = vsub.f32 %v13557_v9, %v4082_v50  ;;  %v4155_v23 = vsub.f32 %v13558_v17, %v4082_v50  ;;  %v4356_v37 = vadd.f32 %v11353_v62, %v11351_v60 }
 0x9a6   : > { %v11361_v26 = vpop.eup %7902  ;;  %v4085_v7 = vpop.xlane.xlu0 %4084 }
 0x9a7   : > { %v4262_v61 = vmul.f32 1.442695, %v4154_v43  ;;  %v4264_v58 = vmul.f32 1.442695, %v4155_v23  ;;  %4357 = vadd.xlane.f32.xlu1 %v4356_v37  ;;  %v4156_v42 = vsub.f32 %v13559_v20, %v4085_v7  ;;  %v4157_v8 = vsub.f32 %v13560_v33, %v4085_v7 }
 0x9a8   : > { %v4359_v34 = vadd.f32 %v11361_v26, %v11355_v12 }
 0x9a9   : > { %7912 = vpow2.f32 %v4262_v61  ;;  %v4266_v9 = vmul.f32 1.442695, %v4156_v42  ;;  %v4268_v63 = vmul.f32 1.442695, %v4157_v8 }
 0x9aa   : > { %7914 = vpow2.f32 %v4264_v58  ;;  %4360 = vadd.xlane.f32.xlu0 %v4359_v34 }
 0x9ab   : > { %v11367_v50 = vpop.eup %7904  ;;  %7916 = vpow2.f32 %v4266_v9 }
 0x9ac   : > { %13561 = vst [vmem:[#allocation12_spill] sm:$0xff] %v11367_v50  ;;  %v11369_v17 = vpop.eup %7906  ;;  %7918 = vpow2.f32 %v4268_v63 }
 0x9ad   : > { %v11371_v43 = vpop.eup %7908  ;;  %v4362_v23 = vadd.f32 %v11369_v17, %v11367_v50 }
 0x9ae   : > { %13562 = vst [vmem:[#allocation11_spill] sm:$0xff] %v11371_v43  ;;  %v11375_v33 = vpop.eup %7910 }
 0x9af   : > { %13563 = vst [vmem:[#allocation28_spill] sm:$0xff] %v11375_v33  ;;  %4363 = vadd.xlane.f32.xlu1 %v4362_v23  ;;  %v4365_v42 = vadd.f32 %v11375_v33, %v11371_v43 }
 0x9b1   : > { %4366 = vadd.xlane.f32.xlu0 %v4365_v42 }
 0x9b3   : > { %v11379_v37 = vpop.eup %7912 }
 0x9b4   : > { %13564 = vst [vmem:[#allocation14_spill] sm:$0xff] %v11379_v37  ;;  %v11381_v34 = vpop.eup %7914 }
 0x9b5   : > { %13565 = vst [vmem:[#allocation25_spill] sm:$0xff] %v11381_v34  ;;  %v11383_v7 = vpop.eup %7916  ;;  %v4368_v63 = vadd.f32 %v11381_v34, %v11379_v37 }
 0x9b6   : > { %13566 = vst [vmem:[#allocation24_spill] sm:$0xff] %v11383_v7  ;;  %v11387_v61 = vpop.eup %7918 }
 0x9b7   : > { %13567 = vst [vmem:[#allocation26_spill] sm:$0xff] %v11387_v61  ;;  %4369 = vadd.xlane.f32.xlu1 %v4368_v63  ;;  %v4371_v58 = vadd.f32 %v11387_v61, %v11383_v7 }
 0x9b9   : > { %4372 = vadd.xlane.f32.xlu0 %v4371_v58 }
 0x9ec   : > { %v4304_v20 = vpop.xlane.xlu1 %4303 }
 0x9ed   : > { %7920 = vrcp.f32 %v4304_v20 }
 0x9ef   : > { %v4307_v8 = vpop.xlane.xlu0 %4306 }
 0x9f0   : > { %7922 = vrcp.f32 %v4307_v8  ;;  %v4088_v9 = vpop.xlane.xlu1 %4087 }
 0x9f1   : > { %v4158_v23 = vsub.f32 %v11127_v41, %v4088_v9  ;;  %v4159_v42 = vsub.f32 %v11129_v56, %v4088_v9 }
 0x9f3   : > { %v4270_v50 = vmul.f32 1.442695, %v4158_v23  ;;  %v4272_v43 = vmul.f32 1.442695, %v4159_v42  ;;  %v4091_v33 = vpop.xlane.xlu0 %4090 }
 0x9f4   : > { %v4160_v37 = vsub.f32 %v11133_v36, %v4091_v33  ;;  %v4161_v63 = vsub.f32 %v11135_v31, %v4091_v33  ;;  %v4310_v34 = vpop.xlane.xlu1 %4309 }
 0x9f5   : > { %7924 = vpow2.f32 %v4270_v50 }
 0x9f6   : > { %7926 = vpow2.f32 %v4272_v43  ;;  %v4274_v58 = vmul.f32 1.442695, %v4160_v37  ;;  %v4276_v7 = vmul.f32 1.442695, %v4161_v63 }
 0x9f7   : > { %v7921_v20 = vpop.eup %7920  ;;  %7928 = vrcp.f32 %v4310_v34 }
 0x9f8   : > { %7930 = vpow2.f32 %v4274_v58  ;;  %v4094_v8 = vpop.xlane.xlu1 %4093  ;;  %v4313_v61 = vpop.xlane.xlu0 %4312  ;;  %v4431_v36 = vmul.f32 %v7921_v20, %v11185_v27  ;;  %v4430_v23 = vmul.f32 %v7921_v20, %v11183_v10 }
 0x9f9   : > { %7932 = vpow2.f32 %v4276_v7  ;;  %v4162_v41 = vsub.f32 %v11139_v18, %v4094_v8  ;;  %v4163_v56 = vsub.f32 %v11141_v15, %v4094_v8 }
 0x9fa   : > { %v7923_v9 = vpop.eup %7922  ;;  %7934 = vrcp.f32 %v4313_v61 }
 0x9fb   : > { %v4278_v31 = vmul.f32 1.442695, %v4162_v41  ;;  %v4280_v33 = vmul.f32 1.442695, %v4163_v56  ;;  %v4433_v50 = vmul.f32 %v7923_v9, %v11193_v25  ;;  %v4432_v43 = vmul.f32 %v7923_v9, %v11187_v3 }
 0x9fc   : > { %v4316_v37 = vpop.xlane.xlu1 %4315  ;;  %v4097_v34 = vpop.xlane.xlu0 %4096 }
 0x9fd   : > { %7936 = vpow2.f32 %v4278_v31  ;;  %v4164_v7 = vsub.f32 %v11145_v1, %v4097_v34  ;;  %v4165_v18 = vsub.f32 %v11147_v21, %v4097_v34  ;;  %v4495_v15 = vpack.c.bf16 %v4433_v50, %v4431_v36 }
 0x9fe   : > { %7938 = vpow2.f32 %v4280_v33  ;;  %v4494_v61 = vpack.c.bf16 %v4432_v43, %v4430_v23 }
 0x9ff   : > { %v11403_v42 = vpop.eup %7924  ;;  %7940 = vrcp.f32 %v4316_v37  ;;  %v4282_v27 = vmul.f32 1.442695, %v4164_v7  ;;  %v4284_v63 = vmul.f32 1.442695, %v4165_v18  ;;  %4526 = vmatprep.subr.bf16.mxu0 %v4495_v15 }
 0xa00   : > { %v11405_v25 = vpop.eup %7926  ;;  %4527 = vmatpush1.bf16.xpose.msra.mxu0 %v4494_v61  ;;  %v4100_v3 = vpop.xlane.xlu1 %4099 }
 0xa01   : > { %v4319_v58 = vpop.xlane.xlu0 %4318  ;;  %v7929_v10 = vpop.eup %7928  ;;  %7942 = vpow2.f32 %v4282_v27  ;;  %v4166_v1 = vsub.f32 %v11151_v45, %v4100_v3  ;;  %v4167_v21 = vsub.f32 %v11153_v55, %v4100_v3  ;;  %v4374_v20 = vadd.f32 %v11405_v25, %v11403_v42 }
 0xa02   : > { %v11411_v8 = vpop.eup %7930  ;;  %7944 = vpow2.f32 %v4284_v63  ;;  %v4435_v55 = vmul.f32 %v7929_v10, %v11204_v46  ;;  %v4434_v34 = vmul.f32 %v7929_v10, %v11199_v49 }
 0xa03   : > { %v11413_v41 = vpop.eup %7932  ;;  %v4286_v56 = vmul.f32 1.442695, %v4166_v1  ;;  %v4288_v9 = vmul.f32 1.442695, %v4167_v21  ;;  %7946 = vrcp.f32 %v4319_v58  ;;  %4375 = vadd.xlane.f32.xlu1 %v4374_v20 }
 0xa04   : > { %v7935_v36 = vpop.eup %7934  ;;  %v4322_v31 = vpop.xlane.xlu1 %4321  ;;  %v4377_v33 = vadd.f32 %v11413_v41, %v11411_v8 }
 0xa05   : > { %v4103_v45 = vpop.xlane.xlu0 %4102  ;;  %7948 = vpow2.f32 %v4286_v56  ;;  %v4437_v37 = vmul.f32 %v7935_v36, %v11217_v19  ;;  %v4436_v23 = vmul.f32 %v7935_v36, %v11213_v59 }
 0xa06   : > { %v4168_v50 = vsub.f32 %v11157_v4, %v4103_v45  ;;  %v4169_v43 = vsub.f32 %v11159_v51, %v4103_v45  ;;  %7950 = vpow2.f32 %v4288_v9  ;;  %4378 = vadd.xlane.f32.xlu0 %v4377_v33 }
 0xa07   : > { %v11423_v7 = vpop.eup %7936  ;;  %v4497_v61 = vpack.c.bf16 %v4437_v37, %v4435_v55  ;;  %7952 = vrcp.f32 %v4322_v31  ;;  %v4496_v63 = vpack.c.bf16 %v4436_v23, %v4434_v34 }
 0xa08   : > { %v4290_v18 = vmul.f32 1.442695, %v4168_v50  ;;  %v4292_v15 = vmul.f32 1.442695, %v4169_v43  ;;  %v11425_v27 = vpop.eup %7938  ;;  %v4106_v46 = vpop.xlane.xlu1 %4105 }
 0xa09   : > { %v4325_v4 = vpop.xlane.xlu0 %4324  ;;  %v7941_v51 = vpop.eup %7940  ;;  %v4170_v19 = vsub.f32 %v11163_v6, %v4106_v46  ;;  %v4171_v3 = vsub.f32 %v11165_v30, %v4106_v46  ;;  %4528 = vmatprep.subr.bf16.mxu0 %v4497_v61  ;;  %v4380_v49 = vadd.f32 %v11425_v27, %v11423_v7 }
 0xa0a   : > { %7954 = vpow2.f32 %v4290_v18  ;;  %4529 = vmatpush1.bf16.xpose.msra.mxu0 %v4496_v63  ;;  %v4439_v20 = vmul.f32 %v7941_v51, %v11226_v44  ;;  %v4438_v33 = vmul.f32 %v7941_v51, %v11221_v52 }
 0xa0b   : > { %7956 = vpow2.f32 %v4292_v15  ;;  %v11431_v59 = vpop.eup %7942  ;;  %v4294_v58 = vmul.f32 1.442695, %v4170_v19  ;;  %v4296_v10 = vmul.f32 1.442695, %v4171_v3  ;;  %4381 = vadd.xlane.f32.xlu1 %v4380_v49 }
 0xa0c   : > { %7958 = vrcp.f32 %v4325_v4  ;;  %v11433_v1 = vpop.eup %7944  ;;  %v4328_v30 = vpop.xlane.xlu1 %4327 }
 0xa0d   : > { %v4109_v21 = vpop.xlane.xlu0 %4108  ;;  %v7947_v6 = vpop.eup %7946  ;;  %7960 = vpow2.f32 %v4294_v58  ;;  %v4383_v36 = vadd.f32 %v11433_v1, %v11431_v59 }
 0xa0e   : > { %v4172_v56 = vsub.f32 %v11169_v39, %v4109_v21  ;;  %v4173_v9 = vsub.f32 %v11171_v11, %v4109_v21  ;;  %7962 = vpow2.f32 %v4296_v10  ;;  %v4441_v31 = vmul.f32 %v7947_v6, %v11234_v53 }
 0xa0f   : > { %v4440_v45 = vmul.f32 %v7947_v6, %v11228_v16  ;;  %v11443_v55 = vpop.eup %7948  ;;  %4384 = vadd.xlane.f32.xlu0 %v4383_v36  ;;  %7964 = vrcp.f32 %v4328_v30 }
 0xa10   : > { %v4298_v44 = vmul.f32 1.442695, %v4172_v56  ;;  %v4300_v50 = vmul.f32 1.442695, %v4173_v9  ;;  %v11445_v43 = vpop.eup %7950  ;;  %v4499_v39 = vpack.c.bf16 %v4441_v31, %v4439_v20 }
 0xa11   : > { %v4331_v11 = vpop.xlane.xlu0 %4330  ;;  %v4498_v37 = vpack.c.bf16 %v4440_v45, %v4438_v33  ;;  %v4386_v34 = vadd.f32 %v11445_v43, %v11443_v55  ;;  %v7953_v53 = vpop.eup %7952 }
 0xa12   : > { %7966 = vpow2.f32 %v4298_v44  ;;  %4530 = vmatprep.subr.bf16.mxu0 %v4499_v39  ;;  %v4443_v61 = vmul.f32 %v7953_v53, %v11248_v22  ;;  %v4442_v4 = vmul.f32 %v7953_v53, %v11243_v47 }
 0xa13   : > { %7968 = vpow2.f32 %v4300_v50  ;;  %4531 = vmatpush1.bf16.xpose.msra.mxu0 %v4498_v37  ;;  %4387 = vadd.xlane.f32.xlu1 %v4386_v34 }
 0xa14   : > { %v11449_v52 = vpop.eup %7954  ;;  %7970 = vrcp.f32 %v4331_v11  ;;  %v4334_v23 = vpop.xlane.xlu1 %4333 }
 0xa15   : > { %v11451_v16 = vpop.eup %7956  ;;  %7972 = vrcp.f32 %v4334_v23 }
 0xa16   : > { %v7959_v18 = vpop.eup %7958  ;;  %v4389_v15 = vadd.f32 %v11451_v16, %v11449_v52 }
 0xa17   : > { %v4445_v46 = vmul.f32 %v7959_v18, %v11256_v5  ;;  %v4444_v63 = vmul.f32 %v7959_v18, %v11250_v2  ;;  %v11459_v51 = vpop.eup %7960  ;;  %v4337_v19 = vpop.xlane.xlu0 %4336 }
 0xa18   : > { %4390 = vadd.xlane.f32.xlu0 %v4389_v15  ;;  %v11461_v3 = vpop.eup %7962  ;;  %7974 = vrcp.f32 %v4337_v19  ;;  %v13568_v19 = vld [vmem:[#allocation36_spill] sm:$0xff] }
 0xa19   : > { %v4501_v49 = vpack.c.bf16 %v4445_v46, %v4443_v61  ;;  %v4500_v58 = vpack.c.bf16 %v4444_v63, %v4442_v4  ;;  %v4392_v10 = vadd.f32 %v11461_v3, %v11459_v51  ;;  %v7965_v22 = vpop.eup %7964 }
 0xa1a   : > { %v4447_v6 = vmul.f32 %v7965_v22, %v11270_v24  ;;  %v4446_v56 = vmul.f32 %v7965_v22, %v11265_v29  ;;  %v13570_v22 = vld [vmem:[#allocation35_spill] sm:$0xff] }
 0xa1b   : > { %4532 = vmatprep.subr.bf16.mxu0 %v4501_v49  ;;  %4393 = vadd.xlane.f32.xlu1 %v4392_v10 }
 0xa1c   : > { %v11465_v21 = vpop.eup %7966  ;;  %4533 = vmatpush1.bf16.xpose.msra.mxu0 %v4500_v58  ;;  %v4340_v2 = vpop.xlane.xlu1 %4339  ;;  %v13569_v58 = vld [vmem:[#allocation38_spill] sm:$0xff] }
 0xa1d   : > { %v11467_v47 = vpop.eup %7968  ;;  %7976 = vrcp.f32 %v4340_v2 }
 0xa1e   : > { %v7971_v5 = vpop.eup %7970  ;;  %v4395_v20 = vadd.f32 %v11467_v47, %v11465_v21 }
 0xa1f   : > { %v4449_v30 = vmul.f32 %v7971_v5, %v11278_v35  ;;  %v4448_v9 = vmul.f32 %v7971_v5, %v11272_v32  ;;  %v4343_v36 = vpop.xlane.xlu0 %4342  ;;  %v7973_v31 = vpop.eup %7972 }
 0xa20   : > { %4396 = vadd.xlane.f32.xlu0 %v4395_v20  ;;  %7978 = vrcp.f32 %v4343_v36  ;;  %v4451_v50 = vmul.f32 %v7973_v31, %v11289_v13  ;;  %v4450_v32 = vmul.f32 %v7973_v31, %v11287_v48  ;;  %v13573_v31 = vld [vmem:[#allocation23_spill] sm:$0xff] }
 0xa21   : > { %v4503_v33 = vpack.c.bf16 %v4449_v30, %v4447_v6  ;;  %v4502_v45 = vpack.c.bf16 %v4448_v9, %v4446_v56  ;;  %v13571_v6 = vld [vmem:[#allocation77_spill] sm:$0xff] }
 0xa22   : > { %v7975_v44 = vpop.eup %7974  ;;  %v13572_v56 = vld [vmem:[#allocation13_spill] sm:$0xff] }
 0xa23   : > { %4534 = vmatprep.subr.bf16.mxu0 %v4503_v33  ;;  %v4453_v24 = vmul.f32 %v7975_v44, %v11297_v40  ;;  %v4452_v35 = vmul.f32 %v7975_v44, %v11291_v0  ;;  %v13574_v44 = vld [vmem:[#allocation78_spill] sm:$0xff] }
 0xa24   : > { %4535 = vmatpush1.bf16.xpose.msra.mxu0 %v4502_v45  ;;  %v4346_v39 = vpop.xlane.xlu1 %4345 }
 0xa25   : > { %v4505_v11 = vpack.c.bf16 %v4453_v24, %v4451_v50  ;;  %7980 = vrcp.f32 %v4346_v39  ;;  %v4504_v34 = vpack.c.bf16 %v4452_v35, %v4450_v32 }
 0xa27   : > { %4536 = vmatprep.subr.bf16.mxu0 %v4505_v11  ;;  %v4349_v29 = vpop.xlane.xlu0 %4348  ;;  %v7977_v37 = vpop.eup %7976 }
 0xa28   : > { %7982 = vrcp.f32 %v4349_v29  ;;  %v4455_v23 = vmul.f32 %v7977_v37, %v11305_v28  ;;  %v4454_v61 = vmul.f32 %v7977_v37, %v11303_v54 }
 0xa2a   : > { %v7979_v53 = vpop.eup %7978 }
 0xa2b   : > { %v4457_v13 = vmul.f32 %v7979_v53, %v11313_v14  ;;  %v4456_v15 = vmul.f32 %v7979_v53, %v11307_v38 }
 0xa2c   : > { %4537 = vmatpush1.bf16.xpose.msra.mxu0 %v4504_v34  ;;  %v4352_v18 = vpop.xlane.xlu1 %4351 }
 0xa2d   : > { %v4507_v40 = vpack.c.bf16 %v4457_v13, %v4455_v23  ;;  %7984 = vrcp.f32 %v4352_v18  ;;  %v4506_v48 = vpack.c.bf16 %v4456_v15, %v4454_v61  ;;  %v13575_v18 = vld [vmem:[#allocation42_spill] sm:$0xff] }
 0xa2f   : > { %4538 = vmatprep.subr.bf16.mxu0 %v4507_v40  ;;  %v4355_v0 = vpop.xlane.xlu0 %4354  ;;  %v7981_v46 = vpop.eup %7980  ;;  %v13576_v40 = vld [vmem:[#allocation39_spill] sm:$0xff] }
 0xa30   : > { %7986 = vrcp.f32 %v4355_v0  ;;  %v4459_v63 = vmul.f32 %v7981_v46, %v11321_v57  ;;  %v4458_v2 = vmul.f32 %v7981_v46, %v13570_v22  ;;  %v13577_v15 = vpack.c.bf16 %v13575_v18, %v13576_v40  ;;  %v13587_v22 = vld [vmem:[#allocation53_spill] sm:$0xff] }
 0xa32   : > { %v7983_v4 = vpop.eup %7982 }
 0xa33   : > { %v4461_v28 = vmul.f32 %v7983_v4, %v13568_v19  ;;  %v4460_v10 = vmul.f32 %v7983_v4, %v13569_v58  ;;  %v13580_v4 = vld [vmem:[#allocation41_spill] sm:$0xff]  ;;  %v13583_v19 = vld [vmem:[#allocation47_spill] sm:$0xff] }
 0xa34   : > { %4539 = vmatpush1.bf16.xpose.msra.mxu0 %v4506_v48  ;;  %v4358_v49 = vpop.xlane.xlu1 %4357  ;;  %v13579_v48 = vld [vmem:[#allocation45_spill] sm:$0xff] }
 0xa35   : > { %v4509_v14 = vpack.c.bf16 %v4461_v28, %v4459_v63  ;;  %7988 = vrcp.f32 %v4358_v49  ;;  %v4508_v54 = vpack.c.bf16 %v4460_v10, %v4458_v2  ;;  %v13582_v63 = vld [vmem:[#allocation50_spill] sm:$0xff]  ;;  %v13585_v49 = vld [vmem:[#allocation11_spill] sm:$0xff]  ;;  %v13586_v10 = vld [vmem:[#allocation12_spill] sm:$0xff] }
 0xa36   : > { %v13584_v28 = vpack.c.bf16 %v13582_v63, %v13583_v19 }
 0xa37   : > { %4540 = vmatprep.subr.bf16.mxu0 %v4509_v14  ;;  %v4361_v38 = vpop.xlane.xlu0 %4360  ;;  %v7985_v5 = vpop.eup %7984 }
 0xa38   : > { %7990 = vrcp.f32 %v4361_v38  ;;  %v4463_v30 = vmul.f32 %v7985_v5, %v13571_v6  ;;  %v4462_v50 = vmul.f32 %v7985_v5, %v13574_v44 }
 0xa3a   : > { %v7987_v20 = vpop.eup %7986 }
 0xa3b   : > { %v4465_v57 = vmul.f32 %v7987_v20, %v13572_v56  ;;  %v4464_v33 = vmul.f32 %v7987_v20, %v13573_v31  ;;  %v13590_v20 = vld [vmem:[#allocation25_spill] sm:$0xff]  ;;  %v13593_v31 = vld [vmem:[#allocation14_spill] sm:$0xff] }
 0xa3c   : > { %4541 = vmatpush1.bf16.xpose.msra.mxu0 %v4508_v54  ;;  %v4364_v9 = vpop.xlane.xlu1 %4363 }
 0xa3d   : > { %7992 = vrcp.f32 %v4364_v9  ;;  %v4511_v36 = vpack.c.bf16 %v4465_v57, %v4463_v30  ;;  %v4510_v39 = vpack.c.bf16 %v4464_v33, %v4462_v50  ;;  %v13591_v30 = vld [vmem:[#allocation26_spill] sm:$0xff]  ;;  %v13592_v9 = vld [vmem:[#allocation24_spill] sm:$0xff] }
 0xa3e   : > { %v4367_v45 = vpop.xlane.xlu0 %4366 }
 0xa3f   : > { %4542 = vmatprep.subr.bf16.mxu0 %v4511_v36  ;;  %7994 = vrcp.f32 %v4367_v45  ;;  %v7989_v24 = vpop.eup %7988 }
 0xa40   : > { %v4467_v35 = vmul.f32 %v7989_v24, %v11353_v62  ;;  %v4466_v13 = vmul.f32 %v7989_v24, %v11351_v60 }
 0xa42   : > { %v7991_v11 = vpop.eup %7990 }
 0xa43   : > { %v4469_v29 = vmul.f32 %v7991_v11, %v11361_v26  ;;  %v4468_v34 = vmul.f32 %v7991_v11, %v11355_v12  ;;  %v13578_v26 = vld [vmem:[#allocation28_spill] sm:$0xff]  ;;  %v13581_v12 = vpack.c.bf16 %v13579_v48, %v13580_v4 }
 0xa44   : > { %4543 = vmatpush1.bf16.xpose.msra.mxu0 %v4510_v39  ;;  %v4370_v32 = vpop.xlane.xlu1 %4369 }
 0xa45   : > { %7996 = vrcp.f32 %v4370_v32  ;;  %v4513_v37 = vpack.c.bf16 %v4469_v29, %v4467_v35  ;;  %v4512_v61 = vpack.c.bf16 %v4468_v34, %v4466_v13 }
 0xa46   : > { %v4373_v53 = vpop.xlane.xlu0 %4372 }
 0xa47   : > { %v7993_v23 = vpop.eup %7992  ;;  %4544 = vmatprep.subr.bf16.mxu0 %v4513_v37  ;;  %7998 = vrcp.f32 %v4373_v53 }
 0xa48   : > { %4599 = vxpose.xlu1.c.b16.start [1/2] (short) %v13577_v15, 128  ;;  %v4471_v62 = vmul.f32 %v7993_v23, %v11369_v17  ;;  %v4470_v38 = vmul.f32 %v7993_v23, %v13586_v10  ;;  %v13588_v17 = vld [vmem:[#allocation49_spill] sm:$0xff] }
 0xa49   : > { %v7995_v0 = vpop.eup %7994  ;;  %v13589_v2 = vpack.c.bf16 %v13587_v22, %v13588_v17  ;;  %v13597_v10 = vld [vmem:[#allocation85_spill] sm:$0xff]  ;;  %v13600_v17 = vld [vmem:[#allocation16_spill] sm:$0xff] }
 0xa4a   : > { %v4473_v46 = vmul.f32 %v7995_v0, %v13578_v26  ;;  %v4472_v14 = vmul.f32 %v7995_v0, %v13585_v49 }
 0xa4c   : > { %4545 = vmatpush1.bf16.xpose.msra.mxu0 %v4512_v61  ;;  %4600 = vxpose.xlu1.c.b16.end [2/2] (short) %v13584_v28, 128  ;;  %v4515_v60 = vpack.c.bf16 %v4473_v46, %v4471_v62  ;;  %v4514_v54 = vpack.c.bf16 %v4472_v14, %v4470_v38  ;;  %v13598_v38 = vld [vmem:[#allocation80_spill] sm:$0xff] }
 0xa4d   : > { %4615 = vxpose.xlu0.c.b16.start [1/2] (short) %v13581_v12, 128  ;;  %v13599_v22 = vpack.c.bf16 %v13597_v10, %v13598_v38 }
 0xa4e   : > { %4546 = vmatprep.subr.bf16.mxu0 %v4515_v60 }
 0xa4f   : > { %v7997_v58 = vpop.eup %7996 }
 0xa50   : > { %v4475_v6 = vmul.f32 %v7997_v58, %v13590_v20  ;;  %v4474_v33 = vmul.f32 %v7997_v58, %v13593_v31  ;;  %v13615_v31 = vmov 0  }
 0xa51   : > { %4616 = vxpose.xlu0.c.b16.end [2/2] (short) %v13589_v2, 128  ;;  %v7999_v5 = vpop.eup %7998 }
 0xa52   : > { %v4477_v56 = vmul.f32 %v7999_v5, %v13591_v30  ;;  %v4476_v36 = vmul.f32 %v7999_v5, %v13592_v9  ;;  %v13610_v30 = vld [vmem:[#allocation63_spill] sm:$0xff]  ;;  %v13613_v9 = vld [vmem:[#allocation9_spill] sm:$0xff] }
 0xa54   : > { %4547 = vmatpush1.bf16.xpose.msra.mxu0 %v4514_v54  ;;  %v4517_v57 = vpack.c.bf16 %v4477_v56, %v4475_v6  ;;  %v4516_v45 = vpack.c.bf16 %v4476_v36, %v4474_v33  ;;  %v13607_v54 = vld [vmem:[#allocation67_spill] sm:$0xff]  ;;  %v13609_v6 = vld [vmem:[#allocation65_spill] sm:$0xff] }
 0xa55   : > { %v13611_v56 = vpack.c.bf16 %v13609_v6, %v13610_v30 }
 0xa56   : > { %4548 = vmatprep.subr.bf16.mxu0 %v4517_v57  ;;  %v13612_v57 = vld [vmem:[#allocation86_spill] sm:$0xff] }
 0xa57   : > { %v13614_v36 = vpack.c.bf16 %v13612_v57, %v13613_v9 }
 0xa5c   : > { %4549 = vmatpush1.bf16.xpose.msra.mxu0 %v4516_v45 }
 0xa90   : > { %v4376_v44 = vpop.xlane.xlu1 %4375 }
 0xa91   : > { %8000 = vrcp.f32 %v4376_v44 }
 0xa93   : > { %v4379_v50 = vpop.xlane.xlu0 %4378 }
 0xa94   : > { %8002 = vrcp.f32 %v4379_v50 }
 0xa98   : > { %v4382_v24 = vpop.xlane.xlu1 %4381 }
 0xa99   : > { %8004 = vrcp.f32 %v4382_v24 }
 0xa9b   : > { %v8001_v39 = vpop.eup %8000 }
 0xa9c   : > { %v4385_v11 = vpop.xlane.xlu0 %4384  ;;  %v4479_v29 = vmul.f32 %v8001_v39, %v11405_v25  ;;  %v4478_v37 = vmul.f32 %v8001_v39, %v11403_v42 }
 0xa9d   : > { %8006 = vrcp.f32 %v4385_v11 }
 0xa9e   : > { %v8003_v35 = vpop.eup %8002 }
 0xa9f   : > { %v4481_v32 = vmul.f32 %v8003_v35, %v11413_v41  ;;  %v4480_v34 = vmul.f32 %v8003_v35, %v11411_v8 }
 0xaa0   : > { %v4388_v53 = vpop.xlane.xlu1 %4387 }
 0xaa1   : > { %v4519_v23 = vpack.c.bf16 %v4481_v32, %v4479_v29  ;;  %v4518_v13 = vpack.c.bf16 %v4480_v34, %v4478_v37  ;;  %8008 = vrcp.f32 %v4388_v53 }
 0xaa3   : > { %4550 = vmatprep.subr.bf16.mxu0 %v4519_v23  ;;  %v8005_v40 = vpop.eup %8004 }
 0xaa4   : > { %4551 = vmatpush1.bf16.xpose.msra.mxu0 %v4518_v13  ;;  %v4483_v61 = vmul.f32 %v8005_v40, %v11425_v27  ;;  %v4482_v41 = vmul.f32 %v8005_v40, %v11423_v7  ;;  %v13616_v40 = vld [vmem:[#allocation84_spill] sm:$0xff] }
 0xaa5   : > { %v4391_v18 = vpop.xlane.xlu0 %4390 }
 0xaa6   : > { %8010 = vrcp.f32 %v4391_v18 }
 0xaa7   : > { %v8007_v15 = vpop.eup %8006 }
 0xaa8   : > { %v4394_v0 = vpop.xlane.xlu1 %4393  ;;  %v4485_v25 = vmul.f32 %v8007_v15, %v11433_v1  ;;  %v4484_v42 = vmul.f32 %v8007_v15, %v11431_v59  ;;  %v13617_v15 = vld [vmem:[#allocation82_spill] sm:$0xff] }
 0xaa9   : > { %8012 = vrcp.f32 %v4394_v0  ;;  %v13618_v0 = vpack.c.bf16 %v13616_v40, %v13617_v15 }
 0xaaa   : > { %v4521_v8 = vpack.c.bf16 %v4485_v25, %v4483_v61  ;;  %v4520_v62 = vpack.c.bf16 %v4484_v42, %v4482_v41 }
 0xaab   : > { %v8009_v46 = vpop.eup %8008 }
 0xaac   : > { %4552 = vmatprep.subr.bf16.mxu0 %v4521_v8  ;;  %v4487_v4 = vmul.f32 %v8009_v46, %v11445_v43  ;;  %v4486_v27 = vmul.f32 %v8009_v46, %v11443_v55  ;;  %v13594_v55 = vld [vmem:[#allocation61_spill] sm:$0xff] }
 0xaad   : > { %v4397_v26 = vpop.xlane.xlu0 %4396  ;;  %4553 = vmatpush1.bf16.xpose.msra.mxu0 %v4520_v62 }
 0xaae   : > { %8014 = vrcp.f32 %v4397_v26  ;;  %v4607_v33 = vpop.trf.xlu1 }
 0xab0   : > { %v8011_v48 = vpop.eup %8010 }
 0xab1   : > { %v4489_v12 = vmul.f32 %v8011_v48, %v11451_v16  ;;  %v4488_v1 = vmul.f32 %v8011_v48, %v11449_v52  ;;  %v13595_v52 = vld [vmem:[#allocation59_spill] sm:$0xff] }
 0xab2   : > { %v13596_v58 = vpack.c.bf16 %v13594_v55, %v13595_v52  ;;  %v4608_v45 = vpop.trf.xlu1 }
 0xab3   : > { %v4523_v7 = vpack.c.bf16 %v4489_v12, %v4487_v4  ;;  %v4522_v63 = vpack.c.bf16 %v4488_v1, %v4486_v27  ;;  %v8013_v59 = vpop.eup %8012  ;;  %v4623_v29 = vpop.trf.xlu0 }
 0xab4   : > { %v4491_v28 = vmul.f32 %v8013_v59, %v11461_v3  ;;  %v4490_v49 = vmul.f32 %v8013_v59, %v11459_v51  ;;  %v13601_v3 = vld [vmem:[#allocation89_spill] sm:$0xff]  ;;  %v13604_v51 = vld [vmem:[#allocation55_spill] sm:$0xff] }
 0xab5   : > { %4554 = vmatprep.subr.bf16.mxu0 %v4523_v7  ;;  %v13602_v2 = vpack.c.bf16 %v13600_v17, %v13601_v3 }
 0xab6   : > { %4555 = vmatpush1.bf16.xpose.msra.mxu0 %v4522_v63  ;;  %v4609_v44 = vpop.trf.xlu1 }
 0xab7   : > { %v4624_v32 = vpop.trf.xlu0 }
 0xab8   : > { %v8015_v19 = vpop.eup %8014 }
 0xab9   : > { %v4493_v60 = vmul.f32 %v8015_v19, %v11467_v47  ;;  %v4492_v43 = vmul.f32 %v8015_v19, %v11465_v21  ;;  %v13603_v47 = vld [vmem:[#allocation57_spill] sm:$0xff] }
 0xaba   : > { %v13605_v5 = vpack.c.bf16 %v13603_v47, %v13604_v51  ;;  %v13606_v21 = vld [vmem:[#allocation69_spill] sm:$0xff]  ;;  %v4610_v50 = vpop.trf.xlu1 }
 0xabb   : > { %v4525_v14 = vpack.c.bf16 %v4493_v60, %v4491_v28  ;;  %v4524_v16 = vpack.c.bf16 %v4492_v43, %v4490_v49  ;;  %v13608_v20 = vpack.c.bf16 %v13606_v21, %v13607_v54  ;;  %v4625_v37 = vpop.trf.xlu0 }
 0xabd   : > { %4556 = vmatprep.subr.bf16.mxu0 %v4525_v14 }
 0xabe   : > { %4557 = vmatpush1.bf16.xpose.msra.mxu0 %v4524_v16  ;;  %v4611_v24 = vpop.trf.xlu1 }
 0xabf   : > { %4679 = vmatprep.subr.bf16.mxu0 %v13596_v58  ;;  %v4626_v34 = vpop.trf.xlu0 }
 0xac2   : > { %v4612_v39 = vpop.trf.xlu1 }
 0xac3   : > { %v4627_v53 = vpop.trf.xlu0 }
 0xac5   : > { %4559 = vmatmul.mubr.bf16.vlgmr.msra.gmra.mrb[184].mxu0 %v13599_v22 }
 0xac6   : > { %4568 = vmatprep.mubr.bf16.mxu0 %v13602_v2  ;;  %4680 = vmatpush1.bf16.msra.mxu0 %v13605_v5  ;;  %v4613_v11 = vpop.trf.xlu1 }
 0xac7   : > { %4681 = vmatprep.subr.bf16.mxu0 %v13608_v20  ;;  %v4628_v23 = vpop.trf.xlu0 }
 0xaca   : > { %4682 = vmatpush1.bf16.msra.mxu0 %v13611_v56  ;;  %v4614_v35 = vpop.trf.xlu1 }
 0xacb   : > { %v4629_v13 = vpop.trf.xlu0 }
 0xacd   : > { %4569 = vmatmul.mubr.bf16.gmra.mrb[188].mxu0 %v13614_v36 }
 0xace   : > { %4711 = vmatprep.mubr.bf16.mxu0 %v13615_v31 }
 0xacf   : > { %v4630_v18 = vpop.trf.xlu0 }
 0xad5   : > { %6840 = vmatmul.mubr.msk.bf16.vlgmr.msra.gmra.mrb[192].mxu0 %vm1254_vm0, %v4607_v33 }
 0xad6   : > { %4721 = vmatprep.mubr.bf16.mxu0 %v13615_v31 }
 0xadd   : > { %6841 = vmatmul.mubr.msk.bf16.gmra.mrb[196].mxu0 %vm1254_vm0, %v4608_v45 }
 0xade   : > { %4731 = vmatprep.mubr.bf16.mxu0 %v13615_v31 }
 0xae5   : > { %6842 = vmatmul.mubr.msk.bf16.gmra.mrb[200].mxu0 %vm1254_vm0, %v4609_v44 }
 0xae6   : > { %4741 = vmatprep.mubr.bf16.mxu0 %v13615_v31 }
 0xaed   : > { %6843 = vmatmul.mubr.msk.bf16.gmra.mrb[204].mxu0 %vm1254_vm0, %v4610_v50 }
 0xaee   : > { %4751 = vmatprep.mubr.bf16.mxu0 %v13615_v31 }
 0xaf5   : > { %6844 = vmatmul.mubr.msk.bf16.gmra.mrb[208].mxu0 %vm1254_vm0, %v4611_v24 }
 0xaf6   : > { %4761 = vmatprep.mubr.bf16.mxu0 %v13615_v31 }
 0xafd   : > { %6845 = vmatmul.mubr.msk.bf16.gmra.mrb[212].mxu0 %vm1254_vm0, %v4612_v39 }
 0xafe   : > { %4771 = vmatprep.mubr.bf16.mxu0 %v13615_v31 }
 0xb05   : > { %6846 = vmatmul.mubr.msk.bf16.gmra.mrb[216].mxu0 %vm1254_vm0, %v4613_v11 }
 0xb06   : > { %4781 = vmatprep.mubr.bf16.mxu0 %v13615_v31 }
 0xb0d   : > { %6847 = vmatmul.mubr.msk.bf16.gmra.mrb[220].mxu0 %vm1254_vm0, %v4614_v35 }
 0xb0e   : > { %4791 = vmatprep.mubr.bf16.mxu0 %v13615_v31 }
 0xb15   : > { %6848 = vmatmul.mubr.msk.bf16.gmra.mrb[224].mxu0 %vm1254_vm0, %v4623_v29 }
 0xb16   : > { %4801 = vmatprep.mubr.bf16.mxu0 %v13615_v31 }
 0xb1d   : > { %6849 = vmatmul.mubr.msk.bf16.gmra.mrb[228].mxu0 %vm1254_vm0, %v4624_v32 }
 0xb1e   : > { %4811 = vmatprep.mubr.bf16.mxu0 %v13615_v31 }
 0xb25   : > { %6850 = vmatmul.mubr.msk.bf16.gmra.mrb[232].mxu0 %vm1254_vm0, %v4625_v37 }
 0xb26   : > { %4821 = vmatprep.mubr.bf16.mxu0 %v13615_v31 }
 0xb2d   : > { %6851 = vmatmul.mubr.msk.bf16.gmra.mrb[236].mxu0 %vm1254_vm0, %v4626_v34 }
 0xb2e   : > { %4831 = vmatprep.mubr.bf16.mxu0 %v13615_v31 }
 0xb35   : > { %6852 = vmatmul.mubr.msk.bf16.gmra.mrb[240].mxu0 %vm1254_vm0, %v4627_v53 }
 0xb36   : > { %4841 = vmatprep.mubr.bf16.mxu0 %v13615_v31 }
 0xb3d   : > { %6853 = vmatmul.mubr.msk.bf16.gmra.mrb[244].mxu0 %vm1254_vm0, %v4628_v23 }
 0xb3e   : > { %4851 = vmatprep.mubr.bf16.mxu0 %v13615_v31 }
 0xb45   : > { %6854 = vmatmul.mubr.msk.bf16.gmra.mrb[248].mxu0 %vm1254_vm0, %v4629_v13 }
 0xb46   : > { %4861 = vmatprep.mubr.bf16.mxu0 %v13615_v31 }
 0xb4d   : > { %6855 = vmatmul.mubr.msk.bf16.gmra.mrb[252].mxu0 %vm1254_vm0, %v4630_v18 }
 0xb4e   : > { %6274 = vmatprep.mubr.bf16.mxu0 %v13618_v0 }
 0xb98   : > { %v11587_v61 = vpop.f32.mrb[184].mxu0 }
 0xb99   : > { %13619 = vst [vmem:[#allocation27_spill] sm:$0xff] %v11587_v61  ;;  %v11589_v25 = vpop.f32.mrb[185].mxu0 }
 0xb9a   : > { %13620 = vst [vmem:[#allocation32_spill] sm:$0xff] %v11589_v25  ;;  %v11591_v41 = vpop.f32.mrb[186].mxu0 }
 0xb9b   : > { %13621 = vst [vmem:[#allocation74_spill] sm:$0xff] %v11591_v41  ;;  %v11595_v8 = vpop.f32.mrb[187].mxu0 }
 0xb9c   : > { %13622 = vst [vmem:[#allocation22_spill] sm:$0xff] %v11595_v8 }
 0xba0   : > { %v11599_v26 = vpop.f32.mrb[188].mxu0 }
 0xba1   : > { %13623 = vst [vmem:[#allocation73_spill] sm:$0xff] %v11599_v26  ;;  %v11601_v46 = vpop.f32.mrb[189].mxu0 }
 0xba2   : > { %13624 = vst [vmem:[#allocation33_spill] sm:$0xff] %v11601_v46  ;;  %v11603_v48 = vpop.f32.mrb[190].mxu0 }
 0xba3   : > { %13625 = vst [vmem:[#allocation29_spill] sm:$0xff] %v11603_v48  ;;  %v11607_v12 = vpop.f32.mrb[191].mxu0 }
 0xba4   : > { %13626 = vst [vmem:[#allocation34_spill] sm:$0xff] %v11607_v12 }
 0xba8   : > { %v11611_v1 = vpop.f32.mrb[192].mxu0 }
 0xba9   : > { %v11613_v7 = vpop.f32.mrb[193].mxu0 }
 0xbaa   : > { %v4872_v63 = vmax.f32 %v11611_v1, %v11613_v7  ;;  %v11617_v59 = vpop.f32.mrb[194].mxu0 }
 0xbab   : > { %v11619_v19 = vpop.f32.mrb[195].mxu0 }
 0xbac   : > { %v4875_v28 = vmax.f32 %v11617_v59, %v11619_v19  ;;  %4873 = vmax.xlane.f32.xlu1 %v4872_v63 }
 0xbae   : > { %4876 = vmax.xlane.f32.xlu0 %v4875_v28 }
 0xbb0   : > { %v11623_v60 = vpop.f32.mrb[196].mxu0 }
 0xbb1   : > { %v11625_v49 = vpop.f32.mrb[197].mxu0 }
 0xbb2   : > { %v4878_v43 = vmax.f32 %v11623_v60, %v11625_v49  ;;  %v11629_v14 = vpop.f32.mrb[198].mxu0 }
 0xbb3   : > { %v11631_v16 = vpop.f32.mrb[199].mxu0 }
 0xbb4   : > { %v4881_v55 = vmax.f32 %v11629_v14, %v11631_v16  ;;  %4879 = vmax.xlane.f32.xlu1 %v4878_v43 }
 0xbb6   : > { %4882 = vmax.xlane.f32.xlu0 %v4881_v55 }
 0xbb8   : > { %v11635_v52 = vpop.f32.mrb[200].mxu0 }
 0xbb9   : > { %v11637_v58 = vpop.f32.mrb[201].mxu0 }
 0xbba   : > { %v4884_v10 = vmax.f32 %v11635_v52, %v11637_v58  ;;  %v11641_v38 = vpop.f32.mrb[202].mxu0 }
 0xbbb   : > { %v11643_v22 = vpop.f32.mrb[203].mxu0 }
 0xbbc   : > { %v4887_v17 = vmax.f32 %v11641_v38, %v11643_v22  ;;  %4885 = vmax.xlane.f32.xlu1 %v4884_v10 }
 0xbbe   : > { %4888 = vmax.xlane.f32.xlu0 %v4887_v17 }
 0xbc0   : > { %v11647_v3 = vpop.f32.mrb[204].mxu0 }
 0xbc1   : > { %v11649_v2 = vpop.f32.mrb[205].mxu0 }
 0xbc2   : > { %v4890_v47 = vmax.f32 %v11647_v3, %v11649_v2  ;;  %v11653_v51 = vpop.f32.mrb[206].mxu0 }
 0xbc3   : > { %v11655_v5 = vpop.f32.mrb[207].mxu0 }
 0xbc4   : > { %v4893_v21 = vmax.f32 %v11653_v51, %v11655_v5  ;;  %4891 = vmax.xlane.f32.xlu1 %v4890_v47 }
 0xbc6   : > { %4894 = vmax.xlane.f32.xlu0 %v4893_v21 }
 0xbc8   : > { %v11659_v54 = vpop.f32.mrb[208].mxu0 }
 0xbc9   : > { %v11661_v20 = vpop.f32.mrb[209].mxu0 }
 0xbca   : > { %v4896_v6 = vmax.f32 %v11659_v54, %v11661_v20  ;;  %v11665_v30 = vpop.f32.mrb[210].mxu0 }
 0xbcb   : > { %v11667_v56 = vpop.f32.mrb[211].mxu0 }
 0xbcc   : > { %v4899_v57 = vmax.f32 %v11665_v30, %v11667_v56  ;;  %4897 = vmax.xlane.f32.xlu1 %v4896_v6 }
 0xbce   : > { %4900 = vmax.xlane.f32.xlu0 %v4899_v57 }
 0xbd0   : > { %v11671_v9 = vpop.f32.mrb[212].mxu0 }
 0xbd1   : > { %v11673_v36 = vpop.f32.mrb[213].mxu0 }
 0xbd2   : > { %v4902_v33 = vmax.f32 %v11671_v9, %v11673_v36  ;;  %v11677_v45 = vpop.f32.mrb[214].mxu0 }
 0xbd3   : > { %v11679_v44 = vpop.f32.mrb[215].mxu0 }
 0xbd4   : > { %v4905_v50 = vmax.f32 %v11677_v45, %v11679_v44  ;;  %4903 = vmax.xlane.f32.xlu1 %v4902_v33 }
 0xbd6   : > { %4906 = vmax.xlane.f32.xlu0 %v4905_v50 }
 0xbd8   : > { %v11683_v24 = vpop.f32.mrb[216].mxu0 }
 0xbd9   : > { %v11685_v39 = vpop.f32.mrb[217].mxu0 }
 0xbda   : > { %v4908_v11 = vmax.f32 %v11683_v24, %v11685_v39  ;;  %v11689_v35 = vpop.f32.mrb[218].mxu0 }
 0xbdb   : > { %v11691_v29 = vpop.f32.mrb[219].mxu0 }
 0xbdc   : > { %v4911_v32 = vmax.f32 %v11689_v35, %v11691_v29  ;;  %4909 = vmax.xlane.f32.xlu1 %v4908_v11 }
 0xbde   : > { %4912 = vmax.xlane.f32.xlu0 %v4911_v32 }
 0xbe0   : > { %v11695_v37 = vpop.f32.mrb[220].mxu0 }
 0xbe1   : > { %v11697_v34 = vpop.f32.mrb[221].mxu0 }
 0xbe2   : > { %v4914_v53 = vmax.f32 %v11695_v37, %v11697_v34  ;;  %v11701_v23 = vpop.f32.mrb[222].mxu0 }
 0xbe3   : > { %v11703_v13 = vpop.f32.mrb[223].mxu0 }
 0xbe4   : > { %v4917_v18 = vmax.f32 %v11701_v23, %v11703_v13  ;;  %4915 = vmax.xlane.f32.xlu1 %v4914_v53 }
 0xbe6   : > { %4918 = vmax.xlane.f32.xlu0 %v4917_v18 }
 0xbe8   : > { %v11707_v40 = vpop.f32.mrb[224].mxu0 }
 0xbe9   : > { %v11709_v15 = vpop.f32.mrb[225].mxu0 }
 0xbea   : > { %v4920_v0 = vmax.f32 %v11707_v40, %v11709_v15  ;;  %v11713_v63 = vpop.f32.mrb[226].mxu0 }
 0xbeb   : > { %v11715_v28 = vpop.f32.mrb[227].mxu0 }
 0xbec   : > { %13627 = vst [vmem:[#allocation30_spill] sm:$0xff] %v11715_v28  ;;  %v4923_v43 = vmax.f32 %v11713_v63, %v11715_v28  ;;  %4921 = vmax.xlane.f32.xlu1 %v4920_v0 }
 0xbee   : > { %4924 = vmax.xlane.f32.xlu0 %v4923_v43 }
 0xbf0   : > { %v11719_v55 = vpop.f32.mrb[228].mxu0 }
 0xbf1   : > { %13628 = vst [vmem:[#allocation76_spill] sm:$0xff] %v11719_v55  ;;  %v11721_v10 = vpop.f32.mrb[229].mxu0 }
 0xbf2   : > { %13629 = vst [vmem:[#allocation75_spill] sm:$0xff] %v11721_v10  ;;  %v4926_v17 = vmax.f32 %v11719_v55, %v11721_v10  ;;  %v11725_v47 = vpop.f32.mrb[230].mxu0 }
 0xbf3   : > { %13630 = vst [vmem:[#allocation37_spill] sm:$0xff] %v11725_v47  ;;  %v11727_v21 = vpop.f32.mrb[231].mxu0 }
 0xbf4   : > { %13631 = vst [vmem:[#allocation36_spill] sm:$0xff] %v11727_v21  ;;  %v4929_v6 = vmax.f32 %v11725_v47, %v11727_v21  ;;  %4927 = vmax.xlane.f32.xlu1 %v4926_v17 }
 0xbf6   : > { %4930 = vmax.xlane.f32.xlu0 %v4929_v6 }
 0xbf8   : > { %v11731_v57 = vpop.f32.mrb[232].mxu0 }
 0xbf9   : > { %13632 = vst [vmem:[#allocation38_spill] sm:$0xff] %v11731_v57  ;;  %v11733_v33 = vpop.f32.mrb[233].mxu0 }
 0xbfa   : > { %13633 = vst [vmem:[#allocation35_spill] sm:$0xff] %v11733_v33  ;;  %v4932_v50 = vmax.f32 %v11731_v57, %v11733_v33  ;;  %v11737_v11 = vpop.f32.mrb[234].mxu0 }
 0xbfb   : > { %13634 = vst [vmem:[#allocation77_spill] sm:$0xff] %v11737_v11  ;;  %v11739_v32 = vpop.f32.mrb[235].mxu0 }
 0xbfc   : > { %13635 = vst [vmem:[#allocation13_spill] sm:$0xff] %v11739_v32  ;;  %v4935_v53 = vmax.f32 %v11737_v11, %v11739_v32  ;;  %4933 = vmax.xlane.f32.xlu1 %v4932_v50 }
 0xbfe   : > { %4936 = vmax.xlane.f32.xlu0 %v4935_v53 }
 0xc00   : > { %v11743_v18 = vpop.f32.mrb[236].mxu0 }
 0xc01   : > { %13636 = vst [vmem:[#allocation23_spill] sm:$0xff] %v11743_v18  ;;  %v11745_v0 = vpop.f32.mrb[237].mxu0 }
 0xc02   : > { %13637 = vst [vmem:[#allocation78_spill] sm:$0xff] %v11745_v0  ;;  %v4938_v43 = vmax.f32 %v11743_v18, %v11745_v0  ;;  %v11749_v17 = vpop.f32.mrb[238].mxu0 }
 0xc03   : > { %13638 = vst [vmem:[#allocation42_spill] sm:$0xff] %v11749_v17  ;;  %v11751_v6 = vpop.f32.mrb[239].mxu0 }
 0xc04   : > { %13639 = vst [vmem:[#allocation39_spill] sm:$0xff] %v11751_v6  ;;  %v4941_v4 = vmax.f32 %v11749_v17, %v11751_v6  ;;  %4939 = vmax.xlane.f32.xlu1 %v4938_v43 }
 0xc06   : > { %4942 = vmax.xlane.f32.xlu0 %v4941_v4 }
 0xc08   : > { %v11755_v27 = vpop.f32.mrb[240].mxu0 }
 0xc09   : > { %v11757_v50 = vpop.f32.mrb[241].mxu0 }
 0xc0a   : > { %v11761_v42 = vpop.f32.mrb[242].mxu0 }
 0xc0b   : > { %v11763_v62 = vpop.f32.mrb[243].mxu0 }
 0xc10   : > { %v11767_v48 = vpop.f32.mrb[244].mxu0 }
 0xc11   : > { %v11769_v46 = vpop.f32.mrb[245].mxu0 }
 0xc12   : > { %v11773_v43 = vpop.f32.mrb[246].mxu0 }
 0xc13   : > { %v11775_v12 = vpop.f32.mrb[247].mxu0 }
 0xc18   : > { %v11779_v61 = vpop.f32.mrb[248].mxu0 }
 0xc19   : > { %v11781_v41 = vpop.f32.mrb[249].mxu0 }
 0xc1a   : > { %v11785_v25 = vpop.f32.mrb[250].mxu0 }
 0xc1b   : > { %v11787_v8 = vpop.f32.mrb[251].mxu0 }
 0xc20   : > { %v11791_v31 = vpop.f32.mrb[252].mxu0 }
 0xc21   : > { %v11793_v6 = vpop.f32.mrb[253].mxu0 }
 0xc22   : > { %v11797_v17 = vpop.f32.mrb[254].mxu0 }
 0xc23   : > { %v11799_v0 = vpop.f32.mrb[255].mxu0 }
 0xc39   : > { %v4874_v18 = vpop.xlane.xlu1 %4873 }
 0xc3a   : > { %v4968_v32 = vsub.f32 %v11611_v1, %v4874_v18  ;;  %v4969_v11 = vsub.f32 %v11613_v7, %v4874_v18 }
 0xc3b   : > { %v4877_v4 = vpop.xlane.xlu0 %4876 }
 0xc3c   : > { %v5032_v33 = vmul.f32 1.442695, %v4968_v32  ;;  %v5034_v57 = vmul.f32 1.442695, %v4969_v11  ;;  %v4970_v21 = vsub.f32 %v11617_v59, %v4877_v4  ;;  %v4971_v47 = vsub.f32 %v11619_v19, %v4877_v4 }
 0xc3e   : > { %8016 = vpow2.f32 %v5032_v33  ;;  %v5036_v53 = vmul.f32 1.442695, %v4970_v21  ;;  %v5038_v10 = vmul.f32 1.442695, %v4971_v47 }
 0xc3f   : > { %8018 = vpow2.f32 %v5034_v57 }
 0xc40   : > { %8020 = vpow2.f32 %v5036_v53 }
 0xc41   : > { %8022 = vpow2.f32 %v5038_v10  ;;  %v4880_v55 = vpop.xlane.xlu1 %4879 }
 0xc42   : > { %v4972_v26 = vsub.f32 %v11623_v60, %v4880_v55  ;;  %v4973_v1 = vsub.f32 %v11625_v49, %v4880_v55 }
 0xc43   : > { %v4883_v28 = vpop.xlane.xlu0 %4882 }
 0xc44   : > { %v5040_v7 = vmul.f32 1.442695, %v4972_v26  ;;  %v5042_v18 = vmul.f32 1.442695, %v4973_v1  ;;  %v4974_v11 = vsub.f32 %v11629_v14, %v4883_v28  ;;  %v4975_v59 = vsub.f32 %v11631_v16, %v4883_v28 }
 0xc46   : > { %8024 = vpow2.f32 %v5040_v7  ;;  %v5044_v19 = vmul.f32 1.442695, %v4974_v11  ;;  %v5046_v33 = vmul.f32 1.442695, %v4975_v59  ;;  %v13640_v7 = vmax.f32 %v11755_v27, %v11757_v50 }
 0xc47   : > { %8026 = vpow2.f32 %v5042_v18 }
 0xc48   : > { %v11811_v47 = vpop.eup %8016  ;;  %8028 = vpow2.f32 %v5044_v19 }
 0xc49   : > { %v11813_v10 = vpop.eup %8018  ;;  %8030 = vpow2.f32 %v5046_v33  ;;  %v4886_v60 = vpop.xlane.xlu1 %4885 }
 0xc4a   : > { %v11815_v21 = vpop.eup %8020  ;;  %v4976_v26 = vsub.f32 %v11635_v52, %v4886_v60  ;;  %v4977_v49 = vsub.f32 %v11637_v58, %v4886_v60  ;;  %v5160_v14 = vadd.f32 %v11813_v10, %v11811_v47  ;;  %v13641_v60 = vmax.f32 %v11761_v42, %v11763_v62 }
 0xc4b   : > { %v11821_v16 = vpop.eup %8022  ;;  %v4889_v28 = vpop.xlane.xlu0 %4888 }
 0xc4c   : > { %v5048_v55 = vmul.f32 1.442695, %v4976_v26  ;;  %v5050_v57 = vmul.f32 1.442695, %v4977_v49  ;;  %v4978_v32 = vsub.f32 %v11641_v38, %v4889_v28  ;;  %v4979_v53 = vsub.f32 %v11643_v22, %v4889_v28  ;;  %5161 = vadd.xlane.f32.xlu1 %v5160_v14 }
 0xc4d   : > { %v5163_v4 = vadd.f32 %v11821_v16, %v11815_v21 }
 0xc4e   : > { %8032 = vpow2.f32 %v5048_v55  ;;  %v5052_v52 = vmul.f32 1.442695, %v4978_v32  ;;  %v5054_v1 = vmul.f32 1.442695, %v4979_v53  ;;  %v13642_v53 = vmax.f32 %v11767_v48, %v11769_v46 }
 0xc4f   : > { %8034 = vpow2.f32 %v5050_v57  ;;  %5164 = vadd.xlane.f32.xlu0 %v5163_v4 }
 0xc50   : > { %v11827_v58 = vpop.eup %8024  ;;  %8036 = vpow2.f32 %v5052_v52  ;;  %4945 = vmax.xlane.f32.xlu1 %v13640_v7 }
 0xc51   : > { %v11832_v18 = vpop.eup %8026  ;;  %8038 = vpow2.f32 %v5054_v1  ;;  %v4892_v38 = vpop.xlane.xlu1 %4891 }
 0xc52   : > { %v11834_v22 = vpop.eup %8028  ;;  %v4980_v11 = vsub.f32 %v11647_v3, %v4892_v38  ;;  %v4981_v59 = vsub.f32 %v11649_v2, %v4892_v38  ;;  %v5166_v19 = vadd.f32 %v11832_v18, %v11827_v58 }
 0xc53   : > { %v11840_v33 = vpop.eup %8030  ;;  %4948 = vmax.xlane.f32.xlu0 %v13641_v60  ;;  %v4895_v26 = vpop.xlane.xlu0 %4894 }
 0xc54   : > { %v5056_v49 = vmul.f32 1.442695, %v4980_v11  ;;  %v5058_v14 = vmul.f32 1.442695, %v4981_v59  ;;  %v4982_v28 = vsub.f32 %v11653_v51, %v4895_v26  ;;  %v4983_v55 = vsub.f32 %v11655_v5, %v4895_v26  ;;  %5167 = vadd.xlane.f32.xlu1 %v5166_v19 }
 0xc55   : > { %v5169_v3 = vadd.f32 %v11840_v33, %v11834_v22  ;;  %v13643_v11 = vmax.f32 %v11773_v43, %v11775_v12 }
 0xc56   : > { %8040 = vpow2.f32 %v5056_v49  ;;  %v5060_v2 = vmul.f32 1.442695, %v4982_v28  ;;  %v5062_v57 = vmul.f32 1.442695, %v4983_v55  ;;  %v13644_v55 = vmax.f32 %v11779_v61, %v11781_v41 }
 0xc57   : > { %8042 = vpow2.f32 %v5058_v14  ;;  %5170 = vadd.xlane.f32.xlu0 %v5169_v3 }
 0xc58   : > { %v11849_v32 = vpop.eup %8032  ;;  %8044 = vpow2.f32 %v5060_v2  ;;  %4951 = vmax.xlane.f32.xlu1 %v13642_v53 }
 0xc59   : > { %v11854_v4 = vpop.eup %8034  ;;  %8046 = vpow2.f32 %v5062_v57  ;;  %v4898_v51 = vpop.xlane.xlu1 %4897 }
 0xc5a   : > { %v11856_v5 = vpop.eup %8036  ;;  %v4984_v52 = vsub.f32 %v11659_v54, %v4898_v51  ;;  %v4985_v1 = vsub.f32 %v11661_v20, %v4898_v51  ;;  %v5172_v7 = vadd.f32 %v11854_v4, %v11849_v32 }
 0xc5b   : > { %v11862_v38 = vpop.eup %8038  ;;  %4954 = vmax.xlane.f32.xlu0 %v13643_v11  ;;  %v4901_v59 = vpop.xlane.xlu0 %4900 }
 0xc5c   : > { %v5064_v19 = vmul.f32 1.442695, %v4984_v52  ;;  %v5066_v60 = vmul.f32 1.442695, %v4985_v1  ;;  %v4986_v26 = vsub.f32 %v11665_v30, %v4901_v59  ;;  %v4987_v49 = vsub.f32 %v11667_v56, %v4901_v59  ;;  %5173 = vadd.xlane.f32.xlu1 %v5172_v7 }
 0xc5d   : > { %v5175_v54 = vadd.f32 %v11862_v38, %v11856_v5  ;;  %v13645_v52 = vmax.f32 %v11785_v25, %v11787_v8 }
 0xc5e   : > { %8048 = vpow2.f32 %v5064_v19  ;;  %v5068_v20 = vmul.f32 1.442695, %v4986_v26  ;;  %v5070_v14 = vmul.f32 1.442695, %v4987_v49  ;;  %v13646_v49 = vmax.f32 %v11791_v31, %v11793_v6 }
 0xc5f   : > { %8050 = vpow2.f32 %v5066_v60  ;;  %5176 = vadd.xlane.f32.xlu0 %v5175_v54 }
 0xc60   : > { %v11871_v28 = vpop.eup %8040  ;;  %8052 = vpow2.f32 %v5068_v20  ;;  %4957 = vmax.xlane.f32.xlu1 %v13644_v55 }
 0xc61   : > { %v11876_v3 = vpop.eup %8042  ;;  %8054 = vpow2.f32 %v5070_v14  ;;  %v4904_v30 = vpop.xlane.xlu1 %4903 }
 0xc62   : > { %v11878_v56 = vpop.eup %8044  ;;  %v4988_v2 = vsub.f32 %v11671_v9, %v4904_v30  ;;  %v4989_v57 = vsub.f32 %v11673_v36, %v4904_v30  ;;  %v5178_v53 = vadd.f32 %v11876_v3, %v11871_v28 }
 0xc63   : > { %v11884_v51 = vpop.eup %8046  ;;  %4960 = vmax.xlane.f32.xlu0 %v13645_v52  ;;  %v4907_v1 = vpop.xlane.xlu0 %4906 }
 0xc64   : > { %v5072_v7 = vmul.f32 1.442695, %v4988_v2  ;;  %v5074_v11 = vmul.f32 1.442695, %v4989_v57  ;;  %v4990_v59 = vsub.f32 %v11677_v45, %v4907_v1  ;;  %v4991_v19 = vsub.f32 %v11679_v44, %v4907_v1  ;;  %5179 = vadd.xlane.f32.xlu1 %v5178_v53 }
 0xc65   : > { %v5181_v9 = vadd.f32 %v11884_v51, %v11878_v56  ;;  %v13647_v2 = vmax.f32 %v11797_v17, %v11799_v0 }
 0xc66   : > { %8056 = vpow2.f32 %v5072_v7  ;;  %v5076_v36 = vmul.f32 1.442695, %v4990_v59  ;;  %v5078_v60 = vmul.f32 1.442695, %v4991_v19 }
 0xc67   : > { %8058 = vpow2.f32 %v5074_v11  ;;  %5182 = vadd.xlane.f32.xlu0 %v5181_v9 }
 0xc68   : > { %v11893_v26 = vpop.eup %8048  ;;  %8060 = vpow2.f32 %v5076_v36  ;;  %4963 = vmax.xlane.f32.xlu1 %v13646_v49 }
 0xc69   : > { %v11898_v54 = vpop.eup %8050  ;;  %8062 = vpow2.f32 %v5078_v60  ;;  %v4910_v45 = vpop.xlane.xlu1 %4909 }
 0xc6a   : > { %v11900_v44 = vpop.eup %8052  ;;  %v4992_v20 = vsub.f32 %v11683_v24, %v4910_v45  ;;  %v4993_v14 = vsub.f32 %v11685_v39, %v4910_v45  ;;  %v5184_v55 = vadd.f32 %v11898_v54, %v11893_v26 }
 0xc6b   : > { %v11906_v30 = vpop.eup %8054  ;;  %4966 = vmax.xlane.f32.xlu0 %v13647_v2  ;;  %v4913_v57 = vpop.xlane.xlu0 %4912 }
 0xc6c   : > { %v5080_v53 = vmul.f32 1.442695, %v4992_v20  ;;  %v5082_v52 = vmul.f32 1.442695, %v4993_v14  ;;  %v4994_v1 = vsub.f32 %v11689_v35, %v4913_v57  ;;  %v4995_v7 = vsub.f32 %v11691_v29, %v4913_v57  ;;  %5185 = vadd.xlane.f32.xlu1 %v5184_v55 }
 0xc6d   : > { %v5187_v24 = vadd.f32 %v11906_v30, %v11900_v44 }
 0xc6e   : > { %8064 = vpow2.f32 %v5080_v53  ;;  %v5084_v39 = vmul.f32 1.442695, %v4994_v1  ;;  %v5086_v11 = vmul.f32 1.442695, %v4995_v7 }
 0xc6f   : > { %8066 = vpow2.f32 %v5082_v52  ;;  %5188 = vadd.xlane.f32.xlu0 %v5187_v24 }
 0xc70   : > { %v11915_v59 = vpop.eup %8056  ;;  %8068 = vpow2.f32 %v5084_v39 }
 0xc71   : > { %v11917_v19 = vpop.eup %8058  ;;  %8070 = vpow2.f32 %v5086_v11  ;;  %v4916_v9 = vpop.xlane.xlu1 %4915 }
 0xc72   : > { %v11919_v36 = vpop.eup %8060  ;;  %v4996_v35 = vsub.f32 %v11695_v37, %v4916_v9  ;;  %v4997_v29 = vsub.f32 %v11697_v34, %v4916_v9  ;;  %v5190_v60 = vadd.f32 %v11917_v19, %v11915_v59 }
 0xc73   : > { %v11925_v49 = vpop.eup %8062  ;;  %v4919_v45 = vpop.xlane.xlu0 %4918 }
 0xc74   : > { %v5088_v20 = vmul.f32 1.442695, %v4996_v35  ;;  %v5090_v14 = vmul.f32 1.442695, %v4997_v29  ;;  %v4998_v55 = vsub.f32 %v11701_v23, %v4919_v45  ;;  %v4999_v2 = vsub.f32 %v11703_v13, %v4919_v45  ;;  %5191 = vadd.xlane.f32.xlu1 %v5190_v60  ;;  %v13648_v60 = vld [vmem:[#allocation30_spill] sm:$0xff] }
 0xc75   : > { %v5193_v57 = vadd.f32 %v11925_v49, %v11919_v36 }
 0xc76   : > { %8072 = vpow2.f32 %v5088_v20  ;;  %v5092_v37 = vmul.f32 1.442695, %v4998_v55  ;;  %v5094_v53 = vmul.f32 1.442695, %v4999_v2 }
 0xc77   : > { %8074 = vpow2.f32 %v5090_v14  ;;  %5194 = vadd.xlane.f32.xlu0 %v5193_v57 }
 0xc78   : > { %v11931_v34 = vpop.eup %8064  ;;  %8076 = vpow2.f32 %v5092_v37 }
 0xc79   : > { %v11933_v52 = vpop.eup %8066  ;;  %8078 = vpow2.f32 %v5094_v53  ;;  %v4922_v1 = vpop.xlane.xlu1 %4921  ;;  %v13652_v53 = vld [vmem:[#allocation75_spill] sm:$0xff] }
 0xc7a   : > { %v11935_v7 = vpop.eup %8068  ;;  %v5000_v23 = vsub.f32 %v11707_v40, %v4922_v1  ;;  %v5001_v13 = vsub.f32 %v11709_v15, %v4922_v1  ;;  %v5196_v24 = vadd.f32 %v11933_v52, %v11931_v34 }
 0xc7b   : > { %v11941_v39 = vpop.eup %8070  ;;  %v4925_v11 = vpop.xlane.xlu0 %4924 }
 0xc7c   : > { %v5096_v9 = vmul.f32 1.442695, %v5000_v23  ;;  %v5098_v35 = vmul.f32 1.442695, %v5001_v13  ;;  %v5002_v29 = vsub.f32 %v11713_v63, %v4925_v11  ;;  %v5003_v45 = vsub.f32 %v13648_v60, %v4925_v11  ;;  %5197 = vadd.xlane.f32.xlu1 %v5196_v24  ;;  %v13651_v63 = vld [vmem:[#allocation76_spill] sm:$0xff] }
 0xc7d   : > { %v5199_v20 = vadd.f32 %v11941_v39, %v11935_v7  ;;  %v13655_v60 = vld [vmem:[#allocation36_spill] sm:$0xff] }
 0xc7e   : > { %8080 = vpow2.f32 %v5096_v9  ;;  %v5100_v40 = vmul.f32 1.442695, %v5002_v29  ;;  %v5102_v14 = vmul.f32 1.442695, %v5003_v45 }
 0xc7f   : > { %8082 = vpow2.f32 %v5098_v35  ;;  %5200 = vadd.xlane.f32.xlu0 %v5199_v20  ;;  %v13654_v35 = vld [vmem:[#allocation37_spill] sm:$0xff] }
 0xc80   : > { %v11947_v15 = vpop.eup %8072  ;;  %8084 = vpow2.f32 %v5100_v40 }
 0xc81   : > { %13649 = vst [vmem:[#allocation28_spill] sm:$0xff] %v11947_v15  ;;  %v11949_v55 = vpop.eup %8074  ;;  %8086 = vpow2.f32 %v5102_v14  ;;  %v4928_v2 = vpop.xlane.xlu1 %4927 }
 0xc82   : > { %v11951_v57 = vpop.eup %8076  ;;  %v5004_v37 = vsub.f32 %v13651_v63, %v4928_v2  ;;  %v5005_v1 = vsub.f32 %v13652_v53, %v4928_v2  ;;  %v5202_v23 = vadd.f32 %v11949_v55, %v11947_v15  ;;  %v13663_v15 = vld [vmem:[#allocation13_spill] sm:$0xff] }
 0xc83   : > { %13650 = vst [vmem:[#allocation45_spill] sm:$0xff] %v11951_v57  ;;  %v11957_v13 = vpop.eup %8078  ;;  %v4931_v24 = vpop.xlane.xlu0 %4930 }
 0xc84   : > { %13653 = vst [vmem:[#allocation41_spill] sm:$0xff] %v11957_v13  ;;  %v5104_v11 = vmul.f32 1.442695, %v5004_v37  ;;  %v5106_v9 = vmul.f32 1.442695, %v5005_v1  ;;  %v5006_v29 = vsub.f32 %v13654_v35, %v4931_v24  ;;  %v5007_v45 = vsub.f32 %v13655_v60, %v4931_v24  ;;  %5203 = vadd.xlane.f32.xlu1 %v5202_v23  ;;  %v13659_v1 = vld [vmem:[#allocation38_spill] sm:$0xff] }
 0xc85   : > { %v5205_v20 = vadd.f32 %v11957_v13, %v11951_v57  ;;  %v13660_v23 = vld [vmem:[#allocation35_spill] sm:$0xff] }
 0xc86   : > { %8088 = vpow2.f32 %v5104_v11  ;;  %v5108_v40 = vmul.f32 1.442695, %v5006_v29  ;;  %v5110_v14 = vmul.f32 1.442695, %v5007_v45 }
 0xc87   : > { %8090 = vpow2.f32 %v5106_v9  ;;  %5206 = vadd.xlane.f32.xlu0 %v5205_v20  ;;  %v13662_v20 = vld [vmem:[#allocation77_spill] sm:$0xff] }
 0xc88   : > { %v11963_v2 = vpop.eup %8080  ;;  %8092 = vpow2.f32 %v5108_v40 }
 0xc89   : > { %13656 = vst [vmem:[#allocation50_spill] sm:$0xff] %v11963_v2  ;;  %v11965_v63 = vpop.eup %8082  ;;  %8094 = vpow2.f32 %v5110_v14  ;;  %v4934_v37 = vpop.xlane.xlu1 %4933 }
 0xc8a   : > { %13657 = vst [vmem:[#allocation47_spill] sm:$0xff] %v11965_v63  ;;  %v11967_v53 = vpop.eup %8084  ;;  %v5008_v24 = vsub.f32 %v13659_v1, %v4934_v37  ;;  %v5009_v35 = vsub.f32 %v13660_v23, %v4934_v37  ;;  %v5208_v11 = vadd.f32 %v11965_v63, %v11963_v2  ;;  %v13666_v2 = vld [vmem:[#allocation42_spill] sm:$0xff] }
 0xc8b   : > { %13658 = vst [vmem:[#allocation11_spill] sm:$0xff] %v11967_v53  ;;  %v11973_v29 = vpop.eup %8086  ;;  %v4937_v9 = vpop.xlane.xlu0 %4936 }
 0xc8c   : > { %13661 = vst [vmem:[#allocation12_spill] sm:$0xff] %v11973_v29  ;;  %v5112_v60 = vmul.f32 1.442695, %v5008_v24  ;;  %v5114_v45 = vmul.f32 1.442695, %v5009_v35  ;;  %v5010_v40 = vsub.f32 %v13662_v20, %v4937_v9  ;;  %v5011_v57 = vsub.f32 %v13663_v15, %v4937_v9  ;;  %5209 = vadd.xlane.f32.xlu1 %v5208_v11  ;;  %v13664_v20 = vld [vmem:[#allocation23_spill] sm:$0xff] }
 0xc8d   : > { %v5211_v14 = vadd.f32 %v11973_v29, %v11967_v53  ;;  %v13665_v11 = vld [vmem:[#allocation78_spill] sm:$0xff]  ;;  %v13667_v53 = vld [vmem:[#allocation39_spill] sm:$0xff] }
 0xc8e   : > { %8096 = vpow2.f32 %v5112_v60  ;;  %v5116_v1 = vmul.f32 1.442695, %v5010_v40  ;;  %v5118_v13 = vmul.f32 1.442695, %v5011_v57 }
 0xc8f   : > { %8098 = vpow2.f32 %v5114_v45  ;;  %5212 = vadd.xlane.f32.xlu0 %v5211_v14 }
 0xc90   : > { %v11979_v37 = vpop.eup %8088  ;;  %8100 = vpow2.f32 %v5116_v1 }
 0xc91   : > { %v11981_v23 = vpop.eup %8090  ;;  %8102 = vpow2.f32 %v5118_v13  ;;  %v4940_v24 = vpop.xlane.xlu1 %4939 }
 0xc92   : > { %v11983_v35 = vpop.eup %8092  ;;  %v5012_v15 = vsub.f32 %v13664_v20, %v4940_v24  ;;  %v5013_v9 = vsub.f32 %v13665_v11, %v4940_v24  ;;  %v5214_v60 = vadd.f32 %v11981_v23, %v11979_v37 }
 0xc93   : > { %v11989_v40 = vpop.eup %8094  ;;  %v4943_v57 = vpop.xlane.xlu0 %4942 }
 0xc94   : > { %v5120_v45 = vmul.f32 1.442695, %v5012_v15  ;;  %v5122_v14 = vmul.f32 1.442695, %v5013_v9  ;;  %v5014_v1 = vsub.f32 %v13666_v2, %v4943_v57  ;;  %v5015_v29 = vsub.f32 %v13667_v53, %v4943_v57  ;;  %5215 = vadd.xlane.f32.xlu1 %v5214_v60 }
 0xc95   : > { %v5217_v13 = vadd.f32 %v11989_v40, %v11983_v35 }
 0xc96   : > { %8104 = vpow2.f32 %v5120_v45  ;;  %v5124_v20 = vmul.f32 1.442695, %v5014_v1  ;;  %v5126_v63 = vmul.f32 1.442695, %v5015_v29 }
 0xc97   : > { %8106 = vpow2.f32 %v5122_v14  ;;  %5218 = vadd.xlane.f32.xlu0 %v5217_v13 }
 0xc98   : > { %v11995_v24 = vpop.eup %8096  ;;  %8108 = vpow2.f32 %v5124_v20 }
 0xc99   : > { %13668 = vst [vmem:[#allocation53_spill] sm:$0xff] %v11995_v24  ;;  %v11997_v11 = vpop.eup %8098  ;;  %8110 = vpow2.f32 %v5126_v63 }
 0xc9a   : > { %v11999_v15 = vpop.eup %8100  ;;  %v5220_v2 = vadd.f32 %v11997_v11, %v11995_v24 }
 0xc9b   : > { %13669 = vst [vmem:[#allocation49_spill] sm:$0xff] %v11999_v15  ;;  %v12003_v53 = vpop.eup %8102 }
 0xc9c   : > { %13670 = vst [vmem:[#allocation25_spill] sm:$0xff] %v12003_v53  ;;  %5221 = vadd.xlane.f32.xlu1 %v5220_v2  ;;  %v5223_v9 = vadd.f32 %v12003_v53, %v11999_v15 }
 0xc9e   : > { %5224 = vadd.xlane.f32.xlu0 %v5223_v9 }
 0xca0   : > { %v12007_v29 = vpop.eup %8104 }
 0xca1   : > { %13671 = vst [vmem:[#allocation26_spill] sm:$0xff] %v12007_v29  ;;  %v12009_v60 = vpop.eup %8106 }
 0xca2   : > { %13672 = vst [vmem:[#allocation24_spill] sm:$0xff] %v12009_v60  ;;  %v12011_v57 = vpop.eup %8108  ;;  %v5226_v63 = vadd.f32 %v12009_v60, %v12007_v29 }
 0xca3   : > { %13673 = vst [vmem:[#allocation14_spill] sm:$0xff] %v12011_v57  ;;  %v12015_v45 = vpop.eup %8110 }
 0xca4   : > { %13674 = vst [vmem:[#allocation61_spill] sm:$0xff] %v12015_v45  ;;  %5227 = vadd.xlane.f32.xlu1 %v5226_v63  ;;  %v5229_v14 = vadd.f32 %v12015_v45, %v12011_v57 }
 0xca6   : > { %5230 = vadd.xlane.f32.xlu0 %v5229_v14 }
 0xcd9   : > { %v5162_v1 = vpop.xlane.xlu1 %5161 }
 0xcda   : > { %8112 = vrcp.f32 %v5162_v1 }
 0xcdc   : > { %v5165_v13 = vpop.xlane.xlu0 %5164 }
 0xcdd   : > { %8114 = vrcp.f32 %v5165_v13  ;;  %v4946_v20 = vpop.xlane.xlu1 %4945 }
 0xcde   : > { %v5016_v2 = vsub.f32 %v11755_v27, %v4946_v20  ;;  %v5017_v9 = vsub.f32 %v11757_v50, %v4946_v20 }
 0xce0   : > { %v5128_v24 = vmul.f32 1.442695, %v5016_v2  ;;  %v5130_v15 = vmul.f32 1.442695, %v5017_v9  ;;  %v4949_v53 = vpop.xlane.xlu0 %4948 }
 0xce1   : > { %v5018_v29 = vsub.f32 %v11761_v42, %v4949_v53  ;;  %v5019_v63 = vsub.f32 %v11763_v62, %v4949_v53  ;;  %v5168_v60 = vpop.xlane.xlu1 %5167 }
 0xce2   : > { %8116 = vpow2.f32 %v5128_v24 }
 0xce3   : > { %8118 = vpow2.f32 %v5130_v15  ;;  %v5132_v14 = vmul.f32 1.442695, %v5018_v29  ;;  %v5134_v57 = vmul.f32 1.442695, %v5019_v63 }
 0xce4   : > { %v8113_v1 = vpop.eup %8112  ;;  %8120 = vrcp.f32 %v5168_v60  ;;  %v5171_v13 = vpop.xlane.xlu0 %5170 }
 0xce5   : > { %8122 = vpow2.f32 %v5132_v14  ;;  %v4952_v45 = vpop.xlane.xlu1 %4951  ;;  %v5289_v42 = vmul.f32 %v8113_v1, %v11813_v10  ;;  %v5288_v62 = vmul.f32 %v8113_v1, %v11811_v47 }
 0xce6   : > { %8124 = vpow2.f32 %v5134_v57  ;;  %v5020_v27 = vsub.f32 %v11767_v48, %v4952_v45  ;;  %v5021_v50 = vsub.f32 %v11769_v46, %v4952_v45 }
 0xce7   : > { %v8115_v20 = vpop.eup %8114  ;;  %8126 = vrcp.f32 %v5171_v13 }
 0xce8   : > { %v5136_v24 = vmul.f32 1.442695, %v5020_v27  ;;  %v5138_v15 = vmul.f32 1.442695, %v5021_v50  ;;  %v4955_v53 = vpop.xlane.xlu0 %4954  ;;  %v5291_v29 = vmul.f32 %v8115_v20, %v11821_v16  ;;  %v5290_v60 = vmul.f32 %v8115_v20, %v11815_v21 }
 0xce9   : > { %v5022_v2 = vsub.f32 %v11773_v43, %v4955_v53  ;;  %v5023_v57 = vsub.f32 %v11775_v12, %v4955_v53  ;;  %v5174_v48 = vpop.xlane.xlu1 %5173 }
 0xcea   : > { %8128 = vpow2.f32 %v5136_v24  ;;  %v5353_v46 = vpack.c.bf16 %v5291_v29, %v5289_v42  ;;  %v5352_v45 = vpack.c.bf16 %v5290_v60, %v5288_v62 }
 0xceb   : > { %8130 = vpow2.f32 %v5138_v15  ;;  %v5140_v9 = vmul.f32 1.442695, %v5022_v2  ;;  %v5142_v10 = vmul.f32 1.442695, %v5023_v57 }
 0xcec   : > { %v12031_v63 = vpop.eup %8116  ;;  %8132 = vrcp.f32 %v5174_v48  ;;  %v5177_v47 = vpop.xlane.xlu0 %5176  ;;  %5384 = vmatprep.subr.bf16.mxu1 %v5353_v46 }
 0xced   : > { %v12033_v14 = vpop.eup %8118  ;;  %8134 = vpow2.f32 %v5140_v9  ;;  %5385 = vmatpush1.bf16.xpose.msra.mxu1 %v5352_v45  ;;  %v4958_v21 = vpop.xlane.xlu1 %4957 }
 0xcee   : > { %v8121_v43 = vpop.eup %8120  ;;  %8136 = vpow2.f32 %v5142_v10  ;;  %v5024_v12 = vsub.f32 %v11779_v61, %v4958_v21  ;;  %v5025_v16 = vsub.f32 %v11781_v41, %v4958_v21  ;;  %v5232_v1 = vadd.f32 %v12033_v14, %v12031_v63 }
 0xcef   : > { %v12039_v13 = vpop.eup %8122  ;;  %8138 = vrcp.f32 %v5177_v47  ;;  %v5293_v53 = vmul.f32 %v8121_v43, %v11832_v18  ;;  %v5292_v60 = vmul.f32 %v8121_v43, %v11827_v58 }
 0xcf0   : > { %v12041_v27 = vpop.eup %8124  ;;  %v5144_v50 = vmul.f32 1.442695, %v5024_v12  ;;  %v5146_v20 = vmul.f32 1.442695, %v5025_v16  ;;  %v4961_v42 = vpop.xlane.xlu0 %4960  ;;  %5233 = vadd.xlane.f32.xlu1 %v5232_v1 }
 0xcf1   : > { %v8127_v62 = vpop.eup %8126  ;;  %v5026_v24 = vsub.f32 %v11785_v25, %v4961_v42  ;;  %v5027_v15 = vsub.f32 %v11787_v8, %v4961_v42  ;;  %v5235_v61 = vadd.f32 %v12041_v27, %v12039_v13  ;;  %v5180_v41 = vpop.xlane.xlu1 %5179 }
 0xcf2   : > { %8140 = vpow2.f32 %v5144_v50  ;;  %v5295_v29 = vmul.f32 %v8127_v62, %v11840_v33  ;;  %v5294_v2 = vmul.f32 %v8127_v62, %v11834_v22 }
 0xcf3   : > { %8142 = vpow2.f32 %v5146_v20  ;;  %v5148_v57 = vmul.f32 1.442695, %v5026_v24  ;;  %v5150_v48 = vmul.f32 1.442695, %v5027_v15  ;;  %5236 = vadd.xlane.f32.xlu0 %v5235_v61 }
 0xcf4   : > { %v12051_v25 = vpop.eup %8128  ;;  %8144 = vrcp.f32 %v5180_v41  ;;  %v5183_v8 = vpop.xlane.xlu0 %5182  ;;  %v5355_v46 = vpack.c.bf16 %v5295_v29, %v5293_v53  ;;  %v5354_v45 = vpack.c.bf16 %v5294_v2, %v5292_v60 }
 0xcf5   : > { %v12053_v9 = vpop.eup %8130  ;;  %8146 = vpow2.f32 %v5148_v57  ;;  %v4964_v18 = vpop.xlane.xlu1 %4963 }
 0xcf6   : > { %v8133_v10 = vpop.eup %8132  ;;  %8148 = vpow2.f32 %v5150_v48  ;;  %5386 = vmatprep.subr.bf16.mxu1 %v5355_v46  ;;  %v5028_v58 = vsub.f32 %v11791_v31, %v4964_v18  ;;  %v5029_v22 = vsub.f32 %v11793_v6, %v4964_v18  ;;  %v5238_v33 = vadd.f32 %v12053_v9, %v12051_v25 }
 0xcf7   : > { %v12059_v47 = vpop.eup %8134  ;;  %8150 = vrcp.f32 %v5183_v8  ;;  %5387 = vmatpush1.bf16.xpose.msra.mxu1 %v5354_v45  ;;  %v5297_v42 = vmul.f32 %v8133_v10, %v11854_v4  ;;  %v5296_v24 = vmul.f32 %v8133_v10, %v11849_v32 }
 0xcf8   : > { %v12061_v21 = vpop.eup %8136  ;;  %v5152_v43 = vmul.f32 1.442695, %v5028_v58  ;;  %v5154_v12 = vmul.f32 1.442695, %v5029_v22  ;;  %v4967_v16 = vpop.xlane.xlu0 %4966  ;;  %5239 = vadd.xlane.f32.xlu1 %v5238_v33 }
 0xcf9   : > { %v8139_v1 = vpop.eup %8138  ;;  %v5030_v50 = vsub.f32 %v11797_v17, %v4967_v16  ;;  %v5031_v31 = vsub.f32 %v11799_v0, %v4967_v16  ;;  %v5241_v6 = vadd.f32 %v12061_v21, %v12059_v47  ;;  %v5186_v20 = vpop.xlane.xlu1 %5185 }
 0xcfa   : > { %8152 = vpow2.f32 %v5152_v43  ;;  %v5299_v62 = vmul.f32 %v8139_v1, %v11862_v38  ;;  %v5298_v15 = vmul.f32 %v8139_v1, %v11856_v5 }
 0xcfb   : > { %8154 = vpow2.f32 %v5154_v12  ;;  %v5156_v61 = vmul.f32 1.442695, %v5030_v50  ;;  %v5158_v41 = vmul.f32 1.442695, %v5031_v31  ;;  %5242 = vadd.xlane.f32.xlu0 %v5241_v6 }
 0xcfc   : > { %v12071_v17 = vpop.eup %8140  ;;  %8156 = vrcp.f32 %v5186_v20  ;;  %v5189_v0 = vpop.xlane.xlu0 %5188  ;;  %v5357_v53 = vpack.c.bf16 %v5299_v62, %v5297_v42  ;;  %v5356_v29 = vpack.c.bf16 %v5298_v15, %v5296_v24 }
 0xcfd   : > { %v12073_v60 = vpop.eup %8142  ;;  %8158 = vpow2.f32 %v5156_v61 }
 0xcfe   : > { %v8145_v4 = vpop.eup %8144  ;;  %8160 = vpow2.f32 %v5158_v41  ;;  %5388 = vmatprep.subr.bf16.mxu1 %v5357_v53  ;;  %v5244_v32 = vadd.f32 %v12073_v60, %v12071_v17 }
 0xcff   : > { %v12077_v5 = vpop.eup %8146  ;;  %8162 = vrcp.f32 %v5189_v0  ;;  %5389 = vmatpush1.bf16.xpose.msra.mxu1 %v5356_v29  ;;  %v5301_v8 = vmul.f32 %v8145_v4, %v11876_v3  ;;  %v5300_v45 = vmul.f32 %v8145_v4, %v11871_v28 }
 0xd00   : > { %v12079_v38 = vpop.eup %8148  ;;  %5245 = vadd.xlane.f32.xlu1 %v5244_v32 }
 0xd01   : > { %v8151_v2 = vpop.eup %8150  ;;  %v5247_v57 = vadd.f32 %v12079_v38, %v12077_v5  ;;  %v5192_v48 = vpop.xlane.xlu1 %5191 }
 0xd02   : > { %v5303_v46 = vmul.f32 %v8151_v2, %v11884_v51  ;;  %v5302_v18 = vmul.f32 %v8151_v2, %v11878_v56  ;;  %8164 = vrcp.f32 %v5192_v48 }
 0xd03   : > { %5248 = vadd.xlane.f32.xlu0 %v5247_v57 }
 0xd04   : > { %v12087_v10 = vpop.eup %8152  ;;  %v5195_v58 = vpop.xlane.xlu0 %5194  ;;  %v5359_v22 = vpack.c.bf16 %v5303_v46, %v5301_v8  ;;  %v5358_v33 = vpack.c.bf16 %v5302_v18, %v5300_v45 }
 0xd05   : > { %v12089_v43 = vpop.eup %8154  ;;  %8166 = vrcp.f32 %v5195_v58  ;;  %v13675_v58 = vld [vmem:[#allocation41_spill] sm:$0xff] }
 0xd06   : > { %v8157_v12 = vpop.eup %8156  ;;  %5390 = vmatprep.subr.bf16.mxu1 %v5359_v22  ;;  %v5250_v3 = vadd.f32 %v12089_v43, %v12087_v10  ;;  %v13676_v22 = vld [vmem:[#allocation45_spill] sm:$0xff] }
 0xd07   : > { %v12093_v51 = vpop.eup %8158  ;;  %5391 = vmatpush1.bf16.xpose.msra.mxu1 %v5358_v33  ;;  %v5305_v50 = vmul.f32 %v8157_v12, %v11898_v54  ;;  %v5304_v6 = vmul.f32 %v8157_v12, %v11893_v26 }
 0xd08   : > { %v12095_v28 = vpop.eup %8160  ;;  %5251 = vadd.xlane.f32.xlu1 %v5250_v3 }
 0xd09   : > { %v8163_v56 = vpop.eup %8162  ;;  %v5253_v16 = vadd.f32 %v12095_v28, %v12093_v51  ;;  %v5198_v1 = vpop.xlane.xlu1 %5197 }
 0xd0a   : > { %v5307_v31 = vmul.f32 %v8163_v56, %v11906_v30  ;;  %v5306_v20 = vmul.f32 %v8163_v56, %v11900_v44  ;;  %8168 = vrcp.f32 %v5198_v1 }
 0xd0b   : > { %5254 = vadd.xlane.f32.xlu0 %v5253_v16 }
 0xd0c   : > { %v5201_v42 = vpop.xlane.xlu0 %5200  ;;  %v5361_v62 = vpack.c.bf16 %v5307_v31, %v5305_v50  ;;  %v5360_v24 = vpack.c.bf16 %v5306_v20, %v5304_v6  ;;  %v8165_v15 = vpop.eup %8164  ;;  %v13678_v50 = vld [vmem:[#allocation47_spill] sm:$0xff]  ;;  %v13679_v6 = vld [vmem:[#allocation12_spill] sm:$0xff] }
 0xd0d   : > { %8170 = vrcp.f32 %v5201_v42  ;;  %v5309_v41 = vmul.f32 %v8165_v15, %v11917_v19  ;;  %v5308_v26 = vmul.f32 %v8165_v15, %v11915_v59  ;;  %v13680_v20 = vld [vmem:[#allocation11_spill] sm:$0xff] }
 0xd0e   : > { %5392 = vmatprep.subr.bf16.mxu1 %v5361_v62 }
 0xd0f   : > { %v8167_v61 = vpop.eup %8166  ;;  %5393 = vmatpush1.bf16.xpose.msra.mxu1 %v5360_v24  ;;  %v13681_v24 = vld [vmem:[#allocation50_spill] sm:$0xff] }
 0xd10   : > { %v5311_v54 = vmul.f32 %v8167_v61, %v11925_v49  ;;  %v5310_v30 = vmul.f32 %v8167_v61, %v11919_v36 }
 0xd11   : > { %v5204_v0 = vpop.xlane.xlu1 %5203 }
 0xd12   : > { %v5363_v44 = vpack.c.bf16 %v5311_v54, %v5309_v41  ;;  %8172 = vrcp.f32 %v5204_v0  ;;  %v5362_v53 = vpack.c.bf16 %v5310_v30, %v5308_v26 }
 0xd14   : > { %v5207_v29 = vpop.xlane.xlu0 %5206  ;;  %5394 = vmatprep.subr.bf16.mxu1 %v5363_v44  ;;  %v8169_v4 = vpop.eup %8168 }
 0xd15   : > { %8174 = vrcp.f32 %v5207_v29  ;;  %v5313_v2 = vmul.f32 %v8169_v4, %v11933_v52  ;;  %v5312_v36 = vmul.f32 %v8169_v4, %v11931_v34 }
 0xd17   : > { %v8171_v32 = vpop.eup %8170  ;;  %5395 = vmatpush1.bf16.xpose.msra.mxu1 %v5362_v53 }
 0xd18   : > { %v5315_v19 = vmul.f32 %v8171_v32, %v11941_v39  ;;  %v5314_v49 = vmul.f32 %v8171_v32, %v11935_v7  ;;  %v13677_v7 = vld [vmem:[#allocation28_spill] sm:$0xff] }
 0xd19   : > { %v5210_v57 = vpop.xlane.xlu1 %5209 }
 0xd1a   : > { %v5365_v48 = vpack.c.bf16 %v5315_v19, %v5313_v2  ;;  %8176 = vrcp.f32 %v5210_v57  ;;  %v5364_v59 = vpack.c.bf16 %v5314_v49, %v5312_v36  ;;  %v13682_v57 = vld [vmem:[#allocation43_spill] sm:$0xff]  ;;  %v13683_v36 = vld [vmem:[#allocation40_spill] sm:$0xff] }
 0xd1c   : > { %v5213_v8 = vpop.xlane.xlu0 %5212  ;;  %5396 = vmatprep.subr.bf16.mxu1 %v5365_v48  ;;  %v8173_v46 = vpop.eup %8172  ;;  %v13684_v48 = vpack.c.bf16 %v13682_v57, %v13683_v36 }
 0xd1d   : > { %8178 = vrcp.f32 %v5213_v8  ;;  %v5317_v18 = vmul.f32 %v8173_v46, %v11949_v55  ;;  %v5316_v12 = vmul.f32 %v8173_v46, %v13677_v7  ;;  %v13686_v8 = vld [vmem:[#allocation49_spill] sm:$0xff] }
 0xd1f   : > { %v8175_v45 = vpop.eup %8174  ;;  %5397 = vmatpush1.bf16.xpose.msra.mxu1 %v5364_v59 }
 0xd20   : > { %v5319_v52 = vmul.f32 %v8175_v45, %v13675_v58  ;;  %v5318_v39 = vmul.f32 %v8175_v45, %v13676_v22  ;;  %v13688_v45 = vld [vmem:[#allocation44_spill] sm:$0xff]  ;;  %v13690_v58 = vld [vmem:[#allocation51_spill] sm:$0xff] }
 0xd21   : > { %v5216_v33 = vpop.xlane.xlu1 %5215 }
 0xd22   : > { %v5367_v3 = vpack.c.bf16 %v5319_v52, %v5317_v18  ;;  %8180 = vrcp.f32 %v5216_v33  ;;  %v5366_v34 = vpack.c.bf16 %v5318_v39, %v5316_v12  ;;  %v13691_v52 = vld [vmem:[#allocation48_spill] sm:$0xff]  ;;  %v13693_v33 = vld [vmem:[#allocation53_spill] sm:$0xff] }
 0xd23   : > { %v13692_v22 = vpack.c.bf16 %v13690_v58, %v13691_v52 }
 0xd24   : > { %v5219_v56 = vpop.xlane.xlu0 %5218  ;;  %5398 = vmatprep.subr.bf16.mxu1 %v5367_v3  ;;  %v8177_v16 = vpop.eup %8176 }
 0xd25   : > { %8182 = vrcp.f32 %v5219_v56  ;;  %v5321_v31 = vmul.f32 %v8177_v16, %v13678_v50  ;;  %v5320_v15 = vmul.f32 %v8177_v16, %v13681_v24 }
 0xd27   : > { %v8179_v1 = vpop.eup %8178  ;;  %5399 = vmatpush1.bf16.xpose.msra.mxu1 %v5366_v34  ;;  %v13694_v34 = vld [vmem:[#allocation54_spill] sm:$0xff] }
 0xd28   : > { %v5323_v55 = vmul.f32 %v8179_v1, %v13679_v6  ;;  %v5322_v42 = vmul.f32 %v8179_v1, %v13680_v20  ;;  %v13697_v1 = vld [vmem:[#allocation24_spill] sm:$0xff] }
 0xd29   : > { %v5222_v62 = vpop.xlane.xlu1 %5221 }
 0xd2a   : > { %8184 = vrcp.f32 %v5222_v62  ;;  %v5369_v61 = vpack.c.bf16 %v5323_v55, %v5321_v31  ;;  %v5368_v54 = vpack.c.bf16 %v5322_v42, %v5320_v15  ;;  %v13698_v31 = vld [vmem:[#allocation61_spill] sm:$0xff]  ;;  %v13699_v55 = vld [vmem:[#allocation14_spill] sm:$0xff] }
 0xd2b   : > { %v5225_v41 = vpop.xlane.xlu0 %5224  ;;  %v13700_v62 = vld [vmem:[#allocation26_spill] sm:$0xff] }
 0xd2c   : > { %8186 = vrcp.f32 %v5225_v41  ;;  %5400 = vmatprep.subr.bf16.mxu1 %v5369_v61  ;;  %v8181_v30 = vpop.eup %8180 }
 0xd2d   : > { %v5325_v26 = vmul.f32 %v8181_v30, %v11981_v23  ;;  %v5324_v4 = vmul.f32 %v8181_v30, %v11979_v37  ;;  %v13687_v37 = vld [vmem:[#allocation46_spill] sm:$0xff] }
 0xd2e   : > { %v13689_v18 = vpack.c.bf16 %v13687_v37, %v13688_v45 }
 0xd2f   : > { %v8183_v0 = vpop.eup %8182  ;;  %5401 = vmatpush1.bf16.xpose.msra.mxu1 %v5368_v54 }
 0xd30   : > { %v5327_v44 = vmul.f32 %v8183_v0, %v11989_v40  ;;  %v5326_v53 = vmul.f32 %v8183_v0, %v11983_v35  ;;  %v13685_v40 = vld [vmem:[#allocation25_spill] sm:$0xff] }
 0xd31   : > { %v5228_v29 = vpop.xlane.xlu1 %5227 }
 0xd32   : > { %8188 = vrcp.f32 %v5228_v29  ;;  %v5371_v32 = vpack.c.bf16 %v5327_v44, %v5325_v26  ;;  %v5370_v19 = vpack.c.bf16 %v5326_v53, %v5324_v4 }
 0xd33   : > { %v5231_v2 = vpop.xlane.xlu0 %5230 }
 0xd34   : > { %v8185_v49 = vpop.eup %8184  ;;  %8190 = vrcp.f32 %v5231_v2  ;;  %5402 = vmatprep.subr.bf16.mxu1 %v5371_v32 }
 0xd35   : > { %5457 = vxpose.xlu1.c.b16.start [1/2] (short) %v13684_v48, 128  ;;  %v5329_v23 = vmul.f32 %v8185_v49, %v11997_v11  ;;  %v5328_v7 = vmul.f32 %v8185_v49, %v13693_v33  ;;  %v13695_v11 = vld [vmem:[#allocation52_spill] sm:$0xff] }
 0xd36   : > { %v8187_v59 = vpop.eup %8186  ;;  %v13696_v56 = vpack.c.bf16 %v13694_v34, %v13695_v11  ;;  %v13707_v34 = vld [vmem:[#allocation15_spill] sm:$0xff] }
 0xd37   : > { %5403 = vmatpush1.bf16.xpose.msra.mxu1 %v5370_v19  ;;  %v5331_v35 = vmul.f32 %v8187_v59, %v13685_v40  ;;  %v5330_v46 = vmul.f32 %v8187_v59, %v13686_v8 }
 0xd38   : > { %5473 = vxpose.xlu0.c.b16.start [1/2] (short) %v13689_v18, 128 }
 0xd39   : > { %5458 = vxpose.xlu1.c.b16.end [2/2] (short) %v13692_v22, 128  ;;  %v5373_v39 = vpack.c.bf16 %v5331_v35, %v5329_v23  ;;  %v5372_v12 = vpack.c.bf16 %v5330_v46, %v5328_v7  ;;  %v13704_v7 = vld [vmem:[#allocation83_spill] sm:$0xff] }
 0xd3b   : > { %5404 = vmatprep.subr.bf16.mxu1 %v5373_v39 }
 0xd3c   : > { %v8189_v3 = vpop.eup %8188  ;;  %5474 = vxpose.xlu0.c.b16.end [2/2] (short) %v13696_v56, 128 }
 0xd3d   : > { %v5333_v50 = vmul.f32 %v8189_v3, %v13697_v1  ;;  %v5332_v24 = vmul.f32 %v8189_v3, %v13700_v62  ;;  %v13722_v62 = vmov 0  }
 0xd3e   : > { %v8191_v16 = vpop.eup %8190 }
 0xd3f   : > { %5405 = vmatpush1.bf16.xpose.msra.mxu1 %v5372_v12  ;;  %v5335_v6 = vmul.f32 %v8191_v16, %v13698_v31  ;;  %v5334_v20 = vmul.f32 %v8191_v16, %v13699_v55  ;;  %v13705_v12 = vld [vmem:[#allocation81_spill] sm:$0xff]  ;;  %v13714_v16 = vld [vmem:[#allocation68_spill] sm:$0xff] }
 0xd40   : > { %v13706_v3 = vpack.c.bf16 %v13704_v7, %v13705_v12  ;;  %v13717_v31 = vld [vmem:[#allocation64_spill] sm:$0xff] }
 0xd41   : > { %v5375_v42 = vpack.c.bf16 %v5335_v6, %v5333_v50  ;;  %v5374_v15 = vpack.c.bf16 %v5334_v20, %v5332_v24  ;;  %v13716_v50 = vld [vmem:[#allocation66_spill] sm:$0xff]  ;;  %v13719_v55 = vld [vmem:[#allocation8_spill] sm:$0xff] }
 0xd42   : > { %v13718_v6 = vpack.c.bf16 %v13716_v50, %v13717_v31  ;;  %v13720_v20 = vld [vmem:[#allocation88_spill] sm:$0xff] }
 0xd43   : > { %5406 = vmatprep.subr.bf16.mxu1 %v5375_v42  ;;  %v13721_v42 = vpack.c.bf16 %v13719_v55, %v13720_v20 }
 0xd47   : > { %5407 = vmatpush1.bf16.xpose.msra.mxu1 %v5374_v15 }
 0xd7d   : > { %v5234_v61 = vpop.xlane.xlu1 %5233 }
 0xd7e   : > { %8192 = vrcp.f32 %v5234_v61 }
 0xd80   : > { %v5237_v41 = vpop.xlane.xlu0 %5236 }
 0xd81   : > { %8194 = vrcp.f32 %v5237_v41 }
 0xd85   : > { %v5240_v54 = vpop.xlane.xlu1 %5239 }
 0xd86   : > { %8196 = vrcp.f32 %v5240_v54 }
 0xd88   : > { %v5243_v30 = vpop.xlane.xlu0 %5242  ;;  %v8193_v0 = vpop.eup %8192 }
 0xd89   : > { %8198 = vrcp.f32 %v5243_v30  ;;  %v5337_v44 = vmul.f32 %v8193_v0, %v12033_v14  ;;  %v5336_v29 = vmul.f32 %v8193_v0, %v12031_v63 }
 0xd8b   : > { %v8195_v26 = vpop.eup %8194 }
 0xd8c   : > { %v5339_v53 = vmul.f32 %v8195_v26, %v12041_v27  ;;  %v5338_v4 = vmul.f32 %v8195_v26, %v12039_v13 }
 0xd8d   : > { %v5246_v32 = vpop.xlane.xlu1 %5245 }
 0xd8e   : > { %v5377_v2 = vpack.c.bf16 %v5339_v53, %v5337_v44  ;;  %v5376_v19 = vpack.c.bf16 %v5338_v4, %v5336_v29  ;;  %8200 = vrcp.f32 %v5246_v32 }
 0xd90   : > { %v5249_v49 = vpop.xlane.xlu0 %5248  ;;  %5408 = vmatprep.subr.bf16.mxu1 %v5377_v2  ;;  %v8197_v57 = vpop.eup %8196 }
 0xd91   : > { %8202 = vrcp.f32 %v5249_v49  ;;  %5409 = vmatpush1.bf16.xpose.msra.mxu1 %v5376_v19  ;;  %v5341_v48 = vmul.f32 %v8197_v57, %v12053_v9  ;;  %v5340_v27 = vmul.f32 %v8197_v57, %v12051_v25 }
 0xd93   : > { %v8199_v36 = vpop.eup %8198 }
 0xd94   : > { %v5343_v14 = vmul.f32 %v8199_v36, %v12061_v21  ;;  %v5342_v63 = vmul.f32 %v8199_v36, %v12059_v47 }
 0xd95   : > { %v5252_v59 = vpop.xlane.xlu1 %5251 }
 0xd96   : > { %v5379_v13 = vpack.c.bf16 %v5343_v14, %v5341_v48  ;;  %v5378_v23 = vpack.c.bf16 %v5342_v63, %v5340_v27  ;;  %8204 = vrcp.f32 %v5252_v59 }
 0xd98   : > { %v5255_v40 = vpop.xlane.xlu0 %5254  ;;  %5410 = vmatprep.subr.bf16.mxu1 %v5379_v13  ;;  %v8201_v35 = vpop.eup %8200 }
 0xd99   : > { %8206 = vrcp.f32 %v5255_v40  ;;  %5411 = vmatpush1.bf16.xpose.msra.mxu1 %v5378_v23  ;;  %v5345_v46 = vmul.f32 %v8201_v35, %v12073_v60  ;;  %v5344_v21 = vmul.f32 %v8201_v35, %v12071_v17  ;;  %v13701_v17 = vld [vmem:[#allocation62_spill] sm:$0xff] }
 0xd9b   : > { %v8203_v8 = vpop.eup %8202  ;;  %v5465_v24 = vpop.trf.xlu1 }
 0xd9c   : > { %v5347_v9 = vmul.f32 %v8203_v8, %v12079_v38  ;;  %v5346_v25 = vmul.f32 %v8203_v8, %v12077_v5  ;;  %v13702_v5 = vld [vmem:[#allocation60_spill] sm:$0xff] }
 0xd9d   : > { %v13703_v33 = vpack.c.bf16 %v13701_v17, %v13702_v5 }
 0xd9e   : > { %v5381_v37 = vpack.c.bf16 %v5347_v9, %v5345_v46  ;;  %v5380_v47 = vpack.c.bf16 %v5346_v25, %v5344_v21  ;;  %v5481_v44 = vpop.trf.xlu0 }
 0xd9f   : > { %v5466_v15 = vpop.trf.xlu1 }
 0xda0   : > { %5412 = vmatprep.subr.bf16.mxu1 %v5381_v37  ;;  %v8205_v45 = vpop.eup %8204 }
 0xda1   : > { %5413 = vmatpush1.bf16.xpose.msra.mxu1 %v5380_v47  ;;  %v5349_v58 = vmul.f32 %v8205_v45, %v12089_v43  ;;  %v5348_v22 = vmul.f32 %v8205_v45, %v12087_v10  ;;  %v13708_v43 = vld [vmem:[#allocation7_spill] sm:$0xff]  ;;  %v13711_v10 = vld [vmem:[#allocation56_spill] sm:$0xff] }
 0xda2   : > { %v13709_v11 = vpack.c.bf16 %v13707_v34, %v13708_v43  ;;  %v5482_v53 = vpop.trf.xlu0 }
 0xda3   : > { %v8207_v18 = vpop.eup %8206  ;;  %v5467_v61 = vpop.trf.xlu1 }
 0xda4   : > { %v5351_v52 = vmul.f32 %v8207_v18, %v12095_v28  ;;  %v5350_v60 = vmul.f32 %v8207_v18, %v12093_v51  ;;  %v13710_v28 = vld [vmem:[#allocation58_spill] sm:$0xff] }
 0xda5   : > { %v13712_v56 = vpack.c.bf16 %v13710_v28, %v13711_v10  ;;  %v13713_v51 = vld [vmem:[#allocation70_spill] sm:$0xff] }
 0xda6   : > { %v5383_v39 = vpack.c.bf16 %v5351_v52, %v5349_v58  ;;  %v5382_v38 = vpack.c.bf16 %v5350_v60, %v5348_v22  ;;  %v13715_v1 = vpack.c.bf16 %v13713_v51, %v13714_v16  ;;  %v5483_v29 = vpop.trf.xlu0 }
 0xda7   : > { %v5468_v41 = vpop.trf.xlu1 }
 0xda8   : > { %5414 = vmatprep.subr.bf16.mxu1 %v5383_v39 }
 0xda9   : > { %5415 = vmatpush1.bf16.xpose.msra.mxu1 %v5382_v38 }
 0xdaa   : > { %5537 = vmatprep.subr.bf16.mxu1 %v13703_v33  ;;  %v5484_v4 = vpop.trf.xlu0 }
 0xdab   : > { %v5469_v54 = vpop.trf.xlu1 }
 0xdae   : > { %v5485_v32 = vpop.trf.xlu0 }
 0xdaf   : > { %v5470_v30 = vpop.trf.xlu1 }
 0xdb0   : > { %5417 = vmatmul.mubr.bf16.vlgmr.msra.gmra.mrb[184].mxu1 %v13706_v3 }
 0xdb1   : > { %5426 = vmatprep.mubr.bf16.mxu1 %v13709_v11  ;;  %5538 = vmatpush1.bf16.msra.mxu1 %v13712_v56 }
 0xdb2   : > { %5539 = vmatprep.subr.bf16.mxu1 %v13715_v1  ;;  %v5486_v2 = vpop.trf.xlu0 }
 0xdb3   : > { %v5471_v0 = vpop.trf.xlu1 }
 0xdb5   : > { %5540 = vmatpush1.bf16.msra.mxu1 %v13718_v6 }
 0xdb6   : > { %v5487_v19 = vpop.trf.xlu0 }
 0xdb7   : > { %v5472_v26 = vpop.trf.xlu1 }
 0xdb8   : > { %5427 = vmatmul.mubr.bf16.gmra.mrb[188].mxu1 %v13721_v42 }
 0xdb9   : > { %5569 = vmatprep.mubr.bf16.mxu1 %v13722_v62 }
 0xdba   : > { %v5488_v49 = vpop.trf.xlu0 }
 0xdc0   : > { %6856 = vmatmul.mubr.msk.bf16.vlgmr.msra.gmra.mrb[192].mxu1 %vm1254_vm0, %v5465_v24 }
 0xdc1   : > { %5579 = vmatprep.mubr.bf16.mxu1 %v13722_v62 }
 0xdc8   : > { %6857 = vmatmul.mubr.msk.bf16.gmra.mrb[196].mxu1 %vm1254_vm0, %v5466_v15 }
 0xdc9   : > { %5589 = vmatprep.mubr.bf16.mxu1 %v13722_v62 }
 0xdd0   : > { %6858 = vmatmul.mubr.msk.bf16.gmra.mrb[200].mxu1 %vm1254_vm0, %v5467_v61 }
 0xdd1   : > { %5599 = vmatprep.mubr.bf16.mxu1 %v13722_v62 }
 0xdd8   : > { %6859 = vmatmul.mubr.msk.bf16.gmra.mrb[204].mxu1 %vm1254_vm0, %v5468_v41 }
 0xdd9   : > { %5609 = vmatprep.mubr.bf16.mxu1 %v13722_v62 }
 0xde0   : > { %6860 = vmatmul.mubr.msk.bf16.gmra.mrb[208].mxu1 %vm1254_vm0, %v5469_v54 }
 0xde1   : > { %5619 = vmatprep.mubr.bf16.mxu1 %v13722_v62 }
 0xde8   : > { %6861 = vmatmul.mubr.msk.bf16.gmra.mrb[212].mxu1 %vm1254_vm0, %v5470_v30 }
 0xde9   : > { %5629 = vmatprep.mubr.bf16.mxu1 %v13722_v62 }
 0xdf0   : > { %6862 = vmatmul.mubr.msk.bf16.gmra.mrb[216].mxu1 %vm1254_vm0, %v5471_v0 }
 0xdf1   : > { %5639 = vmatprep.mubr.bf16.mxu1 %v13722_v62 }
 0xdf8   : > { %6863 = vmatmul.mubr.msk.bf16.gmra.mrb[220].mxu1 %vm1254_vm0, %v5472_v26 }
 0xdf9   : > { %5649 = vmatprep.mubr.bf16.mxu1 %v13722_v62 }
 0xe00   : > { %6864 = vmatmul.mubr.msk.bf16.gmra.mrb[224].mxu1 %vm1254_vm0, %v5481_v44 }
 0xe01   : > { %5659 = vmatprep.mubr.bf16.mxu1 %v13722_v62 }
 0xe08   : > { %6865 = vmatmul.mubr.msk.bf16.gmra.mrb[228].mxu1 %vm1254_vm0, %v5482_v53 }
 0xe09   : > { %5669 = vmatprep.mubr.bf16.mxu1 %v13722_v62 }
 0xe10   : > { %6866 = vmatmul.mubr.msk.bf16.gmra.mrb[232].mxu1 %vm1254_vm0, %v5483_v29 }
 0xe11   : > { %5679 = vmatprep.mubr.bf16.mxu1 %v13722_v62 }
 0xe18   : > { %6867 = vmatmul.mubr.msk.bf16.gmra.mrb[236].mxu1 %vm1254_vm0, %v5484_v4 }
 0xe19   : > { %5689 = vmatprep.mubr.bf16.mxu1 %v13722_v62 }
 0xe20   : > { %6868 = vmatmul.mubr.msk.bf16.gmra.mrb[240].mxu1 %vm1254_vm0, %v5485_v32 }
 0xe21   : > { %5699 = vmatprep.mubr.bf16.mxu1 %v13722_v62 }
 0xe28   : > { %6869 = vmatmul.mubr.msk.bf16.gmra.mrb[244].mxu1 %vm1254_vm0, %v5486_v2 }
 0xe29   : > { %5709 = vmatprep.mubr.bf16.mxu1 %v13722_v62 }
 0xe30   : > { %6870 = vmatmul.mubr.msk.bf16.gmra.mrb[248].mxu1 %vm1254_vm0, %v5487_v19 }
 0xe31   : > { %5719 = vmatprep.mubr.bf16.mxu1 %v13722_v62 }
 0xe38   : > { %6871 = vmatmul.mubr.msk.bf16.gmra.mrb[252].mxu1 %vm1254_vm0, %v5488_v49 }
 0xe83   : > { %v12212_v57 = vpop.f32.mrb[184].mxu1 }
 0xe84   : > { %13723 = vst [vmem:[#allocation59_spill] sm:$0xff] %v12212_v57  ;;  %v12214_v36 = vpop.f32.mrb[185].mxu1 }
 0xe85   : > { %13724 = vst [vmem:[#allocation85_spill] sm:$0xff] %v12214_v36  ;;  %v12216_v48 = vpop.f32.mrb[186].mxu1 }
 0xe86   : > { %13725 = vst [vmem:[#allocation80_spill] sm:$0xff] %v12216_v48  ;;  %v12220_v27 = vpop.f32.mrb[187].mxu1 }
 0xe87   : > { %13726 = vst [vmem:[#allocation16_spill] sm:$0xff] %v12220_v27 }
 0xe8b   : > { %v12224_v59 = vpop.f32.mrb[188].mxu1 }
 0xe8c   : > { %13727 = vst [vmem:[#allocation89_spill] sm:$0xff] %v12224_v59  ;;  %v12226_v13 = vpop.f32.mrb[189].mxu1 }
 0xe8d   : > { %13728 = vst [vmem:[#allocation57_spill] sm:$0xff] %v12226_v13  ;;  %v12228_v23 = vpop.f32.mrb[190].mxu1 }
 0xe8e   : > { %13729 = vst [vmem:[#allocation55_spill] sm:$0xff] %v12228_v23  ;;  %v12232_v35 = vpop.f32.mrb[191].mxu1 }
 0xe8f   : > { %13730 = vst [vmem:[#allocation69_spill] sm:$0xff] %v12232_v35 }
 0xe93   : > { %v12236_v46 = vpop.f32.mrb[192].mxu1 }
 0xe94   : > { %v12238_v9 = vpop.f32.mrb[193].mxu1 }
 0xe95   : > { %v5730_v21 = vmax.f32 %v12236_v46, %v12238_v9  ;;  %v12242_v25 = vpop.f32.mrb[194].mxu1 }
 0xe96   : > { %v12244_v37 = vpop.f32.mrb[195].mxu1 }
 0xe97   : > { %v5733_v47 = vmax.f32 %v12242_v25, %v12244_v37  ;;  %5731 = vmax.xlane.f32.xlu1 %v5730_v21 }
 0xe99   : > { %5734 = vmax.xlane.f32.xlu0 %v5733_v47 }
 0xe9b   : > { %v12248_v45 = vpop.f32.mrb[196].mxu1 }
 0xe9c   : > { %v12250_v18 = vpop.f32.mrb[197].mxu1 }
 0xe9d   : > { %v5736_v58 = vmax.f32 %v12248_v45, %v12250_v18  ;;  %v12254_v52 = vpop.f32.mrb[198].mxu1 }
 0xe9e   : > { %v12256_v22 = vpop.f32.mrb[199].mxu1 }
 0xe9f   : > { %v5739_v60 = vmax.f32 %v12254_v52, %v12256_v22  ;;  %5737 = vmax.xlane.f32.xlu1 %v5736_v58 }
 0xea1   : > { %5740 = vmax.xlane.f32.xlu0 %v5739_v60 }
 0xea3   : > { %v12260_v39 = vpop.f32.mrb[200].mxu1 }
 0xea4   : > { %v12262_v38 = vpop.f32.mrb[201].mxu1 }
 0xea5   : > { %v5742_v17 = vmax.f32 %v12260_v39, %v12262_v38  ;;  %v12266_v5 = vpop.f32.mrb[202].mxu1 }
 0xea6   : > { %v12268_v33 = vpop.f32.mrb[203].mxu1 }
 0xea7   : > { %v5745_v7 = vmax.f32 %v12266_v5, %v12268_v33  ;;  %5743 = vmax.xlane.f32.xlu1 %v5742_v17 }
 0xea9   : > { %5746 = vmax.xlane.f32.xlu0 %v5745_v7 }
 0xeab   : > { %v12272_v12 = vpop.f32.mrb[204].mxu1 }
 0xeac   : > { %v12274_v3 = vpop.f32.mrb[205].mxu1 }
 0xead   : > { %v5748_v34 = vmax.f32 %v12272_v12, %v12274_v3  ;;  %v12278_v43 = vpop.f32.mrb[206].mxu1 }
 0xeae   : > { %v12280_v11 = vpop.f32.mrb[207].mxu1 }
 0xeaf   : > { %v5751_v28 = vmax.f32 %v12278_v43, %v12280_v11  ;;  %5749 = vmax.xlane.f32.xlu1 %v5748_v34 }
 0xeb1   : > { %5752 = vmax.xlane.f32.xlu0 %v5751_v28 }
 0xeb3   : > { %v12284_v10 = vpop.f32.mrb[208].mxu1 }
 0xeb4   : > { %v12286_v56 = vpop.f32.mrb[209].mxu1 }
 0xeb5   : > { %v5754_v51 = vmax.f32 %v12284_v10, %v12286_v56  ;;  %v12290_v16 = vpop.f32.mrb[210].mxu1 }
 0xeb6   : > { %v12292_v1 = vpop.f32.mrb[211].mxu1 }
 0xeb7   : > { %v5757_v50 = vmax.f32 %v12290_v16, %v12292_v1  ;;  %5755 = vmax.xlane.f32.xlu1 %v5754_v51 }
 0xeb9   : > { %5758 = vmax.xlane.f32.xlu0 %v5757_v50 }
 0xebb   : > { %v12296_v31 = vpop.f32.mrb[212].mxu1 }
 0xebc   : > { %v12298_v6 = vpop.f32.mrb[213].mxu1 }
 0xebd   : > { %v5760_v55 = vmax.f32 %v12296_v31, %v12298_v6  ;;  %v12302_v20 = vpop.f32.mrb[214].mxu1 }
 0xebe   : > { %v12304_v42 = vpop.f32.mrb[215].mxu1 }
 0xebf   : > { %v5763_v24 = vmax.f32 %v12302_v20, %v12304_v42  ;;  %5761 = vmax.xlane.f32.xlu1 %v5760_v55 }
 0xec1   : > { %5764 = vmax.xlane.f32.xlu0 %v5763_v24 }
 0xec3   : > { %v12308_v15 = vpop.f32.mrb[216].mxu1 }
 0xec4   : > { %v12310_v61 = vpop.f32.mrb[217].mxu1 }
 0xec5   : > { %v5766_v41 = vmax.f32 %v12308_v15, %v12310_v61  ;;  %v12314_v54 = vpop.f32.mrb[218].mxu1 }
 0xec6   : > { %v12316_v30 = vpop.f32.mrb[219].mxu1 }
 0xec7   : > { %v5769_v0 = vmax.f32 %v12314_v54, %v12316_v30  ;;  %5767 = vmax.xlane.f32.xlu1 %v5766_v41 }
 0xec9   : > { %5770 = vmax.xlane.f32.xlu0 %v5769_v0 }
 0xecb   : > { %v12320_v26 = vpop.f32.mrb[220].mxu1 }
 0xecc   : > { %v12322_v44 = vpop.f32.mrb[221].mxu1 }
 0xecd   : > { %v5772_v53 = vmax.f32 %v12320_v26, %v12322_v44  ;;  %v12326_v29 = vpop.f32.mrb[222].mxu1 }
 0xece   : > { %v12328_v4 = vpop.f32.mrb[223].mxu1 }
 0xecf   : > { %v5775_v32 = vmax.f32 %v12326_v29, %v12328_v4  ;;  %5773 = vmax.xlane.f32.xlu1 %v5772_v53 }
 0xed1   : > { %5776 = vmax.xlane.f32.xlu0 %v5775_v32 }
 0xed3   : > { %v12332_v2 = vpop.f32.mrb[224].mxu1 }
 0xed4   : > { %v12334_v19 = vpop.f32.mrb[225].mxu1 }
 0xed5   : > { %v5778_v49 = vmax.f32 %v12332_v2, %v12334_v19  ;;  %v12338_v21 = vpop.f32.mrb[226].mxu1 }
 0xed6   : > { %v12340_v47 = vpop.f32.mrb[227].mxu1 }
 0xed7   : > { %13731 = vst [vmem:[#allocation67_spill] sm:$0xff] %v12340_v47  ;;  %v5781_v58 = vmax.f32 %v12338_v21, %v12340_v47  ;;  %5779 = vmax.xlane.f32.xlu1 %v5778_v49 }
 0xed9   : > { %5782 = vmax.xlane.f32.xlu0 %v5781_v58 }
 0xedb   : > { %v12344_v60 = vpop.f32.mrb[228].mxu1 }
 0xedc   : > { %13732 = vst [vmem:[#allocation65_spill] sm:$0xff] %v12344_v60  ;;  %v12346_v17 = vpop.f32.mrb[229].mxu1 }
 0xedd   : > { %13733 = vst [vmem:[#allocation63_spill] sm:$0xff] %v12346_v17  ;;  %v5784_v7 = vmax.f32 %v12344_v60, %v12346_v17  ;;  %v12350_v34 = vpop.f32.mrb[230].mxu1 }
 0xede   : > { %13734 = vst [vmem:[#allocation86_spill] sm:$0xff] %v12350_v34  ;;  %v12352_v28 = vpop.f32.mrb[231].mxu1 }
 0xedf   : > { %13735 = vst [vmem:[#allocation9_spill] sm:$0xff] %v12352_v28  ;;  %v5787_v51 = vmax.f32 %v12350_v34, %v12352_v28  ;;  %5785 = vmax.xlane.f32.xlu1 %v5784_v7 }
 0xee1   : > { %5788 = vmax.xlane.f32.xlu0 %v5787_v51 }
 0xee3   : > { %v12356_v50 = vpop.f32.mrb[232].mxu1 }
 0xee4   : > { %13736 = vst [vmem:[#allocation84_spill] sm:$0xff] %v12356_v50  ;;  %v12358_v55 = vpop.f32.mrb[233].mxu1 }
 0xee5   : > { %13737 = vst [vmem:[#allocation82_spill] sm:$0xff] %v12358_v55  ;;  %v5790_v24 = vmax.f32 %v12356_v50, %v12358_v55  ;;  %v12362_v41 = vpop.f32.mrb[234].mxu1 }
 0xee6   : > { %13738 = vst [vmem:[#allocation30_spill] sm:$0xff] %v12362_v41  ;;  %v12364_v0 = vpop.f32.mrb[235].mxu1 }
 0xee7   : > { %13739 = vst [vmem:[#allocation76_spill] sm:$0xff] %v12364_v0  ;;  %v5793_v53 = vmax.f32 %v12362_v41, %v12364_v0  ;;  %5791 = vmax.xlane.f32.xlu1 %v5790_v24 }
 0xee9   : > { %5794 = vmax.xlane.f32.xlu0 %v5793_v53 }
 0xeeb   : > { %v12368_v32 = vpop.f32.mrb[236].mxu1 }
 0xeec   : > { %13740 = vst [vmem:[#allocation75_spill] sm:$0xff] %v12368_v32  ;;  %v12370_v49 = vpop.f32.mrb[237].mxu1 }
 0xeed   : > { %13741 = vst [vmem:[#allocation37_spill] sm:$0xff] %v12370_v49  ;;  %v5796_v58 = vmax.f32 %v12368_v32, %v12370_v49  ;;  %v12374_v7 = vpop.f32.mrb[238].mxu1 }
 0xeee   : > { %13742 = vst [vmem:[#allocation36_spill] sm:$0xff] %v12374_v7  ;;  %v12376_v51 = vpop.f32.mrb[239].mxu1 }
 0xeef   : > { %13743 = vst [vmem:[#allocation38_spill] sm:$0xff] %v12376_v51  ;;  %v5799_v40 = vmax.f32 %v12374_v7, %v12376_v51  ;;  %5797 = vmax.xlane.f32.xlu1 %v5796_v58 }
 0xef1   : > { %5800 = vmax.xlane.f32.xlu0 %v5799_v40 }
 0xef3   : > { %v12380_v8 = vpop.f32.mrb[240].mxu1 }
 0xef4   : > { %v12382_v24 = vpop.f32.mrb[241].mxu1 }
 0xef5   : > { %v12386_v14 = vpop.f32.mrb[242].mxu1 }
 0xef6   : > { %v12388_v63 = vpop.f32.mrb[243].mxu1 }
 0xefb   : > { %v12392_v23 = vpop.f32.mrb[244].mxu1 }
 0xefc   : > { %v12394_v13 = vpop.f32.mrb[245].mxu1 }
 0xefd   : > { %v12398_v58 = vpop.f32.mrb[246].mxu1 }
 0xefe   : > { %v12400_v35 = vpop.f32.mrb[247].mxu1 }
 0xf03   : > { %v12404_v57 = vpop.f32.mrb[248].mxu1 }
 0xf04   : > { %v12406_v48 = vpop.f32.mrb[249].mxu1 }
 0xf05   : > { %v12410_v36 = vpop.f32.mrb[250].mxu1 }
 0xf06   : > { %v12412_v27 = vpop.f32.mrb[251].mxu1 }
 0xf0b   : > { %v12416_v62 = vpop.f32.mrb[252].mxu1 }
 0xf0c   : > { %v12418_v51 = vpop.f32.mrb[253].mxu1 }
 0xf0d   : > { %v12422_v7 = vpop.f32.mrb[254].mxu1 }
 0xf0e   : > { %v12424_v49 = vpop.f32.mrb[255].mxu1 }
 0xf24   : > { %v5732_v32 = vpop.xlane.xlu1 %5731 }
 0xf25   : > { %v5826_v0 = vsub.f32 %v12236_v46, %v5732_v32  ;;  %v5827_v41 = vsub.f32 %v12238_v9, %v5732_v32 }
 0xf26   : > { %v5735_v40 = vpop.xlane.xlu0 %5734 }
 0xf27   : > { %v5890_v55 = vmul.f32 1.442695, %v5826_v0  ;;  %v5892_v50 = vmul.f32 1.442695, %v5827_v41  ;;  %v5828_v28 = vsub.f32 %v12242_v25, %v5735_v40  ;;  %v5829_v34 = vsub.f32 %v12244_v37, %v5735_v40 }
 0xf29   : > { %8208 = vpow2.f32 %v5890_v55  ;;  %v5894_v53 = vmul.f32 1.442695, %v5828_v28  ;;  %v5896_v17 = vmul.f32 1.442695, %v5829_v34 }
 0xf2a   : > { %8210 = vpow2.f32 %v5892_v50 }
 0xf2b   : > { %8212 = vpow2.f32 %v5894_v53 }
 0xf2c   : > { %8214 = vpow2.f32 %v5896_v17  ;;  %v5738_v60 = vpop.xlane.xlu1 %5737 }
 0xf2d   : > { %v5830_v59 = vsub.f32 %v12248_v45, %v5738_v60  ;;  %v5831_v46 = vsub.f32 %v12250_v18, %v5738_v60 }
 0xf2e   : > { %v5741_v47 = vpop.xlane.xlu0 %5740 }
 0xf2f   : > { %v5898_v9 = vmul.f32 1.442695, %v5830_v59  ;;  %v5900_v32 = vmul.f32 1.442695, %v5831_v46  ;;  %v5832_v41 = vsub.f32 %v12254_v52, %v5741_v47  ;;  %v5833_v25 = vsub.f32 %v12256_v22, %v5741_v47 }
 0xf31   : > { %8216 = vpow2.f32 %v5898_v9  ;;  %v5902_v37 = vmul.f32 1.442695, %v5832_v41  ;;  %v5904_v55 = vmul.f32 1.442695, %v5833_v25  ;;  %v13744_v9 = vmax.f32 %v12380_v8, %v12382_v24 }
 0xf32   : > { %8218 = vpow2.f32 %v5900_v32 }
 0xf33   : > { %v12436_v34 = vpop.eup %8208  ;;  %8220 = vpow2.f32 %v5902_v37 }
 0xf34   : > { %v12438_v17 = vpop.eup %8210  ;;  %8222 = vpow2.f32 %v5904_v55  ;;  %v5744_v45 = vpop.xlane.xlu1 %5743 }
 0xf35   : > { %v12440_v28 = vpop.eup %8212  ;;  %v5834_v59 = vsub.f32 %v12260_v39, %v5744_v45  ;;  %v5835_v18 = vsub.f32 %v12262_v38, %v5744_v45  ;;  %v6018_v52 = vadd.f32 %v12438_v17, %v12436_v34  ;;  %v13745_v45 = vmax.f32 %v12386_v14, %v12388_v63 }
 0xf36   : > { %v12446_v22 = vpop.eup %8214  ;;  %v5747_v47 = vpop.xlane.xlu0 %5746 }
 0xf37   : > { %v5906_v60 = vmul.f32 1.442695, %v5834_v59  ;;  %v5908_v50 = vmul.f32 1.442695, %v5835_v18  ;;  %v5836_v0 = vsub.f32 %v12266_v5, %v5747_v47  ;;  %v5837_v53 = vsub.f32 %v12268_v33, %v5747_v47  ;;  %6019 = vadd.xlane.f32.xlu1 %v6018_v52 }
 0xf38   : > { %v6021_v40 = vadd.f32 %v12446_v22, %v12440_v28 }
 0xf39   : > { %8224 = vpow2.f32 %v5906_v60  ;;  %v5910_v39 = vmul.f32 1.442695, %v5836_v0  ;;  %v5912_v46 = vmul.f32 1.442695, %v5837_v53  ;;  %v13746_v53 = vmax.f32 %v12392_v23, %v12394_v13 }
 0xf3a   : > { %8226 = vpow2.f32 %v5908_v50  ;;  %6022 = vadd.xlane.f32.xlu0 %v6021_v40 }
 0xf3b   : > { %v12452_v38 = vpop.eup %8216  ;;  %8228 = vpow2.f32 %v5910_v39  ;;  %5803 = vmax.xlane.f32.xlu1 %v13744_v9 }
 0xf3c   : > { %v12457_v32 = vpop.eup %8218  ;;  %8230 = vpow2.f32 %v5912_v46  ;;  %v5750_v5 = vpop.xlane.xlu1 %5749 }
 0xf3d   : > { %v12459_v33 = vpop.eup %8220  ;;  %v5838_v41 = vsub.f32 %v12272_v12, %v5750_v5  ;;  %v5839_v25 = vsub.f32 %v12274_v3, %v5750_v5  ;;  %v6024_v37 = vadd.f32 %v12457_v32, %v12452_v38 }
 0xf3e   : > { %v12465_v55 = vpop.eup %8222  ;;  %5806 = vmax.xlane.f32.xlu0 %v13745_v45  ;;  %v5753_v59 = vpop.xlane.xlu0 %5752 }
 0xf3f   : > { %v5914_v18 = vmul.f32 1.442695, %v5838_v41  ;;  %v5916_v52 = vmul.f32 1.442695, %v5839_v25  ;;  %v5840_v47 = vsub.f32 %v12278_v43, %v5753_v59  ;;  %v5841_v60 = vsub.f32 %v12280_v11, %v5753_v59  ;;  %6025 = vadd.xlane.f32.xlu1 %v6024_v37 }
 0xf40   : > { %v6027_v12 = vadd.f32 %v12465_v55, %v12459_v33  ;;  %v13747_v41 = vmax.f32 %v12398_v58, %v12400_v35 }
 0xf41   : > { %8232 = vpow2.f32 %v5914_v18  ;;  %v5918_v3 = vmul.f32 1.442695, %v5840_v47  ;;  %v5920_v50 = vmul.f32 1.442695, %v5841_v60  ;;  %v13748_v60 = vmax.f32 %v12404_v57, %v12406_v48 }
 0xf42   : > { %8234 = vpow2.f32 %v5916_v52  ;;  %6028 = vadd.xlane.f32.xlu0 %v6027_v12 }
 0xf43   : > { %v12474_v0 = vpop.eup %8224  ;;  %8236 = vpow2.f32 %v5918_v3  ;;  %5809 = vmax.xlane.f32.xlu1 %v13746_v53 }
 0xf44   : > { %v12479_v40 = vpop.eup %8226  ;;  %8238 = vpow2.f32 %v5920_v50  ;;  %v5756_v43 = vpop.xlane.xlu1 %5755 }
 0xf45   : > { %v12481_v11 = vpop.eup %8228  ;;  %v5842_v39 = vsub.f32 %v12284_v10, %v5756_v43  ;;  %v5843_v46 = vsub.f32 %v12286_v56, %v5756_v43  ;;  %v6030_v9 = vadd.f32 %v12479_v40, %v12474_v0 }
 0xf46   : > { %v12487_v5 = vpop.eup %8230  ;;  %5812 = vmax.xlane.f32.xlu0 %v13747_v41  ;;  %v5759_v25 = vpop.xlane.xlu0 %5758 }
 0xf47   : > { %v5922_v37 = vmul.f32 1.442695, %v5842_v39  ;;  %v5924_v45 = vmul.f32 1.442695, %v5843_v46  ;;  %v5844_v59 = vsub.f32 %v12290_v16, %v5759_v25  ;;  %v5845_v18 = vsub.f32 %v12292_v1, %v5759_v25  ;;  %6031 = vadd.xlane.f32.xlu1 %v6030_v9 }
 0xf48   : > { %v6033_v10 = vadd.f32 %v12487_v5, %v12481_v11  ;;  %v13749_v39 = vmax.f32 %v12410_v36, %v12412_v27 }
 0xf49   : > { %8240 = vpow2.f32 %v5922_v37  ;;  %v5926_v56 = vmul.f32 1.442695, %v5844_v59  ;;  %v5928_v52 = vmul.f32 1.442695, %v5845_v18  ;;  %v13750_v18 = vmax.f32 %v12416_v62, %v12418_v51 }
 0xf4a   : > { %8242 = vpow2.f32 %v5924_v45  ;;  %6034 = vadd.xlane.f32.xlu0 %v6033_v10 }
 0xf4b   : > { %v12496_v47 = vpop.eup %8232  ;;  %8244 = vpow2.f32 %v5926_v56  ;;  %5815 = vmax.xlane.f32.xlu1 %v13748_v60 }
 0xf4c   : > { %v12501_v12 = vpop.eup %8234  ;;  %8246 = vpow2.f32 %v5928_v52  ;;  %v5762_v16 = vpop.xlane.xlu1 %5761 }
 0xf4d   : > { %v12503_v1 = vpop.eup %8236  ;;  %v5846_v3 = vsub.f32 %v12296_v31, %v5762_v16  ;;  %v5847_v50 = vsub.f32 %v12298_v6, %v5762_v16  ;;  %v6036_v53 = vadd.f32 %v12501_v12, %v12496_v47 }
 0xf4e   : > { %v12509_v43 = vpop.eup %8238  ;;  %5818 = vmax.xlane.f32.xlu0 %v13749_v39  ;;  %v5765_v46 = vpop.xlane.xlu0 %5764 }
 0xf4f   : > { %v5930_v9 = vmul.f32 1.442695, %v5846_v3  ;;  %v5932_v41 = vmul.f32 1.442695, %v5847_v50  ;;  %v5848_v25 = vsub.f32 %v12302_v20, %v5765_v46  ;;  %v5849_v37 = vsub.f32 %v12304_v42, %v5765_v46  ;;  %6037 = vadd.xlane.f32.xlu1 %v6036_v53 }
 0xf50   : > { %v6039_v31 = vadd.f32 %v12509_v43, %v12503_v1  ;;  %v13751_v3 = vmax.f32 %v12422_v7, %v12424_v49 }
 0xf51   : > { %8248 = vpow2.f32 %v5930_v9  ;;  %v5934_v6 = vmul.f32 1.442695, %v5848_v25  ;;  %v5936_v45 = vmul.f32 1.442695, %v5849_v37 }
 0xf52   : > { %8250 = vpow2.f32 %v5932_v41  ;;  %6040 = vadd.xlane.f32.xlu0 %v6039_v31 }
 0xf53   : > { %v12518_v59 = vpop.eup %8240  ;;  %8252 = vpow2.f32 %v5934_v6  ;;  %5821 = vmax.xlane.f32.xlu1 %v13750_v18 }
 0xf54   : > { %v12523_v10 = vpop.eup %8242  ;;  %8254 = vpow2.f32 %v5936_v45  ;;  %v5768_v20 = vpop.xlane.xlu1 %5767 }
 0xf55   : > { %v12525_v42 = vpop.eup %8244  ;;  %v5850_v56 = vsub.f32 %v12308_v15, %v5768_v20  ;;  %v5851_v52 = vsub.f32 %v12310_v61, %v5768_v20  ;;  %v6042_v60 = vadd.f32 %v12523_v10, %v12518_v59 }
 0xf56   : > { %v12531_v16 = vpop.eup %8246  ;;  %5824 = vmax.xlane.f32.xlu0 %v13751_v3  ;;  %v5771_v50 = vpop.xlane.xlu0 %5770 }
 0xf57   : > { %v5938_v53 = vmul.f32 1.442695, %v5850_v56  ;;  %v5940_v39 = vmul.f32 1.442695, %v5851_v52  ;;  %v5852_v46 = vsub.f32 %v12314_v54, %v5771_v50  ;;  %v5853_v9 = vsub.f32 %v12316_v30, %v5771_v50  ;;  %6043 = vadd.xlane.f32.xlu1 %v6042_v60 }
 0xf58   : > { %v6045_v15 = vadd.f32 %v12531_v16, %v12525_v42 }
 0xf59   : > { %8256 = vpow2.f32 %v5938_v53  ;;  %v5942_v61 = vmul.f32 1.442695, %v5852_v46  ;;  %v5944_v41 = vmul.f32 1.442695, %v5853_v9 }
 0xf5a   : > { %8258 = vpow2.f32 %v5940_v39  ;;  %6046 = vadd.xlane.f32.xlu0 %v6045_v15 }
 0xf5b   : > { %v12540_v25 = vpop.eup %8248  ;;  %8260 = vpow2.f32 %v5942_v61 }
 0xf5c   : > { %v12542_v37 = vpop.eup %8250  ;;  %8262 = vpow2.f32 %v5944_v41  ;;  %v5774_v31 = vpop.xlane.xlu1 %5773 }
 0xf5d   : > { %v12544_v6 = vpop.eup %8252  ;;  %v5854_v54 = vsub.f32 %v12320_v26, %v5774_v31  ;;  %v5855_v30 = vsub.f32 %v12322_v44, %v5774_v31  ;;  %v6048_v45 = vadd.f32 %v12542_v37, %v12540_v25 }
 0xf5e   : > { %v12550_v18 = vpop.eup %8254  ;;  %v5777_v20 = vpop.xlane.xlu0 %5776 }
 0xf5f   : > { %v5946_v56 = vmul.f32 1.442695, %v5854_v54  ;;  %v5948_v52 = vmul.f32 1.442695, %v5855_v30  ;;  %v5856_v60 = vsub.f32 %v12326_v29, %v5777_v20  ;;  %v5857_v3 = vsub.f32 %v12328_v4, %v5777_v20  ;;  %6049 = vadd.xlane.f32.xlu1 %v6048_v45  ;;  %v13752_v45 = vld [vmem:[#allocation67_spill] sm:$0xff] }
 0xf60   : > { %v6051_v50 = vadd.f32 %v12550_v18, %v12544_v6 }
 0xf61   : > { %8264 = vpow2.f32 %v5946_v56  ;;  %v5950_v26 = vmul.f32 1.442695, %v5856_v60  ;;  %v5952_v53 = vmul.f32 1.442695, %v5857_v3 }
 0xf62   : > { %8266 = vpow2.f32 %v5948_v52  ;;  %6052 = vadd.xlane.f32.xlu0 %v6051_v50 }
 0xf63   : > { %v12556_v44 = vpop.eup %8256  ;;  %8268 = vpow2.f32 %v5950_v26 }
 0xf64   : > { %v12558_v39 = vpop.eup %8258  ;;  %8270 = vpow2.f32 %v5952_v53  ;;  %v5780_v46 = vpop.xlane.xlu1 %5779  ;;  %v13756_v53 = vld [vmem:[#allocation63_spill] sm:$0xff] }
 0xf65   : > { %v12560_v9 = vpop.eup %8260  ;;  %v5858_v29 = vsub.f32 %v12332_v2, %v5780_v46  ;;  %v5859_v4 = vsub.f32 %v12334_v19, %v5780_v46  ;;  %v6054_v15 = vadd.f32 %v12558_v39, %v12556_v44 }
 0xf66   : > { %v12566_v61 = vpop.eup %8262  ;;  %v5783_v41 = vpop.xlane.xlu0 %5782 }
 0xf67   : > { %v5954_v31 = vmul.f32 1.442695, %v5858_v29  ;;  %v5956_v54 = vmul.f32 1.442695, %v5859_v4  ;;  %v5860_v30 = vsub.f32 %v12338_v21, %v5783_v41  ;;  %v5861_v20 = vsub.f32 %v13752_v45, %v5783_v41  ;;  %6055 = vadd.xlane.f32.xlu1 %v6054_v15  ;;  %v13755_v21 = vld [vmem:[#allocation65_spill] sm:$0xff] }
 0xf68   : > { %v6057_v56 = vadd.f32 %v12566_v61, %v12560_v9  ;;  %v13759_v45 = vld [vmem:[#allocation9_spill] sm:$0xff] }
 0xf69   : > { %8272 = vpow2.f32 %v5954_v31  ;;  %v5958_v2 = vmul.f32 1.442695, %v5860_v30  ;;  %v5960_v52 = vmul.f32 1.442695, %v5861_v20 }
 0xf6a   : > { %8274 = vpow2.f32 %v5956_v54  ;;  %6058 = vadd.xlane.f32.xlu0 %v6057_v56  ;;  %v13758_v54 = vld [vmem:[#allocation86_spill] sm:$0xff] }
 0xf6b   : > { %v12572_v19 = vpop.eup %8264  ;;  %8276 = vpow2.f32 %v5958_v2 }
 0xf6c   : > { %13753 = vst [vmem:[#allocation35_spill] sm:$0xff] %v12572_v19  ;;  %v12574_v60 = vpop.eup %8266  ;;  %8278 = vpow2.f32 %v5960_v52  ;;  %v5786_v3 = vpop.xlane.xlu1 %5785 }
 0xf6d   : > { %v12576_v50 = vpop.eup %8268  ;;  %v5862_v26 = vsub.f32 %v13755_v21, %v5786_v3  ;;  %v5863_v46 = vsub.f32 %v13756_v53, %v5786_v3  ;;  %v6060_v29 = vadd.f32 %v12574_v60, %v12572_v19  ;;  %v13767_v19 = vld [vmem:[#allocation76_spill] sm:$0xff] }
 0xf6e   : > { %13754 = vst [vmem:[#allocation77_spill] sm:$0xff] %v12576_v50  ;;  %v12582_v4 = vpop.eup %8270  ;;  %v5789_v15 = vpop.xlane.xlu0 %5788 }
 0xf6f   : > { %13757 = vst [vmem:[#allocation13_spill] sm:$0xff] %v12582_v4  ;;  %v5962_v41 = vmul.f32 1.442695, %v5862_v26  ;;  %v5964_v31 = vmul.f32 1.442695, %v5863_v46  ;;  %v5864_v30 = vsub.f32 %v13758_v54, %v5789_v15  ;;  %v5865_v20 = vsub.f32 %v13759_v45, %v5789_v15  ;;  %6061 = vadd.xlane.f32.xlu1 %v6060_v29  ;;  %v13763_v46 = vld [vmem:[#allocation84_spill] sm:$0xff] }
 0xf70   : > { %v6063_v56 = vadd.f32 %v12582_v4, %v12576_v50  ;;  %v13764_v29 = vld [vmem:[#allocation82_spill] sm:$0xff] }
 0xf71   : > { %8280 = vpow2.f32 %v5962_v41  ;;  %v5966_v2 = vmul.f32 1.442695, %v5864_v30  ;;  %v5968_v52 = vmul.f32 1.442695, %v5865_v20 }
 0xf72   : > { %8282 = vpow2.f32 %v5964_v31  ;;  %6064 = vadd.xlane.f32.xlu0 %v6063_v56  ;;  %v13766_v56 = vld [vmem:[#allocation30_spill] sm:$0xff] }
 0xf73   : > { %v12588_v3 = vpop.eup %8272  ;;  %8284 = vpow2.f32 %v5966_v2 }
 0xf74   : > { %13760 = vst [vmem:[#allocation23_spill] sm:$0xff] %v12588_v3  ;;  %v12590_v21 = vpop.eup %8274  ;;  %8286 = vpow2.f32 %v5968_v52  ;;  %v5792_v26 = vpop.xlane.xlu1 %5791 }
 0xf75   : > { %13761 = vst [vmem:[#allocation78_spill] sm:$0xff] %v12590_v21  ;;  %v12592_v53 = vpop.eup %8276  ;;  %v5866_v15 = vsub.f32 %v13763_v46, %v5792_v26  ;;  %v5867_v54 = vsub.f32 %v13764_v29, %v5792_v26  ;;  %v6066_v41 = vadd.f32 %v12590_v21, %v12588_v3  ;;  %v13770_v3 = vld [vmem:[#allocation36_spill] sm:$0xff] }
 0xf76   : > { %13762 = vst [vmem:[#allocation42_spill] sm:$0xff] %v12592_v53  ;;  %v12598_v30 = vpop.eup %8278  ;;  %v5795_v31 = vpop.xlane.xlu0 %5794 }
 0xf77   : > { %13765 = vst [vmem:[#allocation39_spill] sm:$0xff] %v12598_v30  ;;  %v5970_v45 = vmul.f32 1.442695, %v5866_v15  ;;  %v5972_v20 = vmul.f32 1.442695, %v5867_v54  ;;  %v5868_v2 = vsub.f32 %v13766_v56, %v5795_v31  ;;  %v5869_v50 = vsub.f32 %v13767_v19, %v5795_v31  ;;  %6067 = vadd.xlane.f32.xlu1 %v6066_v41  ;;  %v13768_v56 = vld [vmem:[#allocation75_spill] sm:$0xff] }
 0xf78   : > { %v6069_v52 = vadd.f32 %v12598_v30, %v12592_v53  ;;  %v13769_v41 = vld [vmem:[#allocation37_spill] sm:$0xff]  ;;  %v13771_v53 = vld [vmem:[#allocation38_spill] sm:$0xff] }
 0xf79   : > { %8288 = vpow2.f32 %v5970_v45  ;;  %v5974_v46 = vmul.f32 1.442695, %v5868_v2  ;;  %v5976_v4 = vmul.f32 1.442695, %v5869_v50 }
 0xf7a   : > { %8290 = vpow2.f32 %v5972_v20  ;;  %6070 = vadd.xlane.f32.xlu0 %v6069_v52 }
 0xf7b   : > { %v12604_v26 = vpop.eup %8280  ;;  %8292 = vpow2.f32 %v5974_v46 }
 0xf7c   : > { %v12606_v29 = vpop.eup %8282  ;;  %8294 = vpow2.f32 %v5976_v4  ;;  %v5798_v15 = vpop.xlane.xlu1 %5797 }
 0xf7d   : > { %v12608_v54 = vpop.eup %8284  ;;  %v5870_v19 = vsub.f32 %v13768_v56, %v5798_v15  ;;  %v5871_v31 = vsub.f32 %v13769_v41, %v5798_v15  ;;  %v6072_v45 = vadd.f32 %v12606_v29, %v12604_v26 }
 0xf7e   : > { %v12614_v2 = vpop.eup %8286  ;;  %v5801_v50 = vpop.xlane.xlu0 %5800 }
 0xf7f   : > { %v5978_v20 = vmul.f32 1.442695, %v5870_v19  ;;  %v5980_v52 = vmul.f32 1.442695, %v5871_v31  ;;  %v5872_v46 = vsub.f32 %v13770_v3, %v5801_v50  ;;  %v5873_v30 = vsub.f32 %v13771_v53, %v5801_v50  ;;  %6073 = vadd.xlane.f32.xlu1 %v6072_v45 }
 0xf80   : > { %v6075_v4 = vadd.f32 %v12614_v2, %v12608_v54 }
 0xf81   : > { %8296 = vpow2.f32 %v5978_v20  ;;  %v5982_v56 = vmul.f32 1.442695, %v5872_v46  ;;  %v5984_v21 = vmul.f32 1.442695, %v5873_v30 }
 0xf82   : > { %8298 = vpow2.f32 %v5980_v52  ;;  %6076 = vadd.xlane.f32.xlu0 %v6075_v4 }
 0xf83   : > { %v12620_v15 = vpop.eup %8288  ;;  %8300 = vpow2.f32 %v5982_v56 }
 0xf84   : > { %13772 = vst [vmem:[#allocation41_spill] sm:$0xff] %v12620_v15  ;;  %v12622_v41 = vpop.eup %8290  ;;  %8302 = vpow2.f32 %v5984_v21 }
 0xf85   : > { %v12624_v19 = vpop.eup %8292  ;;  %v6078_v3 = vadd.f32 %v12622_v41, %v12620_v15 }
 0xf86   : > { %13773 = vst [vmem:[#allocation45_spill] sm:$0xff] %v12624_v19  ;;  %v12628_v53 = vpop.eup %8294 }
 0xf87   : > { %13774 = vst [vmem:[#allocation28_spill] sm:$0xff] %v12628_v53  ;;  %6079 = vadd.xlane.f32.xlu1 %v6078_v3  ;;  %v6081_v31 = vadd.f32 %v12628_v53, %v12624_v19 }
 0xf89   : > { %6082 = vadd.xlane.f32.xlu0 %v6081_v31 }
 0xf8b   : > { %v12632_v30 = vpop.eup %8296 }
 0xf8c   : > { %13775 = vst [vmem:[#allocation47_spill] sm:$0xff] %v12632_v30  ;;  %v12634_v45 = vpop.eup %8298 }
 0xf8d   : > { %13776 = vst [vmem:[#allocation12_spill] sm:$0xff] %v12634_v45  ;;  %v12636_v50 = vpop.eup %8300  ;;  %v6084_v21 = vadd.f32 %v12634_v45, %v12632_v30 }
 0xf8e   : > { %13777 = vst [vmem:[#allocation11_spill] sm:$0xff] %v12636_v50  ;;  %v12640_v20 = vpop.eup %8302 }
 0xf8f   : > { %13778 = vst [vmem:[#allocation50_spill] sm:$0xff] %v12640_v20  ;;  %6085 = vadd.xlane.f32.xlu1 %v6084_v21  ;;  %v6087_v52 = vadd.f32 %v12640_v20, %v12636_v50 }
 0xf91   : > { %6088 = vadd.xlane.f32.xlu0 %v6087_v52 }
 0xfc4   : > { %v6020_v46 = vpop.xlane.xlu1 %6019 }
 0xfc5   : > { %8304 = vrcp.f32 %v6020_v46 }
 0xfc7   : > { %v6023_v4 = vpop.xlane.xlu0 %6022 }
 0xfc8   : > { %8306 = vrcp.f32 %v6023_v4  ;;  %v5804_v56 = vpop.xlane.xlu1 %5803 }
 0xfc9   : > { %v5874_v3 = vsub.f32 %v12380_v8, %v5804_v56  ;;  %v5875_v31 = vsub.f32 %v12382_v24, %v5804_v56 }
 0xfcb   : > { %v5986_v15 = vmul.f32 1.442695, %v5874_v3  ;;  %v5988_v19 = vmul.f32 1.442695, %v5875_v31  ;;  %v5807_v53 = vpop.xlane.xlu0 %5806 }
 0xfcc   : > { %v5876_v30 = vsub.f32 %v12386_v14, %v5807_v53  ;;  %v5877_v21 = vsub.f32 %v12388_v63, %v5807_v53  ;;  %v6026_v45 = vpop.xlane.xlu1 %6025 }
 0xfcd   : > { %8308 = vpow2.f32 %v5986_v15 }
 0xfce   : > { %8310 = vpow2.f32 %v5988_v19  ;;  %v5990_v52 = vmul.f32 1.442695, %v5876_v30  ;;  %v5992_v50 = vmul.f32 1.442695, %v5877_v21 }
 0xfcf   : > { %v8305_v46 = vpop.eup %8304  ;;  %8312 = vrcp.f32 %v6026_v45  ;;  %v6029_v4 = vpop.xlane.xlu0 %6028 }
 0xfd0   : > { %8314 = vpow2.f32 %v5990_v52  ;;  %v5810_v20 = vpop.xlane.xlu1 %5809  ;;  %v6147_v14 = vmul.f32 %v8305_v46, %v12438_v17  ;;  %v6146_v63 = vmul.f32 %v8305_v46, %v12436_v34 }
 0xfd1   : > { %8316 = vpow2.f32 %v5992_v50  ;;  %v5878_v8 = vsub.f32 %v12392_v23, %v5810_v20  ;;  %v5879_v24 = vsub.f32 %v12394_v13, %v5810_v20 }
 0xfd2   : > { %v8307_v56 = vpop.eup %8306  ;;  %8318 = vrcp.f32 %v6029_v4 }
 0xfd3   : > { %v5994_v15 = vmul.f32 1.442695, %v5878_v8  ;;  %v5996_v19 = vmul.f32 1.442695, %v5879_v24  ;;  %v5813_v53 = vpop.xlane.xlu0 %5812  ;;  %v6149_v30 = vmul.f32 %v8307_v56, %v12446_v22  ;;  %v6148_v45 = vmul.f32 %v8307_v56, %v12440_v28 }
 0xfd4   : > { %v5880_v3 = vsub.f32 %v12398_v58, %v5813_v53  ;;  %v5881_v50 = vsub.f32 %v12400_v35, %v5813_v53  ;;  %v6032_v23 = vpop.xlane.xlu1 %6031 }
 0xfd5   : > { %8320 = vpow2.f32 %v5994_v15  ;;  %v6211_v13 = vpack.c.bf16 %v6149_v30, %v6147_v14  ;;  %v6210_v20 = vpack.c.bf16 %v6148_v45, %v6146_v63 }
 0xfd6   : > { %8322 = vpow2.f32 %v5996_v19  ;;  %v5998_v31 = vmul.f32 1.442695, %v5880_v3  ;;  %v6000_v17 = vmul.f32 1.442695, %v5881_v50 }
 0xfd7   : > { %v12656_v21 = vpop.eup %8308  ;;  %8324 = vrcp.f32 %v6032_v23  ;;  %v6035_v34 = vpop.xlane.xlu0 %6034  ;;  %6242 = vmatprep.subr.bf16.mxu0 %v6211_v13 }
 0xfd8   : > { %v12658_v52 = vpop.eup %8310  ;;  %8326 = vpow2.f32 %v5998_v31  ;;  %6243 = vmatpush1.bf16.xpose.msra.mxu0 %v6210_v20  ;;  %v5816_v28 = vpop.xlane.xlu1 %5815 }
 0xfd9   : > { %v8313_v58 = vpop.eup %8312  ;;  %8328 = vpow2.f32 %v6000_v17  ;;  %v5882_v35 = vsub.f32 %v12404_v57, %v5816_v28  ;;  %v5883_v22 = vsub.f32 %v12406_v48, %v5816_v28  ;;  %v6090_v46 = vadd.f32 %v12658_v52, %v12656_v21 }
 0xfda   : > { %v12664_v4 = vpop.eup %8314  ;;  %8330 = vrcp.f32 %v6035_v34  ;;  %v6151_v53 = vmul.f32 %v8313_v58, %v12457_v32  ;;  %v6150_v45 = vmul.f32 %v8313_v58, %v12452_v38 }
 0xfdb   : > { %v12666_v8 = vpop.eup %8316  ;;  %v6002_v24 = vmul.f32 1.442695, %v5882_v35  ;;  %v6004_v56 = vmul.f32 1.442695, %v5883_v22  ;;  %v5819_v14 = vpop.xlane.xlu0 %5818  ;;  %6091 = vadd.xlane.f32.xlu1 %v6090_v46 }
 0xfdc   : > { %v8319_v63 = vpop.eup %8318  ;;  %v5884_v15 = vsub.f32 %v12410_v36, %v5819_v14  ;;  %v5885_v19 = vsub.f32 %v12412_v27, %v5819_v14  ;;  %v6093_v57 = vadd.f32 %v12666_v8, %v12664_v4  ;;  %v6038_v48 = vpop.xlane.xlu1 %6037 }
 0xfdd   : > { %8332 = vpow2.f32 %v6002_v24  ;;  %v6153_v30 = vmul.f32 %v8319_v63, %v12465_v55  ;;  %v6152_v3 = vmul.f32 %v8319_v63, %v12459_v33 }
 0xfde   : > { %8334 = vpow2.f32 %v6004_v56  ;;  %v6006_v50 = vmul.f32 1.442695, %v5884_v15  ;;  %v6008_v23 = vmul.f32 1.442695, %v5885_v19  ;;  %6094 = vadd.xlane.f32.xlu0 %v6093_v57 }
 0xfdf   : > { %v12676_v36 = vpop.eup %8320  ;;  %8336 = vrcp.f32 %v6038_v48  ;;  %v6041_v27 = vpop.xlane.xlu0 %6040  ;;  %v6213_v13 = vpack.c.bf16 %v6153_v30, %v6151_v53  ;;  %v6212_v20 = vpack.c.bf16 %v6152_v3, %v6150_v45 }
 0xfe0   : > { %v12678_v31 = vpop.eup %8322  ;;  %8338 = vpow2.f32 %v6006_v50  ;;  %v5822_v32 = vpop.xlane.xlu1 %5821 }
 0xfe1   : > { %v8325_v17 = vpop.eup %8324  ;;  %8340 = vpow2.f32 %v6008_v23  ;;  %6244 = vmatprep.subr.bf16.mxu0 %v6213_v13  ;;  %v5886_v38 = vsub.f32 %v12416_v62, %v5822_v32  ;;  %v5887_v33 = vsub.f32 %v12418_v51, %v5822_v32  ;;  %v6096_v55 = vadd.f32 %v12678_v31, %v12676_v36 }
 0xfe2   : > { %v12684_v34 = vpop.eup %8326  ;;  %8342 = vrcp.f32 %v6041_v27  ;;  %6245 = vmatpush1.bf16.xpose.msra.mxu0 %v6212_v20  ;;  %v6155_v14 = vmul.f32 %v8325_v17, %v12479_v40  ;;  %v6154_v15 = vmul.f32 %v8325_v17, %v12474_v0 }
 0xfe3   : > { %v12686_v28 = vpop.eup %8328  ;;  %v6010_v58 = vmul.f32 1.442695, %v5886_v38  ;;  %v6012_v35 = vmul.f32 1.442695, %v5887_v33  ;;  %v5825_v22 = vpop.xlane.xlu0 %5824  ;;  %6097 = vadd.xlane.f32.xlu1 %v6096_v55 }
 0xfe4   : > { %v8331_v46 = vpop.eup %8330  ;;  %v5888_v24 = vsub.f32 %v12422_v7, %v5825_v22  ;;  %v5889_v62 = vsub.f32 %v12424_v49, %v5825_v22  ;;  %v6099_v51 = vadd.f32 %v12686_v28, %v12684_v34  ;;  %v6044_v56 = vpop.xlane.xlu1 %6043 }
 0xfe5   : > { %8344 = vpow2.f32 %v6010_v58  ;;  %v6157_v63 = vmul.f32 %v8331_v46, %v12487_v5  ;;  %v6156_v19 = vmul.f32 %v8331_v46, %v12481_v11 }
 0xfe6   : > { %8346 = vpow2.f32 %v6012_v35  ;;  %v6014_v57 = vmul.f32 1.442695, %v5888_v24  ;;  %v6016_v48 = vmul.f32 1.442695, %v5889_v62  ;;  %6100 = vadd.xlane.f32.xlu0 %v6099_v51 }
 0xfe7   : > { %v12696_v7 = vpop.eup %8332  ;;  %8348 = vrcp.f32 %v6044_v56  ;;  %v6047_v49 = vpop.xlane.xlu0 %6046  ;;  %v6215_v53 = vpack.c.bf16 %v6157_v63, %v6155_v14  ;;  %v6214_v30 = vpack.c.bf16 %v6156_v19, %v6154_v15 }
 0xfe8   : > { %v12698_v45 = vpop.eup %8334  ;;  %8350 = vpow2.f32 %v6014_v57 }
 0xfe9   : > { %v8337_v40 = vpop.eup %8336  ;;  %8352 = vpow2.f32 %v6016_v48  ;;  %6246 = vmatprep.subr.bf16.mxu0 %v6215_v53  ;;  %v6102_v0 = vadd.f32 %v12698_v45, %v12696_v7 }
 0xfea   : > { %v12702_v11 = vpop.eup %8338  ;;  %8354 = vrcp.f32 %v6047_v49  ;;  %6247 = vmatpush1.bf16.xpose.msra.mxu0 %v6214_v30  ;;  %v6159_v27 = vmul.f32 %v8337_v40, %v12501_v12  ;;  %v6158_v20 = vmul.f32 %v8337_v40, %v12496_v47 }
 0xfeb   : > { %v12704_v5 = vpop.eup %8340  ;;  %6103 = vadd.xlane.f32.xlu1 %v6102_v0 }
 0xfec   : > { %v8343_v3 = vpop.eup %8342  ;;  %v6105_v50 = vadd.f32 %v12704_v5, %v12702_v11  ;;  %v6050_v23 = vpop.xlane.xlu1 %6049 }
 0xfed   : > { %v6161_v13 = vmul.f32 %v8343_v3, %v12509_v43  ;;  %v6160_v32 = vmul.f32 %v8343_v3, %v12503_v1  ;;  %8356 = vrcp.f32 %v6050_v23 }
 0xfee   : > { %6106 = vadd.xlane.f32.xlu0 %v6105_v50 }
 0xfef   : > { %v12712_v17 = vpop.eup %8344  ;;  %v6053_v38 = vpop.xlane.xlu0 %6052  ;;  %v6217_v33 = vpack.c.bf16 %v6161_v13, %v6159_v27  ;;  %v6216_v55 = vpack.c.bf16 %v6160_v32, %v6158_v20 }
 0xff0   : > { %v12714_v58 = vpop.eup %8346  ;;  %8358 = vrcp.f32 %v6053_v38  ;;  %v13779_v38 = vld [vmem:[#allocation13_spill] sm:$0xff] }
 0xff1   : > { %v8349_v35 = vpop.eup %8348  ;;  %6248 = vmatprep.subr.bf16.mxu0 %v6217_v33  ;;  %v6108_v12 = vadd.f32 %v12714_v58, %v12712_v17  ;;  %v13780_v33 = vld [vmem:[#allocation77_spill] sm:$0xff] }
 0xff2   : > { %v12718_v43 = vpop.eup %8350  ;;  %6249 = vmatpush1.bf16.xpose.msra.mxu0 %v6216_v55  ;;  %v6163_v24 = vmul.f32 %v8349_v35, %v12523_v10  ;;  %v6162_v51 = vmul.f32 %v8349_v35, %v12518_v59 }
 0xff3   : > { %v12720_v47 = vpop.eup %8352  ;;  %6109 = vadd.xlane.f32.xlu1 %v6108_v12 }
 0xff4   : > { %v8355_v1 = vpop.eup %8354  ;;  %v6111_v22 = vadd.f32 %v12720_v47, %v12718_v43  ;;  %v6056_v46 = vpop.xlane.xlu1 %6055 }
 0xff5   : > { %v6165_v62 = vmul.f32 %v8355_v1, %v12531_v16  ;;  %v6164_v56 = vmul.f32 %v8355_v1, %v12525_v42  ;;  %8360 = vrcp.f32 %v6056_v46 }
 0xff6   : > { %6112 = vadd.xlane.f32.xlu0 %v6111_v22 }
 0xff7   : > { %v6059_v14 = vpop.xlane.xlu0 %6058  ;;  %v6219_v63 = vpack.c.bf16 %v6165_v62, %v6163_v24  ;;  %v6218_v15 = vpack.c.bf16 %v6164_v56, %v6162_v51  ;;  %v8357_v19 = vpop.eup %8356  ;;  %v13782_v24 = vld [vmem:[#allocation78_spill] sm:$0xff]  ;;  %v13783_v51 = vld [vmem:[#allocation39_spill] sm:$0xff] }
 0xff8   : > { %8362 = vrcp.f32 %v6059_v14  ;;  %v6167_v48 = vmul.f32 %v8357_v19, %v12542_v37  ;;  %v6166_v59 = vmul.f32 %v8357_v19, %v12540_v25  ;;  %v13784_v56 = vld [vmem:[#allocation42_spill] sm:$0xff] }
 0xff9   : > { %6250 = vmatprep.subr.bf16.mxu0 %v6219_v63 }
 0xffa   : > { %v8359_v57 = vpop.eup %8358  ;;  %6251 = vmatpush1.bf16.xpose.msra.mxu0 %v6218_v15  ;;  %v13785_v15 = vld [vmem:[#allocation23_spill] sm:$0xff] }
 0xffb   : > { %v6169_v10 = vmul.f32 %v8359_v57, %v12550_v18  ;;  %v6168_v16 = vmul.f32 %v8359_v57, %v12544_v6 }
 0xffc   : > { %v6062_v49 = vpop.xlane.xlu1 %6061 }
 0xffd   : > { %v6221_v42 = vpack.c.bf16 %v6169_v10, %v6167_v48  ;;  %8364 = vrcp.f32 %v6062_v49  ;;  %v6220_v53 = vpack.c.bf16 %v6168_v16, %v6166_v59 }
 0xfff   : > { %v6065_v30 = vpop.xlane.xlu0 %6064  ;;  %6252 = vmatprep.subr.bf16.mxu0 %v6221_v42  ;;  %v8361_v40 = vpop.eup %8360 }
0x1000   : > { %8366 = vrcp.f32 %v6065_v30  ;;  %v6171_v3 = vmul.f32 %v8361_v40, %v12558_v39  ;;  %v6170_v6 = vmul.f32 %v8361_v40, %v12556_v44 }
0x1002   : > { %v8363_v0 = vpop.eup %8362  ;;  %6253 = vmatpush1.bf16.xpose.msra.mxu0 %v6220_v53 }
0x1003   : > { %v6173_v37 = vmul.f32 %v8363_v0, %v12566_v61  ;;  %v6172_v18 = vmul.f32 %v8363_v0, %v12560_v9  ;;  %v13781_v9 = vld [vmem:[#allocation35_spill] sm:$0xff] }
0x1004   : > { %v6068_v50 = vpop.xlane.xlu1 %6067 }
0x1005   : > { %v6223_v23 = vpack.c.bf16 %v6173_v37, %v6171_v3  ;;  %8368 = vrcp.f32 %v6068_v50  ;;  %v6222_v25 = vpack.c.bf16 %v6172_v18, %v6170_v6 }
0x1007   : > { %v6071_v27 = vpop.xlane.xlu0 %6070  ;;  %6254 = vmatprep.subr.bf16.mxu0 %v6223_v23  ;;  %v8365_v13 = vpop.eup %8364  ;;  %v13786_v23 = vld [vmem:[#allocation28_spill] sm:$0xff] }
0x1008   : > { %8370 = vrcp.f32 %v6071_v27  ;;  %v6175_v32 = vmul.f32 %v8365_v13, %v12574_v60  ;;  %v6174_v35 = vmul.f32 %v8365_v13, %v13781_v9 }
0x100a   : > { %v8367_v20 = vpop.eup %8366  ;;  %6255 = vmatpush1.bf16.xpose.msra.mxu0 %v6222_v25  ;;  %v13787_v25 = vld [vmem:[#allocation45_spill] sm:$0xff] }
0x100b   : > { %v6177_v39 = vmul.f32 %v8367_v20, %v13779_v38  ;;  %v6176_v61 = vmul.f32 %v8367_v20, %v13780_v33  ;;  %v13789_v38 = vld [vmem:[#allocation12_spill] sm:$0xff]  ;;  %v13790_v33 = vld [vmem:[#allocation50_spill] sm:$0xff] }
0x100c   : > { %v6074_v55 = vpop.xlane.xlu1 %6073 }
0x100d   : > { %v6225_v12 = vpack.c.bf16 %v6177_v39, %v6175_v32  ;;  %8372 = vrcp.f32 %v6074_v55  ;;  %v6224_v44 = vpack.c.bf16 %v6176_v61, %v6174_v35  ;;  %v13791_v55 = vld [vmem:[#allocation11_spill] sm:$0xff] }
0x100f   : > { %v6077_v1 = vpop.xlane.xlu0 %6076  ;;  %6256 = vmatprep.subr.bf16.mxu0 %v6225_v12  ;;  %v8369_v22 = vpop.eup %8368 }
0x1010   : > { %8374 = vrcp.f32 %v6077_v1  ;;  %v6179_v62 = vmul.f32 %v8369_v22, %v13782_v24  ;;  %v6178_v19 = vmul.f32 %v8369_v22, %v13785_v15 }
0x1012   : > { %v8371_v46 = vpop.eup %8370  ;;  %6257 = vmatpush1.bf16.xpose.msra.mxu0 %v6224_v44 }
0x1013   : > { %v6181_v60 = vmul.f32 %v8371_v46, %v13783_v51  ;;  %v6180_v14 = vmul.f32 %v8371_v46, %v13784_v56 }
0x1014   : > { %v6080_v63 = vpop.xlane.xlu1 %6079 }
0x1015   : > { %8376 = vrcp.f32 %v6080_v63  ;;  %v6227_v57 = vpack.c.bf16 %v6181_v60, %v6179_v62  ;;  %v6226_v10 = vpack.c.bf16 %v6180_v14, %v6178_v19 }
0x1016   : > { %v6083_v48 = vpop.xlane.xlu0 %6082 }
0x1017   : > { %8378 = vrcp.f32 %v6083_v48  ;;  %6258 = vmatprep.subr.bf16.mxu0 %v6227_v57  ;;  %v8373_v16 = vpop.eup %8372 }
0x1018   : > { %v6183_v59 = vmul.f32 %v8373_v16, %v12606_v29  ;;  %v6182_v40 = vmul.f32 %v8373_v16, %v12604_v26 }
0x101a   : > { %v8375_v49 = vpop.eup %8374  ;;  %6259 = vmatpush1.bf16.xpose.msra.mxu0 %v6226_v10 }
0x101b   : > { %v6185_v42 = vmul.f32 %v8375_v49, %v12614_v2  ;;  %v6184_v53 = vmul.f32 %v8375_v49, %v12608_v54  ;;  %v13788_v54 = vld [vmem:[#allocation41_spill] sm:$0xff] }
0x101c   : > { %v6086_v30 = vpop.xlane.xlu1 %6085 }
0x101d   : > { %8380 = vrcp.f32 %v6086_v30  ;;  %v6229_v0 = vpack.c.bf16 %v6185_v42, %v6183_v59  ;;  %v6228_v37 = vpack.c.bf16 %v6184_v53, %v6182_v40 }
0x101e   : > { %v6089_v3 = vpop.xlane.xlu0 %6088 }
0x101f   : > { %v8377_v18 = vpop.eup %8376  ;;  %8382 = vrcp.f32 %v6089_v3  ;;  %6260 = vmatprep.subr.bf16.mxu0 %v6229_v0 }
0x1020   : > { %v6187_v6 = vmul.f32 %v8377_v18, %v12622_v41  ;;  %v6186_v13 = vmul.f32 %v8377_v18, %v13788_v54  ;;  %v13792_v41 = vld [vmem:[#allocation47_spill] sm:$0xff] }
0x1021   : > { %v8379_v50 = vpop.eup %8378 }
0x1022   : > { %6261 = vmatpush1.bf16.xpose.msra.mxu0 %v6228_v37  ;;  %v6189_v29 = vmul.f32 %v8379_v50, %v13786_v23  ;;  %v6188_v2 = vmul.f32 %v8379_v50, %v13787_v25 }
0x1024   : > { %v6231_v27 = vpack.c.bf16 %v6189_v29, %v6187_v6  ;;  %v6230_v26 = vpack.c.bf16 %v6188_v2, %v6186_v13  ;;  %v13796_v2 = vld [vmem:[#allocation79_spill] sm:$0xff]  ;;  %v13799_v13 = vld [vmem:[#allocation10_spill] sm:$0xff] }
0x1026   : > { %6262 = vmatprep.subr.bf16.mxu0 %v6231_v27  ;;  %v13797_v27 = vld [vmem:[#allocation92_spill] sm:$0xff] }
0x1027   : > { %v8381_v20 = vpop.eup %8380  ;;  %v13798_v54 = vpack.c.bf16 %v13796_v2, %v13797_v27 }
0x1028   : > { %v6191_v39 = vmul.f32 %v8381_v20, %v13789_v38  ;;  %v6190_v12 = vmul.f32 %v8381_v20, %v13792_v41  ;;  %v13814_v41 = vld [vmem:[#allocation17_spill] sm:$0xff] }
0x1029   : > { %v8383_v32 = vpop.eup %8382 }
0x102a   : > { %6263 = vmatpush1.bf16.xpose.msra.mxu0 %v6230_v26  ;;  %v6193_v61 = vmul.f32 %v8383_v32, %v13790_v33  ;;  %v6192_v9 = vmul.f32 %v8383_v32, %v13791_v55  ;;  %v13806_v32 = vld [vmem:[#allocation21_spill] sm:$0xff]  ;;  %v13809_v33 = vld [vmem:[#allocation90_spill] sm:$0xff] }
0x102b   : > { %v13811_v55 = vld [vmem:[#allocation22_spill] sm:$0xff] }
0x102c   : > { %v6233_v35 = vpack.c.bf16 %v6193_v61, %v6191_v39  ;;  %v6232_v44 = vpack.c.bf16 %v6192_v9, %v6190_v12  ;;  %v13808_v39 = vld [vmem:[#allocation31_spill] sm:$0xff]  ;;  %v13812_v9 = vld [vmem:[#allocation32_spill] sm:$0xff] }
0x102d   : > { %v13810_v61 = vpack.c.bf16 %v13808_v39, %v13809_v33  ;;  %v13815_v12 = vld [vmem:[#allocation87_spill] sm:$0xff] }
0x102e   : > { %6264 = vmatprep.subr.bf16.mxu0 %v6233_v35  ;;  %v13813_v35 = vpack.c.bf16 %v13811_v55, %v13812_v9  ;;  %v8436_v39 = vld [vmem:[%s8947_s29 + $0x40] sm:$0xff] }
0x102f   : > { %v8438_v9 = vld [vmem:[%s8947_s29] sm:$0xff] }
0x1032   : > { %6265 = vmatpush1.bf16.xpose.msra.mxu0 %v6232_v44  ;;  %v13816_v44 = vpack.c.bf16 %v13814_v41, %v13815_v12  ;;  %v8439_v41 = vld [vmem:[%s8947_s29 + $0x8] sm:$0xff] }
0x1068   : > { %v6092_v1 = vpop.xlane.xlu1 %6091 }
0x1069   : > { %8384 = vrcp.f32 %v6092_v1  ;;  %v13817_v1 = vmov 0  }
0x106b   : > { %v6095_v22 = vpop.xlane.xlu0 %6094 }
0x106c   : > { %8386 = vrcp.f32 %v6095_v22  ;;  %v7622_v22 = vld [vmem:[%s13018_s6] sm:$0xff]  }
0x1070   : > { %v6098_v46 = vpop.xlane.xlu1 %6097 }
0x1071   : > { %8388 = vrcp.f32 %v6098_v46  ;;  %v13818_v46 = vld [vmem:[#allocation74_spill] sm:$0xff] }
0x1073   : > { %v6101_v24 = vpop.xlane.xlu0 %6100  ;;  %v8385_v62 = vpop.eup %8384 }
0x1074   : > { %8390 = vrcp.f32 %v6101_v24  ;;  %v6195_v60 = vmul.f32 %v8385_v62, %v12658_v52  ;;  %v6194_v14 = vmul.f32 %v8385_v62, %v12656_v21  ;;  %v13819_v24 = vld [vmem:[#allocation27_spill] sm:$0xff] }
0x1075   : > { %v13820_v62 = vpack.c.bf16 %v13818_v46, %v13819_v24 }
0x1076   : > { %v8387_v51 = vpop.eup %8386 }
0x1077   : > { %v6197_v56 = vmul.f32 %v8387_v51, %v12666_v8  ;;  %v6196_v63 = vmul.f32 %v8387_v51, %v12664_v4  ;;  %v13821_v51 = vld [vmem:[#allocation34_spill] sm:$0xff] }
0x1078   : > { %v6104_v15 = vpop.xlane.xlu1 %6103 }
0x1079   : > { %v6235_v19 = vpack.c.bf16 %v6197_v56, %v6195_v60  ;;  %v6234_v57 = vpack.c.bf16 %v6196_v63, %v6194_v14  ;;  %8392 = vrcp.f32 %v6104_v15  ;;  %v13822_v60 = vld [vmem:[#allocation33_spill] sm:$0xff]  ;;  %v7623_v14 = vld [vmem:[%s13018_s6 + $0x8] sm:$0xff]  }
0x107a   : > { %v13823_v56 = vpack.c.bf16 %v13821_v51, %v13822_v60  ;;  %v13824_v63 = vld [vmem:[#allocation29_spill] sm:$0xff]  ;;  %v8440_v51 = vld [vmem:[%s8947_s29 + $0x80] sm:$0xff] }
0x107b   : > { %v6107_v48 = vpop.xlane.xlu0 %6106  ;;  %6266 = vmatprep.subr.bf16.mxu0 %v6235_v19  ;;  %v8389_v10 = vpop.eup %8388  ;;  %v13825_v15 = vld [vmem:[#allocation73_spill] sm:$0xff] }
0x107c   : > { %8394 = vrcp.f32 %v6107_v48  ;;  %6267 = vmatpush1.bf16.xpose.msra.mxu0 %v6234_v57  ;;  %v6199_v49 = vmul.f32 %v8389_v10, %v12678_v31  ;;  %v6198_v8 = vmul.f32 %v8389_v10, %v12676_v36  ;;  %v13826_v19 = vpack.c.bf16 %v13824_v63, %v13825_v15  ;;  %v13827_v57 = vld [vmem:[#allocation16_spill] sm:$0xff]  ;;  %v13828_v48 = vld [vmem:[#allocation85_spill] sm:$0xff] }
0x107d   : > { %v13829_v10 = vpack.c.bf16 %v13827_v57, %v13828_v48  ;;  %v8442_v57 = vld [vmem:[%s8947_s29 + $0x10] sm:$0xff] }
0x107e   : > { %v8391_v16 = vpop.eup %8390 }
0x107f   : > { %v6201_v52 = vmul.f32 %v8391_v16, %v12686_v28  ;;  %v6200_v21 = vmul.f32 %v8391_v16, %v12684_v34  ;;  %v13830_v16 = vld [vmem:[#allocation80_spill] sm:$0xff] }
0x1080   : > { %v6110_v59 = vpop.xlane.xlu1 %6109 }
0x1081   : > { %v6237_v4 = vpack.c.bf16 %v6201_v52, %v6199_v49  ;;  %v6236_v42 = vpack.c.bf16 %v6200_v21, %v6198_v8  ;;  %8396 = vrcp.f32 %v6110_v59  ;;  %v13831_v49 = vld [vmem:[#allocation59_spill] sm:$0xff]  ;;  %v13833_v8 = vld [vmem:[#allocation69_spill] sm:$0xff] }
0x1082   : > { %v13832_v52 = vpack.c.bf16 %v13830_v16, %v13831_v49  ;;  %v13834_v21 = vld [vmem:[#allocation57_spill] sm:$0xff] }
0x1083   : > { %v6113_v53 = vpop.xlane.xlu0 %6112  ;;  %6268 = vmatprep.subr.bf16.mxu0 %v6237_v4  ;;  %v8393_v30 = vpop.eup %8392  ;;  %v13835_v59 = vpack.c.bf16 %v13833_v8, %v13834_v21  ;;  %v13836_v4 = vld [vmem:[#allocation55_spill] sm:$0xff]  ;;  %v8443_v8 = vld [vmem:[%s8947_s29 + $0x18] sm:$0xff] }
0x1084   : > { %8398 = vrcp.f32 %v6113_v53  ;;  %6269 = vmatpush1.bf16.xpose.msra.mxu0 %v6236_v42  ;;  %v6203_v0 = vmul.f32 %v8393_v30, %v12698_v45  ;;  %v6202_v28 = vmul.f32 %v8393_v30, %v12696_v7  ;;  %v13793_v7 = vld [vmem:[#allocation91_spill] sm:$0xff]  ;;  %v13837_v42 = vld [vmem:[#allocation89_spill] sm:$0xff]  ;;  %v8536_v30 = vmov 3  }
0x1085   : > { %v13838_v53 = vpack.c.bf16 %v13836_v4, %v13837_v42  ;;  %7611 = vset.pattern.permute.xlu0 %v8536_v30  ;;  %7610 = vset.pattern.permute.xlu1 %v8536_v30  ;;  %v8444_v4 = vld [vmem:[%s8947_s29 + $0x50] sm:$0xff] }
0x1086   : > { %v8395_v40 = vpop.eup %8394 }
0x1087   : > { %v6205_v31 = vmul.f32 %v8395_v40, %v12704_v5  ;;  %v6204_v36 = vmul.f32 %v8395_v40, %v12702_v11  ;;  %v13794_v11 = vld [vmem:[#allocation19_spill] sm:$0xff]  ;;  %v8432_v40 = vld [vmem:[%s13017_s5 + $0x8] sm:$0xff] }
0x1088   : > { %v13795_v25 = vpack.c.bf16 %v13793_v7, %v13794_v11  ;;  %6328 = vperm.xlu0 %7611, %v8432_v40   ;;  %v8446_v40 = vld [vmem:[%s8947_s29 + $0xc8] sm:$0xff] }
0x1089   : > { %v6239_v3 = vpack.c.bf16 %v6205_v31, %v6203_v0  ;;  %v6238_v34 = vpack.c.bf16 %v6204_v36, %v6202_v28  ;;  %v8433_v0 = vld [vmem:[%s13017_s5] sm:$0xff]  ;;  %v8434_v31 = vld [vmem:[%s13017_s5 + $0x10] sm:$0xff]  ;;  %v8435_v28 = vld [vmem:[%s13017_s5 + $0x18] sm:$0xff] }
0x108a   : > { %6324 = vperm.xlu1 %7610, %v8433_v0  }
0x108b   : > { %6270 = vmatprep.subr.bf16.mxu0 %v6239_v3  ;;  %v8397_v37 = vpop.eup %8396 }
0x108c   : > { %6271 = vmatpush1.bf16.xpose.msra.mxu0 %v6238_v34  ;;  %v6207_v50 = vmul.f32 %v8397_v37, %v12714_v58  ;;  %v6206_v23 = vmul.f32 %v8397_v37, %v12712_v17  ;;  %v13800_v58 = vld [vmem:[#allocation20_spill] sm:$0xff] }
0x108d   : > { %v13801_v26 = vpack.c.bf16 %v13799_v13, %v13800_v58  ;;  %v13803_v17 = vld [vmem:[#allocation72_spill] sm:$0xff] }
0x108e   : > { %v8399_v18 = vpop.eup %8398  ;;  %6332 = vperm.xlu1 %7610, %v8434_v31   ;;  %v8447_v31 = vld [vmem:[%s8947_s29 + $0x58] sm:$0xff] }
0x108f   : > { %v6209_v6 = vmul.f32 %v8399_v18, %v12720_v47  ;;  %v6208_v45 = vmul.f32 %v8399_v18, %v12718_v43  ;;  %v13802_v47 = vld [vmem:[#allocation71_spill] sm:$0xff]  ;;  %v13805_v43 = vld [vmem:[#allocation18_spill] sm:$0xff] }
0x1090   : > { %v13804_v20 = vpack.c.bf16 %v13802_v47, %v13803_v17  ;;  %v13807_v38 = vpack.c.bf16 %v13805_v43, %v13806_v32 }
0x1091   : > { %v6241_v29 = vpack.c.bf16 %v6209_v6, %v6207_v50  ;;  %v6240_v5 = vpack.c.bf16 %v6208_v45, %v6206_v23 }
0x1092   : > { %6336 = vperm.xlu1 %7610, %v8435_v28  }
0x1093   : > { %6272 = vmatprep.subr.bf16.mxu0 %v6241_v29 }
0x1094   : > { %6273 = vmatpush1.bf16.xpose.msra.mxu0 %v6240_v5 }
0x1095   : > { %6355 = vmatprep.subr.bf16.mxu0 %v13795_v25 }
0x109b   : > { %6275 = vmatmul.mubr.bf16.vlgmr.msra.gmra.mrb[0].mxu0 %v13798_v54 }
0x109c   : > { %6284 = vmatprep.mubr.bf16.mxu0 %v13801_v26  ;;  %6356 = vmatpush1.bf16.msra.mxu0 %v13804_v20 }
0x109d   : > { %6357 = vmatprep.subr.bf16.mxu0 %v13807_v38 }
0x10a0   : > { %6358 = vmatpush1.bf16.msra.mxu0 %v13810_v61  ;;  %v8437_v61 = vld [vmem:[%s8947_s29 + $0x48] sm:$0xff] }
0x10a1   : > { %6408 = vmatprep.subr.bf16.mxu0 %v13813_v35 }
0x10a3   : > { %6285 = vmatmul.mubr.bf16.gmra.mrb[4].mxu0 %v13816_v44 }
0x10a4   : > { %6387 = vmatprep.mubr.bf16.mxu0 %v13817_v1 }
0x10ab   : > { %6874 = vmatmul.mubr.msk.bf16.vlgmr.msra.gmra.mrb[8].mxu0 %vm1254_vm0, %v7622_v22 }
0x10ac   : > { %6409 = vmatpush1.bf16.msra.mxu0 %v13820_v62  ;;  %6397 = vmatprep.mubr.bf16.mxu0 %v13817_v1 }
0x10ad   : > { %6410 = vmatprep.subr.bf16.mxu0 %v13823_v56  ;;  %v8441_v56 = vld [vmem:[%s8947_s29 + $0x88] sm:$0xff] }
0x10b0   : > { %6411 = vmatpush1.bf16.msra.mxu0 %v13826_v19 }
0x10b1   : > { %6461 = vmatprep.subr.bf16.mxu0 %v13829_v10 }
0x10b3   : > { %6875 = vmatmul.mubr.msk.bf16.gmra.mrb[12].mxu0 %vm1254_vm0, %v7623_v14 }
0x10b4   : > { %6440 = vmatprep.mubr.bf16.mxu0 %v13817_v1 }
0x10bb   : > { %6876 = vmatmul.mubr.msk.bf16.vlgmr.msra.gmra.mrb[16].mxu0 %vm1254_vm0, %v7622_v22 }
0x10bc   : > { %6462 = vmatpush1.bf16.msra.mxu0 %v13832_v52  ;;  %6450 = vmatprep.mubr.bf16.mxu0 %v13817_v1 }
0x10bd   : > { %6463 = vmatprep.subr.bf16.mxu0 %v13835_v59 }
0x10c0   : > { %6464 = vmatpush1.bf16.msra.mxu0 %v13838_v53  ;;  %v8445_v53 = vld [vmem:[%s8947_s29 + $0xc0] sm:$0xff] }
0x10c3   : > { %6877 = vmatmul.mubr.msk.bf16.gmra.mrb[20].mxu0 %vm1254_vm0, %v7623_v14 }
0x10c4   : > { %6493 = vmatprep.mubr.bf16.mxu0 %v13817_v1 }
0x10cb   : > { %6878 = vmatmul.mubr.msk.bf16.vlgmr.msra.gmra.mrb[24].mxu0 %vm1254_vm0, %v7622_v22 }
0x10cc   : > { %6503 = vmatprep.mubr.bf16.mxu0 %v13817_v1 }
0x10d3   : > { %6879 = vmatmul.mubr.msk.bf16.gmra.mrb[28].mxu0 %vm1254_vm0, %v7623_v14 }
0x10d4   : > { %6546 = vmatprep.mubr.bf16.mxu0 %v13817_v1 }
0x1107   : > { %v12851_v26 = vpop.permute.xlu0 %6328 }
0x1109   : > { %v12853_v47 = vpop.permute.xlu1 %6324 }
0x110d   : > { %v12863_v44 = vpop.permute.xlu1 %6332 }
0x1111   : > { %v12878_v19 = vpop.permute.xlu1 %6336 }
0x116e   : > { %v6276_v36 = vpop.f32.mrb[0].mxu0 }
0x116f   : > { %v6278_v3 = vpop.f32.mrb[1].mxu0 }
0x1170   : > { %v6280_v34 = vpop.f32.mrb[2].mxu0 }
0x1171   : > { %v6295_v37 = vpack.c.bf16 %v6280_v34, %v6276_v36  ;;  %v6282_v18 = vpop.f32.mrb[3].mxu0 }
0x1172   : > { %v6296_v50 = vpack.c.bf16 %v6282_v18, %v6278_v3 }
0x1174   : > { %6514 = vmatprep.subr.bf16.mxu0 %v6296_v50  ;;  %v8448_v50 = vld [vmem:[%s8947_s29 + $0x90] sm:$0xff] }
0x1175   : > { %6515 = vmatpush1.bf16.msra.mxu0 %v6295_v37 }
0x1176   : > { %v6286_v6 = vpop.f32.mrb[4].mxu0 }
0x1177   : > { %v6288_v23 = vpop.f32.mrb[5].mxu0 }
0x1178   : > { %v6290_v45 = vpop.f32.mrb[6].mxu0 }
0x1179   : > { %v6297_v29 = vpack.c.bf16 %v6290_v45, %v6286_v6  ;;  %v6292_v5 = vpop.f32.mrb[7].mxu0 }
0x117a   : > { %v6298_v7 = vpack.c.bf16 %v6292_v5, %v6288_v23 }
0x117c   : > { %6516 = vmatprep.subr.bf16.mxu0 %v6298_v7 }
0x117d   : > { %6517 = vmatpush1.bf16.msra.mxu0 %v6297_v29  ;;  %v8449_v29 = vld [vmem:[%s8947_s29 + $0x98] sm:$0xff] }
0x117e   : > { %v6389_v11 = vpop.f32.mrb[8].mxu0 }
0x117f   : > { %v6391_v25 = vpop.f32.mrb[9].mxu0  ;;  %v6390_v43 = vadd.f32 %v6389_v11, %v12853_v47  ;;  %v8450_v11 = vld [vmem:[%s8947_s29 + $0xd0] sm:$0xff] }
0x1180   : > { %6880 = vmatmul.mubr.msk.bf16.vlgmr.msra.gmra.mrb[32].mxu0 %vm1254_vm0, %v7622_v22  ;;  %v6393_v2 = vpop.f32.mrb[10].mxu0  ;;  %v6392_v32 = vadd.f32 %v6391_v25, %v12853_v47 }
0x1181   : > { %6556 = vmatprep.mubr.bf16.mxu0 %v13817_v1  ;;  %v6395_v27 = vpop.f32.mrb[11].mxu0  ;;  %v6394_v17 = vadd.f32 %v6393_v2, %v12851_v26  ;;  %v6567_v35 = vadd.f32 %v8438_v9, %v6390_v43  ;;  %v8451_v2 = vld [vmem:[%s8947_s29 + $0xd8] sm:$0xff]  ;;  %v8452_v43 = vld [vmem:[%s8947_s29 + $0x20] sm:$0xff] }
0x1182   : > { %v6396_v20 = vadd.f32 %v6395_v27, %v12851_v26  ;;  %v6568_v12 = vadd.f32 %v8439_v41, %v6392_v32  ;;  %v8454_v9 = vld [vmem:[%s8947_s29 + $0x60] sm:$0xff]  ;;  %v8455_v41 = vld [vmem:[%s8947_s29 + $0x68] sm:$0xff] }
0x1183   : > { %v6575_v33 = vadd.f32 %v8436_v39, %v6394_v17  ;;  %6599 = vst [vmem:[%s12866_s13] sm:$0xff] %v6567_v35 }
0x1184   : > { %v6576_v55 = vadd.f32 %v8437_v61, %v6396_v20  ;;  %6600 = vst [vmem:[%s12866_s13 + $0x8] sm:$0xff] %v6568_v12 }
0x1185   : > { %6607 = vst [vmem:[%s12866_s13 + $0x40] sm:$0xff] %v6575_v33  ;;  %v8453_v33 = vld [vmem:[%s8947_s29 + $0x28] sm:$0xff] }
0x1186   : > { %v6399_v54 = vpop.f32.mrb[12].mxu0  ;;  %6608 = vst [vmem:[%s12866_s13 + $0x48] sm:$0xff] %v6576_v55 }
0x1187   : > { %v6401_v13 = vpop.f32.mrb[13].mxu0  ;;  %v6400_v1 = vadd.f32 %v6399_v54, %v12863_v44 }
0x1188   : > { %6881 = vmatmul.mubr.msk.bf16.gmra.mrb[36].mxu0 %vm1254_vm0, %v7623_v14  ;;  %v6403_v58 = vpop.f32.mrb[14].mxu0  ;;  %v6402_v22 = vadd.f32 %v6401_v13, %v12863_v44 }
0x1189   : > { %v6405_v38 = vpop.f32.mrb[15].mxu0  ;;  %v6583_v60 = vadd.f32 %v8440_v51, %v6400_v1  ;;  %v6404_v49 = vadd.f32 %v6403_v58, %v12878_v19  ;;  %v8456_v51 = vld [vmem:[%s8947_s29 + $0xa0] sm:$0xff] }
0x118a   : > { %v6584_v14 = vadd.f32 %v8441_v56, %v6402_v22  ;;  %v6406_v52 = vadd.f32 %v6405_v38, %v12878_v19 }
0x118b   : > { %6615 = vst [vmem:[%s12866_s13 + $0x80] sm:$0xff] %v6583_v60  ;;  %v6591_v30 = vadd.f32 %v8445_v53, %v6404_v49 }
0x118c   : > { %6616 = vst [vmem:[%s12866_s13 + $0x88] sm:$0xff] %v6584_v14  ;;  %v6592_v0 = vadd.f32 %v8446_v40, %v6406_v52 }
0x118d   : > { %6623 = vst [vmem:[%s12866_s13 + $0xc0] sm:$0xff] %v6591_v30 }
0x118e   : > { %v6442_v46 = vpop.f32.mrb[16].mxu0  ;;  %6624 = vst [vmem:[%s12866_s13 + $0xc8] sm:$0xff] %v6592_v0  ;;  %v8461_v0 = vld [vmem:[%s8947_s29 + $0x38] sm:$0xff] }
0x118f   : > { %v6443_v24 = vadd.f32 %v6442_v46, %v12853_v47  ;;  %v6444_v62 = vpop.f32.mrb[17].mxu0 }
0x1190   : > { %v6445_v63 = vadd.f32 %v6444_v62, %v12853_v47  ;;  %v6446_v15 = vpop.f32.mrb[18].mxu0 }
0x1191   : > { %v6569_v48 = vadd.f32 %v8442_v57, %v6443_v24  ;;  %v6447_v10 = vadd.f32 %v6446_v15, %v12851_v26  ;;  %v6448_v16 = vpop.f32.mrb[19].mxu0 }
0x1192   : > { %v6570_v21 = vadd.f32 %v8443_v8, %v6445_v63  ;;  %v6449_v59 = vadd.f32 %v6448_v16, %v12851_v26  ;;  %v8457_v63 = vld [vmem:[%s8947_s29 + $0xa8] sm:$0xff] }
0x1193   : > { %6601 = vst [vmem:[%s12866_s13 + $0x10] sm:$0xff] %v6569_v48  ;;  %v6577_v42 = vadd.f32 %v8444_v4, %v6447_v10  ;;  %v8458_v48 = vld [vmem:[%s8947_s29 + $0xe0] sm:$0xff]  ;;  %v8459_v16 = vld [vmem:[%s8947_s29 + $0xe8] sm:$0xff] }
0x1194   : > { %6602 = vst [vmem:[%s12866_s13 + $0x18] sm:$0xff] %v6570_v21  ;;  %v6578_v28 = vadd.f32 %v8447_v31, %v6449_v59 }
0x1195   : > { %6609 = vst [vmem:[%s12866_s13 + $0x50] sm:$0xff] %v6577_v42  ;;  %v8460_v42 = vld [vmem:[%s8947_s29 + $0x30] sm:$0xff] }
0x1196   : > { %6610 = vst [vmem:[%s12866_s13 + $0x58] sm:$0xff] %v6578_v28  ;;  %v6452_v36 = vpop.f32.mrb[20].mxu0 }
0x1197   : > { %v6453_v3 = vadd.f32 %v6452_v36, %v12863_v44  ;;  %v6454_v34 = vpop.f32.mrb[21].mxu0  ;;  %v8462_v36 = vld [vmem:[%s8947_s29 + $0x70] sm:$0xff] }
0x1198   : > { %v6455_v37 = vadd.f32 %v6454_v34, %v12863_v44  ;;  %v6456_v18 = vpop.f32.mrb[22].mxu0 }
0x1199   : > { %v6585_v6 = vadd.f32 %v8448_v50, %v6453_v3  ;;  %v6457_v23 = vadd.f32 %v6456_v18, %v12878_v19  ;;  %v6458_v45 = vpop.f32.mrb[23].mxu0 }
0x119a   : > { %v6586_v5 = vadd.f32 %v8449_v29, %v6455_v37  ;;  %v6459_v7 = vadd.f32 %v6458_v45, %v12878_v19 }
0x119b   : > { %6617 = vst [vmem:[%s12866_s13 + $0x90] sm:$0xff] %v6585_v6  ;;  %v6593_v25 = vadd.f32 %v8450_v11, %v6457_v23  ;;  %v8464_v23 = vld [vmem:[%s8947_s29 + $0xb0] sm:$0xff] }
0x119c   : > { %6618 = vst [vmem:[%s12866_s13 + $0x98] sm:$0xff] %v6586_v5  ;;  %v6594_v27 = vadd.f32 %v8451_v2, %v6459_v7  ;;  %v8465_v7 = vld [vmem:[%s8947_s29 + $0xb8] sm:$0xff] }
0x119d   : > { %6625 = vst [vmem:[%s12866_s13 + $0xd0] sm:$0xff] %v6593_v25 }
0x119e   : > { %6626 = vst [vmem:[%s12866_s13 + $0xd8] sm:$0xff] %v6594_v27  ;;  %v6495_v54 = vpop.f32.mrb[24].mxu0  ;;  %v8467_v27 = vld [vmem:[%s8947_s29 + $0xf8] sm:$0xff] }
0x119f   : > { %v6496_v13 = vadd.f32 %v6495_v54, %v12853_v47  ;;  %v6497_v58 = vpop.f32.mrb[25].mxu0 }
0x11a0   : > { %v6498_v17 = vadd.f32 %v6497_v58, %v12853_v47  ;;  %v6499_v20 = vpop.f32.mrb[26].mxu0 }
0x11a1   : > { %v6571_v32 = vadd.f32 %v8452_v43, %v6496_v13  ;;  %v6500_v38 = vadd.f32 %v6499_v20, %v12851_v26  ;;  %v6501_v39 = vpop.f32.mrb[27].mxu0 }
0x11a2   : > { %v6572_v61 = vadd.f32 %v8453_v33, %v6498_v17  ;;  %v6502_v55 = vadd.f32 %v6501_v39, %v12851_v26 }
0x11a3   : > { %6603 = vst [vmem:[%s12866_s13 + $0x20] sm:$0xff] %v6571_v32  ;;  %v6579_v35 = vadd.f32 %v8454_v9, %v6500_v38 }
0x11a4   : > { %6604 = vst [vmem:[%s12866_s13 + $0x28] sm:$0xff] %v6572_v61  ;;  %v6580_v12 = vadd.f32 %v8455_v41, %v6502_v55 }
0x11a5   : > { %6611 = vst [vmem:[%s12866_s13 + $0x60] sm:$0xff] %v6579_v35 }
0x11a6   : > { %6612 = vst [vmem:[%s12866_s13 + $0x68] sm:$0xff] %v6580_v12  ;;  %v6505_v1 = vpop.f32.mrb[28].mxu0 }
0x11a7   : > { %v6506_v22 = vadd.f32 %v6505_v1, %v12863_v44  ;;  %v6507_v46 = vpop.f32.mrb[29].mxu0 }
0x11a8   : > { %v6508_v24 = vadd.f32 %v6507_v46, %v12863_v44  ;;  %v6509_v62 = vpop.f32.mrb[30].mxu0 }
0x11a9   : > { %v6587_v60 = vadd.f32 %v8456_v51, %v6506_v22  ;;  %v6510_v56 = vadd.f32 %v6509_v62, %v12878_v19  ;;  %v6511_v14 = vpop.f32.mrb[31].mxu0 }
0x11aa   : > { %v6588_v15 = vadd.f32 %v8457_v63, %v6508_v24  ;;  %v6512_v57 = vadd.f32 %v6511_v14, %v12878_v19 }
0x11ab   : > { %6619 = vst [vmem:[%s12866_s13 + $0xa0] sm:$0xff] %v6587_v60  ;;  %v6595_v10 = vadd.f32 %v8458_v48, %v6510_v56 }
0x11ac   : > { %6620 = vst [vmem:[%s12866_s13 + $0xa8] sm:$0xff] %v6588_v15  ;;  %v6596_v49 = vadd.f32 %v8459_v16, %v6512_v57 }
0x11ad   : > { %6627 = vst [vmem:[%s12866_s13 + $0xe0] sm:$0xff] %v6595_v10 }
0x11ae   : > { %6628 = vst [vmem:[%s12866_s13 + $0xe8] sm:$0xff] %v6596_v49 }
0x1253   : > { %v6548_v52 = vpop.f32.mrb[32].mxu0 }
0x1254   : > { %v6549_v8 = vadd.f32 %v6548_v52, %v12853_v47  ;;  %v6550_v21 = vpop.f32.mrb[33].mxu0 }
0x1255   : > { %v6551_v59 = vadd.f32 %v6550_v21, %v12853_v47  ;;  %v6552_v4 = vpop.f32.mrb[34].mxu0  ;;  %v8463_v47 = vld [vmem:[%s8947_s29 + $0x78] sm:$0xff] }
0x1256   : > { %v6573_v53 = vadd.f32 %v8460_v42, %v6549_v8  ;;  %v6553_v30 = vadd.f32 %v6552_v4, %v12851_v26  ;;  %v6554_v40 = vpop.f32.mrb[35].mxu0 }
0x1257   : > { %v6574_v31 = vadd.f32 %v8461_v0, %v6551_v59  ;;  %v6555_v28 = vadd.f32 %v6554_v40, %v12851_v26 }
0x1258   : > { %6605 = vst [vmem:[%s12866_s13 + $0x30] sm:$0xff] %v6573_v53  ;;  %v6581_v3 = vadd.f32 %v8462_v36, %v6553_v30 }
0x1259   : > { %6606 = vst [vmem:[%s12866_s13 + $0x38] sm:$0xff] %v6574_v31  ;;  %v6582_v34 = vadd.f32 %v8463_v47, %v6555_v28 }
0x125a   : > { %6613 = vst [vmem:[%s12866_s13 + $0x70] sm:$0xff] %v6581_v3 }
0x125b   : > { %6614 = vst [vmem:[%s12866_s13 + $0x78] sm:$0xff] %v6582_v34  ;;  %v6558_v37 = vpop.f32.mrb[36].mxu0 }
0x125c   : > { %v6559_v18 = vadd.f32 %v6558_v37, %v12863_v44  ;;  %v6560_v50 = vpop.f32.mrb[37].mxu0 }
0x125d   : > { %v6561_v26 = vadd.f32 %v6560_v50, %v12863_v44  ;;  %v6562_v6 = vpop.f32.mrb[38].mxu0  ;;  %v8466_v44 = vld [vmem:[%s8947_s29 + $0xf0] sm:$0xff] }
0x125e   : > { %v6589_v45 = vadd.f32 %v8464_v23, %v6559_v18  ;;  %v6563_v29 = vadd.f32 %v6562_v6, %v12878_v19  ;;  %v6564_v5 = vpop.f32.mrb[39].mxu0 }
0x125f   : > { %v6590_v11 = vadd.f32 %v8465_v7, %v6561_v26  ;;  %v6565_v25 = vadd.f32 %v6564_v5, %v12878_v19 }
0x1260   : > { %6621 = vst [vmem:[%s12866_s13 + $0xb0] sm:$0xff] %v6589_v45  ;;  %v6597_v2 = vadd.f32 %v8466_v44, %v6563_v29 }
0x1261   : > { %6622 = vst [vmem:[%s12866_s13 + $0xb8] sm:$0xff] %v6590_v11  ;;  %v6598_v54 = vadd.f32 %v8467_v27, %v6565_v25 }
0x1262   : > { %6629 = vst [vmem:[%s12866_s13 + $0xf0] sm:$0xff] %v6597_v2 }
0x1263   : > { %6630 = vst [vmem:[%s12866_s13 + $0xf8] sm:$0xff] %v6598_v54 }
0x1264   : > { %8481 = shalt.err (!%p8478_p5)
}
0x1265   : > { %s8482_s22 = scalar_lea.hbm %s12958_s16, 4096  ;;  %s8486_s8 = scalar_lea.hbm %s13019_s7, 8192 }
0x1266   : > { %p8483_p7 = scmp.ne.s32.totalorder %s12958_s16, %s8482_s22  ;;  %p8487_p12 = scmp.lt.u32.totalorder %s12958_s16, %s13019_s7 }
0x1267   : > { %p8488_p13 = scmp.lt.u32.totalorder %s8486_s8, %s8482_s22  ;;  %p8490_p1 = scmp.lt.u32.totalorder %s8482_s22, %s12958_s16 }
0x1268   : > { %p8484_p10 = pnand %p8483_p7, %p8619_p6 }
0x1269   : > { %p8489_p0 = por %p8488_p13, %p8487_p12 }
0x126a   : > { %p8485_p11 = pneg %p8484_p10 }
0x126b   : > { %p8491_p2 = por %p8490_p1, %p8489_p0 }
0x126d   : > { %p8492_p3 = pnand %p8491_p2, %p8485_p11 }
0x126f   : > { %8495 = shalt.err (!%p8492_p3)
}
0x1270   : > { %s8538_s28 = smov 1024   ;;  %s8539_s15 = smov 2048  }
0x1271   : > { %s8540_s18 = smov 64  }
0x1272   : > { %7557 = dma.vmem_to_hbm [thread:$0]  (%p8619_p6), %s12962_s14, 4096, %s12958_s16, %s12970_s17, %s8538_s28, %s8539_s15, %s8540_s18  }
0x1273 PF: > { %s6660_s19 = sand.u32 1, %s8518_s24   ;;  %p7560_p4 = pnand %p6715_p9, %p8623_p8 }
0x1274   : > { %s6661_s20 = scalar_lea.sflag [#allocation5], %s6660_s19 }
0x1275   : > { %8513 = dma.done.wait (!%p7560_p4), %s6661_s20, 4096  }
0x1276   : > { %8515 = vsyncadd (!%p7560_p4), %s6661_s20, 4294963200  ;;  %p17_p5 = scmp.ge.s32.totalorder %s8604_s30, 4   ;;  %s13839_s24 = smov %s8522_s25 }
0x1277   : > { %s13840_s25 = smov %s8526_s26  ;;  %s13841_s26 = smov %s8617_s10 }
0x1278   : > { %s13842_s27 = smov %s8604_s30  ;;  %19 = sbr.rel (!%p17_p5) target bundleno = 3 (0x3), region = 111 }
0x127f   :  { %6666 = vsyncpa [#allocation5], 1 }
0x1280   :  { %6668 = vsyncpa [#allocation5 + $0x1], 1 }

</bundles_post_ra>
